<compile_context>
chip_gen: v5e
topology: v5e:2x2
jax: 0.10.0
libtpu: 0.0.40
codegen_flags: <defaults>
</compile_context>

<pallas_src>
import functools

import jax
import jax.numpy as jnp
from jax.experimental import pallas as pl
from jax.experimental.pallas import tpu as pltpu


def _dncnn_fused_kernel(x_ref, w_ref, s_ref, b_ref, o_ref, buf_ref, slab_ref,
                        *, H, W, F, L):
    """One grid step = one batch element; all L layers run in-kernel.

    x_ref   : (1, H, W, F)      bf16  input image, channels zero-padded to F
    w_ref   : (L, 10F, F)       bf16  im2col weights (tap slot 9 all-zero)
    s_ref   : (L, 1, F)         f32   folded-BN per-channel scale
    b_ref   : (L, 1, F)         f32   folded-BN per-channel bias
    o_ref   : (1, H, W, F)      f32   network output
    buf_ref : (2, H+2, W+2, F)  bf16  ping-pong padded activations (VMEM)
    slab_ref: (H, W, 10F)       bf16  im2col patch slab (matmul LHS)
    """
    K = 10 * F
    bdt = buf_ref.dtype

    # Per-image init: zero ONLY the 1-pixel halo of both ping-pong halves
    # (this is the conv padding=1); the interiors are always overwritten.
    buf_ref[:, 0:1, :, :] = jnp.zeros((2, 1, W + 2, F), bdt)
    buf_ref[:, H + 1:H + 2, :, :] = jnp.zeros((2, 1, W + 2, F), bdt)
    buf_ref[:, :, 0:1, :] = jnp.zeros((2, H + 2, 1, F), bdt)
    buf_ref[:, :, W + 1:W + 2, :] = jnp.zeros((2, H + 2, 1, F), bdt)
    buf_ref[0:1, 1:H + 1, 1:W + 1, :] = x_ref[...].astype(bdt)

    taps = [(ky, kx) for ky in range(3) for kx in range(3)]

    def conv_bn(l, src_sl):
        """3x3 conv + folded BN reading buf[src_sl]; returns f32 (H*W, F)."""
        # im2col slab: five full 128-lane-wide, lane-aligned stores per layer
        # (tap pairs); no per-tap reshape (slab stays (H, W, 10F)).
        for p in range(4):
            ay, ax = taps[2 * p]
            by, bx = taps[2 * p + 1]
            pa = buf_ref[src_sl, ay:ay + H, ax:ax + W, :][0]
            pb = buf_ref[src_sl, by:by + H, bx:bx + W, :][0]
            slab_ref[:, :, 2 * p * F:(2 * p + 2) * F] = jnp.concatenate(
                [pa, pb], axis=-1)
        p8 = buf_ref[src_sl, 2:2 + H, 2:2 + W, :][0]
        # Duplicate tap 8 into the padded tap slot; its weight rows are zero.
        slab_ref[:, :, 8 * F:10 * F] = jnp.concatenate([p8, p8], axis=-1)

        # Single large-K matmul on the MXU, f32 accumulation.
        acc = jnp.dot(slab_ref[...].reshape(H * W, K), w_ref[l],
                      preferred_element_type=jnp.float32)
        # Folded BatchNorm affine (identity for the first / last layer).
        return acc * s_ref[l] + b_ref[l]

    # Layers 0 .. L-2: conv + BN + ReLU; activation stays VMEM-resident and
    # ping-pongs between the two buffer halves (dynamic index, single body).
    @pl.loop(0, L - 1)
    def _(l):
        src = l % 2
        act = jnp.maximum(conv_bn(l, pl.ds(src, 1)), 0.0)
        buf_ref[pl.ds(1 - src, 1), 1:H + 1, 1:W + 1, :] = (
            act.astype(bdt).reshape(1, H, W, F))

    # Last layer: conv only (no BN, no ReLU), written straight to the output.
    o_ref[...] = conv_bn(L - 1, pl.ds((L - 1) % 2, 1)).reshape(1, H, W, F)


def dncnn_forward(params, x_nchw):
    """Forward pass matching DnCNN.forward.  Input/output NCHW (PyTorch-like)."""
    N, channels, H, W = x_nchw.shape
    L = len(params)
    F = params[0][0].shape[-1]          # features (64)
    K = 10 * F                          # 9 real taps + 1 zero tap (alignment)

    # Pack every layer into a uniform (10F, F) im2col weight (bf16) and
    # (1, F) scale / bias (f32); real in/out channel counts are zero-padded
    # to F (padded channels carry exact zeros) and tap slot 9 is all-zero.
    w_list, s_list, b_list = [], [], []
    for (w, s, b) in params:
        cin, cout = w.shape[2], w.shape[3]
        wp = jnp.zeros((3, 3, F, F), jnp.float32).at[:, :, :cin, :cout].set(w)
        wp = jnp.concatenate([wp.reshape(9 * F, F),
                              jnp.zeros((F, F), jnp.float32)], axis=0)
        w_list.append(wp)
        s_list.append(jnp.ones((1, F), jnp.float32).at[:, :cout].set(s))
        b_list.append(jnp.zeros((1, F), jnp.float32).at[:, :cout].set(b))
    w_all = jnp.stack(w_list).astype(jnp.bfloat16)    # (L, 10F, F)
    s_all = jnp.stack(s_list)                          # (L, 1, F)
    b_all = jnp.stack(b_list)                          # (L, 1, F)

    # NCHW -> NHWC bf16 (operands hit the MXU as bf16 anyway), pad channels.
    x = jnp.transpose(x_nchw, (0, 2, 3, 1)).astype(jnp.bfloat16)
    x = jnp.pad(x, ((0, 0), (0, 0), (0, 0), (0, F - channels)))

    # Explicit VMEM budget: bf16 ping-pong buf + bf16 slab + double-buffered
    # in/out blocks + resident weights; 64-wide minors counted as padded to
    # 128 lanes, plus headroom for sublane padding / compiler scratch.
    lane = lambda c: -(-c // 128) * 128
    vmem_bytes = (
        2 * (H + 2) * (W + 2) * lane(F) * 2            # ping-pong activations
        + H * W * lane(K) * 2                          # im2col slab
        + 2 * H * W * lane(F) * 2                      # input block  (x2 bufs)
        + 2 * H * W * lane(F) * 4                      # output block (x2 bufs)
        + 2 * L * K * lane(F) * 2                      # weights      (x2 bufs)
        + 2 * L * 8 * lane(F) * 4 * 2                  # scale / bias
        + (4 << 20))                                   # headroom
    vmem_bytes = int(min(vmem_bytes, 64 << 20))        # physical cap on v7x

    kern = functools.partial(_dncnn_fused_kernel, H=H, W=W, F=F, L=L)
    out = pl.pallas_call(
        kern,
        out_shape=jax.ShapeDtypeStruct((N, H, W, F), jnp.float32),
        grid=(N,),
        in_specs=[
            pl.BlockSpec((1, H, W, F), lambda n: (n, 0, 0, 0)),   # image
            pl.BlockSpec((L, K, F), lambda n: (0, 0, 0)),         # weights
            pl.BlockSpec((L, 1, F), lambda n: (0, 0, 0)),         # scales
            pl.BlockSpec((L, 1, F), lambda n: (0, 0, 0)),         # biases
        ],
        out_specs=pl.BlockSpec((1, H, W, F), lambda n: (n, 0, 0, 0)),
        scratch_shapes=[
            pltpu.VMEM((2, H + 2, W + 2, F), jnp.bfloat16),   # ping-pong acts
            pltpu.VMEM((H, W, K), jnp.bfloat16),              # im2col slab
        ],
        compiler_params=pltpu.CompilerParams(
            dimension_semantics=("parallel",),
            vmem_limit_bytes=vmem_bytes),
    )(x, w_all, s_all, b_all)

    out = out[..., :channels]                 # drop zero-padded output channels
    return jnp.transpose(out, (0, 3, 1, 2))   # NHWC -> NCHW


def init_dncnn_params(key, channels, num_of_layers=17, features=64, eps=1e-5):
    """Deterministic synthetic parameters mirroring DnCNN.__init__ shapes.

    Returns a list of (w_hwio, scale(1,Cout), bias(1,Cout)) per conv layer.
    BatchNorm uses fresh-module defaults (gamma=1, beta=0, running_mean=0,
    running_var=1) folded into scale/bias with inference semantics.
    """
    params = []
    keys = jax.random.split(key, num_of_layers)

    def conv_w(k, cin, cout):
        # PyTorch weight is (cout, cin, 3, 3); we store HWIO (3, 3, cin, cout).
        return 0.05 * jax.random.normal(k, (3, 3, cin, cout), jnp.float32)

    ident = lambda cout: (jnp.ones((1, cout), jnp.float32),
                          jnp.zeros((1, cout), jnp.float32))

    # Layer 0: Conv(channels -> features) + ReLU, no BN.
    s, b = ident(features)
    params.append((conv_w(keys[0], channels, features), s, b))

    # Middle layers: Conv(features -> features) + BN + ReLU.
    bn_scale = 1.0 / jnp.sqrt(1.0 + eps)   # gamma / sqrt(running_var + eps)
    for i in range(1, num_of_layers - 1):
        s = jnp.full((1, features), bn_scale, jnp.float32)
        b = jnp.zeros((1, features), jnp.float32)
        params.append((conv_w(keys[i], features, features), s, b))

    # Last layer: Conv(features -> channels), no BN, no ReLU.
    s, b = ident(channels)
    params.append((conv_w(keys[-1], features, channels), s, b))
    return params


def dncnn_reference(params, x_nchw):
    """Pure-JAX f32 reference (same folded-BN semantics) for validation."""
    x = jnp.transpose(x_nchw, (0, 2, 3, 1)).astype(jnp.float32)
    dn = ("NHWC", "HWIO", "NHWC")
    n_layers = len(params)
    for i, (w, s, b) in enumerate(params):
        y = jax.lax.conv_general_dilated(x, w, (1, 1), "SAME",
                                         dimension_numbers=dn)
        y = y * s[0] + b[0]
        if i < n_layers - 1:
            y = jnp.maximum(y, 0.0)
        x = y
    return jnp.transpose(x, (0, 3, 1, 2))


if __name__ == "__main__":
    key = jax.random.PRNGKey(0)
    k_params, k_x = jax.random.split(key)

    channels = 4
    num_of_layers = 17
    N, H, W = 2, 16, 16

    params = init_dncnn_params(k_params, channels, num_of_layers)
    x = jax.random.normal(k_x, (N, channels, H, W), jnp.float32)

    out = jax.jit(dncnn_forward)(params, x)
    out = jax.block_until_ready(out)
    assert out.shape == (N, channels, H, W), out.shape
    assert bool(jnp.all(jnp.isfinite(out)))

    # Validate against a pure-JAX f32 reference.  bf16 MXU operands plus bf16
    # inter-layer activations introduce drift over 17 layers, so use a
    # max-norm tolerance consistent with that drift (still far tighter than
    # any indexing / halo bug would produce).
    ref = jax.block_until_ready(dncnn_reference(params, x))
    err = float(jnp.max(jnp.abs(out - ref)))
    ref_scale = float(jnp.max(jnp.abs(ref)))
    assert err <= 0.1 * max(ref_scale, 1e-3), (err, ref_scale)

    print("KERNEL_OK")
</pallas_src>

<mosaic_0001>
module attributes {stable_mosaic.version = 11 : i64} {
  func.func @_dncnn_fused_kernel(%arg0: i32, %arg1: memref<1x16x16x64xbf16, #tpu.memory_space<vmem>>, %arg2: memref<17x640x64xbf16, #tpu.memory_space<vmem>>, %arg3: memref<17x1x64xf32, #tpu.memory_space<vmem>>, %arg4: memref<17x1x64xf32, #tpu.memory_space<vmem>>, %arg5: memref<1x16x16x64xf32, #tpu.memory_space<vmem>>, %arg6: memref<2x18x18x64xbf16, #tpu.memory_space<vmem>>, %arg7: memref<16x16x640xbf16, #tpu.memory_space<vmem>>) attributes {dimension_semantics = [#tpu.dimension_semantics<parallel>], iteration_bounds = array<i64: 2>, scalar_prefetch = 0 : i64, scratch_operands = 2 : i64, tpu.core_type = #tpu.core_type<tc>, window_params = [{transform_indices = @transform_0, window_bounds = array<i64: 1, 16, 16, 64>}, {pipeline_mode = #tpu.pipeline_mode<synchronous>, transform_indices = @transform_1, window_bounds = array<i64: 17, 640, 64>}, {pipeline_mode = #tpu.pipeline_mode<synchronous>, transform_indices = @transform_2, window_bounds = array<i64: 17, 1, 64>}, {pipeline_mode = #tpu.pipeline_mode<synchronous>, transform_indices = @transform_3, window_bounds = array<i64: 17, 1, 64>}, {transform_indices = @transform_4, window_bounds = array<i64: 1, 16, 16, 64>}]} {
    %cst = arith.constant 0.000000e+00 : bf16
    %0 = vector.broadcast %cst : bf16 to vector<2x1x18x64xbf16>
    %c0 = arith.constant 0 : index
    %c0_0 = arith.constant 0 : index
    %c0_1 = arith.constant 0 : index
    %c0_2 = arith.constant 0 : index
    %1 = vector.load %arg6[%c0, %c0_0, %c0_1, %c0_2] : memref<2x18x18x64xbf16, #tpu.memory_space<vmem>>, vector<2x1x18x64xbf16>
    tpu.vector_store %arg6[%c0, %c0_0, %c0_1, %c0_2], %0 {strides = array<i32>} : memref<2x18x18x64xbf16, #tpu.memory_space<vmem>>, vector<2x1x18x64xbf16>,
    %cst_3 = arith.constant 0.000000e+00 : bf16
    %2 = vector.broadcast %cst_3 : bf16 to vector<2x1x18x64xbf16>
    %c0_4 = arith.constant 0 : index
    %c17 = arith.constant 17 : index
    %c0_5 = arith.constant 0 : index
    %c0_6 = arith.constant 0 : index
    %3 = vector.load %arg6[%c0_4, %c17, %c0_5, %c0_6] : memref<2x18x18x64xbf16, #tpu.memory_space<vmem>>, vector<2x1x18x64xbf16>
    tpu.vector_store %arg6[%c0_4, %c17, %c0_5, %c0_6], %2 {strides = array<i32>} : memref<2x18x18x64xbf16, #tpu.memory_space<vmem>>, vector<2x1x18x64xbf16>,
    %cst_7 = arith.constant 0.000000e+00 : bf16
    %4 = vector.broadcast %cst_7 : bf16 to vector<2x18x1x64xbf16>
    %c0_8 = arith.constant 0 : index
    %c0_9 = arith.constant 0 : index
    %c0_10 = arith.constant 0 : index
    %c0_11 = arith.constant 0 : index
    %5 = vector.load %arg6[%c0_8, %c0_9, %c0_10, %c0_11] : memref<2x18x18x64xbf16, #tpu.memory_space<vmem>>, vector<2x18x1x64xbf16>
    tpu.vector_store %arg6[%c0_8, %c0_9, %c0_10, %c0_11], %4 {strides = array<i32>} : memref<2x18x18x64xbf16, #tpu.memory_space<vmem>>, vector<2x18x1x64xbf16>,
    %cst_12 = arith.constant 0.000000e+00 : bf16
    %6 = vector.broadcast %cst_12 : bf16 to vector<2x18x1x64xbf16>
    %c0_13 = arith.constant 0 : index
    %c0_14 = arith.constant 0 : index
    %c17_15 = arith.constant 17 : index
    %c0_16 = arith.constant 0 : index
    %7 = vector.load %arg6[%c0_13, %c0_14, %c17_15, %c0_16] : memref<2x18x18x64xbf16, #tpu.memory_space<vmem>>, vector<2x18x1x64xbf16>
    tpu.vector_store %arg6[%c0_13, %c0_14, %c17_15, %c0_16], %6 {strides = array<i32>} : memref<2x18x18x64xbf16, #tpu.memory_space<vmem>>, vector<2x18x1x64xbf16>,
    %c0_17 = arith.constant 0 : index
    %c0_18 = arith.constant 0 : index
    %c0_19 = arith.constant 0 : index
    %c0_20 = arith.constant 0 : index
    %8 = vector.load %arg1[%c0_17, %c0_18, %c0_19, %c0_20] : memref<1x16x16x64xbf16, #tpu.memory_space<vmem>>, vector<1x16x16x64xbf16>
    %c0_21 = arith.constant 0 : index
    %c1 = arith.constant 1 : index
    %c1_22 = arith.constant 1 : index
    %c0_23 = arith.constant 0 : index
    %9 = vector.load %arg6[%c0_21, %c1, %c1_22, %c0_23] : memref<2x18x18x64xbf16, #tpu.memory_space<vmem>>, vector<1x16x16x64xbf16>
    tpu.vector_store %arg6[%c0_21, %c1, %c1_22, %c0_23], %8 {strides = array<i32>} : memref<2x18x18x64xbf16, #tpu.memory_space<vmem>>, vector<1x16x16x64xbf16>,
    %c0_i32 = arith.constant 0 : i32
    %c16_i32 = arith.constant 16 : i32
    %10 = arith.addi %c0_i32, %c16_i32 : i32
    %c1_i32 = arith.constant 1 : i32
    scf.for %arg8 = %c0_i32 to %10 step %c1_i32  : i32 {
      %c1_i32_87 = arith.constant 1 : i32
      %54 = arith.muli %arg8, %c1_i32_87 : i32
      %c0_i32_88 = arith.constant 0 : i32
      %55 = arith.addi %c0_i32_88, %54 : i32
      %c2_i32 = arith.constant 2 : i32
      %c0_i32_89 = arith.constant 0 : i32
      %56 = arith.cmpi eq, %c2_i32, %c0_i32_89 : i32
      %c1_i32_90 = arith.constant 1 : i32
      %57 = arith.select %56, %c1_i32_90, %c2_i32 : i32
      %58 = arith.remsi %55, %57 : i32
      %c0_i32_91 = arith.constant 0 : i32
      %59 = arith.cmpi ne, %58, %c0_i32_91 : i32
      %c0_i32_92 = arith.constant 0 : i32
      %60 = arith.cmpi slt, %58, %c0_i32_92 : i32
      %c0_i32_93 = arith.constant 0 : i32
      %61 = arith.cmpi slt, %57, %c0_i32_93 : i32
      %62 = arith.xori %60, %61 : i1
      %63 = arith.andi %62, %59 : i1
      %64 = arith.addi %58, %57 : i32
      %65 = arith.select %63, %64, %58 : i32
      %66 = arith.index_cast %65 : i32 to index
      %c0_94 = arith.constant 0 : index
      %c0_95 = arith.constant 0 : index
      %c0_96 = arith.constant 0 : index
      %67 = vector.load %arg6[%66, %c0_94, %c0_95, %c0_96] : memref<2x18x18x64xbf16, #tpu.memory_space<vmem>>, vector<1x16x16x64xbf16>
      %68 = vector.shape_cast %67 : vector<1x16x16x64xbf16> to vector<16x16x64xbf16>
      %69 = arith.index_cast %65 : i32 to index
      %c0_97 = arith.constant 0 : index
      %c1_98 = arith.constant 1 : index
      %c0_99 = arith.constant 0 : index
      %70 = vector.load %arg6[%69, %c0_97, %c1_98, %c0_99] : memref<2x18x18x64xbf16, #tpu.memory_space<vmem>>, vector<1x16x16x64xbf16>
      %71 = vector.shape_cast %70 : vector<1x16x16x64xbf16> to vector<16x16x64xbf16>
      %72 = tpu.concatenate %68, %71 in 2 : vector<16x16x64xbf16>, vector<16x16x64xbf16> -> vector<16x16x128xbf16>
      %c0_100 = arith.constant 0 : index
      %c0_101 = arith.constant 0 : index
      %c0_102 = arith.constant 0 : index
      %73 = vector.load %arg7[%c0_100, %c0_101, %c0_102] : memref<16x16x640xbf16, #tpu.memory_space<vmem>>, vector<16x16x128xbf16>
      tpu.vector_store %arg7[%c0_100, %c0_101, %c0_102], %72 {strides = array<i32>} : memref<16x16x640xbf16, #tpu.memory_space<vmem>>, vector<16x16x128xbf16>,
      %74 = arith.index_cast %65 : i32 to index
      %c0_103 = arith.constant 0 : index
      %c2_104 = arith.constant 2 : index
      %c0_105 = arith.constant 0 : index
      %75 = vector.load %arg6[%74, %c0_103, %c2_104, %c0_105] : memref<2x18x18x64xbf16, #tpu.memory_space<vmem>>, vector<1x16x16x64xbf16>
      %76 = vector.shape_cast %75 : vector<1x16x16x64xbf16> to vector<16x16x64xbf16>
      %77 = arith.index_cast %65 : i32 to index
      %c1_106 = arith.constant 1 : index
      %c0_107 = arith.constant 0 : index
      %c0_108 = arith.constant 0 : index
      %78 = vector.load %arg6[%77, %c1_106, %c0_107, %c0_108] : memref<2x18x18x64xbf16, #tpu.memory_space<vmem>>, vector<1x16x16x64xbf16>
      %79 = vector.shape_cast %78 : vector<1x16x16x64xbf16> to vector<16x16x64xbf16>
      %80 = tpu.concatenate %76, %79 in 2 : vector<16x16x64xbf16>, vector<16x16x64xbf16> -> vector<16x16x128xbf16>
      %c0_109 = arith.constant 0 : index
      %c0_110 = arith.constant 0 : index
      %c128_111 = arith.constant 128 : index
      %81 = vector.load %arg7[%c0_109, %c0_110, %c128_111] : memref<16x16x640xbf16, #tpu.memory_space<vmem>>, vector<16x16x128xbf16>
      tpu.vector_store %arg7[%c0_109, %c0_110, %c128_111], %80 {strides = array<i32>} : memref<16x16x640xbf16, #tpu.memory_space<vmem>>, vector<16x16x128xbf16>,
      %82 = arith.index_cast %65 : i32 to index
      %c1_112 = arith.constant 1 : index
      %c1_113 = arith.constant 1 : index
      %c0_114 = arith.constant 0 : index
      %83 = vector.load %arg6[%82, %c1_112, %c1_113, %c0_114] : memref<2x18x18x64xbf16, #tpu.memory_space<vmem>>, vector<1x16x16x64xbf16>
      %84 = vector.shape_cast %83 : vector<1x16x16x64xbf16> to vector<16x16x64xbf16>
      %85 = arith.index_cast %65 : i32 to index
      %c1_115 = arith.constant 1 : index
      %c2_116 = arith.constant 2 : index
      %c0_117 = arith.constant 0 : index
      %86 = vector.load %arg6[%85, %c1_115, %c2_116, %c0_117] : memref<2x18x18x64xbf16, #tpu.memory_space<vmem>>, vector<1x16x16x64xbf16>
      %87 = vector.shape_cast %86 : vector<1x16x16x64xbf16> to vector<16x16x64xbf16>
      %88 = tpu.concatenate %84, %87 in 2 : vector<16x16x64xbf16>, vector<16x16x64xbf16> -> vector<16x16x128xbf16>
      %c0_118 = arith.constant 0 : index
      %c0_119 = arith.constant 0 : index
      %c256_120 = arith.constant 256 : index
      %89 = vector.load %arg7[%c0_118, %c0_119, %c256_120] : memref<16x16x640xbf16, #tpu.memory_space<vmem>>, vector<16x16x128xbf16>
      tpu.vector_store %arg7[%c0_118, %c0_119, %c256_120], %88 {strides = array<i32>} : memref<16x16x640xbf16, #tpu.memory_space<vmem>>, vector<16x16x128xbf16>,
      %90 = arith.index_cast %65 : i32 to index
      %c2_121 = arith.constant 2 : index
      %c0_122 = arith.constant 0 : index
      %c0_123 = arith.constant 0 : index
      %91 = vector.load %arg6[%90, %c2_121, %c0_122, %c0_123] : memref<2x18x18x64xbf16, #tpu.memory_space<vmem>>, vector<1x16x16x64xbf16>
      %92 = vector.shape_cast %91 : vector<1x16x16x64xbf16> to vector<16x16x64xbf16>
      %93 = arith.index_cast %65 : i32 to index
      %c2_124 = arith.constant 2 : index
      %c1_125 = arith.constant 1 : index
      %c0_126 = arith.constant 0 : index
      %94 = vector.load %arg6[%93, %c2_124, %c1_125, %c0_126] : memref<2x18x18x64xbf16, #tpu.memory_space<vmem>>, vector<1x16x16x64xbf16>
      %95 = vector.shape_cast %94 : vector<1x16x16x64xbf16> to vector<16x16x64xbf16>
      %96 = tpu.concatenate %92, %95 in 2 : vector<16x16x64xbf16>, vector<16x16x64xbf16> -> vector<16x16x128xbf16>
      %c0_127 = arith.constant 0 : index
      %c0_128 = arith.constant 0 : index
      %c384_129 = arith.constant 384 : index
      %97 = vector.load %arg7[%c0_127, %c0_128, %c384_129] : memref<16x16x640xbf16, #tpu.memory_space<vmem>>, vector<16x16x128xbf16>
      tpu.vector_store %arg7[%c0_127, %c0_128, %c384_129], %96 {strides = array<i32>} : memref<16x16x640xbf16, #tpu.memory_space<vmem>>, vector<16x16x128xbf16>,
      %98 = arith.index_cast %65 : i32 to index
      %c2_130 = arith.constant 2 : index
      %c2_131 = arith.constant 2 : index
      %c0_132 = arith.constant 0 : index
      %99 = vector.load %arg6[%98, %c2_130, %c2_131, %c0_132] : memref<2x18x18x64xbf16, #tpu.memory_space<vmem>>, vector<1x16x16x64xbf16>
      %100 = vector.shape_cast %99 : vector<1x16x16x64xbf16> to vector<16x16x64xbf16>
      %101 = tpu.concatenate %100, %100 in 2 : vector<16x16x64xbf16>, vector<16x16x64xbf16> -> vector<16x16x128xbf16>
      %c0_133 = arith.constant 0 : index
      %c0_134 = arith.constant 0 : index
      %c512_135 = arith.constant 512 : index
      %102 = vector.load %arg7[%c0_133, %c0_134, %c512_135] : memref<16x16x640xbf16, #tpu.memory_space<vmem>>, vector<16x16x128xbf16>
      tpu.vector_store %arg7[%c0_133, %c0_134, %c512_135], %101 {strides = array<i32>} : memref<16x16x640xbf16, #tpu.memory_space<vmem>>, vector<16x16x128xbf16>,
      %c0_136 = arith.constant 0 : index
      %c0_137 = arith.constant 0 : index
      %c0_138 = arith.constant 0 : index
      %103 = vector.load %arg7[%c0_136, %c0_137, %c0_138] : memref<16x16x640xbf16, #tpu.memory_space<vmem>>, vector<16x16x640xbf16>
      %104 = vector.shape_cast %103 : vector<16x16x640xbf16> to vector<256x640xbf16>
      %105 = arith.index_cast %55 : i32 to index
      %c0_139 = arith.constant 0 : index
      %c0_140 = arith.constant 0 : index
      %106 = vector.load %arg2[%105, %c0_139, %c0_140] : memref<17x640x64xbf16, #tpu.memory_space<vmem>>, vector<1x640x64xbf16>
      %107 = vector.shape_cast %106 : vector<1x640x64xbf16> to vector<640x64xbf16>
      %cst_141 = arith.constant dense<0.000000e+00> : vector<256x64xf32>
      %108 = tpu.matmul %104, %107, %cst_141 {dimension_numbers = #tpu.dot_dimension_numbers<[1], [0], [0], [1], [0, 0, 1, 1], [], []>} : vector<256x640xbf16>, vector<640x64xbf16>, vector<256x64xf32> -> vector<256x64xf32>
      %109 = arith.index_cast %55 : i32 to index
      %c0_142 = arith.constant 0 : index
      %c0_143 = arith.constant 0 : index
      %110 = vector.load %arg3[%109, %c0_142, %c0_143] : memref<17x1x64xf32, #tpu.memory_space<vmem>>, vector<1x1x64xf32>
      %111 = vector.shape_cast %110 : vector<1x1x64xf32> to vector<1x64xf32>
      %112 = vector.broadcast %111 : vector<1x64xf32> to vector<256x64xf32>
      %113 = arith.mulf %108, %112 : vector<256x64xf32>
      %114 = arith.index_cast %55 : i32 to index
      %c0_144 = arith.constant 0 : index
      %c0_145 = arith.constant 0 : index
      %115 = vector.load %arg4[%114, %c0_144, %c0_145] : memref<17x1x64xf32, #tpu.memory_space<vmem>>, vector<1x1x64xf32>
      %116 = vector.shape_cast %115 : vector<1x1x64xf32> to vector<1x64xf32>
      %117 = vector.broadcast %116 : vector<1x64xf32> to vector<256x64xf32>
      %118 = arith.addf %113, %117 : vector<256x64xf32>
      %cst_146 = arith.constant 0.000000e+00 : f32
      %119 = vector.broadcast %cst_146 : f32 to vector<256x64xf32>
      %120 = arith.maximumf %118, %119 : vector<256x64xf32>
      %121 = arith.truncf %120 : vector<256x64xf32> to vector<256x64xbf16>
      %122 = vector.shape_cast %121 : vector<256x64xbf16> to vector<1x16x16x64xbf16>
      %c1_i32_147 = arith.constant 1 : i32
      %123 = arith.subi %c1_i32_147, %65 : i32
      %124 = arith.index_cast %123 : i32 to index
      %c1_148 = arith.constant 1 : index
      %c1_149 = arith.constant 1 : index
      %c0_150 = arith.constant 0 : index
      %125 = vector.load %arg6[%124, %c1_148, %c1_149, %c0_150] : memref<2x18x18x64xbf16, #tpu.memory_space<vmem>>, vector<1x16x16x64xbf16>
      tpu.vector_store %arg6[%124, %c1_148, %c1_149, %c0_150], %122 {strides = array<i32>} : memref<2x18x18x64xbf16, #tpu.memory_space<vmem>>, vector<1x16x16x64xbf16>,
    }
    %c16_i32_24 = arith.constant 16 : i32
    %c0_25 = arith.constant 0 : index
    %c0_26 = arith.constant 0 : index
    %c0_27 = arith.constant 0 : index
    %c0_28 = arith.constant 0 : index
    %11 = vector.load %arg6[%c0_25, %c0_26, %c0_27, %c0_28] : memref<2x18x18x64xbf16, #tpu.memory_space<vmem>>, vector<1x16x16x64xbf16>
    %12 = vector.shape_cast %11 : vector<1x16x16x64xbf16> to vector<16x16x64xbf16>
    %c0_29 = arith.constant 0 : index
    %c0_30 = arith.constant 0 : index
    %c1_31 = arith.constant 1 : index
    %c0_32 = arith.constant 0 : index
    %13 = vector.load %arg6[%c0_29, %c0_30, %c1_31, %c0_32] : memref<2x18x18x64xbf16, #tpu.memory_space<vmem>>, vector<1x16x16x64xbf16>
    %14 = vector.shape_cast %13 : vector<1x16x16x64xbf16> to vector<16x16x64xbf16>
    %15 = tpu.concatenate %12, %14 in 2 : vector<16x16x64xbf16>, vector<16x16x64xbf16> -> vector<16x16x128xbf16>
    %c0_33 = arith.constant 0 : index
    %c0_34 = arith.constant 0 : index
    %c0_35 = arith.constant 0 : index
    %16 = vector.load %arg7[%c0_33, %c0_34, %c0_35] : memref<16x16x640xbf16, #tpu.memory_space<vmem>>, vector<16x16x128xbf16>
    tpu.vector_store %arg7[%c0_33, %c0_34, %c0_35], %15 {strides = array<i32>} : memref<16x16x640xbf16, #tpu.memory_space<vmem>>, vector<16x16x128xbf16>,
    %c0_36 = arith.constant 0 : index
    %c0_37 = arith.constant 0 : index
    %c2 = arith.constant 2 : index
    %c0_38 = arith.constant 0 : index
    %17 = vector.load %arg6[%c0_36, %c0_37, %c2, %c0_38] : memref<2x18x18x64xbf16, #tpu.memory_space<vmem>>, vector<1x16x16x64xbf16>
    %18 = vector.shape_cast %17 : vector<1x16x16x64xbf16> to vector<16x16x64xbf16>
    %c0_39 = arith.constant 0 : index
    %c1_40 = arith.constant 1 : index
    %c0_41 = arith.constant 0 : index
    %c0_42 = arith.constant 0 : index
    %19 = vector.load %arg6[%c0_39, %c1_40, %c0_41, %c0_42] : memref<2x18x18x64xbf16, #tpu.memory_space<vmem>>, vector<1x16x16x64xbf16>
    %20 = vector.shape_cast %19 : vector<1x16x16x64xbf16> to vector<16x16x64xbf16>
    %21 = tpu.concatenate %18, %20 in 2 : vector<16x16x64xbf16>, vector<16x16x64xbf16> -> vector<16x16x128xbf16>
    %c0_43 = arith.constant 0 : index
    %c0_44 = arith.constant 0 : index
    %c128 = arith.constant 128 : index
    %22 = vector.load %arg7[%c0_43, %c0_44, %c128] : memref<16x16x640xbf16, #tpu.memory_space<vmem>>, vector<16x16x128xbf16>
    tpu.vector_store %arg7[%c0_43, %c0_44, %c128], %21 {strides = array<i32>} : memref<16x16x640xbf16, #tpu.memory_space<vmem>>, vector<16x16x128xbf16>,
    %c0_45 = arith.constant 0 : index
    %c1_46 = arith.constant 1 : index
    %c1_47 = arith.constant 1 : index
    %c0_48 = arith.constant 0 : index
    %23 = vector.load %arg6[%c0_45, %c1_46, %c1_47, %c0_48] : memref<2x18x18x64xbf16, #tpu.memory_space<vmem>>, vector<1x16x16x64xbf16>
    %24 = vector.shape_cast %23 : vector<1x16x16x64xbf16> to vector<16x16x64xbf16>
    %c0_49 = arith.constant 0 : index
    %c1_50 = arith.constant 1 : index
    %c2_51 = arith.constant 2 : index
    %c0_52 = arith.constant 0 : index
    %25 = vector.load %arg6[%c0_49, %c1_50, %c2_51, %c0_52] : memref<2x18x18x64xbf16, #tpu.memory_space<vmem>>, vector<1x16x16x64xbf16>
    %26 = vector.shape_cast %25 : vector<1x16x16x64xbf16> to vector<16x16x64xbf16>
    %27 = tpu.concatenate %24, %26 in 2 : vector<16x16x64xbf16>, vector<16x16x64xbf16> -> vector<16x16x128xbf16>
    %c0_53 = arith.constant 0 : index
    %c0_54 = arith.constant 0 : index
    %c256 = arith.constant 256 : index
    %28 = vector.load %arg7[%c0_53, %c0_54, %c256] : memref<16x16x640xbf16, #tpu.memory_space<vmem>>, vector<16x16x128xbf16>
    tpu.vector_store %arg7[%c0_53, %c0_54, %c256], %27 {strides = array<i32>} : memref<16x16x640xbf16, #tpu.memory_space<vmem>>, vector<16x16x128xbf16>,
    %c0_55 = arith.constant 0 : index
    %c2_56 = arith.constant 2 : index
    %c0_57 = arith.constant 0 : index
    %c0_58 = arith.constant 0 : index
    %29 = vector.load %arg6[%c0_55, %c2_56, %c0_57, %c0_58] : memref<2x18x18x64xbf16, #tpu.memory_space<vmem>>, vector<1x16x16x64xbf16>
    %30 = vector.shape_cast %29 : vector<1x16x16x64xbf16> to vector<16x16x64xbf16>
    %c0_59 = arith.constant 0 : index
    %c2_60 = arith.constant 2 : index
    %c1_61 = arith.constant 1 : index
    %c0_62 = arith.constant 0 : index
    %31 = vector.load %arg6[%c0_59, %c2_60, %c1_61, %c0_62] : memref<2x18x18x64xbf16, #tpu.memory_space<vmem>>, vector<1x16x16x64xbf16>
    %32 = vector.shape_cast %31 : vector<1x16x16x64xbf16> to vector<16x16x64xbf16>
    %33 = tpu.concatenate %30, %32 in 2 : vector<16x16x64xbf16>, vector<16x16x64xbf16> -> vector<16x16x128xbf16>
    %c0_63 = arith.constant 0 : index
    %c0_64 = arith.constant 0 : index
    %c384 = arith.constant 384 : index
    %34 = vector.load %arg7[%c0_63, %c0_64, %c384] : memref<16x16x640xbf16, #tpu.memory_space<vmem>>, vector<16x16x128xbf16>
    tpu.vector_store %arg7[%c0_63, %c0_64, %c384], %33 {strides = array<i32>} : memref<16x16x640xbf16, #tpu.memory_space<vmem>>, vector<16x16x128xbf16>,
    %c0_65 = arith.constant 0 : index
    %c2_66 = arith.constant 2 : index
    %c2_67 = arith.constant 2 : index
    %c0_68 = arith.constant 0 : index
    %35 = vector.load %arg6[%c0_65, %c2_66, %c2_67, %c0_68] : memref<2x18x18x64xbf16, #tpu.memory_space<vmem>>, vector<1x16x16x64xbf16>
    %36 = vector.shape_cast %35 : vector<1x16x16x64xbf16> to vector<16x16x64xbf16>
    %37 = tpu.concatenate %36, %36 in 2 : vector<16x16x64xbf16>, vector<16x16x64xbf16> -> vector<16x16x128xbf16>
    %c0_69 = arith.constant 0 : index
    %c0_70 = arith.constant 0 : index
    %c512 = arith.constant 512 : index
    %38 = vector.load %arg7[%c0_69, %c0_70, %c512] : memref<16x16x640xbf16, #tpu.memory_space<vmem>>, vector<16x16x128xbf16>
    tpu.vector_store %arg7[%c0_69, %c0_70, %c512], %37 {strides = array<i32>} : memref<16x16x640xbf16, #tpu.memory_space<vmem>>, vector<16x16x128xbf16>,
    %c0_71 = arith.constant 0 : index
    %c0_72 = arith.constant 0 : index
    %c0_73 = arith.constant 0 : index
    %39 = vector.load %arg7[%c0_71, %c0_72, %c0_73] : memref<16x16x640xbf16, #tpu.memory_space<vmem>>, vector<16x16x640xbf16>
    %40 = vector.shape_cast %39 : vector<16x16x640xbf16> to vector<256x640xbf16>
    %c16 = arith.constant 16 : index
    %c0_74 = arith.constant 0 : index
    %c0_75 = arith.constant 0 : index
    %41 = vector.load %arg2[%c16, %c0_74, %c0_75] : memref<17x640x64xbf16, #tpu.memory_space<vmem>>, vector<1x640x64xbf16>
    %42 = vector.shape_cast %41 : vector<1x640x64xbf16> to vector<640x64xbf16>
    %cst_76 = arith.constant dense<0.000000e+00> : vector<256x64xf32>
    %43 = tpu.matmul %40, %42, %cst_76 {dimension_numbers = #tpu.dot_dimension_numbers<[1], [0], [0], [1], [0, 0, 1, 1], [], []>} : vector<256x640xbf16>, vector<640x64xbf16>, vector<256x64xf32> -> vector<256x64xf32>
    %c16_77 = arith.constant 16 : index
    %c0_78 = arith.constant 0 : index
    %c0_79 = arith.constant 0 : index
    %44 = vector.load %arg3[%c16_77, %c0_78, %c0_79] : memref<17x1x64xf32, #tpu.memory_space<vmem>>, vector<1x1x64xf32>
    %45 = vector.shape_cast %44 : vector<1x1x64xf32> to vector<1x64xf32>
    %46 = vector.broadcast %45 : vector<1x64xf32> to vector<256x64xf32>
    %47 = arith.mulf %43, %46 : vector<256x64xf32>
    %c16_80 = arith.constant 16 : index
    %c0_81 = arith.constant 0 : index
    %c0_82 = arith.constant 0 : index
    %48 = vector.load %arg4[%c16_80, %c0_81, %c0_82] : memref<17x1x64xf32, #tpu.memory_space<vmem>>, vector<1x1x64xf32>
    %49 = vector.shape_cast %48 : vector<1x1x64xf32> to vector<1x64xf32>
    %50 = vector.broadcast %49 : vector<1x64xf32> to vector<256x64xf32>
    %51 = arith.addf %47, %50 : vector<256x64xf32>
    %52 = vector.shape_cast %51 : vector<256x64xf32> to vector<1x16x16x64xf32>
    %c0_83 = arith.constant 0 : index
    %c0_84 = arith.constant 0 : index
    %c0_85 = arith.constant 0 : index
    %c0_86 = arith.constant 0 : index
    %53 = vector.load %arg5[%c0_83, %c0_84, %c0_85, %c0_86] : memref<1x16x16x64xf32, #tpu.memory_space<vmem>>, vector<1x16x16x64xf32>
    tpu.vector_store %arg5[%c0_83, %c0_84, %c0_85, %c0_86], %52 {strides = array<i32>} : memref<1x16x16x64xf32, #tpu.memory_space<vmem>>, vector<1x16x16x64xf32>,
    return
  }
  func.func @transform_0(%arg0: i32) -> (i32, i32, i32, i32) {
    %c0_i32 = arith.constant 0 : i32
    %c0_i32_0 = arith.constant 0 : i32
    %c0_i32_1 = arith.constant 0 : i32
    %c0_i32_2 = arith.constant 0 : i32
    return %arg0, %c0_i32, %c0_i32_0, %c0_i32_1 : i32, i32, i32, i32
  }
  func.func @transform_1(%arg0: i32) -> (i32, i32, i32) {
    %c0_i32 = arith.constant 0 : i32
    %c0_i32_0 = arith.constant 0 : i32
    %c0_i32_1 = arith.constant 0 : i32
    %c0_i32_2 = arith.constant 0 : i32
    return %c0_i32, %c0_i32_0, %c0_i32_1 : i32, i32, i32
  }
  func.func @transform_2(%arg0: i32) -> (i32, i32, i32) {
    %c0_i32 = arith.constant 0 : i32
    %c0_i32_0 = arith.constant 0 : i32
    %c0_i32_1 = arith.constant 0 : i32
    %c0_i32_2 = arith.constant 0 : i32
    return %c0_i32, %c0_i32_0, %c0_i32_1 : i32, i32, i32
  }
  func.func @transform_3(%arg0: i32) -> (i32, i32, i32) {
    %c0_i32 = arith.constant 0 : i32
    %c0_i32_0 = arith.constant 0 : i32
    %c0_i32_1 = arith.constant 0 : i32
    %c0_i32_2 = arith.constant 0 : i32
    return %c0_i32, %c0_i32_0, %c0_i32_1 : i32, i32, i32
  }
  func.func @transform_4(%arg0: i32) -> (i32, i32, i32, i32) {
    %c0_i32 = arith.constant 0 : i32
    %c0_i32_0 = arith.constant 0 : i32
    %c0_i32_1 = arith.constant 0 : i32
    %c0_i32_2 = arith.constant 0 : i32
    return %arg0, %c0_i32, %c0_i32_0, %c0_i32_1 : i32, i32, i32, i32
  }
}

</mosaic_0001>

<bundles_post_ra>
// kernel: dncnn_forward.1
= control target key start
LH: loop header
LB: loop body
LE: loop exit
PB: predicated region body
PF: predicated region fallthrough
CT: control target
= control target key end

     0   :  { %s14397_s15 = smov 0   ;;  %s18385_s0 = inlined_call_operand.vmem [shape: bf16[2,16,16,64], index: 0, kind: input, shape index: {}]   ;;  %s18386_s1 = inlined_call_operand.vmem [shape: bf16[17,640,64], index: 1, kind: input, shape index: {}]   ;;  %s18387_s2 = inlined_call_operand.vmem [shape: f32[17,1,64], index: 2, kind: input, shape index: {}]   ;;  %s18388_s3 = inlined_call_operand.vmem [shape: f32[17,1,64], index: 3, kind: input, shape index: {}]   ;;  %s18389_s4 = inlined_call_operand.vmem [shape: f32[2,16,16,64], index: 4, kind: output, shape index: {}]  }
   0x1 LB: > { %s11657_s16 = sadd.s32 4294967295, %s14363_s15   ;;  %p11661_p0 = scmp.ge.s32.totalorder %s14363_s15, 1  ;;  %s14363_s15 = sphi %s14397_s15, %s14_s15  }
   0x2   : > { %p162_p1 = scmp.lt.s32.totalorder %s14363_s15, 3 }
   0x4   : > { %p163_p2 = pnand %p11661_p0, %p162_p1 }
   0x6   : > { %166 = sbr.rel (%p163_p2) target bundleno = 1533 (0x5fd), region = 36 }
   0xb   : > { %vm199_vm0 = vcmask 519168   ;;  %p188_p3 = scmp.lt.s32.totalorder %s11657_s16, 1  ;;  %v14369_v0 = vmov 0   ;;  %vm202_vm1 = vcmask 516096   ;;  %vm215_vm2 = vsmask.f32 256 }
   0xc   : > { %200 = vst.msk [vmem:[#allocation2] sm:$0xf] %vm199_vm0, %v14369_v0  ;;  %v220_v1 = vld [vmem:[#allocation2 + $0xc] sm:$0x1]  ;;  %vm14422_vm3 = vmand %vm202_vm1, %vm215_vm2  ;;  %v18433_v2 = vmov 0  ;;  %s14743_s25 = smov 0  }
   0xd   : > { %201 = vst.msk [vmem:[#allocation2 + $0x4] sm:$0xf] %vm199_vm0, %v14369_v0  ;;  %s18634_s16 = smov (!%p188_p3, %s11657_s16), 1  ;;  %v18434_v2 = vsel %vm14422_vm3, 4294967295, %v18433_v2  ;;  %v223_v3 = vld [vmem:[#allocation2 + $0x18] sm:$0x1] }
   0xe   : > { %204 = vst.msk [vmem:[#allocation2 + $0xd8] sm:$0xf] %vm199_vm0, %v14369_v0  ;;  %s13695_s17 = sshll.u32 %s18634_s16, 8  ;;  %v226_v4 = vld [vmem:[#allocation2 + $0x24] sm:$0x1]  ;;  %v221_v7 = vsel %vm14422_vm3, 0, %v220_v1 }
   0xf   : > { %205 = vst.msk [vmem:[#allocation2 + $0xdc] sm:$0xf] %vm199_vm0, %v14369_v0  ;;  %s14417_s20 = scalar_lea.vmem %s18389_s4, %s13695_s17  ;;  %v229_v5 = vld [vmem:[#allocation2 + $0x30] sm:$0x1]  ;;  %v232_v6 = vld [vmem:[#allocation2 + $0x3c] sm:$0x1] }
  0x10   : > { %208 = vst.msk [vmem:[#allocation2 + $0xcc] sm:$0xf] %vm199_vm0, %v14369_v0  ;;  %v224_v8 = vsel %vm14422_vm3, 0, %v223_v3  ;;  %v227_v9 = vsel %vm14422_vm3, 0, %v226_v4  ;;  %v230_v10 = vsel %vm14422_vm3, 0, %v229_v5  ;;  %v233_v11 = vsel %vm14422_vm3, 0, %v232_v6 }
  0x11   : > { %209 = vst.msk [vmem:[#allocation2 + $0xd0] sm:$0xf] %vm199_vm0, %v14369_v0  ;;  %v235_v12 = vld [vmem:[#allocation2 + $0x48] sm:$0x1]  ;;  %v238_v13 = vld [vmem:[#allocation2 + $0x54] sm:$0x1] }
  0x12   : > { %211 = vst.msk [vmem:[#allocation2 + $0x1a4] sm:$0xf] %vm199_vm0, %v14369_v0  ;;  %v241_v14 = vld [vmem:[#allocation2 + $0x60] sm:$0x1]  ;;  %v244_v15 = vld [vmem:[#allocation2 + $0x6c] sm:$0x1] }
  0x13   : > { %18435 = vst [vmem:[#allocation4_spill] sm:$0xff] %v18434_v2  ;;  %v247_v16 = vld [vmem:[#allocation2 + $0x78] sm:$0x1]  ;;  %v250_v17 = vld [vmem:[#allocation2 + $0x84] sm:$0x1]  ;;  %v236_v18 = vsel %vm14422_vm3, 0, %v235_v12 }
  0x14   : > { %212 = vst.msk [vmem:[#allocation2 + $0x1a8] sm:$0xf] %vm199_vm0, %v14369_v0  ;;  %vm325_vm4 = vsmask.f32 7938  ;;  %v239_v19 = vsel %vm14422_vm3, 0, %v238_v13  ;;  %v242_v20 = vsel %vm14422_vm3, 0, %v241_v14 }
  0x15   : > { %203 = vst.msk [vmem:[#allocation2 + $0x8] sm:$0x1] %vm202_vm1, %v14369_v0  ;;  %v245_v21 = vsel %vm14422_vm3, 0, %v244_v15  ;;  %v248_v22 = vsel %vm14422_vm3, 0, %v247_v16  ;;  %v251_v23 = vsel %vm14422_vm3, 0, %v250_v17  ;;  %vm14455_vm5 = vmand %vm202_vm1, %vm325_vm4  ;;  %s13694_s21 = sshll.u32 %s18634_s16, 7 }
  0x16   : > { %206 = vst.msk [vmem:[#allocation2 + $0xe0] sm:$0x1] %vm202_vm1, %v14369_v0  ;;  %v253_v24 = vld [vmem:[#allocation2 + $0x90] sm:$0x1]  ;;  %v256_v25 = vld [vmem:[#allocation2 + $0x9c] sm:$0x1]  ;;  %s14565_s24 = scalar_lea.vmem %s18385_s0, %s13694_s21  ;;  %vm14590_vm7 = vmand %vm199_vm0, %vm325_vm4 }
  0x17   : > { %210 = vst.msk [vmem:[#allocation2 + $0xd4] sm:$0x1] %vm202_vm1, %v14369_v0  ;;  %v259_v26 = vld [vmem:[#allocation2 + $0xa8] sm:$0x1]  ;;  %v262_v27 = vld [vmem:[#allocation2 + $0xb4] sm:$0x1] }
  0x18   : > { %213 = vst.msk [vmem:[#allocation2 + $0x1ac] sm:$0x1] %vm202_vm1, %v14369_v0  ;;  %v265_v29 = vld [vmem:[#allocation2 + $0xc0] sm:$0x1]  ;;  %v330_v30 = vld [vmem:[#allocation2 + $0x14] sm:$0x1] }
  0x19   : > { %222 = vst [vmem:[#allocation2 + $0xc] sm:$0x1] %v221_v7  ;;  %v254_v31 = vsel %vm14422_vm3, 0, %v253_v24  ;;  %v257_v32 = vsel %vm14422_vm3, 0, %v256_v25  ;;  %v260_v33 = vsel %vm14422_vm3, 0, %v259_v26  ;;  %v263_v34 = vsel %vm14422_vm3, 0, %v262_v27 }
  0x1a   : > { %225 = vst [vmem:[#allocation2 + $0x18] sm:$0x1] %v224_v8  ;;  %v266_v35 = vsel %vm14422_vm3, 0, %v265_v29  ;;  %v331_v36 = vsel %vm14455_vm5, 0, %v330_v30  ;;  %v333_v37 = vld [vmem:[#allocation2 + $0x20] sm:$0x1] }
  0x1b   : > { %228 = vst [vmem:[#allocation2 + $0x24] sm:$0x1] %v227_v9  ;;  %v336_v38 = vld [vmem:[#allocation2 + $0x2c] sm:$0x1]  ;;  %v339_v39 = vld [vmem:[#allocation2 + $0x38] sm:$0x1] }
  0x1c   : > { %231 = vst [vmem:[#allocation2 + $0x30] sm:$0x1] %v230_v10  ;;  %v342_v40 = vld [vmem:[#allocation2 + $0x44] sm:$0x1]  ;;  %v345_v41 = vld [vmem:[#allocation2 + $0x50] sm:$0x1] }
  0x1d   : > { %234 = vst [vmem:[#allocation2 + $0x3c] sm:$0x1] %v233_v11  ;;  %v348_v42 = vld [vmem:[#allocation2 + $0x5c] sm:$0x1]  ;;  %v334_v43 = vsel %vm14455_vm5, 0, %v333_v37  ;;  %v337_v44 = vsel %vm14455_vm5, 0, %v336_v38 }
  0x1e   : > { %237 = vst [vmem:[#allocation2 + $0x48] sm:$0x1] %v236_v18  ;;  %v340_v45 = vsel %vm14455_vm5, 0, %v339_v39  ;;  %v343_v46 = vsel %vm14455_vm5, 0, %v342_v40  ;;  %v346_v47 = vsel %vm14455_vm5, 0, %v345_v41  ;;  %v349_v48 = vsel %vm14455_vm5, 0, %v348_v42 }
  0x1f   : > { %240 = vst [vmem:[#allocation2 + $0x54] sm:$0x1] %v239_v19  ;;  %v351_v49 = vld [vmem:[#allocation2 + $0x68] sm:$0x1]  ;;  %v354_v50 = vld [vmem:[#allocation2 + $0x74] sm:$0x1] }
  0x20   : > { %243 = vst [vmem:[#allocation2 + $0x60] sm:$0x1] %v242_v20  ;;  %v357_v51 = vld [vmem:[#allocation2 + $0x80] sm:$0x1]  ;;  %v360_v52 = vld [vmem:[#allocation2 + $0x8c] sm:$0x1] }
  0x21   : > { %246 = vst [vmem:[#allocation2 + $0x6c] sm:$0x1] %v245_v21  ;;  %v363_v53 = vld [vmem:[#allocation2 + $0x98] sm:$0x1]  ;;  %v366_v54 = vld [vmem:[#allocation2 + $0xa4] sm:$0x1] }
  0x22   : > { %249 = vst [vmem:[#allocation2 + $0x78] sm:$0x1] %v248_v22  ;;  %v352_v55 = vsel %vm14455_vm5, 0, %v351_v49  ;;  %v355_v56 = vsel %vm14455_vm5, 0, %v354_v50  ;;  %v358_v57 = vsel %vm14455_vm5, 0, %v357_v51  ;;  %v361_v58 = vsel %vm14455_vm5, 0, %v360_v52 }
  0x23   : > { %252 = vst [vmem:[#allocation2 + $0x84] sm:$0x1] %v251_v23  ;;  %v364_v59 = vsel %vm14455_vm5, 0, %v363_v53  ;;  %v367_v60 = vsel %vm14455_vm5, 0, %v366_v54  ;;  %v369_v61 = vld [vmem:[#allocation2 + $0xb0] sm:$0x1] }
  0x24   : > { %255 = vst [vmem:[#allocation2 + $0x90] sm:$0x1] %v254_v31  ;;  %v372_v62 = vld [vmem:[#allocation2 + $0xbc] sm:$0x1]  ;;  %v375_v63 = vld [vmem:[#allocation2 + $0xc8] sm:$0x1] }
  0x25   : > { %258 = vst [vmem:[#allocation2 + $0x9c] sm:$0x1] %v257_v32  ;;  %v217_v0 = vld [vmem:[#allocation2] sm:$0x1]  ;;  %v268_v1 = vld [vmem:[#allocation2 + $0xcc] sm:$0x1] }
  0x26   : > { %261 = vst [vmem:[#allocation2 + $0xa8] sm:$0x1] %v260_v33  ;;  %v271_v3 = vld [vmem:[#allocation2 + $0xd8] sm:$0x1]  ;;  %v370_v4 = vsel %vm14455_vm5, 0, %v369_v61  ;;  %v373_v5 = vsel %vm14455_vm5, 0, %v372_v62 }
  0x27   : > { %264 = vst [vmem:[#allocation2 + $0xb4] sm:$0x1] %v263_v34  ;;  %v376_v6 = vsel %vm14455_vm5, 0, %v375_v63  ;;  %v218_v7 = vsel %vm14422_vm3, 0, %v217_v0  ;;  %v269_v8 = vsel %vm14422_vm3, 0, %v268_v1  ;;  %v272_v9 = vsel %vm14422_vm3, 0, %v271_v3 }
  0x28   : > { %267 = vst [vmem:[#allocation2 + $0xc0] sm:$0x1] %v266_v35  ;;  %v274_v10 = vld [vmem:[#allocation2 + $0xe4] sm:$0x1]  ;;  %v277_v11 = vld [vmem:[#allocation2 + $0xf0] sm:$0x1] }
  0x29   : > { %332 = vst [vmem:[#allocation2 + $0x14] sm:$0x1] %v331_v36  ;;  %v280_v12 = vld [vmem:[#allocation2 + $0xfc] sm:$0x1]  ;;  %v283_v13 = vld [vmem:[#allocation2 + $0x108] sm:$0x1] }
  0x2a   : > { %335 = vst [vmem:[#allocation2 + $0x20] sm:$0x1] %v334_v43  ;;  %v286_v14 = vld [vmem:[#allocation2 + $0x114] sm:$0x1]  ;;  %v289_v15 = vld [vmem:[#allocation2 + $0x120] sm:$0x1] }
  0x2b   : > { %338 = vst [vmem:[#allocation2 + $0x2c] sm:$0x1] %v337_v44  ;;  %v275_v16 = vsel %vm14422_vm3, 0, %v274_v10  ;;  %v278_v17 = vsel %vm14422_vm3, 0, %v277_v11  ;;  %v281_v18 = vsel %vm14422_vm3, 0, %v280_v12  ;;  %v284_v19 = vsel %vm14422_vm3, 0, %v283_v13 }
  0x2c   : > { %341 = vst [vmem:[#allocation2 + $0x38] sm:$0x1] %v340_v45  ;;  %v287_v20 = vsel %vm14422_vm3, 0, %v286_v14  ;;  %v290_v21 = vsel %vm14422_vm3, 0, %v289_v15  ;;  %v292_v22 = vld [vmem:[#allocation2 + $0x12c] sm:$0x1] }
  0x2d   : > { %344 = vst [vmem:[#allocation2 + $0x44] sm:$0x1] %v343_v46  ;;  %v295_v23 = vld [vmem:[#allocation2 + $0x138] sm:$0x1]  ;;  %v298_v24 = vld [vmem:[#allocation2 + $0x144] sm:$0x1] }
  0x2e   : > { %347 = vst [vmem:[#allocation2 + $0x50] sm:$0x1] %v346_v47  ;;  %v301_v25 = vld [vmem:[#allocation2 + $0x150] sm:$0x1]  ;;  %v304_v26 = vld [vmem:[#allocation2 + $0x15c] sm:$0x1] }
  0x2f   : > { %350 = vst [vmem:[#allocation2 + $0x5c] sm:$0x1] %v349_v48  ;;  %v307_v27 = vld [vmem:[#allocation2 + $0x168] sm:$0x1]  ;;  %v293_v29 = vsel %vm14422_vm3, 0, %v292_v22  ;;  %v296_v30 = vsel %vm14422_vm3, 0, %v295_v23 }
  0x30   : > { %353 = vst [vmem:[#allocation2 + $0x68] sm:$0x1] %v352_v55  ;;  %v299_v31 = vsel %vm14422_vm3, 0, %v298_v24  ;;  %v302_v32 = vsel %vm14422_vm3, 0, %v301_v25  ;;  %v305_v33 = vsel %vm14422_vm3, 0, %v304_v26  ;;  %v308_v34 = vsel %vm14422_vm3, 0, %v307_v27 }
  0x31   : > { %356 = vst [vmem:[#allocation2 + $0x74] sm:$0x1] %v355_v56  ;;  %v310_v35 = vld [vmem:[#allocation2 + $0x174] sm:$0x1]  ;;  %v313_v36 = vld [vmem:[#allocation2 + $0x180] sm:$0x1] }
  0x32   : > { %359 = vst [vmem:[#allocation2 + $0x80] sm:$0x1] %v358_v57  ;;  %v316_v37 = vld [vmem:[#allocation2 + $0x18c] sm:$0x1]  ;;  %v319_v38 = vld [vmem:[#allocation2 + $0x198] sm:$0x1] }
  0x33   : > { %362 = vst [vmem:[#allocation2 + $0x8c] sm:$0x1] %v361_v58  ;;  %v322_v39 = vld [vmem:[#allocation2 + $0x1a4] sm:$0x1]  ;;  %v327_v40 = vld [vmem:[#allocation2 + $0x8] sm:$0x1] }
  0x34   : > { %365 = vst [vmem:[#allocation2 + $0x98] sm:$0x1] %v364_v59  ;;  %v311_v41 = vsel %vm14422_vm3, 0, %v310_v35  ;;  %v314_v42 = vsel %vm14422_vm3, 0, %v313_v36  ;;  %v317_v43 = vsel %vm14422_vm3, 0, %v316_v37  ;;  %v320_v44 = vsel %vm14422_vm3, 0, %v319_v38 }
  0x35   : > { %368 = vst [vmem:[#allocation2 + $0xa4] sm:$0x1] %v367_v60  ;;  %v323_v45 = vsel %vm14422_vm3, 0, %v322_v39  ;;  %v328_v46 = vsel %vm14455_vm5, 0, %v327_v40  ;;  %v378_v47 = vld [vmem:[#allocation2 + $0xd4] sm:$0x1] }
  0x36   : > { %371 = vst [vmem:[#allocation2 + $0xb0] sm:$0x1] %v370_v4  ;;  %v381_v48 = vld [vmem:[#allocation2 + $0xe0] sm:$0x1]  ;;  %v384_v49 = vld [vmem:[#allocation2 + $0xec] sm:$0x1] }
  0x37   : > { %374 = vst [vmem:[#allocation2 + $0xbc] sm:$0x1] %v373_v5  ;;  %v387_v50 = vld [vmem:[#allocation2 + $0xf8] sm:$0x1]  ;;  %v390_v51 = vld [vmem:[#allocation2 + $0x104] sm:$0x1] }
  0x38   : > { %377 = vst [vmem:[#allocation2 + $0xc8] sm:$0x1] %v376_v6  ;;  %v393_v52 = vld [vmem:[#allocation2 + $0x110] sm:$0x1]  ;;  %v396_v53 = vld [vmem:[#allocation2 + $0x11c] sm:$0x1] }
  0x39   : > { %219 = vst [vmem:[#allocation2] sm:$0x1] %v218_v7  ;;  %v379_v54 = vsel %vm14455_vm5, 0, %v378_v47  ;;  %v382_v55 = vsel %vm14455_vm5, 0, %v381_v48  ;;  %v385_v56 = vsel %vm14455_vm5, 0, %v384_v49  ;;  %v388_v57 = vsel %vm14455_vm5, 0, %v387_v50 }
  0x3a   : > { %270 = vst [vmem:[#allocation2 + $0xcc] sm:$0x1] %v269_v8  ;;  %v391_v58 = vsel %vm14455_vm5, 0, %v390_v51  ;;  %v394_v59 = vsel %vm14455_vm5, 0, %v393_v52  ;;  %v397_v60 = vsel %vm14455_vm5, 0, %v396_v53  ;;  %v18441_v37 = vmov 0 }
  0x3b   : > { %273 = vst [vmem:[#allocation2 + $0xd8] sm:$0x1] %v272_v9  ;;  %v399_v61 = vld [vmem:[#allocation2 + $0x128] sm:$0x1]  ;;  %v402_v62 = vld [vmem:[#allocation2 + $0x134] sm:$0x1] }
  0x3c   : > { %276 = vst [vmem:[#allocation2 + $0xe4] sm:$0x1] %v275_v16  ;;  %v405_v63 = vld [vmem:[#allocation2 + $0x140] sm:$0x1]  ;;  %v408_v0 = vld [vmem:[#allocation2 + $0x14c] sm:$0x1] }
  0x3d   : > { %279 = vst [vmem:[#allocation2 + $0xf0] sm:$0x1] %v278_v17  ;;  %v411_v1 = vld [vmem:[#allocation2 + $0x158] sm:$0x1]  ;;  %v414_v3 = vld [vmem:[#allocation2 + $0x164] sm:$0x1] }
  0x3e   : > { %282 = vst [vmem:[#allocation2 + $0xfc] sm:$0x1] %v281_v18  ;;  %v417_v4 = vld [vmem:[#allocation2 + $0x170] sm:$0x1]  ;;  %v420_v5 = vld [vmem:[#allocation2 + $0x17c] sm:$0x1] }
  0x3f   : > { %285 = vst [vmem:[#allocation2 + $0x108] sm:$0x1] %v284_v19  ;;  %v423_v6 = vld [vmem:[#allocation2 + $0x188] sm:$0x1]  ;;  %v400_v7 = vsel %vm14455_vm5, 0, %v399_v61  ;;  %v403_v8 = vsel %vm14455_vm5, 0, %v402_v62 }
  0x40   : > { %288 = vst [vmem:[#allocation2 + $0x114] sm:$0x1] %v287_v20  ;;  %v426_v9 = vld [vmem:[#allocation2 + $0x194] sm:$0x1]  ;;  %v406_v10 = vsel %vm14455_vm5, 0, %v405_v63  ;;  %v409_v11 = vsel %vm14455_vm5, 0, %v408_v0 }
  0x41   : > { %291 = vst [vmem:[#allocation2 + $0x120] sm:$0x1] %v290_v21  ;;  %v412_v12 = vsel %vm14455_vm5, 0, %v411_v1  ;;  %v415_v13 = vsel %vm14455_vm5, 0, %v414_v3  ;;  %v418_v14 = vsel %vm14455_vm5, 0, %v417_v4  ;;  %v421_v15 = vsel %vm14455_vm5, 0, %v420_v5 }
  0x42   : > { %294 = vst [vmem:[#allocation2 + $0x12c] sm:$0x1] %v293_v29  ;;  %v424_v16 = vsel %vm14455_vm5, 0, %v423_v6  ;;  %v427_v17 = vsel %vm14455_vm5, 0, %v426_v9  ;;  %v429_v18 = vld [vmem:[#allocation2 + $0x1a0] sm:$0x1] }
  0x43   : > { %297 = vst [vmem:[#allocation2 + $0x138] sm:$0x1] %v296_v30  ;;  %v435_v19 = vld [vmem:[%s14565_s24] sm:$0xf]  ;;  %v432_v20 = vld [vmem:[#allocation2 + $0x1ac] sm:$0x1] }
  0x44   : > { %300 = vst [vmem:[#allocation2 + $0x144] sm:$0x1] %v299_v31  ;;  %v470_v21 = vshrl.u32 %v435_v19, 16  ;;  %v473_v22 = vshll.u32 %v435_v19, 16  ;;  %v436_v23 = vld [vmem:[%s14565_s24 + $0x4] sm:$0xf] }
  0x45   : > { %303 = vst [vmem:[#allocation2 + $0x150] sm:$0x1] %v302_v32  ;;  %vm467_vm6 = vsmask.f32 4368  ;;  %v430_v24 = vsel %vm14455_vm5, 0, %v429_v18  ;;  %v478_v26 = vshrl.u32 %v436_v23, 16 }
  0x46   : > { %306 = vst [vmem:[#allocation2 + $0x15c] sm:$0x1] %v305_v33  ;;  %v472_v25 = vrot.slane %v470_v21, 7  ;;  %v481_v27 = vshll.u32 %v436_v23, 16  ;;  %v792_v29 = vld [vmem:[#allocation2 + $0xc] sm:$0xf]  ;;  %vm14598_vm8 = vmor %vm215_vm2, %vm467_vm6 }
  0x47   : > { %309 = vst [vmem:[#allocation2 + $0x168] sm:$0x1] %v308_v34  ;;  %v437_v30 = vld [vmem:[%s14565_s24 + $0x8] sm:$0xf]  ;;  %v18438_v32 = vmov 0  ;;  %v480_v34 = vrot.slane %v478_v26, 7 }
  0x48   : > { %312 = vst [vmem:[#allocation2 + $0x174] sm:$0x1] %v311_v41  ;;  %v475_v31 = vor.u32 %v473_v22, %v472_v25  ;;  %v18439_v32 = vsel %vm14590_vm7, 4294967295, %v18438_v32  ;;  %v476_v33 = vrot.slane %v472_v25, 4  ;;  %v487_v35 = vshrl.u32 %v437_v30, 16 }
  0x49   : > { %315 = vst [vmem:[#allocation2 + $0x180] sm:$0x1] %v314_v42  ;;  %v433_v36 = vsel %vm14455_vm5, 0, %v432_v20  ;;  %v18442_v37 = vsel %vm14598_vm8, 4294967295, %v18441_v37  ;;  %v796_v38 = vld [vmem:[#allocation2 + $0x14] sm:$0x1]  ;;  %v483_v40 = vor.u32 %v481_v27, %v480_v34 }
  0x4a   : > { %318 = vst [vmem:[#allocation2 + $0x18c] sm:$0x1] %v317_v43  ;;  %v490_v39 = vshll.u32 %v437_v30, 16  ;;  %v485_v41 = vrot.slane %v480_v34, 4  ;;  %v489_v42 = vrot.slane %v487_v35, 7 }
  0x4b   : > { %321 = vst [vmem:[#allocation2 + $0x198] sm:$0x1] %v320_v44  ;;  %v438_v43 = vld [vmem:[%s14565_s24 + $0xc] sm:$0xf]  ;;  %v799_v44 = vld [vmem:[#allocation2 + $0x18] sm:$0xf]  ;;  %v484_v47 = vsel %vm14598_vm8, %v476_v33, %v483_v40 }
  0x4c   : > { %324 = vst [vmem:[#allocation2 + $0x1a4] sm:$0x1] %v323_v45  ;;  %v495_v45 = vshrl.u32 %v438_v43, 16  ;;  %v498_v28 = vshll.u32 %v438_v43, 16  ;;  %v492_v48 = vor.u32 %v490_v39, %v489_v42  ;;  %v439_v49 = vld [vmem:[%s14565_s24 + $0x10] sm:$0xf] }
  0x4d   : > { %329 = vst [vmem:[#allocation2 + $0x8] sm:$0x1] %v328_v46  ;;  %v793_v46 = vsel %vm14590_vm7, %v475_v31, %v792_v29  ;;  %v493_v50 = vrot.slane %v489_v42, 4  ;;  %v504_v52 = vshrl.u32 %v439_v49, 16  ;;  %v507_v53 = vshll.u32 %v439_v49, 16 }
  0x4e   : > { %380 = vst [vmem:[#allocation2 + $0xd4] sm:$0x1] %v379_v54  ;;  %v497_v51 = vrot.slane %v495_v45, 7  ;;  %v797_v54 = vsel %vm14422_vm3, %v485_v41, %v796_v38  ;;  %v806_v62 = vld [vmem:[#allocation2 + $0x24] sm:$0xf] }
  0x4f   : > { %383 = vst [vmem:[#allocation2 + $0xe0] sm:$0x1] %v382_v55  ;;  %v800_v55 = vsel %vm14590_vm7, %v492_v48, %v799_v44  ;;  %v441_v4 = vld [vmem:[%s14565_s24 + $0x18] sm:$0xf]  ;;  %v443_v21 = vld [vmem:[%s14565_s24 + $0x20] sm:$0xf] }
  0x50   : > { %386 = vst [vmem:[#allocation2 + $0xec] sm:$0x1] %v385_v56  ;;  %v803_v56 = vld [vmem:[#allocation2 + $0x20] sm:$0x1]  ;;  %v541_v25 = vshll.u32 %v443_v21, 16 }
  0x51   : > { %389 = vst [vmem:[#allocation2 + $0xf8] sm:$0x1] %v388_v57  ;;  %v440_v57 = vld [vmem:[%s14565_s24 + $0x14] sm:$0xf]  ;;  %v817_v27 = vld [vmem:[#allocation2 + $0x38] sm:$0x1] }
  0x52   : > { %392 = vst [vmem:[#allocation2 + $0x104] sm:$0x1] %v391_v58  ;;  %v500_v58 = vor.u32 %v498_v28, %v497_v51  ;;  %v512_v61 = vshrl.u32 %v440_v57, 16  ;;  %v515_v63 = vshll.u32 %v440_v57, 16  ;;  %v444_v29 = vld [vmem:[%s14565_s24 + $0x24] sm:$0xf] }
  0x53   : > { %395 = vst [vmem:[#allocation2 + $0x110] sm:$0x1] %v394_v59  ;;  %v502_v59 = vrot.slane %v497_v51, 4  ;;  %v546_v34 = vshrl.u32 %v444_v29, 16  ;;  %v820_v35 = vld [vmem:[#allocation2 + $0x3c] sm:$0xf] }
  0x54   : > { %398 = vst [vmem:[#allocation2 + $0x11c] sm:$0x1] %v397_v60  ;;  %v506_v60 = vrot.slane %v504_v52, 7  ;;  %v501_v0 = vsel %vm14598_vm8, %v493_v50, %v500_v58  ;;  %v514_v6 = vrot.slane %v512_v61, 7  ;;  %v445_v38 = vld [vmem:[%s14565_s24 + $0x28] sm:$0xf] }
  0x55   : > { %401 = vst [vmem:[#allocation2 + $0x128] sm:$0x1] %v400_v7  ;;  %v804_v1 = vsel %vm14422_vm3, %v502_v59, %v803_v56  ;;  %v521_v7 = vshrl.u32 %v441_v4, 16  ;;  %v824_v43 = vld [vmem:[#allocation2 + $0x44] sm:$0x1]  ;;  %v548_v45 = vrot.slane %v546_v34, 7 }
  0x56   : > { %404 = vst [vmem:[#allocation2 + $0x134] sm:$0x1] %v403_v8  ;;  %v509_v3 = vor.u32 %v507_v53, %v506_v60  ;;  %v510_v5 = vrot.slane %v506_v60, 4  ;;  %v524_v8 = vshll.u32 %v441_v4, 16  ;;  %v446_v44 = vld [vmem:[%s14565_s24 + $0x2c] sm:$0xf] }
  0x57   : > { %407 = vst [vmem:[#allocation2 + $0x140] sm:$0x1] %v406_v10  ;;  %v810_v10 = vld [vmem:[#allocation2 + $0x2c] sm:$0x1]  ;;  %v555_v28 = vshrl.u32 %v445_v38, 16  ;;  %v566_v50 = vshll.u32 %v446_v44, 16 }
  0x58   : > { %410 = vst [vmem:[#allocation2 + $0x14c] sm:$0x1] %v409_v11  ;;  %v807_v9 = vsel %vm14590_vm7, %v509_v3, %v806_v62  ;;  %v442_v11 = vld [vmem:[%s14565_s24 + $0x1c] sm:$0xf]  ;;  %v827_v49 = vld [vmem:[#allocation2 + $0x48] sm:$0xf] }
  0x59   : > { %413 = vst [vmem:[#allocation2 + $0x158] sm:$0x1] %v412_v12  ;;  %v517_v12 = vor.u32 %v515_v63, %v514_v6  ;;  %v447_v51 = vld [vmem:[%s14565_s24 + $0x30] sm:$0xf]  ;;  %v553_v53 = vrot.slane %v548_v45, 4 }
  0x5a   : > { %416 = vst [vmem:[#allocation2 + $0x164] sm:$0x1] %v415_v13  ;;  %v519_v13 = vrot.slane %v514_v6, 4  ;;  %v831_v56 = vld [vmem:[#allocation2 + $0x50] sm:$0x1]  ;;  %v572_v57 = vshrl.u32 %v447_v51, 16 }
  0x5b   : > { %18440 = vst [vmem:[#allocation5_spill] sm:$0xff] %v18439_v32  ;;  %v518_v18 = vsel %vm14598_vm8, %v510_v5, %v517_v12  ;;  %v575_v58 = vshll.u32 %v447_v51, 16  ;;  %v448_v59 = vld [vmem:[%s14565_s24 + $0x34] sm:$0xf]  ;;  %v825_v61 = vsel %vm14422_vm3, %v553_v53, %v824_v43 }
  0x5c   : > { %419 = vst [vmem:[#allocation2 + $0x170] sm:$0x1] %v418_v14  ;;  %v523_v14 = vrot.slane %v521_v7, 7  ;;  %v811_v19 = vsel %vm14422_vm3, %v519_v13, %v810_v10  ;;  %v574_v5 = vrot.slane %v572_v57, 7  ;;  %v580_v6 = vshrl.u32 %v448_v59, 16 }
  0x5d   : > { %18443 = vst [vmem:[#allocation6_spill] sm:$0xff] %v18442_v37  ;;  %v852_v51 = vld [vmem:[#allocation2 + $0x74] sm:$0x1] }
  0x5e   : > { %422 = vst [vmem:[#allocation2 + $0x17c] sm:$0x1] %v421_v15  ;;  %v529_v15 = vshrl.u32 %v442_v11, 16  ;;  %v526_v20 = vor.u32 %v524_v8, %v523_v14  ;;  %v527_v22 = vrot.slane %v523_v14, 4  ;;  %v583_v8 = vshll.u32 %v448_v59, 16 }
  0x5f   : > { %425 = vst [vmem:[#allocation2 + $0x188] sm:$0x1] %v424_v16  ;;  %v813_v16 = vld [vmem:[#allocation2 + $0x30] sm:$0xf]  ;;  %v577_v13 = vor.u32 %v575_v58, %v574_v5  ;;  %v578_v14 = vrot.slane %v574_v5, 4 }
  0x60   : > { %428 = vst [vmem:[#allocation2 + $0x194] sm:$0x1] %v427_v17  ;;  %v532_v17 = vshll.u32 %v442_v11, 16  ;;  %v531_v23 = vrot.slane %v529_v15, 7  ;;  %v814_v26 = vsel %vm14590_vm7, %v526_v20, %v813_v16  ;;  %v838_v15 = vld [vmem:[#allocation2 + $0x5c] sm:$0x1] }
  0x61   : > { %431 = vst [vmem:[#allocation2 + $0x1a0] sm:$0x1] %v430_v24  ;;  %v538_v24 = vshrl.u32 %v443_v21, 16  ;;  %v582_v16 = vrot.slane %v580_v6, 7  ;;  %v841_v20 = vld [vmem:[#allocation2 + $0x60] sm:$0xf] }
  0x62   : > { %434 = vst [vmem:[#allocation2 + $0x1ac] sm:$0x1] %v433_v36  ;;  %v534_v30 = vor.u32 %v532_v17, %v531_v23  ;;  %v536_v31 = vrot.slane %v531_v23, 4  ;;  %v549_v36 = vshll.u32 %v444_v29, 16 }
  0x63   : > { %794 = vst [vmem:[#allocation2 + $0xc] sm:$0xf] %v793_v46  ;;  %v540_v33 = vrot.slane %v538_v24, 7  ;;  %v558_v46 = vshll.u32 %v445_v38, 16  ;;  %v585_v23 = vor.u32 %v583_v8, %v582_v16  ;;  %v587_v24 = vrot.slane %v582_v16, 4 }
  0x64   : > { %795 = vst.msk [vmem:[#allocation2 + $0x10] sm:$0xf] %vm199_vm0, %v484_v47  ;;  %v535_v39 = vsel %vm14598_vm8, %v527_v22, %v534_v30  ;;  %v818_v40 = vsel %vm14422_vm3, %v536_v31, %v817_v27  ;;  %v563_v47 = vshrl.u32 %v446_v44, 16  ;;  %v551_v52 = vor.u32 %v549_v36, %v548_v45  ;;  %v845_v30 = vld [vmem:[#allocation2 + $0x68] sm:$0x1] }
  0x65   : > { %798 = vst [vmem:[#allocation2 + $0x14] sm:$0x1] %v797_v54  ;;  %v543_v41 = vor.u32 %v541_v25, %v540_v33  ;;  %v544_v42 = vrot.slane %v540_v33, 4  ;;  %v557_v54 = vrot.slane %v555_v28, 7  ;;  %v586_v34 = vsel %vm14598_vm8, %v578_v14, %v585_v23  ;;  %v848_v38 = vld [vmem:[#allocation2 + $0x6c] sm:$0xf] }
  0x66   : > { %801 = vst [vmem:[#allocation2 + $0x18] sm:$0xf] %v800_v55  ;;  %v565_v55 = vrot.slane %v563_v47, 7  ;;  %v862_v8 = vld [vmem:[#allocation2 + $0x84] sm:$0xf] }
  0x67   : > { %802 = vst.msk [vmem:[#allocation2 + $0x1c] sm:$0xf] %vm199_vm0, %v501_v0  ;;  %v821_v48 = vsel %vm14590_vm7, %v543_v41, %v820_v35  ;;  %v552_v60 = vsel %vm14598_vm8, %v544_v42, %v551_v52  ;;  %v560_v62 = vor.u32 %v558_v46, %v557_v54  ;;  %v561_v63 = vrot.slane %v557_v54, 4  ;;  %v834_v0 = vld [vmem:[#allocation2 + $0x54] sm:$0xf] }
  0x68   : > { %805 = vst [vmem:[#allocation2 + $0x20] sm:$0x1] %v804_v1  ;;  %v449_v1 = vld [vmem:[%s14565_s24 + $0x38] sm:$0xf]  ;;  %v568_v3 = vor.u32 %v566_v50, %v565_v55  ;;  %v570_v4 = vrot.slane %v565_v55, 4  ;;  %v839_v35 = vsel %vm14422_vm3, %v587_v24, %v838_v15 }
  0x69   : > { %808 = vst [vmem:[#allocation2 + $0x24] sm:$0xf] %v807_v9  ;;  %v828_v7 = vsel %vm14590_vm7, %v560_v62, %v827_v49  ;;  %v589_v9 = vshrl.u32 %v449_v1, 16  ;;  %v592_v10 = vshll.u32 %v449_v1, 16  ;;  %v454_v54 = vld [vmem:[%s14565_s24 + $0x4c] sm:$0xf] }
  0x6a   : > { %809 = vst.msk [vmem:[#allocation2 + $0x28] sm:$0xf] %vm199_vm0, %v518_v18  ;;  %v569_v11 = vsel %vm14598_vm8, %v561_v63, %v568_v3  ;;  %v832_v12 = vsel %vm14422_vm3, %v570_v4, %v831_v56  ;;  %v450_v18 = vld [vmem:[%s14565_s24 + $0x3c] sm:$0xf]  ;;  %v855_v56 = vld [vmem:[#allocation2 + $0x78] sm:$0xf] }
  0x6b   : > { %812 = vst [vmem:[#allocation2 + $0x2c] sm:$0x1] %v811_v19  ;;  %v591_v17 = vrot.slane %v589_v9, 7  ;;  %v835_v19 = vsel %vm14590_vm7, %v577_v13, %v834_v0  ;;  %v597_v21 = vshrl.u32 %v450_v18, 16  ;;  %v600_v22 = vshll.u32 %v450_v18, 16 }
  0x6c   : > { %815 = vst [vmem:[#allocation2 + $0x30] sm:$0xf] %v814_v26  ;;  %v451_v26 = vld [vmem:[%s14565_s24 + $0x40] sm:$0xf]  ;;  %v631_v57 = vshrl.u32 %v454_v54, 16  ;;  %v634_v58 = vshll.u32 %v454_v54, 16 }
  0x6d   : > { %816 = vst.msk [vmem:[#allocation2 + $0x34] sm:$0xf] %vm199_vm0, %v535_v39  ;;  %v594_v25 = vor.u32 %v592_v10, %v591_v17  ;;  %v595_v27 = vrot.slane %v591_v17, 4  ;;  %v599_v29 = vrot.slane %v597_v21, 7  ;;  %v606_v31 = vshrl.u32 %v451_v26, 16 }
  0x6e   : > { %819 = vst [vmem:[#allocation2 + $0x38] sm:$0x1] %v818_v40  ;;  %v609_v33 = vshll.u32 %v451_v26, 16  ;;  %v452_v39 = vld [vmem:[%s14565_s24 + $0x44] sm:$0xf]  ;;  %v633_v0 = vrot.slane %v631_v57, 7 }
  0x6f   : > { %822 = vst [vmem:[#allocation2 + $0x3c] sm:$0xf] %v821_v48  ;;  %v842_v36 = vsel %vm14590_vm7, %v594_v25, %v841_v20  ;;  %v453_v40 = vld [vmem:[%s14565_s24 + $0x48] sm:$0xf]  ;;  %v602_v41 = vor.u32 %v600_v22, %v599_v29  ;;  %v604_v42 = vrot.slane %v599_v29, 4  ;;  %v608_v43 = vrot.slane %v606_v31, 7 }
  0x70   : > { %823 = vst.msk [vmem:[#allocation2 + $0x40] sm:$0xf] %vm199_vm0, %v552_v60  ;;  %v614_v44 = vshrl.u32 %v452_v39, 16  ;;  %v617_v45 = vshll.u32 %v452_v39, 16  ;;  %v623_v28 = vshrl.u32 %v453_v40, 16  ;;  %v626_v46 = vshll.u32 %v453_v40, 16 }
  0x71   : > { %826 = vst [vmem:[#allocation2 + $0x44] sm:$0x1] %v825_v61  ;;  %v603_v47 = vsel %vm14598_vm8, %v595_v27, %v602_v41  ;;  %v846_v48 = vsel %vm14422_vm3, %v604_v42, %v845_v30  ;;  %v611_v49 = vor.u32 %v609_v33, %v608_v43  ;;  %v612_v50 = vrot.slane %v608_v43, 4  ;;  %v455_v62 = vld [vmem:[%s14565_s24 + $0x50] sm:$0xf] }
  0x72   : > { %829 = vst [vmem:[#allocation2 + $0x48] sm:$0xf] %v828_v7  ;;  %v616_v52 = vrot.slane %v614_v44, 7  ;;  %v625_v53 = vrot.slane %v623_v28, 7  ;;  %v859_v1 = vld [vmem:[#allocation2 + $0x80] sm:$0x1] }
  0x73   : > { %830 = vst.msk [vmem:[#allocation2 + $0x4c] sm:$0xf] %vm199_vm0, %v569_v11  ;;  %v849_v55 = vsel %vm14590_vm7, %v611_v49, %v848_v38  ;;  %v640_v3 = vshrl.u32 %v455_v62, 16  ;;  %v643_v4 = vshll.u32 %v455_v62, 16  ;;  %v456_v9 = vld [vmem:[%s14565_s24 + $0x54] sm:$0xf]  ;;  %v636_v11 = vor.u32 %v634_v58, %v633_v0 }
  0x74   : > { %833 = vst [vmem:[#allocation2 + $0x50] sm:$0x1] %v832_v12  ;;  %v619_v59 = vor.u32 %v617_v45, %v616_v52  ;;  %v621_v60 = vrot.slane %v616_v52, 4  ;;  %v628_v61 = vor.u32 %v626_v46, %v625_v53  ;;  %v629_v63 = vrot.slane %v625_v53, 4  ;;  %v457_v10 = vld [vmem:[%s14565_s24 + $0x58] sm:$0xf] }
  0x75   : > { %836 = vst [vmem:[#allocation2 + $0x54] sm:$0xf] %v835_v19  ;;  %v638_v12 = vrot.slane %v633_v0, 4  ;;  %v642_v13 = vrot.slane %v640_v3, 7  ;;  %v648_v14 = vshrl.u32 %v456_v9, 16  ;;  %v651_v15 = vshll.u32 %v456_v9, 16 }
  0x76   : > { %837 = vst.msk [vmem:[#allocation2 + $0x58] sm:$0xf] %vm199_vm0, %v586_v34  ;;  %v620_v5 = vsel %vm14598_vm8, %v612_v50, %v619_v59  ;;  %v853_v6 = vsel %vm14422_vm3, %v621_v60, %v852_v51  ;;  %v856_v7 = vsel %vm14590_vm7, %v628_v61, %v855_v56  ;;  %v657_v16 = vshrl.u32 %v457_v10, 16  ;;  %v866_v22 = vld [vmem:[#allocation2 + $0x8c] sm:$0x1] }
  0x77   : > { %840 = vst [vmem:[#allocation2 + $0x5c] sm:$0x1] %v839_v35  ;;  %v660_v17 = vshll.u32 %v457_v10, 16  ;;  %v637_v18 = vsel %vm14598_vm8, %v629_v63, %v636_v11  ;;  %v860_v19 = vsel %vm14422_vm3, %v638_v12, %v859_v1  ;;  %v645_v20 = vor.u32 %v643_v4, %v642_v13  ;;  %v458_v25 = vld [vmem:[%s14565_s24 + $0x5c] sm:$0xf] }
  0x78   : > { %843 = vst [vmem:[#allocation2 + $0x60] sm:$0xf] %v842_v36  ;;  %v646_v21 = vrot.slane %v642_v13, 4  ;;  %v650_v23 = vrot.slane %v648_v14, 7  ;;  %v659_v24 = vrot.slane %v657_v16, 7  ;;  %v665_v29 = vshrl.u32 %v458_v25, 16 }
  0x79   : > { %844 = vst.msk [vmem:[#allocation2 + $0x64] sm:$0xf] %vm199_vm0, %v603_v47  ;;  %v863_v26 = vsel %vm14590_vm7, %v645_v20, %v862_v8  ;;  %v869_v27 = vld [vmem:[#allocation2 + $0x90] sm:$0xf]  ;;  %v668_v30 = vshll.u32 %v458_v25, 16 }
  0x7a   : > { %847 = vst [vmem:[#allocation2 + $0x68] sm:$0x1] %v846_v48  ;;  %v653_v31 = vor.u32 %v651_v15, %v650_v23  ;;  %v655_v33 = vrot.slane %v650_v23, 4  ;;  %v662_v34 = vor.u32 %v660_v17, %v659_v24  ;;  %v459_v35 = vld [vmem:[%s14565_s24 + $0x60] sm:$0xf]  ;;  %v663_v36 = vrot.slane %v659_v24, 4 }
  0x7b   : > { %850 = vst [vmem:[#allocation2 + $0x6c] sm:$0xf] %v849_v55  ;;  %v667_v38 = vrot.slane %v665_v29, 7  ;;  %v873_v39 = vld [vmem:[#allocation2 + $0x98] sm:$0x1]  ;;  %v674_v40 = vshrl.u32 %v459_v35, 16 }
  0x7c   : > { %851 = vst.msk [vmem:[#allocation2 + $0x70] sm:$0xf] %vm199_vm0, %v620_v5  ;;  %v677_v41 = vshll.u32 %v459_v35, 16  ;;  %v654_v42 = vsel %vm14598_vm8, %v646_v21, %v653_v31  ;;  %v867_v43 = vsel %vm14422_vm3, %v655_v33, %v866_v22  ;;  %v870_v44 = vsel %vm14590_vm7, %v662_v34, %v869_v27  ;;  %v876_v45 = vld [vmem:[#allocation2 + $0x9c] sm:$0xf] }
  0x7d   : > { %854 = vst [vmem:[#allocation2 + $0x74] sm:$0x1] %v853_v6  ;;  %v460_v28 = vld [vmem:[%s14565_s24 + $0x64] sm:$0xf]  ;;  %v461_v46 = vld [vmem:[%s14565_s24 + $0x68] sm:$0xf]  ;;  %v670_v47 = vor.u32 %v668_v30, %v667_v38 }
  0x7e   : > { %857 = vst [vmem:[#allocation2 + $0x78] sm:$0xf] %v856_v7  ;;  %v672_v48 = vrot.slane %v667_v38, 4  ;;  %v676_v49 = vrot.slane %v674_v40, 7  ;;  %v682_v50 = vshrl.u32 %v460_v28, 16  ;;  %v685_v51 = vshll.u32 %v460_v28, 16 }
  0x7f   : > { %858 = vst.msk [vmem:[#allocation2 + $0x7c] sm:$0xf] %vm199_vm0, %v637_v18  ;;  %v691_v52 = vshrl.u32 %v461_v46, 16  ;;  %v694_v53 = vshll.u32 %v461_v46, 16  ;;  %v671_v54 = vsel %vm14598_vm8, %v663_v36, %v670_v47  ;;  %v880_v58 = vld [vmem:[#allocation2 + $0xa4] sm:$0x1] }
  0x80   : > { %861 = vst [vmem:[#allocation2 + $0x80] sm:$0x1] %v860_v19  ;;  %v874_v55 = vsel %vm14422_vm3, %v672_v48, %v873_v39  ;;  %v679_v56 = vor.u32 %v677_v41, %v676_v49  ;;  %v680_v57 = vrot.slane %v676_v49, 4  ;;  %v684_v59 = vrot.slane %v682_v50, 7  ;;  %v462_v61 = vld [vmem:[%s14565_s24 + $0x6c] sm:$0xf] }
  0x81   : > { %864 = vst [vmem:[#allocation2 + $0x84] sm:$0xf] %v863_v26  ;;  %v693_v60 = vrot.slane %v691_v52, 7  ;;  %v883_v63 = vld [vmem:[#allocation2 + $0xa8] sm:$0xf]  ;;  %v699_v0 = vshrl.u32 %v462_v61, 16 }
  0x82   : > { %865 = vst.msk [vmem:[#allocation2 + $0x88] sm:$0xf] %vm199_vm0, %v654_v42  ;;  %v877_v62 = vsel %vm14590_vm7, %v679_v56, %v876_v45  ;;  %v702_v1 = vshll.u32 %v462_v61, 16  ;;  %v687_v3 = vor.u32 %v685_v51, %v684_v59  ;;  %v689_v4 = vrot.slane %v684_v59, 4  ;;  %v463_v6 = vld [vmem:[%s14565_s24 + $0x70] sm:$0xf] }
  0x83   : > { %868 = vst [vmem:[#allocation2 + $0x8c] sm:$0x1] %v867_v43  ;;  %v696_v5 = vor.u32 %v694_v53, %v693_v60  ;;  %v697_v7 = vrot.slane %v693_v60, 4  ;;  %v701_v8 = vrot.slane %v699_v0, 7  ;;  %v887_v9 = vld [vmem:[#allocation2 + $0xb0] sm:$0x1] }
  0x84   : > { %871 = vst [vmem:[#allocation2 + $0x90] sm:$0xf] %v870_v44  ;;  %v708_v10 = vshrl.u32 %v463_v6, 16  ;;  %v711_v11 = vshll.u32 %v463_v6, 16  ;;  %v688_v12 = vsel %vm14598_vm8, %v680_v57, %v687_v3  ;;  %v881_v13 = vsel %vm14422_vm3, %v689_v4, %v880_v58  ;;  %v890_v15 = vld [vmem:[#allocation2 + $0xb4] sm:$0xf] }
  0x85   : > { %872 = vst.msk [vmem:[#allocation2 + $0x94] sm:$0xf] %vm199_vm0, %v671_v54  ;;  %v884_v14 = vsel %vm14590_vm7, %v696_v5, %v883_v63  ;;  %v464_v16 = vld [vmem:[%s14565_s24 + $0x74] sm:$0xf]  ;;  %v465_v17 = vld [vmem:[%s14565_s24 + $0x78] sm:$0xf]  ;;  %v704_v18 = vor.u32 %v702_v1, %v701_v8 }
  0x86   : > { %875 = vst [vmem:[#allocation2 + $0x98] sm:$0x1] %v874_v55  ;;  %v706_v19 = vrot.slane %v701_v8, 4  ;;  %v710_v20 = vrot.slane %v708_v10, 7  ;;  %v716_v21 = vshrl.u32 %v464_v16, 16  ;;  %v719_v22 = vshll.u32 %v464_v16, 16 }
  0x87   : > { %878 = vst [vmem:[#allocation2 + $0x9c] sm:$0xf] %v877_v62  ;;  %v725_v23 = vshrl.u32 %v465_v17, 16  ;;  %v728_v24 = vshll.u32 %v465_v17, 16  ;;  %v705_v25 = vsel %vm14598_vm8, %v697_v7, %v704_v18  ;;  %v894_v30 = vld [vmem:[#allocation2 + $0xbc] sm:$0x1] }
  0x88   : > { %879 = vst.msk [vmem:[#allocation2 + $0xa0] sm:$0xf] %vm199_vm0, %v688_v12  ;;  %v888_v26 = vsel %vm14422_vm3, %v706_v19, %v887_v9  ;;  %v713_v27 = vor.u32 %v711_v11, %v710_v20  ;;  %v714_v29 = vrot.slane %v710_v20, 4  ;;  %v718_v31 = vrot.slane %v716_v21, 7  ;;  %v466_v34 = vld [vmem:[%s14565_s24 + $0x7c] sm:$0xf] }
  0x89   : > { %882 = vst [vmem:[#allocation2 + $0xa4] sm:$0x1] %v881_v13  ;;  %v727_v33 = vrot.slane %v725_v23, 7  ;;  %v897_v36 = vld [vmem:[#allocation2 + $0xc0] sm:$0xf]  ;;  %v733_v38 = vshrl.u32 %v466_v34, 16 }
  0x8a   : > { %885 = vst [vmem:[#allocation2 + $0xa8] sm:$0xf] %v884_v14  ;;  %v891_v35 = vsel %vm14590_vm7, %v713_v27, %v890_v15  ;;  %v736_v39 = vshll.u32 %v466_v34, 16  ;;  %v721_v40 = vor.u32 %v719_v22, %v718_v31  ;;  %v723_v41 = vrot.slane %v718_v31, 4  ;;  %v901_v47 = vld [vmem:[#allocation2 + $0xc8] sm:$0x1] }
  0x8b   : > { %886 = vst.msk [vmem:[#allocation2 + $0xac] sm:$0xf] %vm199_vm0, %v705_v25  ;;  %v730_v42 = vor.u32 %v728_v24, %v727_v33  ;;  %v731_v43 = vrot.slane %v727_v33, 4  ;;  %v735_v44 = vrot.slane %v733_v38, 7 }
  0x8c   : > { %889 = vst [vmem:[#allocation2 + $0xb0] sm:$0x1] %v888_v26  ;;  %v722_v45 = vsel %vm14598_vm8, %v714_v29, %v721_v40  ;;  %v895_v28 = vsel %vm14422_vm3, %v723_v41, %v894_v30 }
  0x8d   : > { %892 = vst [vmem:[#allocation2 + $0xb4] sm:$0xf] %v891_v35  ;;  %v898_v46 = vsel %vm14590_vm7, %v730_v42, %v897_v36  ;;  %v738_v48 = vor.u32 %v736_v39, %v735_v44  ;;  %v740_v49 = vrot.slane %v735_v44, 4 }
  0x8e   : > { %893 = vst.msk [vmem:[#allocation2 + $0xb8] sm:$0xf] %vm199_vm0, %v722_v45 }
  0x8f   : > { %896 = vst [vmem:[#allocation2 + $0xbc] sm:$0x1] %v895_v28  ;;  %v739_v50 = vsel %vm14598_vm8, %v731_v43, %v738_v48  ;;  %v902_v51 = vsel %vm14422_vm3, %v740_v49, %v901_v47 }
  0x90   : > { %899 = vst [vmem:[#allocation2 + $0xc0] sm:$0xf] %v898_v46 }
  0x91   : > { %900 = vst.msk [vmem:[#allocation2 + $0xc4] sm:$0xf] %vm199_vm0, %v739_v50 }
  0x92   : > { %903 = vst [vmem:[#allocation2 + $0xc8] sm:$0x1] %v902_v51 }
  0x93 LB: >> { %p910_p4 = scmp.lt.s32.totalorder %s14367_s25, 0  ;;  %s911_s26 = ssub.s32 0, %s14367_s25  ;;  %vm1101_vm9 = vsmask.f32 7424  ;;  %vm1326_vm10 = vcmask 523264   ;;  %vm2050_vm13 = vcmask 1042432   ;;  %s14367_s25 = sphi %s14743_s25, %s909_s25  }
  0x94   : >> { %s11666_s27 = smin.u32 %s14367_s25, %s911_s26  ;;  %s14370_s7 = smov 64   ;;  %vm2965_vm11 = vsmask.f32 3328  ;;  %vm2966_vm12 = vsmask.f32 7440  ;;  %vm2051_vm14 = vcmask 1046532  }
  0x95   : >> { %s913_s28 = sand.u32 1, %s11666_s27   ;;  %s13857_s8 = smul.u32 320, %s14367_s25  ;;  %vm15312_vm15 = vmor %vm2965_vm11, %vm2966_vm12 }
  0x96   : >> { %s914_s29 = ssub.s32 0, %s913_s28  ;;  %vm15322_vm1 = vmor %vm2050_vm13, %vm2051_vm14  ;;  %s15633_s14 = scalar_lea.vmem %s18387_s2, %s14367_s25 }
  0x97   : >> { %s18636_s29 = smov (!%p910_p4, %s914_s29), %s913_s28  ;;  %s14885_s11 = scalar_lea.vmem %s18386_s1, %s13857_s8 }
  0x98   : >> { %p11668_p5 = scmp.lt.s32.totalorder %s18636_s29, 0  ;;  %s920_s30 = sadd.s32 2, %s18636_s29 }
  0x99   : >> { %s15645_s18 = scalar_lea.vmem %s18388_s3, %s14367_s25  ;;  %s909_s25 = sadd.s32 1, %s14367_s25  }
  0x9a   : >> { %s18638_s30 = smov (!%p11668_p5, %s920_s30), %s18636_s29  ;;  %p906_p6 = scmp.ge.s32.totalorder %s909_s25, 16  }
  0x9b   : >> { %s13696_s5 = smul.u32 216, %s18638_s30  ;;  %s6053_s19 = ssub.s32 1, %s18638_s30 }
  0x9c   : >> { %s16074_s21 = smul.u32 216, %s6053_s19  ;;  %s14371_s23 = smov (%p906_p6), 64  }
  0x9d   : >> { %s14754_s6 = scalar_lea.vmem [#allocation2], %s13696_s5 }
  0x9e   : >> { %v14757_v52 = vld [vmem:[%s14754_s6 + $0x60] sm:$0xff]  ;;  %v965_v53 = vld [vmem:[%s14754_s6 + $0x68] sm:$0x1]  ;;  %v14761_v54 = vld [vmem:[%s14754_s6 + $0x30] sm:$0xff]  ;;  %s16097_s22 = scalar_lea.vmem [#allocation2], %s16074_s21 }
  0x9f   : >> { %v1077_v55 = vunpack.c.l.b16 %v965_v53  ;;  %v961_v56 = vld [vmem:[%s14754_s6 + $0x38] sm:$0x1]  ;;  %v13709_v57 = vld [vmem:[%s14754_s6 + $0x90] sm:$0xff]  ;;  %v1199_v59 = vshrl.u32 %v14757_v52, 16  ;;  %v1201_v60 = vshll.u32 %v14757_v52, 16  ;;  %v1151_v0 = vshrl.u32 %v14761_v54, 16 }
  0xa0   : >> { %v969_v58 = vld [vmem:[%s14754_s6 + $0x98] sm:$0x1]  ;;  %v1073_v61 = vunpack.c.l.b16 %v961_v56  ;;  %v957_v62 = vld [vmem:[%s14754_s6 + $0x8] sm:$0x1]  ;;  %v1153_v1 = vshll.u32 %v14761_v54, 16  ;;  %v13697_v4 = vld [vmem:[%s14754_s6] sm:$0xff] }
  0xa1   : >> { %v1093_v63 = vpack.c.b16 %v1077_v55, %v1077_v55  ;;  %v1081_v3 = vunpack.c.l.b16 %v969_v58  ;;  %v1203_v5 = vrot.slane %v1201_v60, 1  ;;  %v1249_v7 = vshll.u32 %v13709_v57, 16  ;;  %v962_v13 = vld [vmem:[%s14754_s6 + $0x44] sm:$0x1]  ;;  %v13702_v22 = vld [vmem:[%s14754_s6 + $0x3c] sm:$0xff]  ;;  %v13698_v27 = vld [vmem:[%s14754_s6 + $0xc] sm:$0xff] }
  0xa2   : >> { %v1089_v6 = vpack.c.b16 %v1073_v61, %v1073_v61  ;;  %v1069_v8 = vunpack.c.l.b16 %v957_v62  ;;  %v1155_v10 = vrot.slane %v1153_v1, 1  ;;  %v1247_v12 = vshrl.u32 %v13709_v57, 16  ;;  %v958_v29 = vld [vmem:[%s14754_s6 + $0x14] sm:$0x1]  ;;  %v963_v43 = vld [vmem:[%s14754_s6 + $0x50] sm:$0x1] }
  0xa3   : >> { %v1206_v9 = vshll.u32 %v1093_v63, 16  ;;  %v1097_v11 = vpack.c.b16 %v1081_v3, %v1081_v3  ;;  %v1204_v14 = vor.u32 %v1203_v5, %v1199_v59  ;;  %v1251_v16 = vrot.slane %v1249_v7, 1  ;;  %v971_v44 = vld [vmem:[%s14754_s6 + $0xb0] sm:$0x1]  ;;  %v14783_v28 = vld [vmem:[%s14754_s6 + $0x48] sm:$0xff] }
  0xa4   : >> { %v1158_v15 = vshll.u32 %v1089_v6, 16  ;;  %v1085_v17 = vpack.c.b16 %v1069_v8, %v1069_v8  ;;  %v1156_v19 = vor.u32 %v1155_v10, %v1151_v0  ;;  %v1105_v21 = vshll.u32 %v13697_v4, 16  ;;  %v13711_v48 = vld [vmem:[%s14754_s6 + $0xa8] sm:$0xff]  ;;  %v966_v50 = vld [vmem:[%s14754_s6 + $0x74] sm:$0x1] }
  0xa5   : >> { %v1208_v18 = vrot.slane %v1206_v9, 1  ;;  %v1254_v20 = vshll.u32 %v1097_v11, 16  ;;  %v1103_v24 = vshrl.u32 %v13697_v4, 16  ;;  %v1074_v26 = vunpack.c.l.b16 %v962_v13  ;;  %v14788_v49 = vld [vmem:[%s14754_s6 + $0x6c] sm:$0xff]  ;;  %v972_v13 = vld [vmem:[%s14754_s6 + $0xbc] sm:$0x1] }
  0xa6   : >> { %v1160_v23 = vrot.slane %v1158_v15, 1  ;;  %v1110_v25 = vshll.u32 %v1085_v17, 16  ;;  %v1107_v31 = vrot.slane %v1105_v21, 1  ;;  %v1252_v34 = vor.u32 %v1251_v16, %v1247_v12  ;;  %v968_v63 = vld [vmem:[%s14754_s6 + $0x8c] sm:$0x1]  ;;  %v13708_v16 = vld [vmem:[%s14754_s6 + $0x84] sm:$0xff] }
  0xa7   : >> { %v1209_v30 = vsel %vm1101_vm9, %v1204_v14, %v1208_v18  ;;  %v1256_v35 = vrot.slane %v1254_v20, 1  ;;  %v1090_v36 = vpack.c.b16 %v1074_v26, %v1074_v26  ;;  %v1165_v38 = vshll.u32 %v13702_v22, 16  ;;  %v14802_v17 = vld [vmem:[%s14754_s6 + $0x9c] sm:$0xff]  ;;  %v970_v18 = vld [vmem:[%s14754_s6 + $0xa4] sm:$0x1]  ;;  %v13712_v26 = vld [vmem:[%s14754_s6 + $0xb4] sm:$0xff] }
  0xa8   : >> { %1310 = vrot.lane.b32.xlu0 %v1209_v30, %s14370_s7  ;;  %v1161_v33 = vsel %vm1101_vm9, %v1156_v19, %v1160_v23  ;;  %v1070_v39 = vunpack.c.l.b16 %v958_v29  ;;  %v1108_v40 = vor.u32 %v1107_v31, %v1103_v24  ;;  %v1112_v41 = vrot.slane %v1110_v25, 1  ;;  %v14808_v29 = vld [vmem:[%s14754_s6 + $0x10] sm:$0xf] }
  0xa9   : >> { %1302 = vrot.lane.b32.xlu1 %v1161_v33, %s14370_s7  ;;  %v1117_v42 = vshll.u32 %v13698_v27, 16  ;;  %v1257_v46 = vsel %vm1101_vm9, %v1252_v34, %v1256_v35  ;;  %v1163_v47 = vshrl.u32 %v13702_v22, 16  ;;  %v1167_v51 = vrot.slane %v1165_v38, 1  ;;  %v11959_v35 = vld [vmem:[%s14754_s6 + $0xc] sm:$0xe] }
  0xaa   : >> { %v1086_v45 = vpack.c.b16 %v1070_v39, %v1070_v39  ;;  %v1170_v53 = vshll.u32 %v1090_v36, 16  ;;  %v1075_v55 = vunpack.c.l.b16 %v963_v43  ;;  %v1083_v56 = vunpack.c.l.b16 %v971_v44 }
  0xab   : >> { %v1113_v57 = vsel %vm1101_vm9, %v1108_v40, %v1112_v41  ;;  %v1115_v58 = vshrl.u32 %v13698_v27, 16  ;;  %v1119_v59 = vrot.slane %v1117_v42, 1  ;;  %v1177_v61 = vshll.u32 %v14783_v28, 16 }
  0xac   : >> { %v1122_v60 = vshll.u32 %v1086_v45, 16  ;;  %v1078_v62 = vunpack.c.l.b16 %v966_v50  ;;  %v1099_v0 = vpack.c.b16 %v1083_v56, %v1083_v56  ;;  %v1273_v1 = vshll.u32 %v13711_v48, 16  ;;  %v967_v50 = vld [vmem:[%s14754_s6 + $0x80] sm:$0x1] }
  0xad   : >> { %v1211_v3 = vshrl.u32 %v14788_v49, 16  ;;  %v1213_v4 = vshll.u32 %v14788_v49, 16  ;;  %v1168_v5 = vor.u32 %v1167_v51, %v1163_v47  ;;  %v1172_v6 = vrot.slane %v1170_v53, 1  ;;  %v11913_v47 = vld [vmem:[%s14754_s6 + $0x14] sm:$0x1] }
  0xae   : >> { %v1091_v7 = vpack.c.b16 %v1075_v55, %v1075_v55  ;;  %v1094_v8 = vpack.c.b16 %v1078_v62, %v1078_v62  ;;  %v1120_v9 = vor.u32 %v1119_v59, %v1115_v58  ;;  %v1124_v10 = vrot.slane %v1122_v60, 1  ;;  %v960_v60 = vld [vmem:[%s14754_s6 + $0x2c] sm:$0x1] }
  0xaf   : >> { %v1215_v11 = vrot.slane %v1213_v4, 1  ;;  %v1080_v12 = vunpack.c.l.b16 %v968_v63  ;;  %v1175_v14 = vshrl.u32 %v14783_v28, 16  ;;  %v1271_v19 = vshrl.u32 %v13711_v48, 16 }
  0xb0   : >> { %1318 = vrot.lane.b32.xlu0 %v1257_v46, %s14370_s7  ;;  %v1218_v15 = vshll.u32 %v1094_v8, 16  ;;  %v1275_v20 = vrot.slane %v1273_v1, 1  ;;  %v1278_v21 = vshll.u32 %v1099_v0, 16  ;;  %v1173_v23 = vsel %vm1101_vm9, %v1168_v5, %v1172_v6 }
  0xb1   : >> { %1294 = vrot.lane.b32.xlu1 %v1113_v57, %s14370_s7  ;;  %v1216_v22 = vor.u32 %v1215_v11, %v1211_v3  ;;  %v1179_v24 = vrot.slane %v1177_v61, 1  ;;  %v1084_v27 = vunpack.c.l.b16 %v972_v13  ;;  %v1125_v30 = vsel %vm1101_vm9, %v1120_v9, %v1124_v10  ;;  %v14823_v61 = vld [vmem:[%s14754_s6 + $0x78] sm:$0xff] }
  0xb2   : >> { %v1220_v25 = vrot.slane %v1218_v15, 1  ;;  %v1182_v31 = vshll.u32 %v1091_v7, 16  ;;  %v1096_v33 = vpack.c.b16 %v1080_v12, %v1080_v12  ;;  %v1082_v34 = vunpack.c.l.b16 %v970_v18  ;;  %v13700_v7 = vld [vmem:[%s14754_s6 + $0x24] sm:$0xff] }
  0xb3   : >> { %v1237_v38 = vshll.u32 %v13708_v16, 16  ;;  %v1259_v39 = vshrl.u32 %v14802_v17, 16  ;;  %v1261_v40 = vshll.u32 %v14802_v17, 16  ;;  %v1276_v41 = vor.u32 %v1275_v20, %v1271_v19 }
  0xb4   : >> { %v1221_v36 = vsel %vm1101_vm9, %v1216_v22, %v1220_v25  ;;  %v1280_v42 = vrot.slane %v1278_v21, 1  ;;  %v1098_v43 = vpack.c.b16 %v1082_v34, %v1082_v34  ;;  %v2342_v44 = vunpack.c.l.b16 %v14808_v29  ;;  %v14839_v21 = vld [vmem:[%s14754_s6 + $0x18] sm:$0xff] }
  0xb5   : >> { %1312 = vrot.lane.b32.xlu2 %v1221_v36, %s14370_s7  ;;  %v1100_v45 = vpack.c.b16 %v1084_v27, %v1084_v27  ;;  %v1285_v28 = vshll.u32 %v13712_v26, 16  ;;  %v1263_v46 = vrot.slane %v1261_v40, 1  ;;  %v2437_v48 = vunpack.c.l.b16 %v11959_v35  ;;  %v12008_v36 = vld [vmem:[%s14754_s6 + $0x20] sm:$0x1] }
  0xb6   : >> { %v1180_v51 = vor.u32 %v1179_v24, %v1175_v14  ;;  %v1184_v53 = vrot.slane %v1182_v31, 1  ;;  %v1266_v55 = vshll.u32 %v1098_v43, 16  ;;  %v1235_v56 = vshrl.u32 %v13708_v16, 16  ;;  %v959_v16 = vld [vmem:[%s14754_s6 + $0x20] sm:$0x1] }
  0xb7   : >> { %v1239_v57 = vrot.slane %v1237_v38, 1  ;;  %v1242_v58 = vshll.u32 %v1096_v33, 16  ;;  %v1264_v59 = vor.u32 %v1263_v46, %v1259_v39  ;;  %v2343_v63 = vunpack.c.l.b16 %v11913_v47  ;;  %v14851_v47 = vld [vmem:[%s14754_s6 + $0x54] sm:$0xff] }
  0xb8   : >> { %1304 = vrot.lane.b32.xlu0 %v1173_v23, %s14370_s7  ;;  %v1268_v62 = vrot.slane %v1266_v55, 1  ;;  %v2453_v0 = vpack.c.b16 %v2342_v44, %v2437_v48  ;;  %v1079_v1 = vunpack.c.l.b16 %v967_v50  ;;  %v1281_v3 = vsel %vm1101_vm9, %v1276_v41, %v1280_v42  ;;  %v964_v42 = vld [vmem:[%s14754_s6 + $0x5c] sm:$0x1] }
  0xb9   : >> { %1296 = vrot.lane.b32.xlu1 %v1125_v30, %s14370_s7  ;;  %v1283_v4 = vshrl.u32 %v13712_v26, 16  ;;  %v1287_v5 = vrot.slane %v1285_v28, 1  ;;  %v1290_v6 = vshll.u32 %v1100_v45, 16  ;;  %v1185_v8 = vsel %vm1101_vm9, %v1180_v51, %v1184_v53  ;;  %v13745_v50 = vld [vmem:[%s14754_s6 + $0x18] sm:$0xff] }
  0xba   : >> { %v1269_v9 = vsel %vm1101_vm9, %v1264_v59, %v1268_v62  ;;  %v1072_v10 = vunpack.c.l.b16 %v960_v60  ;;  %v1095_v11 = vpack.c.b16 %v1079_v1, %v1079_v1  ;;  %v1240_v12 = vor.u32 %v1239_v57, %v1235_v56  ;;  %v14170_v59 = vld [vmem:[%s14754_s6 + $0x18] sm:$0xf0] }
  0xbb   : >> { %v1244_v13 = vrot.slane %v1242_v58, 1  ;;  %v1223_v14 = vshrl.u32 %v14823_v61, 16  ;;  %v1225_v15 = vshll.u32 %v14823_v61, 16  ;;  %v14836_v18 = vpack.c.b16 %v2343_v63, %v2343_v63  ;;  %v11916_v63 = vld [vmem:[%s14754_s6 + $0x20] sm:$0x1] }
  0xbc   : >> { %v2472_v19 = vshll.u32 %v2453_v0, 16  ;;  %v1230_v20 = vshll.u32 %v1095_v11, 16  ;;  %v1288_v22 = vor.u32 %v1287_v5, %v1283_v4  ;;  %v1292_v23 = vrot.slane %v1290_v6, 1 }
  0xbd   : >> { %1320 = vrot.lane.b32.xlu2 %v1269_v9, %s14370_s7  ;;  %v1141_v24 = vshll.u32 %v13700_v7, 16  ;;  %v1227_v25 = vrot.slane %v1225_v15, 1  ;;  %v1088_v26 = vpack.c.b16 %v1072_v10, %v1072_v10  ;;  %v1071_v30 = vunpack.c.l.b16 %v959_v16 }
  0xbe   : >> { %v1232_v27 = vrot.slane %v1230_v20, 1  ;;  %v1245_v31 = vsel %vm1101_vm9, %v1240_v12, %v1244_v13  ;;  %v2470_v33 = vshrl.u32 %v2453_v0, 16  ;;  %v1139_v34 = vshrl.u32 %v13700_v7, 16  ;;  %v14171_v0 = vld [vmem:[%s14754_s6 + $0x18] sm:$0xe] }
  0xbf   : >> { %v1228_v35 = vor.u32 %v1227_v25, %v1223_v14  ;;  %v2474_v38 = vrot.slane %v2472_v19, 1  ;;  %v2477_v39 = vshll.u32 %v14836_v18, 16  ;;  %v1087_v40 = vpack.c.b16 %v1071_v30, %v1071_v30 }
  0xc0   : >> { %1322 = vrot.lane.b32.xlu0 %v1281_v3, %s14370_s7  ;;  %v1129_v41 = vshll.u32 %v14839_v21, 16  ;;  %v1293_v43 = vsel %vm1101_vm9, %v1288_v22, %v1292_v23  ;;  %v1143_v45 = vrot.slane %v1141_v24, 1  ;;  %v1127_v46 = vshrl.u32 %v14839_v21, 16  ;;  %v13729_v22 = vld [vmem:[%s14754_s6 + $0xc] sm:$0xff] }
  0xc1   : >> { %1306 = vrot.lane.b32.xlu1 %v1185_v8, %s14370_s7  ;;  %v1233_v28 = vsel %vm1101_vm9, %v1228_v35, %v1232_v27  ;;  %v1146_v48 = vshll.u32 %v1088_v26, 16  ;;  %v3563_v51 = vunpack.c.l.b16 %v12008_v36  ;;  %v1134_v55 = vshll.u32 %v1087_v40, 16 }
  0xc2   : >> { %v1131_v53 = vrot.slane %v1129_v41, 1  ;;  %v1076_v56 = vunpack.c.l.b16 %v964_v42  ;;  %v2475_v57 = vor.u32 %v2474_v38, %v2470_v33  ;;  %v2479_v58 = vrot.slane %v2477_v39, 1  ;;  %v12090_v38 = vld [vmem:[%s14754_s6 + $0x20] sm:$0x1]  ;;  %v13746_v41 = vld [vmem:[%s14754_s6 + $0x24] sm:$0xff] }
  0xc3   : >> { %v1136_v62 = vrot.slane %v1134_v55, 1  ;;  %v1189_v3 = vshll.u32 %v14851_v47, 16  ;;  %v1144_v4 = vor.u32 %v1143_v45, %v1139_v34  ;;  %v1148_v5 = vrot.slane %v1146_v48, 1  ;;  %v11961_v45 = vld [vmem:[%s14754_s6 + $0x24] sm:$0xe] }
  0xc4   : >> { %v1132_v60 = vor.u32 %v1131_v53, %v1127_v46  ;;  %v1092_v1 = vpack.c.b16 %v1076_v56, %v1076_v56  ;;  %v3579_v6 = vpack.c.b16 %v3563_v51, %v3563_v51  ;;  %v3598_v7 = vshll.u32 %v13745_v50, 16  ;;  %v13865_v53 = vld [vmem:[%s14885_s11 + $0x38] sm:$0xff] }
  0xc5   : >> { %1314 = vrot.lane.b32.xlu2 %v1233_v28, %s14370_s7  ;;  %v2480_v8 = vsel %vm1101_vm9, %v2475_v57, %v2479_v58  ;;  %v2346_v9 = vunpack.c.l.b16 %v11916_v63  ;;  %v14172_v10 = vor.u32 %v14171_v0, %v14170_v59  ;;  %v1187_v12 = vshrl.u32 %v14851_v47, 16  ;;  %v11919_v57 = vld [vmem:[%s14754_s6 + $0x2c] sm:$0x1]  ;;  %14226 = vmatpush.bf16.msra.mxu1 %v13865_v53 }
  0xc6   : >> { %v1137_v11 = vsel %vm1101_vm9, %v1132_v60, %v1136_v62  ;;  %v1191_v13 = vrot.slane %v1189_v3, 1  ;;  %v1194_v14 = vshll.u32 %v1092_v1, 16  ;;  %v1149_v15 = vsel %vm1101_vm9, %v1144_v4, %v1148_v5  ;;  %14227 = vmatpush.bf16.msra.mxu2 %v13865_v53  ;;  %5470 = vmatpush.bf16.msra.mxu0 %v13865_v53  ;;  %v13730_v4 = vld [vmem:[%s14754_s6 + $0x18] sm:$0xff] }
  0xc7   : >> { %v3596_v16 = vshrl.u32 %v13745_v50, 16  ;;  %v3600_v19 = vrot.slane %v3598_v7, 1  ;;  %v3603_v20 = vshll.u32 %v3579_v6, 16  ;;  %v14869_v23 = vpack.c.b16 %v2346_v9, %v2346_v9  ;;  %14228 = vmatpush.bf16.msra.mxu3 %v13865_v53  ;;  %v12138_v7 = vld [vmem:[%s14754_s6 + $0x18] sm:$0xe]  ;;  %v13731_v53 = vld [vmem:[%s14754_s6 + $0x24] sm:$0xff] }
  0xc8   : >> { %1316 = vrot.lane.b32.xlu0 %v1245_v31, %s14370_s7  ;;  %v2486_v24 = vshll.u32 %v14172_v10, 16  ;;  %v1192_v25 = vor.u32 %v1191_v13, %v1187_v12  ;;  %v1196_v26 = vrot.slane %v1194_v14, 1  ;;  %v12009_v31 = vld [vmem:[%s14754_s6 + $0x2c] sm:$0x1]  ;;  %v1794_v33 = vrot.slane %v13729_v22, 7  ;;  %v13864_v9 = vld [vmem:[%s14885_s11 + $0x30] sm:$0xff] }
  0xc9   : >> { %1324 = vrot.lane.b32.xlu1 %v1293_v43, %s14370_s7  ;;  %v3601_v27 = vor.u32 %v3600_v19, %v3596_v16  ;;  %v3605_v30 = vrot.slane %v3603_v20, 1  ;;  %v2484_v34 = vshrl.u32 %v14172_v10, 16  ;;  %v2491_v36 = vshll.u32 %v14869_v23, 16  ;;  %v14879_v43 = vld [vmem:[%s14754_s6 + $0x28] sm:$0xf]  ;;  %14229 = vmatpush.bf16.msra.mxu1 %v13864_v9 }
  0xca   : >> { %v2488_v35 = vrot.slane %v2486_v24, 1  ;;  %v1197_v39 = vsel %vm1101_vm9, %v1192_v25, %v1196_v26  ;;  %v3564_v42 = vunpack.c.l.b16 %v12009_v31  ;;  %v4093_v28 = vunpack.c.l.b16 %v12090_v38  ;;  %v12010_v12 = vld [vmem:[%s14754_s6 + $0x38] sm:$0x1]  ;;  %14230 = vmatpush.bf16.msra.mxu2 %v13864_v9  ;;  %v13863_v13 = vld [vmem:[%s14885_s11 + $0x28] sm:$0xff]  ;;  %5471 = vmatpush.bf16.msra.mxu0 %v13864_v9 }
  0xcb   : >> { %v3606_v40 = vsel %vm1101_vm9, %v3601_v27, %v3605_v30  ;;  %v2493_v48 = vrot.slane %v2491_v36, 1  ;;  %v18392_v50 = vunpack.c.l.b16 %v14879_v43  ;;  %v2439_v51 = vunpack.c.l.b16 %v11961_v45  ;;  %14231 = vmatpush.bf16.msra.mxu3 %v13864_v9  ;;  %v12093_v24 = vld [vmem:[%s14754_s6 + $0x2c] sm:$0x1]  ;;  %v13747_v25 = vld [vmem:[%s14754_s6 + $0x30] sm:$0xff]  ;;  %v11922_v38 = vld [vmem:[%s14754_s6 + $0x38] sm:$0x1] }
  0xcc   : >> { %v2489_v46 = vor.u32 %v2488_v35, %v2484_v34  ;;  %v3580_v55 = vpack.c.b16 %v3564_v42, %v3564_v42  ;;  %v3610_v56 = vshll.u32 %v13746_v41, 16  ;;  %v2481_v58 = vshrl.u32 %v14836_v18, 16  ;;  %v13862_v34 = vld [vmem:[%s14885_s11 + $0x20] sm:$0xff] }
  0xcd   : >> { %1298 = vrot.lane.b32.xlu2 %v1137_v11, %s14370_s7  ;;  %v14895_v60 = vpack.c.b16 %v4093_v28, %v4093_v28  ;;  %v2349_v62 = vunpack.c.l.b16 %v11919_v57  ;;  %v2455_v63 = vpack.c.b16 %v18392_v50, %v2439_v51  ;;  %v3608_v0 = vshrl.u32 %v13746_v41, 16  ;;  %14232 = vmatpush.bf16.msra.mxu1 %v13863_v13  ;;  %v12142_v57 = vld [vmem:[%s14754_s6 + $0x24] sm:$0xe] }
  0xce   : >> { %v2494_v59 = vsel %vm1101_vm9, %v2489_v46, %v2493_v48  ;;  %v3612_v1 = vrot.slane %v3610_v56, 1  ;;  %v3615_v3 = vshll.u32 %v3580_v55, 16  ;;  %v1795_v14 = vrot.slane %v13730_v4, 7  ;;  %14233 = vmatpush.bf16.msra.mxu2 %v13863_v13  ;;  %5472 = vmatpush.bf16.msra.mxu0 %v13863_v13 }
  0xcf   : >> { %v14904_v5 = vpack.c.b16 %v2349_v62, %v2349_v62  ;;  %v2500_v6 = vshll.u32 %v2455_v63, 16  ;;  %v2498_v16 = vshrl.u32 %v2455_v63, 16  ;;  %v3565_v26 = vunpack.c.l.b16 %v12010_v12  ;;  %14234 = vmatpush.bf16.msra.mxu3 %v13863_v13  ;;  %v12011_v63 = vld [vmem:[%s14754_s6 + $0x44] sm:$0x1] }
  0xd0   : >> { %2693 = vrot.lane.b32.xlu0 %v2480_v8, %s14370_s7  ;;  %v13761_v8 = vld [vmem:[%s14754_s6 + $0x18] sm:$0xf0]  ;;  %v3613_v10 = vor.u32 %v3612_v1, %v3608_v0  ;;  %v3617_v11 = vrot.slane %v3615_v3, 1  ;;  %v4096_v31 = vunpack.c.l.b16 %v12093_v24  ;;  %v3622_v36 = vshll.u32 %v13747_v25, 16 }
  0xd1   : >> { %1300 = vrot.lane.b32.xlu1 %v1149_v15, %s14370_s7  ;;  %v14911_v15 = vor.u32 %v13761_v8, %v12138_v7  ;;  %v2502_v19 = vrot.slane %v2500_v6, 1  ;;  %v2505_v20 = vshll.u32 %v14904_v5, 16  ;;  %v3581_v35 = vpack.c.b16 %v3565_v26, %v3565_v26  ;;  %14235 = vmatpush.bf16.msra.mxu1 %v13862_v34  ;;  %v14943_v7 = vld [vmem:[%s14754_s6 + $0x40] sm:$0xf]  ;;  %v11963_v8 = vld [vmem:[%s14754_s6 + $0x3c] sm:$0xe] }
  0xd2   : >> { %v3618_v22 = vsel %vm1101_vm9, %v3613_v10, %v3617_v11  ;;  %14236 = vmatpush.bf16.msra.mxu2 %v13862_v34  ;;  %v14927_v42 = vpack.c.b16 %v4096_v31, %v4096_v31  ;;  %v2352_v45 = vunpack.c.l.b16 %v11922_v38  ;;  %5473 = vmatpush.bf16.msra.mxu0 %v13862_v34  ;;  %v3620_v46 = vshrl.u32 %v13747_v25, 16  ;;  %v12096_v10 = vld [vmem:[%s14754_s6 + $0x38] sm:$0x1]  ;;  %v13748_v11 = vld [vmem:[%s14754_s6 + $0x3c] sm:$0xff]  ;;  %v11925_v25 = vld [vmem:[%s14754_s6 + $0x44] sm:$0x1] }
  0xd3   : >> { %v2503_v27 = vor.u32 %v2502_v19, %v2498_v16  ;;  %v2507_v30 = vrot.slane %v2505_v20, 1  ;;  %v3624_v48 = vrot.slane %v3622_v36, 1  ;;  %v3627_v51 = vshll.u32 %v3581_v35, 16  ;;  %14237 = vmatpush.bf16.msra.mxu3 %v13862_v34  ;;  %v13861_v26 = vld [vmem:[%s14885_s11 + $0x18] sm:$0xff] }
  0xd4   : >> { %v14934_v55 = vpack.c.b16 %v2352_v45, %v2352_v45  ;;  %v1796_v0 = vrot.slane %v13731_v53, 7  ;;  %v3566_v12 = vunpack.c.l.b16 %v12011_v63  ;;  %v18391_v13 = vunpack.c.l.b16 %v14943_v7  ;;  %v12146_v53 = vld [vmem:[%s14754_s6 + $0x30] sm:$0xe]  ;;  %v13749_v63 = vld [vmem:[%s14754_s6 + $0x48] sm:$0xff] }
  0xd5   : >> { %1308 = vrot.lane.b32.xlu2 %v1197_v39, %s14370_s7  ;;  %v14174_v39 = vld [vmem:[%s14754_s6 + $0x30] sm:$0xe]  ;;  %v2508_v41 = vsel %vm1101_vm9, %v2503_v27, %v2507_v30  ;;  %v3629_v62 = vrot.slane %v3627_v51, 1  ;;  %v4099_v20 = vunpack.c.l.b16 %v12096_v10  ;;  %v3634_v24 = vshll.u32 %v13748_v11, 16  ;;  %14238 = vmatpush.bf16.msra.mxu1 %v13861_v26  ;;  %v14177_v10 = vld [vmem:[%s14754_s6 + $0x48] sm:$0xe] }
  0xd6   : >> { %v2519_v6 = vshll.u32 %v14934_v55, 16  ;;  %v2509_v30 = vshrl.u32 %v14904_v5, 16  ;;  %v2355_v34 = vunpack.c.l.b16 %v11925_v25  ;;  %v3632_v35 = vshrl.u32 %v13748_v11, 16  ;;  %14239 = vmatpush.bf16.msra.mxu2 %v13861_v26  ;;  %5474 = vmatpush.bf16.msra.mxu0 %v13861_v26 }
  0xd7   : >> { %v3636_v36 = vrot.slane %v3634_v24, 1  ;;  %14240 = vmatpush.bf16.msra.mxu3 %v13861_v26  ;;  %v3644_v25 = vshrl.u32 %v13749_v63, 16 }
  0xd8   : >> { %1810 = vrot.lane.b32.xlu0 %v1794_v33, %s14370_s7  ;;  %v14173_v33 = vld [vmem:[%s14754_s6 + $0x30] sm:$0xf0]  ;;  %v2521_v19 = vrot.slane %v2519_v6, 1  ;;  %v14968_v45 = vpack.c.b16 %v2355_v34, %v2355_v34 }
  0xd9   : >> { %3787 = vrot.lane.b32.xlu1 %v3606_v40, %s14370_s7  ;;  %v2495_v40 = vshrl.u32 %v14869_v23, 16  ;;  %v14175_v28 = vor.u32 %v14174_v39, %v14173_v33  ;;  %v14960_v33 = vpack.c.b16 %v4099_v20, %v4099_v20  ;;  %v13732_v39 = vld [vmem:[%s14754_s6 + $0x30] sm:$0xff] }
  0xda   : >> { %v1797_v51 = vrot.slane %v13732_v39, 7  ;;  %v13733_v39 = vld [vmem:[%s14754_s6 + $0x3c] sm:$0xff] }
  0xdb   : >> { %v2514_v56 = vshll.u32 %v14175_v28, 16  ;;  %v2512_v1 = vshrl.u32 %v14175_v28, 16  ;;  %v12012_v28 = vld [vmem:[%s14754_s6 + $0x50] sm:$0x1] }
  0xdd   : >> { %2695 = vrot.lane.b32.xlu2 %v2481_v58, %s14370_s7  ;;  %v13762_v58 = vld [vmem:[%s14754_s6 + $0x24] sm:$0xf0]  ;;  %v2516_v4 = vrot.slane %v2514_v56, 1  ;;  %v13763_v56 = vld [vmem:[%s14754_s6 + $0x30] sm:$0xf0] }
  0xde   : >> { %v14939_v3 = vor.u32 %v13762_v58, %v12142_v57 }
  0xdf   : >> { %v2517_v16 = vor.u32 %v2516_v4, %v2512_v1  ;;  %v2533_v1 = vshll.u32 %v14968_v45, 16  ;;  %v12099_v4 = vld [vmem:[%s14754_s6 + $0x44] sm:$0x1] }
  0xe0   : >> { %2697 = vrot.lane.b32.xlu0 %v2494_v59, %s14370_s7  ;;  %v3625_v59 = vor.u32 %v3624_v48, %v3620_v46  ;;  %v3637_v46 = vor.u32 %v3636_v36, %v3632_v35  ;;  %v4102_v20 = vunpack.c.l.b16 %v12099_v4 }
  0xe1   : >> { %4173 = vrot.lane.b32.xlu1 %v14895_v60, %s14370_s7  ;;  %v2522_v31 = vsel %vm1101_vm9, %v2517_v16, %v2521_v19  ;;  %v13858_v16 = vld [vmem:[%s14885_s11] sm:$0xff]  ;;  %v2535_v19 = vrot.slane %v2533_v1, 1  ;;  %v1798_v1 = vrot.slane %v13733_v39, 7 }
  0xe2   : >> { %v3630_v9 = vsel %vm1101_vm9, %v3625_v59, %v3629_v62  ;;  %v13859_v59 = vld [vmem:[%s14885_s11 + $0x8] sm:$0xff]  ;;  %v14974_v62 = vor.u32 %v13763_v56, %v12146_v53  ;;  %v14990_v34 = vpack.c.b16 %v4102_v20, %v4102_v20  ;;  %v13881_v53 = vld [vmem:[%s14885_s11 + $0xb8] sm:$0xff] }
  0xe3   : >> { %v13889_v56 = vld [vmem:[%s14885_s11 + $0xf8] sm:$0xff] }
  0xe5   : >> { %4171 = vrot.lane.b32.xlu2 %v14911_v15, %s14370_s7 }
  0xe8   : >> { %1812 = vrot.lane.b32.xlu0 %v1795_v14, %s14370_s7  ;;  %v2441_v14 = vunpack.c.l.b16 %v11963_v8  ;;  %v14176_v8 = vld [vmem:[%s14754_s6 + $0x48] sm:$0xf0] }
  0xe9   : >> { %3789 = vrot.lane.b32.xlu1 %v3618_v22, %s14370_s7  ;;  %v3582_v22 = vpack.c.b16 %v3566_v12, %v3566_v12  ;;  %v14178_v24 = vor.u32 %v14177_v10, %v14176_v8  ;;  %v13764_v8 = vld [vmem:[%s14754_s6 + $0x3c] sm:$0xf0] }
  0xea   : >> { %v2457_v27 = vpack.c.b16 %v18391_v13, %v2441_v14  ;;  %v3646_v14 = vshll.u32 %v13749_v63, 16  ;;  %v15008_v63 = vld [vmem:[%s14754_s6 + $0x58] sm:$0xf] }
  0xeb   : >> { %v3639_v38 = vshll.u32 %v3582_v22, 16  ;;  %v2542_v36 = vshll.u32 %v14178_v24, 16  ;;  %v18390_v10 = vunpack.c.l.b16 %v15008_v63 }
  0xec   : >> { %v2526_v57 = vshrl.u32 %v2457_v27, 16  ;;  %v3648_v26 = vrot.slane %v3646_v14, 1 }
  0xed   : >> { %2699 = vrot.lane.b32.xlu2 %v2495_v40, %s14370_s7  ;;  %v2528_v40 = vshll.u32 %v2457_v27, 16  ;;  %v3641_v48 = vrot.slane %v3639_v38, 1  ;;  %v12013_v38 = vld [vmem:[%s14754_s6 + $0x5c] sm:$0x1] }
  0xef   : >> { %v2530_v58 = vrot.slane %v2528_v40, 1  ;;  %v3642_v6 = vsel %vm1101_vm9, %v3637_v46, %v3641_v48  ;;  %v14997_v40 = vld [vmem:[%s14754_s6 + $0x54] sm:$0xff]  ;;  %v2540_v46 = vshrl.u32 %v14178_v24, 16  ;;  %v2544_v48 = vrot.slane %v2542_v36, 1 }
  0xf0   : >> { %2701 = vrot.lane.b32.xlu0 %v2508_v41, %s14370_s7  ;;  %v13860_v41 = vld [vmem:[%s14885_s11 + $0x10] sm:$0xff] }
  0xf1   : >> { %4177 = vrot.lane.b32.xlu1 %v14927_v42, %s14370_s7  ;;  %14241 = vmatpush.bf16.msra.mxu1 %v13860_v41  ;;  %v2531_v11 = vor.u32 %v2530_v58, %v2526_v57  ;;  %v3568_v57 = vunpack.c.l.b16 %v12013_v38  ;;  %v2545_v20 = vor.u32 %v2544_v48, %v2540_v46  ;;  %v13897_v38 = vld [vmem:[%s14885_s11 + $0x138] sm:$0xff] }
  0xf2   : >> { %14242 = vmatpush.bf16.msra.mxu2 %v13860_v41  ;;  %5475 = vmatpush.bf16.msra.mxu0 %v13860_v41 }
  0xf3   : >> { %14243 = vmatpush.bf16.msra.mxu3 %v13860_v41  ;;  %v3649_v41 = vor.u32 %v3648_v26, %v3644_v25  ;;  %v3584_v24 = vpack.c.b16 %v3568_v57, %v3568_v57  ;;  %v13880_v25 = vld [vmem:[%s14885_s11 + $0xb0] sm:$0xff] }
  0xf4   : >> { %v13888_v26 = vld [vmem:[%s14885_s11 + $0xf0] sm:$0xff] }
  0xf5   : >> { %4175 = vrot.lane.b32.xlu2 %v14939_v3, %s14370_s7  ;;  %14244 = vmatpush.bf16.msra.mxu1 %v13859_v59  ;;  %v3663_v46 = vshll.u32 %v3584_v24, 16 }
  0xf6   : >> { %14245 = vmatpush.bf16.msra.mxu2 %v13859_v59  ;;  %5476 = vmatpush.bf16.msra.mxu0 %v13859_v59 }
  0xf7   : >> { %14246 = vmatpush.bf16.msra.mxu3 %v13859_v59  ;;  %v12102_v59 = vld [vmem:[%s14754_s6 + $0x50] sm:$0x1] }
  0xf8   : >> { %1814 = vrot.lane.b32.xlu0 %v1796_v0, %s14370_s7  ;;  %v3567_v0 = vunpack.c.l.b16 %v12012_v28  ;;  %v4105_v36 = vunpack.c.l.b16 %v12102_v59 }
  0xf9   : >> { %3791 = vrot.lane.b32.xlu1 %v3630_v9, %s14370_s7  ;;  %v11928_v9 = vld [vmem:[%s14754_s6 + $0x50] sm:$0x1]  ;;  %14247 = vmatpush.bf16.msra.mxu1 %v13858_v16 }
  0xfa   : >> { %v3583_v12 = vpack.c.b16 %v3567_v0, %v3567_v0  ;;  %v2358_v22 = vunpack.c.l.b16 %v11928_v9  ;;  %14248 = vmatpush.bf16.msra.mxu2 %v13858_v16  ;;  %5477 = vmatpush.bf16.msra.mxu0 %v13858_v16  ;;  %v11965_v0 = vld [vmem:[%s14754_s6 + $0x54] sm:$0xe]  ;;  %v3658_v9 = vshll.u32 %v14997_v40, 16 }
  0xfb   : >> { %14249 = vmatpush.bf16.msra.mxu3 %v13858_v16 }
  0xfc   : >> { %v3651_v27 = vshll.u32 %v3583_v12, 16  ;;  %v14992_v35 = vpack.c.b16 %v2358_v22, %v2358_v22  ;;  %v13873_v22 = vld [vmem:[%s14885_s11 + $0x78] sm:$0xff] }
  0xfd   : >> { %2703 = vrot.lane.b32.xlu2 %v2509_v30, %s14370_s7  ;;  %v2523_v30 = vshrl.u32 %v14934_v55, 16  ;;  %5559 = vmatpush.bf16.msrb.mxu1 %v13873_v22  ;;  %v13879_v22 = vld [vmem:[%s14885_s11 + $0xa8] sm:$0xff] }
  0xfe   : >> { %v3653_v28 = vrot.slane %v3651_v27, 1  ;;  %5648 = vmatpush.bf16.msrb.mxu2 %v13881_v53  ;;  %v2443_v27 = vunpack.c.l.b16 %v11965_v0  ;;  %5826 = vmatpush.bf16.msrb.mxu0 %v13897_v38  ;;  %v15056_v38 = vld [vmem:[%s14754_s6 + $0x60] sm:$0xff] }
  0xff   : >> { %5737 = vmatpush.bf16.msrb.mxu3 %v13889_v56 }
 0x100   : >> { %2705 = vrot.lane.b32.xlu0 %v2522_v31, %s14370_s7  ;;  %v2536_v31 = vsel %vm1101_vm9, %v2531_v11, %v2535_v19  ;;  %v3654_v11 = vsel %vm1101_vm9, %v3649_v41, %v3653_v28  ;;  %v11931_v19 = vld [vmem:[%s14754_s6 + $0x5c] sm:$0x1]  ;;  %v3656_v41 = vshrl.u32 %v14997_v40, 16  ;;  %v3660_v28 = vrot.slane %v3658_v9, 1 }
 0x101   : >> { %4181 = vrot.lane.b32.xlu1 %v14960_v33, %s14370_s7  ;;  %v2361_v39 = vunpack.c.l.b16 %v11931_v19  ;;  %v15028_v53 = vpack.c.b16 %v18390_v10, %v2443_v27  ;;  %v12014_v27 = vld [vmem:[%s14754_s6 + $0x68] sm:$0x1] }
 0x102   : >> { %5649 = vmatpush.bf16.msrb.mxu2 %v13880_v25 }
 0x103   : >> { %5738 = vmatpush.bf16.msrb.mxu3 %v13888_v26  ;;  %v15037_v57 = vpack.c.b16 %v2361_v39, %v2361_v39  ;;  %v2537_v26 = vshrl.u32 %v14968_v45, 16 }
 0x105   : >> { %4179 = vrot.lane.b32.xlu2 %v14974_v62, %s14370_s7  ;;  %18444 = vst [vmem:[#allocation7_spill] sm:$0xff] %v15037_v57  ;;  %v2561_v25 = vshll.u32 %v15037_v57, 16 }
 0x106   : >> { %5650 = vmatpush.bf16.msrb.mxu2 %v13879_v22 }
 0x108   : >> { %1816 = vrot.lane.b32.xlu0 %v1797_v51, %s14370_s7  ;;  %v2547_v51 = vshll.u32 %v14992_v35, 16 }
 0x109   : >> { %3793 = vrot.lane.b32.xlu1 %v3642_v6, %s14370_s7  ;;  %v12150_v6 = vld [vmem:[%s14754_s6 + $0x3c] sm:$0xe] }
 0x10a   : >> { %v15018_v16 = vor.u32 %v13764_v8, %v12150_v6 }
 0x10d   : >> { %2707 = vrot.lane.b32.xlu2 %v2523_v30, %s14370_s7 }
 0x10f   : >> { %v1313_v58 = vpop.permute.xlu2 %1312 }
 0x110   : >> { %2709 = vrot.lane.b32.xlu0 %v2536_v31, %s14370_s7  ;;  %v1346_v4 = vsel %vm1326_vm10, %v14788_v49, %v1313_v58  ;;  %v2549_v49 = vrot.slane %v2547_v51, 1  ;;  %v15035_v51 = vpack.c.b16 %v4105_v36, %v4105_v36 }
 0x111   : >> { %4185 = vrot.lane.b32.xlu1 %v14990_v34, %s14370_s7  ;;  %v1393_v12 = vunpack.c.l.b16 %v1346_v4  ;;  %v1394_v14 = vunpack.c.h.b16 %v1346_v4  ;;  %v2556_v4 = vshll.u32 %v15028_v53, 16 }
 0x112   : >> { %v2550_v40 = vsel %vm1101_vm9, %v2545_v20, %v2549_v49  ;;  %v15047_v20 = vld [vmem:[%s14754_s6 + $0x48] sm:$0xff]  ;;  %v13872_v49 = vld [vmem:[%s14885_s11 + $0x70] sm:$0xff] }
 0x113   : >> { %v1425_v30 = vpack.c.b16 %v1393_v12, %v1393_v12  ;;  %v1426_v31 = vpack.c.b16 %v1394_v14, %v1394_v14  ;;  %v2558_v36 = vrot.slane %v2556_v4, 1  ;;  %5560 = vmatpush.bf16.msrb.mxu1 %v13872_v49  ;;  %v14296_v49 = vld [vmem:[%s14754_s6] sm:$0xff] }
 0x115   : >> { %1489 = vst [vmem:[#allocation3 + $0x168] sm:$0xf] %v1425_v30  ;;  %4183 = vrot.lane.b32.xlu2 %v15018_v16, %s14370_s7 }
 0x116   : >> { %1490 = vst [vmem:[#allocation3 + $0x17c] sm:$0xf] %v1426_v31 }
 0x117   : >> { %v1321_v56 = vpop.permute.xlu2 %1320 }
 0x118   : >> { %1818 = vrot.lane.b32.xlu0 %v1798_v1, %s14370_s7  ;;  %v1354_v0 = vsel %vm1326_vm10, %v14802_v17, %v1321_v56  ;;  %v3661_v1 = vor.u32 %v3660_v28, %v3656_v41  ;;  %v1799_v28 = vrot.slane %v15047_v20, 7  ;;  %v12105_v56 = vld [vmem:[%s14754_s6 + $0x5c] sm:$0x1] }
 0x119   : >> { %3795 = vrot.lane.b32.xlu1 %v3654_v11, %s14370_s7  ;;  %v1401_v11 = vunpack.c.l.b16 %v1354_v0  ;;  %v1402_v19 = vunpack.c.h.b16 %v1354_v0 }
 0x11a   : >> { %v1311_v48 = vpop.permute.xlu0 %1310 }
 0x11b   : >> { %v1344_v58 = vsel %vm1326_vm10, %v14757_v52, %v1311_v48  ;;  %v1303_v59 = vpop.permute.xlu1 %1302  ;;  %v3665_v52 = vrot.slane %v3663_v46, 1  ;;  %v1433_v39 = vpack.c.b16 %v1401_v11, %v1401_v11  ;;  %v1434_v41 = vpack.c.b16 %v1402_v19, %v1402_v19  ;;  %v13887_v11 = vld [vmem:[%s14885_s11 + $0xe8] sm:$0xff] }
 0x11c   : >> { %v1391_v6 = vunpack.c.l.b16 %v1344_v58  ;;  %v1392_v8 = vunpack.c.h.b16 %v1344_v58  ;;  %v1336_v9 = vsel %vm1326_vm10, %v14761_v54, %v1303_v59  ;;  %v2554_v54 = vshrl.u32 %v15028_v53, 16  ;;  %v14295_v59 = vld [vmem:[%s14754_s6 + $0x90] sm:$0xff]  ;;  %5739 = vmatpush.bf16.msrb.mxu3 %v13887_v11 }
 0x11d   : >> { %v1383_v12 = vunpack.c.l.b16 %v1336_v9  ;;  %v1384_v14 = vunpack.c.h.b16 %v1336_v9  ;;  %2711 = vrot.lane.b32.xlu2 %v2537_v26, %s14370_s7  ;;  %v3569_v53 = vunpack.c.l.b16 %v12014_v27  ;;  %v3670_v58 = vshll.u32 %v15056_v38, 16  ;;  %1497 = vst [vmem:[#allocation3 + $0x208] sm:$0xf] %v1433_v39  ;;  %v13878_v27 = vld [vmem:[%s14885_s11 + $0xa0] sm:$0xff] }
 0x11e   : >> { %v1423_v17 = vpack.c.b16 %v1391_v6, %v1391_v6  ;;  %v1424_v24 = vpack.c.b16 %v1392_v8, %v1392_v8  ;;  %v3666_v6 = vsel %vm1101_vm9, %v3661_v1, %v3665_v52  ;;  %v2559_v9 = vor.u32 %v2558_v36, %v2554_v54  ;;  %1498 = vst [vmem:[#allocation3 + $0x21c] sm:$0xf] %v1434_v41  ;;  %v14179_v39 = vld [vmem:[%s14754_s6 + $0x60] sm:$0xf0] }
 0x11f   : >> { %v1415_v30 = vpack.c.b16 %v1383_v12, %v1383_v12  ;;  %v1416_v31 = vpack.c.b16 %v1384_v14, %v1384_v14  ;;  %v1315_v48 = vpop.permute.xlu2 %1314  ;;  %v13896_v12 = vld [vmem:[%s14885_s11 + $0x130] sm:$0xff]  ;;  %v12154_v14 = vld [vmem:[%s14754_s6 + $0x48] sm:$0xe]  ;;  %v3585_v26 = vpack.c.b16 %v3569_v53, %v3569_v53  ;;  %v4108_v54 = vunpack.c.l.b16 %v12105_v56  ;;  %5651 = vmatpush.bf16.msrb.mxu2 %v13878_v27 }
 0x120   : >> { %1487 = vst [vmem:[#allocation3 + $0x140] sm:$0xf] %v1423_v17  ;;  %2713 = vrot.lane.b32.xlu0 %v2550_v40, %s14370_s7  ;;  %v2563_v40 = vrot.slane %v2561_v25, 1  ;;  %v1348_v8 = vsel %vm1326_vm10, %v14823_v61, %v1315_v48  ;;  %5827 = vmatpush.bf16.msrb.mxu0 %v13896_v12  ;;  %v13871_v25 = vld [vmem:[%s14885_s11 + $0x68] sm:$0xff]  ;;  %v3668_v41 = vshrl.u32 %v15056_v38, 16  ;;  %v3672_v56 = vrot.slane %v3670_v58, 1 }
 0x121   : >> { %1488 = vst [vmem:[#allocation3 + $0x154] sm:$0xf] %v1424_v24  ;;  %4189 = vrot.lane.b32.xlu1 %v15035_v51, %s14370_s7  ;;  %v1395_v17 = vunpack.c.l.b16 %v1348_v8  ;;  %v13765_v24 = vld [vmem:[%s14754_s6 + $0x48] sm:$0xf0]  ;;  %v1396_v61 = vunpack.c.h.b16 %v1348_v8  ;;  %5561 = vmatpush.bf16.msrb.mxu1 %v13871_v25 }
 0x122   : >> { %1479 = vst [vmem:[#allocation3 + $0xa0] sm:$0xf] %v1415_v30  ;;  %v1319_v46 = vpop.permute.xlu0 %1318  ;;  %v15078_v36 = vor.u32 %v13765_v24, %v12154_v14  ;;  %v15094_v24 = vld [vmem:[%s14754_s6 + $0x54] sm:$0xff] }
 0x123   : >> { %1480 = vst [vmem:[#allocation3 + $0xb4] sm:$0xf] %v1416_v31  ;;  %v1352_v0 = vsel %vm1326_vm10, %v14295_v59, %v1319_v46  ;;  %v1295_v4 = vpop.permute.xlu1 %1294  ;;  %v11934_v46 = vld [vmem:[%s14754_s6 + $0x68] sm:$0x1]  ;;  %v1427_v53 = vpack.c.b16 %v1395_v17, %v1395_v17  ;;  %v1428_v38 = vpack.c.b16 %v1396_v61, %v1396_v61  ;;  %v15091_v17 = vpack.c.b16 %v4108_v54, %v4108_v54 }
 0x124   : >> { %v1399_v19 = vunpack.c.l.b16 %v1352_v0  ;;  %v1400_v20 = vunpack.c.h.b16 %v1352_v0  ;;  %v1328_v22 = vsel %vm1326_vm10, %v14296_v49, %v1295_v4  ;;  %v14180_v4 = vld [vmem:[%s14754_s6 + $0x60] sm:$0xe]  ;;  %v2364_v11 = vunpack.c.l.b16 %v11934_v46 }
 0x125   : >> { %v1375_v1 = vunpack.c.l.b16 %v1328_v22  ;;  %v1376_v52 = vunpack.c.h.b16 %v1328_v22  ;;  %4187 = vrot.lane.b32.xlu2 %v15078_v36, %s14370_s7  ;;  %v3675_v49 = vshll.u32 %v3585_v26, 16  ;;  %18445 = vst [vmem:[#allocation8_spill] sm:$0xff] %v15091_v17  ;;  %v15102_v26 = vld [vmem:[#allocation3 + $0x178] sm:$0xf0] }
 0x126   : >> { %v1431_v30 = vpack.c.b16 %v1399_v19, %v1399_v19  ;;  %v1432_v31 = vpack.c.b16 %v1400_v20, %v1400_v20  ;;  %v15088_v19 = vld [vmem:[#allocation3 + $0x168] sm:$0xf]  ;;  %v2564_v20 = vsel %vm1101_vm9, %v2559_v9, %v2563_v40  ;;  %1491 = vst [vmem:[#allocation3 + $0x190] sm:$0xf] %v1427_v53  ;;  %v15174_v53 = vld [vmem:[%s14754_s6] sm:$0xf0] }
 0x127   : >> { %v1407_v48 = vpack.c.b16 %v1375_v1, %v1375_v1  ;;  %v1408_v59 = vpack.c.b16 %v1376_v52, %v1376_v52  ;;  %v12379_v0 = vld [vmem:[#allocation3 + $0x140] sm:$0xf]  ;;  %v1299_v58 = vpop.permute.xlu2 %1298  ;;  %v3673_v1 = vor.u32 %v3672_v56, %v3668_v41  ;;  %v15098_v52 = vor.u32 %v14180_v4, %v14179_v39  ;;  %v14297_v40 = vld [vmem:[%s14754_s6 + $0x3c] sm:$0xff]  ;;  %1492 = vst [vmem:[#allocation3 + $0x1a4] sm:$0xf] %v1428_v38 }
 0x128   : >> { %1495 = vst [vmem:[#allocation3 + $0x1e0] sm:$0xf] %v1431_v30  ;;  %v13819_v8 = vld [vmem:[#allocation3 + $0x150] sm:$0xf0]  ;;  %1820 = vrot.lane.b32.xlu0 %v1799_v28, %s14370_s7  ;;  %v1332_v27 = vsel %vm1326_vm10, %v14839_v21, %v1299_v58  ;;  %v3677_v56 = vrot.slane %v3675_v49, 1 }
 0x129   : >> { %1496 = vst [vmem:[#allocation3 + $0x1f4] sm:$0xf] %v1432_v31  ;;  %v12380_v12 = vor.u32 %v13819_v8, %v12379_v0  ;;  %v12299_v14 = vld [vmem:[#allocation3 + $0xa0] sm:$0xf]  ;;  %3797 = vrot.lane.b32.xlu1 %v3666_v6, %s14370_s7  ;;  %v15096_v6 = vpack.c.b16 %v2364_v11, %v2364_v11  ;;  %v13886_v30 = vld [vmem:[%s14885_s11 + $0xe0] sm:$0xff]  ;;  %v13895_v31 = vld [vmem:[%s14885_s11 + $0x128] sm:$0xff]  ;;  %v1379_v0 = vunpack.c.l.b16 %v1332_v27  ;;  %v1380_v21 = vunpack.c.h.b16 %v1332_v27 }
 0x12a   : >> { %1471 = vst [vmem:[#allocation3] sm:$0xf] %v1407_v48  ;;  %v1305_v28 = vpop.permute.xlu0 %1304  ;;  %v13799_v22 = vld [vmem:[#allocation3 + $0xb0] sm:$0xf0]  ;;  %v15112_v8 = vld [vmem:[#allocation3 + $0x218] sm:$0xf0]  ;;  %5740 = vmatpush.bf16.msrb.mxu3 %v13886_v30  ;;  %5828 = vmatpush.bf16.msrb.mxu0 %v13895_v31 }
 0x12b   : >> { %1472 = vst [vmem:[#allocation3 + $0x14] sm:$0xf] %v1408_v59  ;;  %5518 = vmatmul.bf16.vlgmr.msra.gmra.mxu2 %v12380_v12  ;;  %v1338_v9 = vsel %vm1326_vm10, %v14297_v40, %v1305_v28  ;;  %v12300_v61 = vor.u32 %v13799_v22, %v12299_v14  ;;  %v1297_v25 = vpop.permute.xlu1 %1296  ;;  %v14298_v48 = vld [vmem:[%s14754_s6 + $0xc] sm:$0xff]  ;;  %v15110_v59 = vld [vmem:[#allocation3 + $0x208] sm:$0xf]  ;;  %v1800_v28 = vrot.slane %v15094_v24, 7  ;;  %v1411_v31 = vpack.c.b16 %v1379_v0, %v1379_v0 }
 0x12c   : >> { %v1385_v54 = vunpack.c.l.b16 %v1338_v9  ;;  %v1386_v46 = vunpack.c.h.b16 %v1338_v9  ;;  %v1330_v39 = vsel %vm1326_vm10, %v14298_v48, %v1297_v25  ;;  %v13870_v11 = vld [vmem:[%s14885_s11 + $0x60] sm:$0xff]  ;;  %v2570_v49 = vshll.u32 %v15098_v52, 16  ;;  %v15125_v25 = vld [vmem:[%s14754_s6 + $0x74] sm:$0x1] }
 0x12d   : >> { %5498 = vmatmul.bf16.vlgmr.msra.gmra.mxu1 %v12300_v61  ;;  %v1377_v41 = vunpack.c.l.b16 %v1330_v39  ;;  %v1378_v4 = vunpack.c.h.b16 %v1330_v39  ;;  %v11911_v22 = vld [vmem:[%s14754_s6 + $0xc] sm:$0xf]  ;;  %v15120_v58 = vld [vmem:[%s14754_s6 + $0x68] sm:$0x1]  ;;  %v2568_v61 = vshrl.u32 %v15098_v52, 16  ;;  %v1412_v52 = vpack.c.b16 %v1380_v21, %v1380_v21 }
 0x12e   : >> { %v1417_v12 = vpack.c.b16 %v1385_v54, %v1385_v54  ;;  %v1418_v14 = vpack.c.b16 %v1386_v46, %v1386_v46  ;;  %5562 = vmatpush.bf16.msrb.mxu1 %v13870_v11  ;;  %v2575_v54 = vshll.u32 %v15096_v6, 16  ;;  %v2551_v46 = vshrl.u32 %v14992_v35, 16  ;;  %1475 = vst [vmem:[#allocation3 + $0x50] sm:$0xf] %v1411_v31  ;;  %v13894_v31 = vld [vmem:[%s14885_s11 + $0x120] sm:$0xff] }
 0x12f   : >> { %v12459_v40 = vld [vmem:[#allocation3 + $0x1e0] sm:$0xf]  ;;  %v1409_v38 = vpack.c.b16 %v1377_v41, %v1377_v41  ;;  %v1410_v9 = vpack.c.b16 %v1378_v4, %v1378_v4  ;;  %v15135_v41 = vsel %vm1101_vm9, %v3673_v1, %v3677_v56  ;;  %v13877_v4 = vld [vmem:[%s14885_s11 + $0x98] sm:$0xff]  ;;  %v2572_v10 = vrot.slane %v2570_v49, 1  ;;  %v14299_v56 = vld [vmem:[%s14754_s6 + $0xa8] sm:$0xff]  ;;  %5829 = vmatpush.bf16.msrb.mxu0 %v13894_v31 }
 0x130   : >> { %1481 = vst [vmem:[#allocation3 + $0xc8] sm:$0xf] %v1417_v12  ;;  %v13839_v27 = vld [vmem:[#allocation3 + $0x1f0] sm:$0xf0]  ;;  %2717 = vrot.lane.b32.xlu0 %v2564_v20, %s14370_s7  ;;  %v2341_v20 = vunpack.c.l.b16 %v11911_v22  ;;  %v1309_v12 = vpop.permute.xlu2 %1308  ;;  %v2577_v13 = vrot.slane %v2575_v54, 1  ;;  %2715 = vrot.lane.b32.xlu2 %v2551_v46, %s14370_s7 }
 0x131   : >> { %1482 = vst [vmem:[#allocation3 + $0xdc] sm:$0xf] %v1418_v14  ;;  %v12219_v48 = vld [vmem:[#allocation3] sm:$0xf]  ;;  %v12460_v39 = vor.u32 %v13839_v27, %v12459_v40  ;;  %4193 = vrot.lane.b32.xlu1 %v15091_v17, %s14370_s7  ;;  %v4111_v14 = vunpack.c.l.b16 %v15120_v58  ;;  %v1342_v49 = vsel %vm1326_vm10, %v14851_v47, %v1309_v12  ;;  %5652 = vmatpush.bf16.msrb.mxu2 %v13877_v4  ;;  %v14300_v27 = vld [vmem:[%s14754_s6 + $0x48] sm:$0xff] }
 0x132   : >> { %v13779_v11 = vld [vmem:[#allocation3 + $0x10] sm:$0xf0]  ;;  %1473 = vst [vmem:[#allocation3 + $0x28] sm:$0xf] %v1409_v38  ;;  %v1323_v0 = vpop.permute.xlu0 %1322  ;;  %v15143_v38 = vld [vmem:[#allocation3 + $0x190] sm:$0xf]  ;;  %v15157_v12 = vpack.c.b16 %v2342_v44, %v2341_v20  ;;  %v2573_v50 = vor.u32 %v2572_v10, %v2568_v61 }
 0x133   : >> { %v12220_v21 = vor.u32 %v13779_v11, %v12219_v48  ;;  %5538 = vmatmul.bf16.vlgmr.msra.gmra.mxu3 %v12460_v39  ;;  %1474 = vst [vmem:[#allocation3 + $0x3c] sm:$0xf] %v1410_v9  ;;  %v1307_v1 = vpop.permute.xlu1 %1306  ;;  %v1356_v22 = vsel %vm1326_vm10, %v14299_v56, %v1323_v0  ;;  %v15149_v9 = vld [vmem:[#allocation3 + $0x1a0] sm:$0xf0]  ;;  %v1389_v48 = vunpack.c.l.b16 %v1342_v49  ;;  %v15153_v11 = vld [vmem:[%s14754_s6 + $0x6c] sm:$0xff]  ;;  %v1390_v0 = vunpack.c.h.b16 %v1342_v49  ;;  %v14301_v31 = vld [vmem:[%s14754_s6 + $0x84] sm:$0xff] }
 0x134   : >> { %v1340_v58 = vsel %vm1326_vm10, %v14300_v27, %v1307_v1  ;;  %v1403_v54 = vunpack.c.l.b16 %v1356_v22  ;;  %v1404_v46 = vunpack.c.h.b16 %v1356_v22  ;;  %v12158_v39 = vld [vmem:[%s14754_s6 + $0x54] sm:$0xe]  ;;  %1476 = vst [vmem:[#allocation3 + $0x64] sm:$0xf] %v1412_v52  ;;  %v13885_v1 = vld [vmem:[%s14885_s11 + $0xd8] sm:$0xff]  ;;  %v15164_v30 = vpack.c.b16 %v4111_v14, %v4111_v14 }
 0x135   : >> { %5478 = vmatmul.bf16.vlgmr.msra.gmra.mxu0 %v12220_v21  ;;  %v1387_v47 = vunpack.c.l.b16 %v1340_v58  ;;  %v1388_v4 = vunpack.c.h.b16 %v1340_v58  ;;  %v13766_v56 = vld [vmem:[%s14754_s6 + $0x54] sm:$0xf0]  ;;  %v15167_v21 = vld [vmem:[%s14754_s6 + $0x60] sm:$0xff]  ;;  %5741 = vmatpush.bf16.msrb.mxu3 %v13885_v1  ;;  %v1421_v10 = vpack.c.b16 %v1389_v48, %v1389_v48  ;;  %v2578_v1 = vsel %vm1101_vm9, %v2573_v50, %v2577_v13  ;;  %v11967_v48 = vld [vmem:[%s14754_s6 + $0x6c] sm:$0xe] }
 0x136   : >> { %v1435_v22 = vpack.c.b16 %v1403_v54, %v1403_v54  ;;  %18446 = vst [vmem:[#allocation9_spill] sm:$0xff] %v15164_v30  ;;  %v13869_v52 = vld [vmem:[%s14885_s11 + $0x58] sm:$0xff]  ;;  %v1436_v58 = vpack.c.b16 %v1404_v46, %v1404_v46  ;;  %v1505_v54 = vld [vmem:[%s14754_s6 + $0x8] sm:$0x1]  ;;  %v15180_v61 = vor.u32 %v13766_v56, %v12158_v39  ;;  %v13876_v27 = vld [vmem:[%s14885_s11 + $0x90] sm:$0xff]  ;;  %v3682_v50 = vshll.u32 %v15153_v11, 16 }
 0x137   : >> { %v15171_v49 = vld [vmem:[%s14754_s6] sm:$0xe]  ;;  %v1419_v44 = vpack.c.b16 %v1387_v47, %v1387_v47  ;;  %v1420_v20 = vpack.c.b16 %v1388_v4, %v1388_v4  ;;  %5563 = vmatpush.bf16.msrb.mxu1 %v13869_v52  ;;  %v1636_v14 = vunpack.c.l.b16 %v1505_v54  ;;  %v1422_v4 = vpack.c.b16 %v1390_v0, %v1390_v0  ;;  %5653 = vmatpush.bf16.msrb.mxu2 %v13876_v27 }
 0x138   : >> { %v12319_v29 = vld [vmem:[#allocation3 + $0xc8] sm:$0xf]  ;;  %v13804_v40 = vld [vmem:[#allocation3 + $0xd8] sm:$0xf0]  ;;  %1499 = vst [vmem:[#allocation3 + $0x230] sm:$0xf] %v1435_v22  ;;  %1822 = vrot.lane.b32.xlu0 %v1800_v28, %s14370_s7  ;;  %4191 = vrot.lane.b32.xlu2 %v15180_v61, %s14370_s7  ;;  %v2696_v39 = vpop.permute.xlu2 %2695  ;;  %v18448_v13 = vor.u32 %v15102_v26, %v15088_v19 }
 0x139   : >> { %v12320_v47 = vor.u32 %v13804_v40, %v12319_v29  ;;  %1483 = vst [vmem:[#allocation3 + $0xf0] sm:$0xf] %v1419_v44  ;;  %v15183_v46 = vld [vmem:[#allocation3 + $0x28] sm:$0xf]  ;;  %3799 = vrot.lane.b32.xlu1 %v15135_v41, %s14370_s7  ;;  %v18447_v41 = vunpack.c.l.b16 %v15125_v25  ;;  %v15204_v52 = vpack.c.b16 %v1636_v14, %v1636_v14  ;;  %v2761_v25 = vsel %vm1326_vm10, %v14836_v18, %v2696_v39  ;;  %v15210_v44 = vld [vmem:[%s14754_s6 + $0x70] sm:$0xf] }
 0x13a   : >> { %1484 = vst [vmem:[#allocation3 + $0x104] sm:$0xf] %v1420_v20  ;;  %v15188_v24 = vld [vmem:[#allocation3 + $0x38] sm:$0xf0]  ;;  %v1317_v28 = vpop.permute.xlu0 %1316  ;;  %v3680_v29 = vshrl.u32 %v15153_v11, 16  ;;  %v2871_v14 = vunpack.c.l.b16 %v2761_v25 }
 0x13b   : >> { %v3586_v0 = vpack.c.b16 %v18447_v41, %v18447_v41  ;;  %5523 = vmatmul.bf16.gmra.mxu2 %v18448_v13  ;;  %1500 = vst [vmem:[#allocation3 + $0x244] sm:$0xf] %v1436_v58  ;;  %v1350_v56 = vsel %vm1326_vm10, %v14301_v31, %v1317_v28  ;;  %v1325_v22 = vpop.permute.xlu1 %1324  ;;  %v14302_v26 = vld [vmem:[%s14754_s6 + $0xb4] sm:$0xff]  ;;  %v15214_v58 = vld [vmem:[#allocation3 + $0x50] sm:$0xf]  ;;  %v3684_v41 = vrot.slane %v3682_v50, 1 }
 0x13c   : >> { %18449 = vst [vmem:[#allocation10_spill] sm:$0xff] %v15210_v44  ;;  %v1397_v27 = vunpack.c.l.b16 %v1350_v56  ;;  %v1398_v19 = vunpack.c.h.b16 %v1350_v56  ;;  %v1358_v20 = vsel %vm1326_vm10, %v14302_v26, %v1325_v22  ;;  %v15216_v54 = vld [vmem:[#allocation3 + $0x60] sm:$0xf0]  ;;  %v13893_v31 = vld [vmem:[%s14885_s11 + $0x118] sm:$0xff]  ;;  %v2919_v26 = vpack.c.b16 %v2871_v14, %v2871_v14 }
 0x13d   : >> { %1485 = vst [vmem:[#allocation3 + $0x118] sm:$0xf] %v1421_v10  ;;  %v11937_v18 = vld [vmem:[%s14754_s6 + $0x74] sm:$0x1]  ;;  %5503 = vmatmul.bf16.gmra.mxu1 %v12320_v47  ;;  %v1405_v28 = vunpack.c.l.b16 %v1358_v20  ;;  %v1406_v39 = vunpack.c.h.b16 %v1358_v20  ;;  %v3687_v40 = vshll.u32 %v3586_v0, 16  ;;  %v3685_v11 = vor.u32 %v3684_v41, %v3680_v29  ;;  %5830 = vmatpush.bf16.msrb.mxu0 %v13893_v31 }
 0x13e   : >> { %1486 = vst [vmem:[#allocation3 + $0x12c] sm:$0xf] %v1422_v4  ;;  %v13884_v13 = vld [vmem:[%s14885_s11 + $0xd0] sm:$0xff]  ;;  %v1429_v56 = vpack.c.b16 %v1397_v27, %v1397_v27  ;;  %v1430_v22 = vpack.c.b16 %v1398_v19, %v1398_v19  ;;  %v18397_v4 = vunpack.c.l.b16 %v15210_v44  ;;  %v15232_v50 = vld [vmem:[%s14754_s6 + $0x80] sm:$0x1]  ;;  %v2988_v0 = vshll.u32 %v2919_v26, 16 }
 0x13f   : >> { %v13868_v10 = vld [vmem:[%s14885_s11 + $0x50] sm:$0xff]  ;;  %v1437_v2 = vpack.c.b16 %v1405_v28, %v1405_v28  ;;  %v1438_v47 = vpack.c.b16 %v1406_v39, %v1406_v39  ;;  %v15228_v37 = vld [vmem:[#allocation3 + $0x230] sm:$0xf]  ;;  %5742 = vmatpush.bf16.msrb.mxu3 %v13884_v13  ;;  %v3689_v19 = vrot.slane %v3687_v40, 1  ;;  %v2367_v20 = vunpack.c.l.b16 %v11937_v18  ;;  %v13875_v13 = vld [vmem:[%s14885_s11 + $0x88] sm:$0xff] }
 0x140   : >> { %v15226_v25 = vld [vmem:[%s14754_s6 + $0x74] sm:$0x1]  ;;  %1493 = vst [vmem:[#allocation3 + $0x1b8] sm:$0xf] %v1429_v56  ;;  %v15234_v27 = vld [vmem:[#allocation3 + $0xf0] sm:$0xf]  ;;  %2721 = vrot.lane.b32.xlu0 %v2578_v1, %s14370_s7  ;;  %v2445_v14 = vunpack.c.l.b16 %v11967_v48  ;;  %5564 = vmatpush.bf16.msrb.mxu1 %v13868_v10  ;;  %v18451_v1 = vor.u32 %v15188_v24, %v15183_v46 }
 0x141   : >> { %1494 = vst [vmem:[#allocation3 + $0x1cc] sm:$0xf] %v1430_v22  ;;  %v15237_v28 = vld [vmem:[#allocation3 + $0x100] sm:$0xf0]  ;;  %4197 = vrot.lane.b32.xlu1 %v15164_v30, %s14370_s7  ;;  %v2565_v39 = vshrl.u32 %v15037_v57, 16  ;;  %v4114_v41 = vunpack.c.l.b16 %v15226_v25  ;;  %v15251_v31 = vrot.slane %v2988_v0, 5  ;;  %v3690_v10 = vsel %vm1101_vm9, %v3685_v11, %v3689_v19  ;;  %5654 = vmatpush.bf16.msrb.mxu2 %v13875_v13 }
 0x142   : >> { %1501 = vst [vmem:[#allocation3 + $0x258] sm:$0xf] %v1437_v2  ;;  %v2694_v40 = vpop.permute.xlu0 %2693  ;;  %v15249_v18 = vld [vmem:[#allocation3 + $0x240] sm:$0xf0]  ;;  %v15254_v56 = vpack.c.b16 %v2367_v20, %v2367_v20  ;;  %v18450_v22 = vor.u32 %v15112_v8, %v15110_v59  ;;  %v2461_v11 = vpack.c.b16 %v18397_v4, %v2445_v14 }
 0x143   : >> { %1502 = vst [vmem:[#allocation3 + $0x26c] sm:$0xf] %v1438_v47  ;;  %v2759_v2 = vsel %vm1326_vm10, %v15157_v12, %v2694_v40  ;;  %v1301_v26 = vpop.permute.xlu1 %1300  ;;  %2719 = vrot.lane.b32.xlu2 %v2565_v39, %s14370_s7  ;;  %v14303_v47 = vld [vmem:[%s14754_s6 + $0x24] sm:$0xff]  ;;  %v4172_v40 = vpop.permute.xlu2 %4171  ;;  %v15285_v24 = vpack.c.b16 %v4114_v41, %v4114_v41 }
 0x144   : >> { %5543 = vmatmul.bf16.gmra.mxu3 %v18450_v22  ;;  %v15263_v0 = vld [vmem:[#allocation3 + $0x118] sm:$0xf]  ;;  %v2869_v59 = vunpack.c.l.b16 %v2759_v2  ;;  %v2870_v8 = vunpack.c.h.b16 %v2759_v2  ;;  %v1334_v12 = vsel %vm1326_vm10, %v14303_v47, %v1301_v26  ;;  %v2589_v20 = vshll.u32 %v15254_v56, 16  ;;  %v13892_v47 = vld [vmem:[%s14885_s11 + $0x110] sm:$0xff] }
 0x145   : >> { %v15270_v19 = vld [vmem:[#allocation3 + $0x128] sm:$0xf0]  ;;  %v13867_v22 = vld [vmem:[%s14885_s11 + $0x48] sm:$0xff]  ;;  %5483 = vmatmul.bf16.gmra.mxu0 %v18451_v1  ;;  %v1381_v14 = vunpack.c.l.b16 %v1334_v12  ;;  %v1382_v4 = vunpack.c.h.b16 %v1334_v12  ;;  %v2582_v2 = vshrl.u32 %v2461_v11, 16  ;;  %v2584_v48 = vshll.u32 %v2461_v11, 16  ;;  %v13866_v1 = vld [vmem:[%s14885_s11 + $0x40] sm:$0xff] }
 0x146   : >> { %v13883_v26 = vld [vmem:[%s14885_s11 + $0xc8] sm:$0xff]  ;;  %v2917_v29 = vpack.c.b16 %v2869_v59, %v2869_v59  ;;  %v2918_v25 = vpack.c.b16 %v2870_v8, %v2870_v8  ;;  %v2591_v32 = vrot.slane %v2589_v20, 1  ;;  %5565 = vmatpush.bf16.msrb.mxu1 %v13867_v22  ;;  %v4237_v46 = vsel %vm1326_vm10, %v14911_v15, %v4172_v40  ;;  %v13874_v12 = vld [vmem:[%s14885_s11 + $0x80] sm:$0xff]  ;;  %5831 = vmatpush.bf16.msrb.mxu0 %v13892_v47 }
 0x147   : >> { %v1413_v13 = vpack.c.b16 %v1381_v14, %v1381_v14  ;;  %v1414_v44 = vpack.c.b16 %v1382_v4, %v1382_v4  ;;  %v15281_v30 = vld [vmem:[#allocation3 + $0x1b8] sm:$0xf]  ;;  %5743 = vmatpush.bf16.msrb.mxu3 %v13883_v26  ;;  %v18452_v11 = vrot.slane %v15167_v21, 7  ;;  %v2586_v4 = vrot.slane %v2584_v48, 1  ;;  %5655 = vmatpush.bf16.msrb.mxu2 %v13874_v12 }
 0x148   : >> { %v2969_v39 = vshrl.u32 %v2917_v29, 16  ;;  %v2972_v57 = vshll.u32 %v2917_v29, 16  ;;  %v2978_v17 = vshll.u32 %v2918_v25, 16  ;;  %v2982_v59 = vshrl.u32 %v2918_v25, 16  ;;  %v15292_v8 = vld [vmem:[#allocation3 + $0x1c8] sm:$0xf0] }
 0x149   : >> { %1824 = vrot.lane.b32.xlu0 %v18452_v11, %s14370_s7  ;;  %1477 = vst [vmem:[#allocation3 + $0x78] sm:$0xf] %v1413_v13  ;;  %3801 = vrot.lane.b32.xlu1 %v3690_v10, %s14370_s7  ;;  %v12440_v15 = vor.u32 %v15292_v8, %v15281_v30  ;;  %v4363_v41 = vunpack.c.l.b16 %v4237_v46  ;;  %v4364_v20 = vunpack.c.h.b16 %v4237_v46  ;;  %v18453_v14 = vor.u32 %v15149_v9, %v15143_v38 }
 0x14a   : >> { %v2971_v29 = vrot.slane %v2969_v39, 4  ;;  %v2974_v40 = vrot.slane %v2972_v57, 5  ;;  %v2980_v25 = vrot.slane %v2978_v17, 5  ;;  %v2984_v22 = vrot.slane %v2982_v59, 4  ;;  %1478 = vst [vmem:[#allocation3 + $0x8c] sm:$0xf] %v1414_v44  ;;  %v1811_v21 = vpop.permute.xlu0 %1810  ;;  %5566 = vmatpush.bf16.msrb.mxu1 %v13866_v1 }
 0x14b   : >> { %5528 = vmatmul.bf16.gmra.mxu2 %v18453_v14  ;;  %v18454_v10 = vor.u32 %v15174_v53, %v15171_v49  ;;  %v1846_v39 = vsel %vm1326_vm10, %v15204_v52, %v1811_v21  ;;  %v3788_v57 = vpop.permute.xlu1 %3787  ;;  %v2587_v17 = vor.u32 %v2586_v4, %v2582_v2  ;;  %v4411_v26 = vpack.c.b16 %v4363_v41, %v4363_v41  ;;  %v13891_v1 = vld [vmem:[%s14885_s11 + $0x108] sm:$0xff]  ;;  %v14304_v49 = vld [vmem:[%s14754_s6 + $0x18] sm:$0xff]  ;;  %v13882_v59 = vld [vmem:[%s14885_s11 + $0xc0] sm:$0xff] }
 0x14c   : >> { %v2975_v44 = vor.u32 %v2974_v40, %v2971_v29  ;;  %v2985_v47 = vor.u32 %v2984_v22, %v2980_v25  ;;  %v18455_v38 = vor.u32 %v15237_v28, %v15234_v27  ;;  %v1956_v9 = vunpack.c.l.b16 %v1846_v39  ;;  %5832 = vmatpush.bf16.msrb.mxu0 %v13891_v1  ;;  %v15326_v22 = vld [vmem:[#allocation3 + $0x258] sm:$0xf]  ;;  %5744 = vmatpush.bf16.msrb.mxu3 %v13882_v59  ;;  %v13890_v1 = vld [vmem:[%s14885_s11 + $0x100] sm:$0xff] }
 0x14d   : >> { %v1844_v48 = vsel %vm1326_vm10, %v18454_v10, %v1811_v21  ;;  %v3820_v52 = vsel %vm1326_vm10, %v14304_v49, %v3788_v57  ;;  %v2592_v2 = vsel %vm1101_vm9, %v2587_v17, %v2591_v32  ;;  %v4412_v12 = vpack.c.b16 %v4364_v20, %v4364_v20  ;;  %v15328_v21 = vld [vmem:[#allocation3 + $0x268] sm:$0xf0]  ;;  %v15331_v14 = vld [vmem:[%s14754_s6 + $0x6c] sm:$0xff] }
 0x14e   : >> { %v1954_v13 = vunpack.c.l.b16 %v1844_v48  ;;  %v1955_v46 = vunpack.c.h.b16 %v1844_v48  ;;  %5508 = vmatmul.bf16.gmra.mxu1 %v18455_v38  ;;  %v2976_v11 = vrot.slane %v2975_v44, 4  ;;  %v2986_v4 = vrot.slane %v2985_v47, 4  ;;  %v14162_v17 = vld [vmem:[%s14754_s6 + $0x18] sm:$0xff]   ;;  %v12162_v44 = vld [vmem:[%s14754_s6 + $0x60] sm:$0xe] }
 0x14f   : >> { %v2004_v29 = vpack.c.b16 %v1956_v9, %v1956_v9  ;;  %v3867_v40 = vunpack.c.l.b16 %v3820_v52  ;;  %v3868_v32 = vunpack.c.h.b16 %v3820_v52  ;;  %v12200_v20 = vrot.slane %v4411_v26, 9  ;;  %v13767_v47 = vld [vmem:[%s14754_s6 + $0x60] sm:$0xf0] }
 0x150   : >> { %v2002_v28 = vpack.c.b16 %v1954_v13, %v1954_v13  ;;  %v2003_v41 = vpack.c.b16 %v1955_v46, %v1955_v46  ;;  %v2981_v10 = vsel %vm15312_vm15, %v2976_v11, %v2980_v25  ;;  %v2991_v57 = vsel %vm15312_vm15, %v2986_v4, %v15251_v31  ;;  %v15340_v26 = vld [vmem:[#allocation3 + $0x78] sm:$0xf]  ;;  %v15345_v13 = vld [vmem:[%s14754_s6 + $0xc] sm:$0xe]  ;;  %5833 = vmatpush.bf16.msrb.mxu0 %v13890_v1 }
 0x151   : >> { %2725 = vrot.lane.b32.xlu0 %v2592_v2, %s14370_s7  ;;  %v15348_v46 = vld [vmem:[%s14754_s6 + $0xc] sm:$0xf0]  ;;  %3384 = vst [vmem:[#allocation3 + $0x8] sm:$0xf] %v2981_v10  ;;  %v2058_v25 = vrot.slane %v2004_v29, 5  ;;  %v3899_v38 = vpack.c.b16 %v3867_v40, %v3867_v40  ;;  %v3900_v9 = vpack.c.b16 %v3868_v32, %v3868_v32  ;;  %v4461_v49 = vrot.slane %v4412_v12, 5  ;;  %4201 = vrot.lane.b32.xlu1 %v15285_v24, %s14370_s7 }
 0x152   : >> { %v11895_v48 = vrot.slane %v2002_v28, 9  ;;  %v2055_v39 = vrot.slane %v2003_v41, 5  ;;  %v15353_v31 = vld [vmem:[#allocation3 + $0x88] sm:$0xf0]  ;;  %3385 = vst [vmem:[#allocation3 + $0x1c] sm:$0xf] %v2991_v57  ;;  %v2698_v59 = vpop.permute.xlu0 %2697  ;;  %v12520_v4 = vor.u32 %v15328_v21, %v15326_v22  ;;  %v18460_v12 = vor.u32 %v15249_v18, %v15228_v37 }
 0x153   : >> { %v12280_v11 = vor.u32 %v15353_v31, %v15340_v26  ;;  %v1508_v28 = vld [vmem:[%s14754_s6 + $0x14] sm:$0x1]  ;;  %v2764_v41 = vsel %vm1326_vm10, %v14162_v17, %v2698_v59  ;;  %v4462_v29 = vsel %vm15322_vm1, %v12200_v20, %v4461_v49  ;;  %v4463_v40 = vrot.slane %v4461_v49, 4  ;;  %v4174_v32 = vpop.permute.xlu1 %4173  ;;  %3963 = vst [vmem:[#allocation3 + $0xc] sm:$0xf] %v3899_v38 }
 0x154   : >> { %v2056_v52 = vsel %vm15322_vm1, %v11895_v48, %v2055_v39  ;;  %v2057_v2 = vrot.slane %v2055_v39, 4  ;;  %5548 = vmatmul.bf16.gmra.mxu3 %v18460_v12  ;;  %v1802_v10 = vrot.slane %v15331_v14, 7  ;;  %v2700_v48 = vpop.permute.xlu2 %2699  ;;  %v2872_v57 = vunpack.c.l.b16 %v2764_v41  ;;  %3964 = vst [vmem:[#allocation3 + $0x20] sm:$0xf] %v3900_v9 }
 0x155   : >> { %2197 = vst [vmem:[#allocation3 + $0x4] sm:$0xf] %v2056_v52  ;;  %v2873_v1 = vunpack.c.h.b16 %v2764_v41  ;;  %v4240_v37 = vsel %vm1326_vm10, %v14895_v60, %v4174_v32  ;;  %v18461_v18 = vor.u32 %v15216_v54, %v15214_v58  ;;  %v15376_v17 = vor.u32 %v13767_v47, %v12162_v44  ;;  %v13753_v52 = vld [vmem:[%s14754_s6 + $0x78] sm:$0xff] }
 0x156   : >> { %v2059_v39 = vsel %vm15322_vm1, %v2057_v2, %v2058_v25  ;;  %v4365_v20 = vunpack.c.l.b16 %v4240_v37  ;;  %v1639_v49 = vunpack.c.l.b16 %v1508_v28  ;;  %v11774_v14 = vor.u32 %v15348_v46, %v15345_v13  ;;  %4603 = vst [vmem:[#allocation3 + $0x10] sm:$0xf] %v4462_v29 }
 0x157   : >> { %5488 = vmatmul.bf16.gmra.mxu0 %v18461_v18  ;;  %2198 = vst [vmem:[#allocation3 + $0x18] sm:$0xf] %v2059_v39  ;;  %v2920_v25 = vpack.c.b16 %v2872_v57, %v2872_v57  ;;  %v2921_v38 = vpack.c.b16 %v2873_v1, %v2873_v1  ;;  %v2766_v2 = vsel %vm1326_vm10, %v14869_v23, %v2700_v48  ;;  %v18462_v60 = vunpack.c.l.b16 %v15232_v50 }
 0x158   : >> { %v4413_v54 = vpack.c.b16 %v4365_v20, %v4365_v20  ;;  %4195 = vrot.lane.b32.xlu2 %v15376_v17, %s14370_s7  ;;  %v1685_v44 = vpack.c.b16 %v1639_v49, %v1639_v49  ;;  %v2874_v47 = vunpack.c.l.b16 %v2766_v2  ;;  %v3692_v59 = vshrl.u32 %v13753_v52, 16 }
 0x159   : >> { %v3587_v58 = vpack.c.b16 %v18462_v60, %v18462_v60  ;;  %v2993_v13 = vshrl.u32 %v2920_v25, 16  ;;  %v2996_v46 = vshll.u32 %v2920_v25, 16  ;;  %v3002_v9 = vshll.u32 %v2921_v38, 16  ;;  %1826 = vrot.lane.b32.xlu0 %v1802_v10, %s14370_s7 }
 0x15a   : >> { %v3006_v28 = vshrl.u32 %v2921_v38, 16  ;;  %v4464_v12 = vrot.slane %v4413_v54, 5  ;;  %v2922_v23 = vpack.c.b16 %v2874_v47, %v2874_v47  ;;  %v3694_v41 = vshll.u32 %v13753_v52, 16  ;;  %v1813_v57 = vpop.permute.xlu0 %1812  ;;  %v15436_v22 = vld [vmem:[#allocation3 + $0xc] sm:$0xf] }
 0x15b   : >> { %v3699_v50 = vshll.u32 %v3587_v58, 16  ;;  %v2995_v32 = vrot.slane %v2993_v13, 4  ;;  %v2998_v48 = vrot.slane %v2996_v46, 5  ;;  %v3004_v29 = vrot.slane %v3002_v9, 5  ;;  %5533 = vmatmul.bf16.gmra.mxu2 %v12440_v15  ;;  %v3790_v20 = vpop.permute.xlu1 %3789  ;;  %v14305_v9 = vld [vmem:[%s14754_s6 + $0x24] sm:$0xff] }
 0x15c   : >> { %v3008_v39 = vrot.slane %v3006_v28, 4  ;;  %v4465_v1 = vsel %vm15322_vm1, %v4463_v40, %v4464_v12  ;;  %v1849_v37 = vsel %vm1326_vm10, %v11774_v14, %v1813_v57  ;;  %v1851_v10 = vsel %vm1326_vm10, %v1685_v44, %v1813_v57  ;;  %v15396_v2 = vld [vmem:[#allocation3 + $0x4] sm:$0xf]  ;;  %v15409_v12 = vld [vmem:[#allocation3 + $0x18] sm:$0xf0] }
 0x15d   : >> { %v3012_v18 = vshll.u32 %v2922_v23, 16  ;;  %v2999_v49 = vor.u32 %v2998_v48, %v2995_v32  ;;  %4604 = vst [vmem:[#allocation3 + $0x24] sm:$0xf] %v4465_v1  ;;  %v1957_v25 = vunpack.c.l.b16 %v1849_v37  ;;  %v1958_v38 = vunpack.c.h.b16 %v1849_v37  ;;  %v11940_v23 = vld [vmem:[%s14754_s6 + $0x80] sm:$0x1] }
 0x15e   : >> { %v3009_v52 = vor.u32 %v3008_v39, %v3004_v29  ;;  %v15398_v60 = vld [vmem:[#allocation3 + $0x14] sm:$0xf0]  ;;  %v18463_v30 = vor.u32 %v15270_v19, %v15263_v0  ;;  %v1959_v8 = vunpack.c.l.b16 %v1851_v10  ;;  %v3696_v40 = vrot.slane %v3694_v41, 1  ;;  %v15407_v19 = vld [vmem:[#allocation3 + $0x8] sm:$0xf] }
 0x15f   : >> { %v3014_v15 = vrot.slane %v3012_v18, 5  ;;  %v3701_v14 = vrot.slane %v3699_v50, 1  ;;  %v3000_v58 = vrot.slane %v2999_v49, 4  ;;  %v2005_v44 = vpack.c.b16 %v1957_v25, %v1957_v25  ;;  %v14182_v48 = vld [vmem:[%s14754_s6 + $0x78] sm:$0xf0] }
 0x160   : >> { %5513 = vmatmul.bf16.gmra.mxu1 %v18463_v30  ;;  %v3010_v54 = vrot.slane %v3009_v52, 4  ;;  %v2006_v47 = vpack.c.b16 %v1958_v38, %v1958_v38  ;;  %v2007_v13 = vpack.c.b16 %v1959_v8, %v1959_v8  ;;  %v3697_v46 = vor.u32 %v3696_v40, %v3692_v59  ;;  %v14183_v39 = vld [vmem:[%s14754_s6 + $0x78] sm:$0xe]  ;;  %v11917_v18 = vld [vmem:[%s14754_s6 + $0x24] sm:$0xf] }
 0x161   : >> { %v3822_v28 = vsel %vm1326_vm10, %v14305_v9, %v3790_v20  ;;  %v12224_v0 = vor.u32 %v15396_v2, %v15398_v60  ;;  %v3005_v41 = vsel %vm15312_vm15, %v3000_v58, %v3004_v29  ;;  %v11896_v50 = vrot.slane %v2005_v44, 9  ;;  %v4176_v20 = vpop.permute.xlu2 %4175  ;;  %v15449_v31 = vld [vmem:[#allocation3 + $0x10] sm:$0xf] }
 0x162   : >> { %v2062_v32 = vrot.slane %v2006_v47, 5  ;;  %v3015_v59 = vsel %vm15312_vm15, %v3010_v54, %v3014_v15  ;;  %3386 = vst [vmem:[#allocation3 + $0x30] sm:$0xf] %v3005_v41  ;;  %v2065_v57 = vrot.slane %v2007_v13, 5  ;;  %v3702_v1 = vsel %vm1101_vm9, %v3697_v46, %v3701_v14  ;;  %v2702_v40 = vpop.permute.xlu0 %2701  ;;  %v12114_v14 = vld [vmem:[%s14754_s6 + $0x80] sm:$0x1] }
 0x163   : >> { %v3869_v37 = vunpack.c.l.b16 %v3822_v28  ;;  %v3870_v10 = vunpack.c.h.b16 %v3822_v28  ;;  %3387 = vst [vmem:[#allocation3 + $0x44] sm:$0xf] %v3015_v59  ;;  %3803 = vrot.lane.b32.xlu1 %v3702_v1, %s14370_s7  ;;  %v12228_v52 = vor.u32 %v15409_v12, %v15407_v19  ;;  %v2370_v25 = vunpack.c.l.b16 %v11940_v23  ;;  %v4178_v58 = vpop.permute.xlu1 %4177  ;;  %v15442_v28 = vld [vmem:[#allocation3 + $0x1c] sm:$0xf0]  ;;  %v12166_v1 = vld [vmem:[%s14754_s6 + $0x6c] sm:$0xe] }
 0x164   : >> { %v2063_v49 = vsel %vm15322_vm1, %v11896_v50, %v2062_v32  ;;  %v2064_v29 = vrot.slane %v2062_v32, 4  ;;  %5553 = vmatmul.bf16.gmra.mxu3 %v12520_v4  ;;  %v14184_v8 = vor.u32 %v14183_v39, %v14182_v48  ;;  %v2579_v15 = vshrl.u32 %v15096_v6, 16  ;;  %v15454_v48 = vld [vmem:[#allocation3 + $0x20] sm:$0xf0] }
 0x165   : >> { %2199 = vst [vmem:[#allocation3 + $0x2c] sm:$0xf] %v2063_v49  ;;  %v3901_v38 = vpack.c.b16 %v3869_v37, %v3869_v37  ;;  %v3902_v30 = vpack.c.b16 %v3870_v10, %v3870_v10  ;;  %v15432_v44 = vpack.c.b16 %v2370_v25, %v2370_v25  ;;  %v2347_v47 = vunpack.c.l.b16 %v11917_v18  ;;  %v13768_v37 = vld [vmem:[%s14754_s6 + $0x6c] sm:$0xf0] }
 0x166   : >> { %v2066_v54 = vsel %vm15322_vm1, %v2064_v29, %v2065_v57  ;;  %v4243_v13 = vsel %vm1326_vm10, %v14939_v3, %v4176_v20  ;;  %v2596_v21 = vshrl.u32 %v14184_v8, 16  ;;  %v2598_v4 = vshll.u32 %v14184_v8, 16  ;;  %2723 = vrot.lane.b32.xlu2 %v2579_v15, %s14370_s7  ;;  %v1511_v29 = vld [vmem:[%s14754_s6 + $0x20] sm:$0x1] }
 0x167   : >> { %5493 = vmatmul.bf16.gmra.mxu0 %v12280_v11  ;;  %2200 = vst [vmem:[#allocation3 + $0x40] sm:$0xf] %v2066_v54  ;;  %v4366_v46 = vunpack.c.l.b16 %v4243_v13  ;;  %v4367_v9 = vunpack.c.h.b16 %v4243_v13  ;;  %v2603_v19 = vshll.u32 %v15432_v44, 16  ;;  %v18464_v3 = vunpack.c.l.b16 %v14879_v43  ;;  %v15452_v11 = vld [vmem:[%s14754_s6 + $0x78] sm:$0xff] }
 0x168   : >> { %3965 = vst [vmem:[#allocation3 + $0x34] sm:$0xf] %v3901_v38  ;;  %v4117_v23 = vunpack.c.l.b16 %v12114_v14  ;;  %v4246_v26 = vsel %vm1326_vm10, %v14927_v42, %v4178_v58  ;;  %v2600_v41 = vrot.slane %v2598_v4, 1  ;;  %v12232_v42 = vor.u32 %v15436_v22, %v15442_v28  ;;  %v11777_v54 = vld [vmem:[%s14754_s6 + $0x18] sm:$0xe] }
 0x169   : >> { %v2393_v12 = vpack.c.b16 %v18464_v3, %v2347_v47  ;;  %3966 = vst [vmem:[#allocation3 + $0x48] sm:$0xf] %v3902_v30  ;;  %v4414_v50 = vpack.c.b16 %v4366_v46, %v4366_v46  ;;  %v4415_v32 = vpack.c.b16 %v4367_v9, %v4367_v9  ;;  %v4368_v59 = vunpack.c.l.b16 %v4246_v26  ;;  %v13715_v47 = vld [vmem:[%s14754_s6 + $0x18] sm:$0xf0]  ;;  %v2704_v13 = vpop.permute.xlu2 %2703  ;;  %v12017_v9 = vld [vmem:[%s14754_s6 + $0x8c] sm:$0x1] }
 0x16a   : >> { %v2605_v43 = vrot.slane %v2603_v19, 1  ;;  %v15457_v57 = vpack.c.b16 %v4117_v23, %v4117_v23  ;;  %v2601_v10 = vor.u32 %v2600_v41, %v2596_v21  ;;  %v12236_v30 = vor.u32 %v15454_v48, %v15449_v31  ;;  %v13754_v48 = vld [vmem:[%s14754_s6 + $0x84] sm:$0xff] }
 0x16b   : >> { %v2769_v39 = vsel %vm1326_vm10, %v2393_v12, %v2702_v40  ;;  %v12201_v49 = vrot.slane %v4414_v50, 9  ;;  %v4468_v25 = vrot.slane %v4415_v32, 5  ;;  %v4416_v38 = vpack.c.b16 %v4368_v59, %v4368_v59  ;;  %5656 = vmatmul.bf16.vlgmr.msrb.gmra.mxu2 %v12228_v52  ;;  %v1815_v12 = vpop.permute.xlu0 %1814 }
 0x16c   : >> { %v2875_v18 = vunpack.c.l.b16 %v2769_v39  ;;  %v2876_v20 = vunpack.c.h.b16 %v2769_v39  ;;  %4205 = vrot.lane.b32.xlu1 %v15457_v57, %s14370_s7  ;;  %v1803_v8 = vrot.slane %v15452_v11, 7  ;;  %v2606_v15 = vsel %vm1101_vm9, %v2601_v10, %v2605_v43  ;;  %v3792_v39 = vpop.permute.xlu1 %3791 }
 0x16d   : >> { %v15470_v58 = vor.u32 %v13768_v37, %v12166_v1  ;;  %2729 = vrot.lane.b32.xlu0 %v2606_v15, %s14370_s7  ;;  %v4469_v22 = vsel %vm15322_vm1, %v12201_v49, %v4468_v25  ;;  %v4470_v21 = vrot.slane %v4468_v25, 4  ;;  %v4471_v4 = vrot.slane %v4416_v38, 5 }
 0x16e   : >> { %v2923_v40 = vpack.c.b16 %v2875_v18, %v2875_v18  ;;  %v2924_v14 = vpack.c.b16 %v2876_v20, %v2876_v20  ;;  %v1642_v46 = vunpack.c.l.b16 %v1511_v29  ;;  %4605 = vst [vmem:[#allocation3 + $0x38] sm:$0xf] %v4469_v22  ;;  %v11778_v26 = vor.u32 %v13715_v47, %v11777_v54 }
 0x16f   : >> { %4199 = vrot.lane.b32.xlu2 %v15470_v58, %s14370_s7  ;;  %v4472_v23 = vsel %vm15322_vm1, %v4470_v21, %v4471_v4  ;;  %v2771_v11 = vsel %vm1326_vm10, %v14904_v5, %v2704_v13  ;;  %v3572_v43 = vunpack.c.l.b16 %v12017_v9  ;;  %v3704_v29 = vshrl.u32 %v13754_v48, 16  ;;  %v13785_v21 = vld [vmem:[#allocation3 + $0x40] sm:$0xf0]  ;;  %v15492_v4 = vld [vmem:[%s14754_s6 + $0x88] sm:$0xf] }
 0x170   : >> { %5567 = vmatmul.bf16.vlgmr.msrb.gmra.mxu1 %v12224_v0  ;;  %v3017_v52 = vshrl.u32 %v2923_v40, 16  ;;  %v3020_v28 = vshll.u32 %v2923_v40, 16  ;;  %v3026_v19 = vshll.u32 %v2924_v14, 16  ;;  %v3030_v3 = vshrl.u32 %v2924_v14, 16  ;;  %4606 = vst [vmem:[#allocation3 + $0x4c] sm:$0xf] %v4472_v23 }
 0x171   : >> { %v1687_v31 = vpack.c.b16 %v1642_v46, %v1642_v46  ;;  %v1854_v50 = vsel %vm1326_vm10, %v11778_v26, %v1815_v12  ;;  %v2877_v59 = vunpack.c.l.b16 %v2771_v11  ;;  %v3588_v49 = vpack.c.b16 %v3572_v43, %v3572_v43  ;;  %v12247_v14 = vld [vmem:[#allocation3 + $0x30] sm:$0xf]  ;;  %v14163_v43 = vld [vmem:[%s14754_s6 + $0x30] sm:$0xff]  }
 0x172   : >> { %v3019_v2 = vrot.slane %v3017_v52, 4  ;;  %v3022_v60 = vrot.slane %v3020_v28, 5  ;;  %v3028_v0 = vrot.slane %v3026_v19, 5  ;;  %v3032_v41 = vrot.slane %v3030_v3, 4  ;;  %v14306_v52 = vld [vmem:[%s14754_s6 + $0x30] sm:$0xff] }
 0x173   : >> { %v1856_v32 = vsel %vm1326_vm10, %v1687_v31, %v1815_v12  ;;  %v1960_v10 = vunpack.c.l.b16 %v1854_v50  ;;  %v1961_v18 = vunpack.c.h.b16 %v1854_v50  ;;  %v2925_v5 = vpack.c.b16 %v2877_v59, %v2877_v59  ;;  %v12241_v19 = vld [vmem:[#allocation3 + $0x3c] sm:$0xf0] }
 0x174   : >> { %v3023_v1 = vor.u32 %v3022_v60, %v3019_v2  ;;  %v3033_v37 = vor.u32 %v3032_v41, %v3028_v0  ;;  %v1962_v20 = vunpack.c.l.b16 %v1856_v32  ;;  %5745 = vmatmul.bf16.vlgmr.msrb.gmra.mxu3 %v12232_v42  ;;  %v3706_v13 = vshll.u32 %v13754_v48, 16  ;;  %v11943_v60 = vld [vmem:[%s14754_s6 + $0x8c] sm:$0x1]  ;;  %v15503_v41 = vld [vmem:[%s14754_s6 + $0x84] sm:$0xff] }
 0x175   : >> { %v2008_v15 = vpack.c.b16 %v1960_v10, %v1960_v10  ;;  %v2009_v40 = vpack.c.b16 %v1961_v18, %v1961_v18  ;;  %1828 = vrot.lane.b32.xlu0 %v1803_v8, %s14370_s7  ;;  %v3036_v47 = vshll.u32 %v2925_v5, 16  ;;  %v3711_v22 = vshll.u32 %v3588_v49, 16  ;;  %v13782_v8 = vld [vmem:[#allocation3 + $0x2c] sm:$0xf] }
 0x176   : >> { %v3024_v25 = vrot.slane %v3023_v1, 4  ;;  %v3034_v38 = vrot.slane %v3033_v37, 4  ;;  %v2010_v54 = vpack.c.b16 %v1962_v20, %v1962_v20  ;;  %v3824_v28 = vsel %vm1326_vm10, %v14306_v52, %v3792_v39  ;;  %v4180_v39 = vpop.permute.xlu2 %4179  ;;  %v12117_v1 = vld [vmem:[%s14754_s6 + $0x8c] sm:$0x1] }
 0x177   : >> { %5834 = vmatmul.bf16.vlgmr.msrb.gmra.mxu0 %v12236_v30  ;;  %v11897_v9 = vrot.slane %v2008_v15, 9  ;;  %v2069_v42 = vrot.slane %v2009_v40, 5  ;;  %v3038_v12 = vrot.slane %v3036_v47, 5  ;;  %v3708_v23 = vrot.slane %v3706_v13, 1  ;;  %v4182_v15 = vpop.permute.xlu1 %4181 }
 0x178   : >> { %v3029_v46 = vsel %vm15312_vm15, %v3024_v25, %v3028_v0  ;;  %v2072_v3 = vrot.slane %v2010_v54, 5  ;;  %v3713_v26 = vrot.slane %v3711_v22, 1  ;;  %v3871_v11 = vunpack.c.l.b16 %v3824_v28  ;;  %v11969_v0 = vld [vmem:[%s14754_s6 + $0x84] sm:$0xe] }
 0x179   : >> { %3388 = vst [vmem:[#allocation3 + $0x58] sm:$0xf] %v3029_v46  ;;  %v2070_v30 = vsel %vm15322_vm1, %v11897_v9, %v2069_v42  ;;  %v2071_v31 = vrot.slane %v2069_v42, 4  ;;  %v3872_v2 = vunpack.c.h.b16 %v3824_v28  ;;  %v3039_v50 = vsel %vm15312_vm15, %v3034_v38, %v3038_v12  ;;  %v2706_v38 = vpop.permute.xlu0 %2705 }
 0x17a   : >> { %2201 = vst [vmem:[#allocation3 + $0x54] sm:$0xf] %v2070_v30  ;;  %v3709_v32 = vor.u32 %v3708_v23, %v3704_v29  ;;  %v12244_v59 = vor.u32 %v13782_v8, %v12241_v19  ;;  %v12248_v48 = vor.u32 %v13785_v21, %v12247_v14  ;;  %v3903_v10 = vpack.c.b16 %v3871_v11, %v3871_v11 }
 0x17b   : >> { %v2073_v37 = vsel %vm15322_vm1, %v2071_v31, %v2072_v3  ;;  %3389 = vst [vmem:[#allocation3 + $0x6c] sm:$0xf] %v3039_v50  ;;  %v3904_v18 = vpack.c.b16 %v3872_v2, %v3872_v2  ;;  %v18405_v20 = vunpack.c.l.b16 %v15492_v4  ;;  %v2373_v49 = vunpack.c.l.b16 %v11943_v60  ;;  %v13783_v31 = vld [vmem:[#allocation3 + $0x34] sm:$0xf]  ;;  %v12249_v50 = vld [vmem:[#allocation3 + $0x44] sm:$0xf0] }
 0x17c   : >> { %2202 = vst [vmem:[#allocation3 + $0x68] sm:$0xf] %v2073_v37  ;;  %v3714_v5 = vsel %vm1101_vm9, %v3709_v32, %v3713_v26  ;;  %v2447_v25 = vunpack.c.l.b16 %v11969_v0  ;;  %v2593_v29 = vshrl.u32 %v15254_v56, 16  ;;  %5661 = vmatmul.bf16.gmra.mxu2 %v12248_v48  ;;  %v2774_v40 = vsel %vm1326_vm10, %v14163_v43, %v2706_v38  ;;  %v12170_v32 = vld [vmem:[%s14754_s6 + $0x78] sm:$0xe] }
 0x17d   : >> { %3805 = vrot.lane.b32.xlu1 %v3714_v5, %s14370_s7  ;;  %3967 = vst [vmem:[#allocation3 + $0x5c] sm:$0xf] %v3903_v10  ;;  %v4249_v14 = vsel %vm1326_vm10, %v14974_v62, %v4180_v39  ;;  %v4120_v54 = vunpack.c.l.b16 %v12117_v1  ;;  %v1804_v47 = vrot.slane %v15503_v41, 7  ;;  %v15519_v13 = vpack.c.b16 %v2373_v49, %v2373_v49  ;;  %v11781_v1 = vld [vmem:[%s14754_s6 + $0x24] sm:$0xe] }
 0x17e   : >> { %3968 = vst [vmem:[#allocation3 + $0x70] sm:$0xf] %v3904_v18  ;;  %v2463_v22 = vpack.c.b16 %v18405_v20, %v2447_v25  ;;  %2727 = vrot.lane.b32.xlu2 %v2593_v29, %s14370_s7  ;;  %v2878_v21 = vunpack.c.l.b16 %v2774_v40  ;;  %v2879_v46 = vunpack.c.h.b16 %v2774_v40  ;;  %v4369_v9 = vunpack.c.l.b16 %v4249_v14  ;;  %v1514_v37 = vld [vmem:[%s14754_s6 + $0x2c] sm:$0x1]  ;;  %v12255_v25 = vld [vmem:[#allocation3 + $0x38] sm:$0xf] }
 0x17f   : >> { %v4370_v42 = vunpack.c.h.b16 %v4249_v14  ;;  %v15524_v52 = vpack.c.b16 %v4120_v54, %v4120_v54  ;;  %v4252_v62 = vsel %vm1326_vm10, %v14960_v33, %v4182_v15  ;;  %v2617_v19 = vshll.u32 %v15519_v13, 16  ;;  %v13769_v33 = vld [vmem:[%s14754_s6 + $0x78] sm:$0xf0]  ;;  %v13716_v54 = vld [vmem:[%s14754_s6 + $0x24] sm:$0xf0] }
 0x180   : >> { %5572 = vmatmul.bf16.gmra.mxu1 %v12244_v59  ;;  %v2610_v28 = vshrl.u32 %v2463_v22, 16  ;;  %v2612_v8 = vshll.u32 %v2463_v22, 16  ;;  %v2926_v3 = vpack.c.b16 %v2878_v21, %v2878_v21  ;;  %v2927_v12 = vpack.c.b16 %v2879_v46, %v2879_v46  ;;  %v13786_v29 = vld [vmem:[#allocation3 + $0x48] sm:$0xf0]  ;;  %v2708_v22 = vpop.permute.xlu2 %2707 }
 0x181   : >> { %v4417_v23 = vpack.c.b16 %v4369_v9, %v4369_v9  ;;  %v4418_v26 = vpack.c.b16 %v4370_v42, %v4370_v42  ;;  %v4371_v30 = vunpack.c.l.b16 %v4252_v62  ;;  %v2619_v2 = vrot.slane %v2617_v19, 1  ;;  %v13755_v62 = vld [vmem:[%s14754_s6 + $0x90] sm:$0xff]  ;;  %v12129_v20 = vld [vmem:[%s14754_s6 + $0xbc] sm:$0x1] }
 0x182   : >> { %v2614_v11 = vrot.slane %v2612_v8, 1  ;;  %v3041_v60 = vshrl.u32 %v2926_v3, 16  ;;  %v3044_v0 = vshll.u32 %v2926_v3, 16  ;;  %v3050_v59 = vshll.u32 %v2927_v12, 16 }
 0x183   : >> { %v3054_v48 = vshrl.u32 %v2927_v12, 16  ;;  %v12202_v43 = vrot.slane %v4417_v23, 9  ;;  %v4475_v39 = vrot.slane %v4418_v26, 5  ;;  %v4419_v49 = vpack.c.b16 %v4371_v30, %v4371_v30  ;;  %v1817_v23 = vpop.permute.xlu0 %1816 }
 0x184   : >> { %v2615_v10 = vor.u32 %v2614_v11, %v2610_v28  ;;  %v3043_v18 = vrot.slane %v3041_v60, 4  ;;  %v3046_v5 = vrot.slane %v3044_v0, 5  ;;  %v3052_v38 = vrot.slane %v3050_v59, 5  ;;  %v12018_v28 = vld [vmem:[%s14754_s6 + $0x98] sm:$0x1] }
 0x185   : >> { %v3056_v15 = vrot.slane %v3054_v48, 4  ;;  %v4476_v40 = vsel %vm15322_vm1, %v12202_v43, %v4475_v39  ;;  %v4477_v14 = vrot.slane %v4475_v39, 4  ;;  %4209 = vrot.lane.b32.xlu1 %v15524_v52, %s14370_s7  ;;  %v4478_v9 = vrot.slane %v4419_v49, 5  ;;  %v14307_v49 = vld [vmem:[%s14754_s6 + $0x3c] sm:$0xff] }
 0x186   : >> { %v2620_v21 = vsel %vm1101_vm9, %v2615_v10, %v2619_v2  ;;  %v3047_v46 = vor.u32 %v3046_v5, %v3043_v18  ;;  %4607 = vst [vmem:[#allocation3 + $0x60] sm:$0xf] %v4476_v40  ;;  %v12252_v42 = vor.u32 %v13783_v31, %v12249_v50  ;;  %v12256_v19 = vor.u32 %v13786_v29, %v12255_v25  ;;  %v3794_v31 = vpop.permute.xlu1 %3793 }
 0x187   : >> { %2733 = vrot.lane.b32.xlu0 %v2620_v21, %s14370_s7  ;;  %v3057_v8 = vor.u32 %v3056_v15, %v3052_v38  ;;  %v15542_v3 = vor.u32 %v13769_v33, %v12170_v32  ;;  %v1645_v12 = vunpack.c.l.b16 %v1514_v37  ;;  %v4479_v30 = vsel %vm15322_vm1, %v4477_v14, %v4478_v9  ;;  %v13787_v14 = vld [vmem:[#allocation3 + $0x54] sm:$0xf]  ;;  %v11946_v21 = vld [vmem:[%s14754_s6 + $0x98] sm:$0x1] }
 0x188   : >> { %v3048_v26 = vrot.slane %v3047_v46, 4  ;;  %5750 = vmatmul.bf16.gmra.mxu3 %v12252_v42  ;;  %v11782_v11 = vor.u32 %v13716_v54, %v11781_v1  ;;  %v2776_v2 = vsel %vm1326_vm10, %v14934_v55, %v2708_v22  ;;  %4608 = vst [vmem:[#allocation3 + $0x74] sm:$0xf] %v4479_v30  ;;  %5839 = vmatmul.bf16.gmra.mxu0 %v12256_v19  ;;  %v3573_v32 = vunpack.c.l.b16 %v12018_v28  ;;  %v12261_v54 = vld [vmem:[#allocation3 + $0x64] sm:$0xf0] }
 0x189   : >> { %v15548_v60 = vrot.slane %v3057_v8, 4  ;;  %4203 = vrot.lane.b32.xlu2 %v15542_v3, %s14370_s7  ;;  %v1689_v0 = vpack.c.b16 %v1645_v12, %v1645_v12  ;;  %v2880_v50 = vunpack.c.l.b16 %v2776_v2  ;;  %v3716_v48 = vshrl.u32 %v13755_v62, 16  ;;  %v14185_v22 = vld [vmem:[%s14754_s6 + $0x90] sm:$0xf0]  ;;  %v12267_v28 = vld [vmem:[#allocation3 + $0x58] sm:$0xf] }
 0x18a   : >> { %v3053_v33 = vsel %vm15312_vm15, %v3048_v26, %v3052_v38  ;;  %v1859_v59 = vsel %vm1326_vm10, %v11782_v11, %v1817_v23  ;;  %v3718_v43 = vshll.u32 %v13755_v62, 16  ;;  %v3589_v18 = vpack.c.b16 %v3573_v32, %v3573_v32  ;;  %v13790_v8 = vld [vmem:[#allocation3 + $0x68] sm:$0xf0]  ;;  %v14186_v30 = vld [vmem:[%s14754_s6 + $0x90] sm:$0xe]  ;;  %v4184_v32 = vpop.permute.xlu2 %4183 }
 0x18b   : >> { %3390 = vst [vmem:[#allocation3 + $0x80] sm:$0xf] %v3053_v33  ;;  %v1861_v55 = vsel %vm1326_vm10, %v1689_v0, %v1817_v23  ;;  %v1963_v39 = vunpack.c.l.b16 %v1859_v59  ;;  %v1964_v1 = vunpack.c.h.b16 %v1859_v59  ;;  %v2928_v37 = vpack.c.b16 %v2880_v50, %v2880_v50  ;;  %v11923_v50 = vld [vmem:[%s14754_s6 + $0x3c] sm:$0xf]  ;;  %v12120_v33 = vld [vmem:[%s14754_s6 + $0x98] sm:$0x1] }
 0x18c   : >> { %v1965_v10 = vunpack.c.l.b16 %v1861_v55  ;;  %v3720_v5 = vrot.slane %v3718_v43, 1  ;;  %v3826_v25 = vsel %vm1326_vm10, %v14307_v49, %v3794_v31  ;;  %v3723_v42 = vshll.u32 %v3589_v18, 16  ;;  %v13788_v18 = vld [vmem:[#allocation3 + $0x5c] sm:$0xf] }
 0x18d   : >> { %v2011_v29 = vpack.c.b16 %v1963_v39, %v1963_v39  ;;  %v2012_v38 = vpack.c.b16 %v1964_v1, %v1964_v1  ;;  %v3060_v15 = vshll.u32 %v2928_v37, 16  ;;  %v3873_v40 = vunpack.c.l.b16 %v3826_v25  ;;  %v2710_v37 = vpop.permute.xlu0 %2709 }
 0x18e   : >> { %v2013_v46 = vpack.c.b16 %v1965_v10, %v1965_v10  ;;  %v3721_v9 = vor.u32 %v3720_v5, %v3716_v48  ;;  %v3874_v62 = vunpack.c.h.b16 %v3826_v25  ;;  %v3725_v2 = vrot.slane %v3723_v42, 1  ;;  %v4186_v10 = vpop.permute.xlu1 %4185 }
 0x18f   : >> { %1830 = vrot.lane.b32.xlu0 %v1804_v47, %s14370_s7  ;;  %v11898_v19 = vrot.slane %v2011_v29, 9  ;;  %v2076_v12 = vrot.slane %v2012_v38, 5  ;;  %v3062_v23 = vrot.slane %v3060_v15, 5  ;;  %v3905_v26 = vpack.c.b16 %v3873_v40, %v3873_v40  ;;  %v12269_v29 = vld [vmem:[#allocation3 + $0x6c] sm:$0xf0] }
 0x190   : >> { %v2079_v11 = vrot.slane %v2013_v46, 5  ;;  %v3906_v31 = vpack.c.b16 %v3874_v62, %v3874_v62  ;;  %v12264_v0 = vor.u32 %v13787_v14, %v12261_v54  ;;  %v12268_v47 = vor.u32 %v13790_v8, %v12267_v28  ;;  %v12275_v38 = vld [vmem:[#allocation3 + $0x60] sm:$0xf] }
 0x191   : >> { %v2077_v59 = vsel %vm15322_vm1, %v11898_v19, %v2076_v12  ;;  %v2078_v48 = vrot.slane %v2076_v12, 4  ;;  %v3063_v41 = vsel %vm15312_vm15, %v15548_v60, %v3062_v23  ;;  %3969 = vst [vmem:[#allocation3 + $0x84] sm:$0xf] %v3905_v26  ;;  %v3726_v43 = vsel %vm1101_vm9, %v3721_v9, %v3725_v2  ;;  %v15588_v62 = vld [vmem:[%s14754_s6 + $0x90] sm:$0xff]  ;;  %v13770_v2 = vld [vmem:[%s14754_s6 + $0x84] sm:$0xf0] }
 0x192   : >> { %2203 = vst [vmem:[#allocation3 + $0x7c] sm:$0xf] %v2077_v59  ;;  %5577 = vmatmul.bf16.gmra.mxu1 %v12264_v0  ;;  %v2376_v55 = vunpack.c.l.b16 %v11946_v21  ;;  %v14187_v39 = vor.u32 %v14186_v30, %v14185_v22  ;;  %v2607_v1 = vshrl.u32 %v15432_v44, 16  ;;  %3807 = vrot.lane.b32.xlu1 %v3726_v43, %s14370_s7  ;;  %v2353_v60 = vunpack.c.l.b16 %v11923_v50  ;;  %v13791_v22 = vld [vmem:[#allocation3 + $0x70] sm:$0xf0] }
 0x193   : >> { %v2080_v5 = vsel %vm15322_vm1, %v2078_v48, %v2079_v11  ;;  %3391 = vst [vmem:[#allocation3 + $0x94] sm:$0xf] %v3063_v41  ;;  %5666 = vmatmul.bf16.gmra.mxu2 %v12268_v47  ;;  %v4255_v49 = vsel %vm1326_vm10, %v15018_v16, %v4184_v32  ;;  %v4123_v25 = vunpack.c.l.b16 %v12120_v33  ;;  %v18465_v21 = vunpack.c.l.b16 %v14943_v7  ;;  %v12174_v11 = vld [vmem:[%s14754_s6 + $0x84] sm:$0xe]  ;;  %v1517_v32 = vld [vmem:[%s14754_s6 + $0x38] sm:$0x1] }
 0x194   : >> { %2204 = vst [vmem:[#allocation3 + $0x90] sm:$0xf] %v2080_v5  ;;  %v15578_v15 = vpack.c.b16 %v2376_v55, %v2376_v55  ;;  %v2624_v40 = vshrl.u32 %v14187_v39, 16  ;;  %v2626_v14 = vshll.u32 %v14187_v39, 16  ;;  %2731 = vrot.lane.b32.xlu2 %v2607_v1, %s14370_s7  ;;  %v4372_v54 = vunpack.c.l.b16 %v4255_v49  ;;  %v11785_v1 = vld [vmem:[%s14754_s6 + $0x30] sm:$0xe] }
 0x195   : >> { %3970 = vst [vmem:[#allocation3 + $0x98] sm:$0xf] %v3906_v31  ;;  %v2397_v46 = vpack.c.b16 %v18465_v21, %v2353_v60  ;;  %v4373_v16 = vunpack.c.h.b16 %v4255_v49  ;;  %v15583_v9 = vpack.c.b16 %v4123_v25, %v4123_v25  ;;  %v4258_v42 = vsel %vm1326_vm10, %v14990_v34, %v4186_v10  ;;  %v2712_v10 = vpop.permute.xlu2 %2711  ;;  %v12019_v25 = vld [vmem:[%s14754_s6 + $0xa4] sm:$0x1] }
 0x196   : >> { %v2628_v28 = vrot.slane %v2626_v14, 1  ;;  %v2631_v8 = vshll.u32 %v15578_v15, 16  ;;  %v4420_v19 = vpack.c.b16 %v4372_v54, %v4372_v54  ;;  %v4374_v12 = vunpack.c.l.b16 %v4258_v42  ;;  %v1819_v54 = vpop.permute.xlu0 %1818  ;;  %v3796_v42 = vpop.permute.xlu1 %3795 }
 0x197   : >> { %v2779_v23 = vsel %vm1326_vm10, %v2397_v46, %v2710_v37  ;;  %v4421_v26 = vpack.c.b16 %v4373_v16, %v4373_v16  ;;  %v12272_v30 = vor.u32 %v13788_v18, %v12269_v29  ;;  %v12276_v7 = vor.u32 %v13791_v22, %v12275_v38  ;;  %v13717_v37 = vld [vmem:[%s14754_s6 + $0x30] sm:$0xf0] }
 0x198   : >> { %v2629_v31 = vor.u32 %v2628_v28, %v2624_v40  ;;  %v2633_v0 = vrot.slane %v2631_v8, 1  ;;  %v2881_v34 = vunpack.c.l.b16 %v2779_v23  ;;  %v2882_v50 = vunpack.c.h.b16 %v2779_v23 }
 0x199   : >> { %v12203_v33 = vrot.slane %v4420_v19, 9  ;;  %v4482_v59 = vrot.slane %v4421_v26, 5  ;;  %v4422_v48 = vpack.c.b16 %v4374_v12, %v4374_v12  ;;  %5755 = vmatmul.bf16.gmra.mxu3 %v12272_v30  ;;  %5844 = vmatmul.bf16.gmra.mxu0 %v12276_v7  ;;  %v1805_v41 = vrot.slane %v15588_v62, 7  ;;  %v13756_v30 = vld [vmem:[%s14754_s6 + $0x9c] sm:$0xff] }
 0x19a   : >> { %v2634_v47 = vsel %vm1101_vm9, %v2629_v31, %v2633_v0  ;;  %v2929_v43 = vpack.c.b16 %v2881_v34, %v2881_v34  ;;  %v2930_v55 = vpack.c.b16 %v2882_v50, %v2882_v50  ;;  %v15597_v39 = vor.u32 %v13770_v2, %v12174_v11  ;;  %4213 = vrot.lane.b32.xlu1 %v15583_v9, %s14370_s7 }
 0x19b   : >> { %2737 = vrot.lane.b32.xlu0 %v2634_v47, %s14370_s7  ;;  %v4483_v18 = vsel %vm15322_vm1, %v12203_v33, %v4482_v59  ;;  %v4484_v5 = vrot.slane %v4482_v59, 4  ;;  %v4485_v60 = vrot.slane %v4422_v48, 5  ;;  %v1648_v49 = vunpack.c.l.b16 %v1517_v32 }
 0x19c   : >> { %v3065_v29 = vshrl.u32 %v2929_v43, 16  ;;  %v3068_v38 = vshll.u32 %v2929_v43, 16  ;;  %v3074_v40 = vshll.u32 %v2930_v55, 16  ;;  %v3078_v14 = vshrl.u32 %v2930_v55, 16  ;;  %4609 = vst [vmem:[#allocation3 + $0x88] sm:$0xf] %v4483_v18  ;;  %4207 = vrot.lane.b32.xlu2 %v15597_v39, %s14370_s7 }
 0x19d   : >> { %v4486_v22 = vsel %vm15322_vm1, %v4484_v5, %v4485_v60  ;;  %v11786_v21 = vor.u32 %v13717_v37, %v11785_v1  ;;  %v1691_v46 = vpack.c.b16 %v1648_v49, %v1648_v49  ;;  %v2781_v16 = vsel %vm1326_vm10, %v14968_v45, %v2712_v10  ;;  %v12287_v43 = vld [vmem:[#allocation3 + $0x80] sm:$0xf]  ;;  %v13792_v18 = vld [vmem:[#allocation3 + $0x7c] sm:$0xf]  ;;  %v15618_v5 = vld [vmem:[%s14754_s6 + $0xa0] sm:$0xf] }
 0x19e   : >> { %v3067_v62 = vrot.slane %v3065_v29, 4  ;;  %v3070_v28 = vrot.slane %v3068_v38, 5  ;;  %v3076_v8 = vrot.slane %v3074_v40, 5  ;;  %v3080_v19 = vrot.slane %v3078_v14, 4  ;;  %4610 = vst [vmem:[#allocation3 + $0x9c] sm:$0xf] %v4486_v22 }
 0x19f   : >> { %v1864_v12 = vsel %vm1326_vm10, %v11786_v21, %v1819_v54  ;;  %v1866_v23 = vsel %vm1326_vm10, %v1691_v46, %v1819_v54  ;;  %v2883_v26 = vunpack.c.l.b16 %v2781_v16  ;;  %v3574_v7 = vunpack.c.l.b16 %v12019_v25  ;;  %v14308_v29 = vld [vmem:[%s14754_s6 + $0x48] sm:$0xff]  ;;  %v11949_v14 = vld [vmem:[%s14754_s6 + $0xa4] sm:$0x1] }
 0x1a0   : >> { %v3071_v11 = vor.u32 %v3070_v28, %v3067_v62  ;;  %v3081_v2 = vor.u32 %v3080_v19, %v3076_v8  ;;  %v1966_v31 = vunpack.c.l.b16 %v1864_v12  ;;  %v1967_v0 = vunpack.c.h.b16 %v1864_v12  ;;  %v12281_v40 = vld [vmem:[#allocation3 + $0x8c] sm:$0xf0]  ;;  %v11971_v19 = vld [vmem:[%s14754_s6 + $0x9c] sm:$0xe]  ;;  %v12123_v12 = vld [vmem:[%s14754_s6 + $0xa4] sm:$0x1] }
 0x1a1   : >> { %v1968_v34 = vunpack.c.l.b16 %v1866_v23  ;;  %v2931_v45 = vpack.c.b16 %v2883_v26, %v2883_v26  ;;  %v3590_v50 = vpack.c.b16 %v3574_v7, %v3574_v7  ;;  %v3728_v32 = vshrl.u32 %v13756_v30, 16  ;;  %v14164_v7 = vld [vmem:[%s14754_s6 + $0x48] sm:$0xff]  }
 0x1a2   : >> { %v3072_v33 = vrot.slane %v3071_v11, 4  ;;  %v3082_v59 = vrot.slane %v3081_v2, 4  ;;  %v2014_v48 = vpack.c.b16 %v1966_v31, %v1966_v31  ;;  %v2015_v47 = vpack.c.b16 %v1967_v0, %v1967_v0  ;;  %v4188_v11 = vpop.permute.xlu2 %4187  ;;  %v4190_v2 = vpop.permute.xlu1 %4189 }
 0x1a3   : >> { %1832 = vrot.lane.b32.xlu0 %v1805_v41, %s14370_s7  ;;  %v2016_v55 = vpack.c.b16 %v1968_v34, %v1968_v34  ;;  %v3084_v1 = vshll.u32 %v2931_v45, 16  ;;  %v3730_v37 = vshll.u32 %v13756_v30, 16  ;;  %v3735_v10 = vshll.u32 %v3590_v50, 16  ;;  %v13795_v41 = vld [vmem:[#allocation3 + $0x90] sm:$0xf0] }
 0x1a4   : >> { %v3077_v60 = vsel %vm15312_vm15, %v3072_v33, %v3076_v8  ;;  %v11899_v49 = vrot.slane %v2014_v48, 9  ;;  %v2083_v25 = vrot.slane %v2015_v47, 5  ;;  %v3828_v38 = vsel %vm1326_vm10, %v14308_v29, %v3796_v42  ;;  %v2714_v48 = vpop.permute.xlu0 %2713 }
 0x1a5   : >> { %3392 = vst [vmem:[#allocation3 + $0xa8] sm:$0xf] %v3077_v60  ;;  %v2086_v54 = vrot.slane %v2016_v55, 5  ;;  %v3086_v22 = vrot.slane %v3084_v1, 5  ;;  %v3732_v21 = vrot.slane %v3730_v37, 1  ;;  %v3737_v46 = vrot.slane %v3735_v10, 1 }
 0x1a6   : >> { %v2084_v16 = vsel %vm15322_vm1, %v11899_v49, %v2083_v25  ;;  %v2085_v62 = vrot.slane %v2083_v25, 4  ;;  %v3875_v28 = vunpack.c.l.b16 %v3828_v38  ;;  %v3876_v8 = vunpack.c.h.b16 %v3828_v38 }
 0x1a7   : >> { %2205 = vst [vmem:[#allocation3 + $0xa4] sm:$0xf] %v2084_v16  ;;  %v3087_v42 = vsel %vm15312_vm15, %v3082_v59, %v3086_v22  ;;  %v3733_v23 = vor.u32 %v3732_v21, %v3728_v32  ;;  %v12284_v26 = vor.u32 %v13792_v18, %v12281_v40  ;;  %v12288_v30 = vor.u32 %v13795_v41, %v12287_v43  ;;  %v12289_v16 = vld [vmem:[#allocation3 + $0x94] sm:$0xf0] }
 0x1a8   : >> { %v2087_v31 = vsel %vm15322_vm1, %v2085_v62, %v2086_v54  ;;  %3393 = vst [vmem:[#allocation3 + $0xbc] sm:$0xf] %v3087_v42  ;;  %v3907_v0 = vpack.c.b16 %v3875_v28, %v3875_v28  ;;  %v3908_v34 = vpack.c.b16 %v3876_v8, %v3876_v8  ;;  %v18404_v45 = vunpack.c.l.b16 %v15618_v5  ;;  %v15664_v62 = vld [vmem:[%s14754_s6 + $0x9c] sm:$0xff] }
 0x1a9   : >> { %2206 = vst [vmem:[#allocation3 + $0xb8] sm:$0xf] %v2087_v31  ;;  %v3738_v50 = vsel %vm1101_vm9, %v3733_v23, %v3737_v46  ;;  %5582 = vmatmul.bf16.gmra.mxu1 %v12284_v26  ;;  %5671 = vmatmul.bf16.gmra.mxu2 %v12288_v30  ;;  %v2379_v32 = vunpack.c.l.b16 %v11949_v14  ;;  %v2449_v33 = vunpack.c.l.b16 %v11971_v19  ;;  %v2621_v59 = vshrl.u32 %v15519_v13, 16  ;;  %v13793_v46 = vld [vmem:[#allocation3 + $0x84] sm:$0xf] }
 0x1aa   : >> { %3809 = vrot.lane.b32.xlu1 %v3738_v50, %s14370_s7  ;;  %3971 = vst [vmem:[#allocation3 + $0xac] sm:$0xf] %v3907_v0  ;;  %v2784_v47 = vsel %vm1326_vm10, %v14164_v7, %v2714_v48  ;;  %v4261_v43 = vsel %vm1326_vm10, %v15078_v36, %v4188_v11  ;;  %v4126_v55 = vunpack.c.l.b16 %v12123_v12  ;;  %v4264_v1 = vsel %vm1326_vm10, %v15035_v51, %v4190_v2  ;;  %v12295_v42 = vld [vmem:[#allocation3 + $0x88] sm:$0xf]  ;;  %v12178_v23 = vld [vmem:[%s14754_s6 + $0x90] sm:$0xe]  ;;  %v15670_v48 = vpop.f32.mrf.mxu1 }
 0x1ab   : >> { %3972 = vst [vmem:[#allocation3 + $0xc0] sm:$0xf] %v3908_v34  ;;  %v15655_v37 = vpack.c.b16 %v2379_v32, %v2379_v32  ;;  %v2465_v10 = vpack.c.b16 %v18404_v45, %v2449_v33  ;;  %2735 = vrot.lane.b32.xlu2 %v2621_v59, %s14370_s7  ;;  %v2884_v18 = vunpack.c.l.b16 %v2784_v47  ;;  %v2885_v60 = vunpack.c.h.b16 %v2784_v47  ;;  %v13771_v26 = vld [vmem:[%s14754_s6 + $0x90] sm:$0xf0]  ;;  %v11789_v0 = vld [vmem:[%s14754_s6 + $0x3c] sm:$0xe] }
 0x1ac   : >> { %v4375_v49 = vunpack.c.l.b16 %v4261_v43  ;;  %v4376_v25 = vunpack.c.h.b16 %v4261_v43  ;;  %v15660_v29 = vpack.c.b16 %v4126_v55, %v4126_v55  ;;  %v4377_v36 = vunpack.c.l.b16 %v4264_v1  ;;  %v13796_v31 = vld [vmem:[#allocation3 + $0x98] sm:$0xf0]  ;;  %v13718_v59 = vld [vmem:[%s14754_s6 + $0x3c] sm:$0xf0] }
 0x1ad   : >> { %v2638_v38 = vshrl.u32 %v2465_v10, 16  ;;  %v2640_v40 = vshll.u32 %v2465_v10, 16  ;;  %v2645_v51 = vshll.u32 %v15655_v37, 16  ;;  %v2932_v41 = vpack.c.b16 %v2884_v18, %v2884_v18  ;;  %v1520_v10 = vld [vmem:[%s14754_s6 + $0x44] sm:$0x1]  ;;  %v2716_v18 = vpop.permute.xlu2 %2715 }
 0x1ae   : >> { %v2933_v14 = vpack.c.b16 %v2885_v60, %v2885_v60  ;;  %v4423_v54 = vpack.c.b16 %v4375_v49, %v4375_v49  ;;  %v4424_v22 = vpack.c.b16 %v4376_v25, %v4376_v25  ;;  %v4425_v21 = vpack.c.b16 %v4377_v36, %v4377_v36 }
 0x1af   : >> { %v2642_v28 = vrot.slane %v2640_v40, 1  ;;  %v2647_v8 = vrot.slane %v2645_v51, 1  ;;  %v3089_v19 = vshrl.u32 %v2932_v41, 16  ;;  %v3092_v12 = vshll.u32 %v2932_v41, 16  ;;  %v12020_v40 = vld [vmem:[%s14754_s6 + $0xb0] sm:$0x1] }
 0x1b0   : >> { %v3098_v30 = vshll.u32 %v2933_v14, 16  ;;  %v3102_v7 = vshrl.u32 %v2933_v14, 16  ;;  %v12204_v11 = vrot.slane %v4423_v54, 9  ;;  %v4489_v2 = vrot.slane %v4424_v22, 5  ;;  %v1821_v22 = vpop.permute.xlu0 %1820 }
 0x1b1   : >> { %v2643_v34 = vor.u32 %v2642_v28, %v2638_v38  ;;  %v3091_v50 = vrot.slane %v3089_v19, 4  ;;  %v3094_v32 = vrot.slane %v3092_v12, 5  ;;  %v4492_v33 = vrot.slane %v4425_v21, 5  ;;  %v13757_v38 = vld [vmem:[%s14754_s6 + $0xa8] sm:$0xff] }
 0x1b2   : >> { %v3100_v47 = vrot.slane %v3098_v30, 5  ;;  %v3104_v43 = vrot.slane %v3102_v7, 4  ;;  %v4490_v55 = vsel %vm15322_vm1, %v12204_v11, %v4489_v2  ;;  %v4491_v1 = vrot.slane %v4489_v2, 4  ;;  %4217 = vrot.lane.b32.xlu1 %v15660_v29, %s14370_s7 }
 0x1b3   : >> { %v2648_v60 = vsel %vm1101_vm9, %v2643_v34, %v2647_v8  ;;  %v3095_v49 = vor.u32 %v3094_v32, %v3091_v50  ;;  %4611 = vst [vmem:[#allocation3 + $0xb0] sm:$0xf] %v4490_v55  ;;  %v12292_v25 = vor.u32 %v13793_v46, %v12289_v16  ;;  %v12296_v36 = vor.u32 %v13796_v31, %v12295_v42  ;;  %v3798_v8 = vpop.permute.xlu1 %3797  ;;  %v15698_v55 = vpop.f32.mrf.mxu2 }
 0x1b4   : >> { %2741 = vrot.lane.b32.xlu0 %v2648_v60, %s14370_s7  ;;  %v3105_v51 = vor.u32 %v3104_v43, %v3100_v47  ;;  %v4493_v41 = vsel %vm15322_vm1, %v4491_v1, %v4492_v33  ;;  %v1806_v14 = vrot.slane %v15664_v62, 7  ;;  %v15684_v54 = vor.u32 %v13771_v26, %v12178_v23  ;;  %v13797_v23 = vld [vmem:[#allocation3 + $0xa4] sm:$0xf]  ;;  %v12301_v26 = vld [vmem:[#allocation3 + $0xb4] sm:$0xf0]  ;;  %18466 = vst [vmem:[#allocation11_spill] sm:$0xff] %v15698_v55 }
 0x1b5   : >> { %v3096_v21 = vrot.slane %v3095_v49, 4  ;;  %4612 = vst [vmem:[#allocation3 + $0xc4] sm:$0xf] %v4493_v41  ;;  %5760 = vmatmul.bf16.gmra.mxu3 %v12292_v25  ;;  %5849 = vmatmul.bf16.gmra.mxu0 %v12296_v36  ;;  %v1651_v28 = vunpack.c.l.b16 %v1520_v10  ;;  %v11790_v46 = vor.u32 %v13718_v59, %v11789_v0  ;;  %v2786_v16 = vsel %vm1326_vm10, %v14992_v35, %v2716_v18  ;;  %v14309_v33 = vld [vmem:[%s14754_s6 + $0x54] sm:$0xff]  ;;  %v11952_v41 = vld [vmem:[%s14754_s6 + $0xb0] sm:$0x1] }
 0x1b6   : >> { %v15688_v19 = vrot.slane %v3105_v51, 4  ;;  %4211 = vrot.lane.b32.xlu2 %v15684_v54, %s14370_s7  ;;  %v2886_v12 = vunpack.c.l.b16 %v2786_v16  ;;  %v3575_v62 = vunpack.c.l.b16 %v12020_v40  ;;  %v3740_v42 = vshrl.u32 %v13757_v38, 16  ;;  %v12307_v60 = vld [vmem:[#allocation3 + $0xa8] sm:$0xf]  ;;  %v13800_v49 = vld [vmem:[#allocation3 + $0xb8] sm:$0xf0] }
 0x1b7   : >> { %v3101_v30 = vsel %vm15312_vm15, %v3096_v21, %v3100_v47  ;;  %v1693_v7 = vpack.c.b16 %v1651_v28, %v1651_v28  ;;  %v1869_v11 = vsel %vm1326_vm10, %v11790_v46, %v1821_v22  ;;  %v3742_v2 = vshll.u32 %v13757_v38, 16  ;;  %v14188_v51 = vld [vmem:[%s14754_s6 + $0xa8] sm:$0xf0]  ;;  %v15704_v21 = vpop.f32.mrf.mxu1 }
 0x1b8   : >> { %3394 = vst [vmem:[#allocation3 + $0xd0] sm:$0xf] %v3101_v30  ;;  %v1969_v35 = vunpack.c.l.b16 %v1869_v11  ;;  %v1970_v31 = vunpack.c.h.b16 %v1869_v11  ;;  %v2934_v0 = vpack.c.b16 %v2886_v12, %v2886_v12  ;;  %v3591_v34 = vpack.c.b16 %v3575_v62, %v3575_v62  ;;  %v14189_v12 = vld [vmem:[%s14754_s6 + $0xa8] sm:$0xe]  ;;  %v11929_v30 = vld [vmem:[%s14754_s6 + $0x54] sm:$0xf] }
 0x1b9   : >> { %v1871_v50 = vsel %vm1326_vm10, %v1693_v7, %v1821_v22  ;;  %v3744_v32 = vrot.slane %v3742_v2, 1  ;;  %v3830_v59 = vsel %vm1326_vm10, %v14309_v33, %v3798_v8  ;;  %v12304_v43 = vor.u32 %v13797_v23, %v12301_v26  ;;  %v15702_v22 = vpop.f32.mrf.mxu0  ;;  %18467 = vst [vmem:[#allocation12_spill] sm:$0xff] %v15704_v21  ;;  %v4192_v7 = vpop.permute.xlu2 %4191  ;;  %v12126_v11 = vld [vmem:[%s14754_s6 + $0xb0] sm:$0x1] }
 0x1ba   : >> { %v1971_v47 = vunpack.c.l.b16 %v1871_v50  ;;  %v2017_v1 = vpack.c.b16 %v1969_v35, %v1969_v35  ;;  %v2018_v10 = vpack.c.b16 %v1970_v31, %v1970_v31  ;;  %v3108_v18 = vshll.u32 %v2934_v0, 16  ;;  %v2718_v33 = vpop.permute.xlu0 %2717 }
 0x1bb   : >> { %v3745_v25 = vor.u32 %v3744_v32, %v3740_v42  ;;  %v3747_v36 = vshll.u32 %v3591_v34, 16  ;;  %v3877_v38 = vunpack.c.l.b16 %v3830_v59  ;;  %v3878_v40 = vunpack.c.h.b16 %v3830_v59  ;;  %5587 = vmatmul.bf16.gmra.mxu1 %v12304_v43  ;;  %v4194_v59 = vpop.permute.xlu1 %4193  ;;  %v13798_v43 = vld [vmem:[#allocation3 + $0xac] sm:$0xf] }
 0x1bc   : >> { %1834 = vrot.lane.b32.xlu0 %v1806_v14, %s14370_s7  ;;  %v2019_v28 = vpack.c.b16 %v1971_v47, %v1971_v47  ;;  %v11900_v46 = vrot.slane %v2017_v1, 9  ;;  %v2090_v16 = vrot.slane %v2018_v10, 5  ;;  %v3110_v8 = vrot.slane %v3108_v18, 5  ;;  %v12309_v18 = vld [vmem:[#allocation3 + $0xbc] sm:$0xf0] }
 0x1bd   : >> { %v3749_v62 = vrot.slane %v3747_v36, 1  ;;  %v3909_v42 = vpack.c.b16 %v3877_v38, %v3877_v38  ;;  %v3910_v23 = vpack.c.b16 %v3878_v40, %v3878_v40  ;;  %v12308_v26 = vor.u32 %v13800_v49, %v12307_v60  ;;  %v12315_v60 = vld [vmem:[#allocation3 + $0xb0] sm:$0xf]  ;;  %v13801_v40 = vld [vmem:[#allocation3 + $0xc0] sm:$0xf0] }
 0x1be   : >> { %v2091_v2 = vsel %vm15322_vm1, %v11900_v46, %v2090_v16  ;;  %v2092_v35 = vrot.slane %v2090_v16, 4  ;;  %v2093_v31 = vrot.slane %v2019_v28, 5  ;;  %v3111_v14 = vsel %vm15312_vm15, %v15688_v19, %v3110_v8  ;;  %v18469_v46 = vld [vmem:[#allocation8_spill] sm:$0xff]  ;;  %v15732_v8 = vld [vmem:[%s14754_s6 + $0xa8] sm:$0xff] }
 0x1bf   : >> { %2207 = vst [vmem:[#allocation3 + $0xcc] sm:$0xf] %v2091_v2  ;;  %v3750_v0 = vsel %vm1101_vm9, %v3745_v25, %v3749_v62  ;;  %5676 = vmatmul.bf16.gmra.mxu2 %v12308_v26  ;;  %v2382_v34 = vunpack.c.l.b16 %v11952_v41  ;;  %v14190_v50 = vor.u32 %v14189_v12, %v14188_v51  ;;  %v2635_v32 = vshrl.u32 %v15578_v15, 16 }
 0x1c0   : >> { %v2094_v47 = vsel %vm15322_vm1, %v2092_v35, %v2093_v31  ;;  %3395 = vst [vmem:[#allocation3 + $0xe4] sm:$0xf] %v3111_v14  ;;  %3811 = vrot.lane.b32.xlu1 %v3750_v0, %s14370_s7  ;;  %v2359_v1 = vunpack.c.l.b16 %v11929_v30  ;;  %v4267_v19 = vsel %vm1326_vm10, %v15180_v61, %v4192_v7  ;;  %v4129_v10 = vunpack.c.l.b16 %v12126_v11  ;;  %v15735_v30 = vpop.f32.mrf.mxu2  ;;  %v12182_v35 = vld [vmem:[%s14754_s6 + $0x9c] sm:$0xe]  ;;  %v13772_v31 = vld [vmem:[%s14754_s6 + $0x9c] sm:$0xf0]  ;;  %v15740_v14 = vpop.f32.mrf.mxu3 }
 0x1c1   : >> { %2208 = vst [vmem:[#allocation3 + $0xe0] sm:$0xf] %v2094_v47  ;;  %v15722_v49 = vpack.c.b16 %v2382_v34, %v2382_v34  ;;  %v2652_v25 = vshrl.u32 %v14190_v50, 16  ;;  %v2654_v36 = vshll.u32 %v14190_v50, 16  ;;  %2739 = vrot.lane.b32.xlu2 %v2635_v32, %s14370_s7  ;;  %v4378_v38 = vunpack.c.l.b16 %v4267_v19  ;;  %v1523_v32 = vld [vmem:[%s14754_s6 + $0x50] sm:$0x1]  ;;  %v15745_v47 = vpop.f32.mrf.mxu1 }
 0x1c2   : >> { %3973 = vst [vmem:[#allocation3 + $0xd4] sm:$0xf] %v3909_v42  ;;  %v18468_v51 = vunpack.c.l.b16 %v15008_v63  ;;  %v4379_v61 = vunpack.c.h.b16 %v4267_v19  ;;  %v15727_v28 = vpack.c.b16 %v4129_v10, %v4129_v10  ;;  %v4270_v16 = vsel %vm1326_vm10, %v18469_v46, %v4194_v59  ;;  %v15743_v59 = vpop.f32.mrf.mxu0 }
 0x1c3   : >> { %3974 = vst [vmem:[#allocation3 + $0xe8] sm:$0xf] %v3910_v23  ;;  %v2656_v12 = vrot.slane %v2654_v36, 1  ;;  %v2659_v62 = vshll.u32 %v15722_v49, 16  ;;  %v4426_v26 = vpack.c.b16 %v4378_v38, %v4378_v38  ;;  %v4380_v42 = vunpack.c.l.b16 %v4270_v16  ;;  %v11793_v36 = vld [vmem:[%s14754_s6 + $0x48] sm:$0xe] }
 0x1c4   : >> { %v2401_v41 = vpack.c.b16 %v18468_v51, %v2359_v1  ;;  %18470 = vst [vmem:[#allocation8_spill] sm:$0xff] %v15735_v30  ;;  %v4427_v7 = vpack.c.b16 %v4379_v61, %v4379_v61  ;;  %v12312_v11 = vor.u32 %v13798_v43, %v12309_v18  ;;  %v12316_v2 = vor.u32 %v13801_v40, %v12315_v60  ;;  %v13719_v38 = vld [vmem:[%s14754_s6 + $0x48] sm:$0xf0]  ;;  %v2720_v40 = vpop.permute.xlu2 %2719  ;;  %v12021_v16 = vld [vmem:[%s14754_s6 + $0xbc] sm:$0x1] }
 0x1c5   : >> { %18471 = vst [vmem:[#allocation13_spill] sm:$0xff] %v15740_v14  ;;  %v2657_v0 = vor.u32 %v2656_v12, %v2652_v25  ;;  %v2661_v34 = vrot.slane %v2659_v62, 1  ;;  %v12205_v1 = vrot.slane %v4426_v26, 9  ;;  %v4428_v19 = vpack.c.b16 %v4380_v42, %v4380_v42  ;;  %v1823_v42 = vpop.permute.xlu0 %1822 }
 0x1c6   : >> { %v2789_v63 = vsel %vm1326_vm10, %v2401_v41, %v2718_v33  ;;  %18472 = vst [vmem:[#allocation14_spill] sm:$0xff] %v15745_v47  ;;  %v4496_v33 = vrot.slane %v4427_v7, 5  ;;  %5765 = vmatmul.bf16.gmra.mxu3 %v12312_v11  ;;  %5854 = vmatmul.bf16.gmra.mxu0 %v12316_v2  ;;  %v1807_v43 = vrot.slane %v15732_v8, 7  ;;  %v15749_v25 = vor.u32 %v13772_v31, %v12182_v35  ;;  %v18473_v2 = vld [vmem:[#allocation7_spill] sm:$0xff]  ;;  %v3800_v31 = vpop.permute.xlu1 %3799 }
 0x1c7   : >> { %v2887_v23 = vunpack.c.l.b16 %v2789_v63  ;;  %v2888_v50 = vunpack.c.h.b16 %v2789_v63  ;;  %v2662_v10 = vsel %vm1101_vm9, %v2657_v0, %v2661_v34  ;;  %v4499_v61 = vrot.slane %v4428_v19, 5  ;;  %v13758_v19 = vld [vmem:[%s14754_s6 + $0xb4] sm:$0xff] }
 0x1c8   : >> { %2745 = vrot.lane.b32.xlu0 %v2662_v10, %s14370_s7  ;;  %v4497_v51 = vsel %vm15322_vm1, %v12205_v1, %v4496_v33  ;;  %v4498_v41 = vrot.slane %v4496_v33, 4  ;;  %4221 = vrot.lane.b32.xlu1 %v15727_v28, %s14370_s7  ;;  %v1654_v46 = vunpack.c.l.b16 %v1523_v32  ;;  %v11794_v7 = vor.u32 %v13719_v38, %v11793_v36 }
 0x1c9   : >> { %v2935_v18 = vpack.c.b16 %v2887_v23, %v2887_v23  ;;  %v2936_v60 = vpack.c.b16 %v2888_v50, %v2888_v50  ;;  %4613 = vst [vmem:[#allocation3 + $0xd8] sm:$0xf] %v4497_v51  ;;  %4215 = vrot.lane.b32.xlu2 %v15749_v25, %s14370_s7  ;;  %v2791_v35 = vsel %vm1326_vm10, %v18473_v2, %v2720_v40  ;;  %v3576_v10 = vunpack.c.l.b16 %v12021_v16  ;;  %v15768_v51 = vpop.f32.mrf.mxu2 }
 0x1ca   : >> { %v4500_v63 = vsel %vm15322_vm1, %v4498_v41, %v4499_v61  ;;  %v1695_v11 = vpack.c.b16 %v1654_v46, %v1654_v46  ;;  %v1874_v32 = vsel %vm1326_vm10, %v11794_v7, %v1823_v42  ;;  %v2889_v33 = vunpack.c.l.b16 %v2791_v35  ;;  %18474 = vst [vmem:[#allocation7_spill] sm:$0xff] %v15768_v51  ;;  %v15772_v16 = vpop.f32.mrf.mxu0  ;;  %v15774_v7 = vpop.f32.mrf.mxu1 }
 0x1cb   : >> { %v3113_v8 = vshrl.u32 %v2935_v18, 16  ;;  %v3116_v12 = vshll.u32 %v2935_v18, 16  ;;  %v3122_v62 = vshll.u32 %v2936_v60, 16  ;;  %v3126_v26 = vshrl.u32 %v2936_v60, 16  ;;  %4614 = vst [vmem:[#allocation3 + $0xec] sm:$0xf] %v4500_v63 }
 0x1cc   : >> { %v1876_v1 = vsel %vm1326_vm10, %v1695_v11, %v1823_v42  ;;  %v1972_v36 = vunpack.c.l.b16 %v1874_v32  ;;  %v1973_v38 = vunpack.c.h.b16 %v1874_v32  ;;  %v2937_v41 = vpack.c.b16 %v2889_v33, %v2889_v33  ;;  %v12327_v63 = vld [vmem:[#allocation3 + $0xd0] sm:$0xf]  ;;  %18476 = vst [vmem:[#allocation16_spill] sm:$0xff] %v15774_v7 }
 0x1cd   : >> { %v3115_v0 = vrot.slane %v3113_v8, 4  ;;  %v3118_v34 = vrot.slane %v3116_v12, 5  ;;  %v3124_v23 = vrot.slane %v3122_v62, 5  ;;  %v3128_v50 = vrot.slane %v3126_v26, 4  ;;  %v15770_v8 = vpop.f32.mrf.mxu3  ;;  %v2722_v45 = vpop.permute.xlu0 %2721  ;;  %v12022_v7 = vld [vmem:[%s14754_s6 + $0xc8] sm:$0x1] }
 0x1ce   : >> { %v1974_v40 = vunpack.c.l.b16 %v1876_v1  ;;  %v3592_v61 = vpack.c.b16 %v3576_v10, %v3576_v10  ;;  %v3752_v46 = vshrl.u32 %v13758_v19, 16  ;;  %18475 = vst [vmem:[#allocation15_spill] sm:$0xff] %v15770_v8  ;;  %v2020_v26 = vpack.c.b16 %v1972_v36, %v1972_v36  ;;  %v14310_v10 = vld [vmem:[%s14754_s6 + $0x60] sm:$0xff]  ;;  %v13805_v36 = vld [vmem:[#allocation3 + $0xe0] sm:$0xf0] }
 0x1cf   : >> { %v3119_v18 = vor.u32 %v3118_v34, %v3115_v0  ;;  %v3129_v60 = vor.u32 %v3128_v50, %v3124_v23  ;;  %v2021_v42 = vpack.c.b16 %v1973_v38, %v1973_v38  ;;  %v3132_v2 = vshll.u32 %v2937_v41, 16  ;;  %v13802_v34 = vld [vmem:[#allocation3 + $0xcc] sm:$0xf]  ;;  %v15778_v50 = vld [vmem:[%s14754_s6 + $0xb8] sm:$0xf] }
 0x1d0   : >> { %1836 = vrot.lane.b32.xlu0 %v1807_v43, %s14370_s7  ;;  %v2022_v11 = vpack.c.b16 %v1974_v40, %v1974_v40  ;;  %v3754_v35 = vshll.u32 %v13758_v19, 16  ;;  %v3759_v0 = vshll.u32 %v3592_v61, 16  ;;  %18477 = vst [vmem:[#allocation17_spill] sm:$0xff] %v15778_v50  ;;  %v11901_v1 = vrot.slane %v2020_v26, 9  ;;  %v11955_v26 = vld [vmem:[%s14754_s6 + $0xbc] sm:$0x1] }
 0x1d1   : >> { %v3120_v12 = vrot.slane %v3119_v18, 4  ;;  %v3130_v62 = vrot.slane %v3129_v60, 4  ;;  %v2097_v33 = vrot.slane %v2021_v42, 5  ;;  %v3832_v18 = vsel %vm1326_vm10, %v14310_v10, %v3800_v31  ;;  %v12321_v60 = vld [vmem:[#allocation3 + $0xdc] sm:$0xf0] }
 0x1d2   : >> { %v2100_v43 = vrot.slane %v2022_v11, 5  ;;  %v3134_v19 = vrot.slane %v3132_v2, 5  ;;  %v3756_v38 = vrot.slane %v3754_v35, 1  ;;  %v3761_v40 = vrot.slane %v3759_v0, 1  ;;  %v11973_v42 = vld [vmem:[%s14754_s6 + $0xb4] sm:$0xe]  ;;  %v4196_v35 = vpop.permute.xlu2 %4195  ;;  %v4198_v0 = vpop.permute.xlu1 %4197 }
 0x1d3   : >> { %v3125_v32 = vsel %vm15312_vm15, %v3120_v12, %v3124_v23  ;;  %v2098_v41 = vsel %vm15322_vm1, %v11901_v1, %v2097_v33  ;;  %v2099_v23 = vrot.slane %v2097_v33, 4  ;;  %v3879_v61 = vunpack.c.l.b16 %v3832_v18  ;;  %v14165_v2 = vld [vmem:[%s14754_s6 + $0x60] sm:$0xff]  }
 0x1d4   : >> { %3396 = vst [vmem:[#allocation3 + $0xf8] sm:$0xf] %v3125_v32  ;;  %v3880_v12 = vunpack.c.h.b16 %v3832_v18  ;;  %v3135_v31 = vsel %vm15312_vm15, %v3130_v62, %v3134_v19  ;;  %v3757_v32 = vor.u32 %v3756_v38, %v3752_v46  ;;  %v12324_v11 = vor.u32 %v13802_v34, %v12321_v60  ;;  %v15803_v38 = vpop.f32.mrf.mxu2 }
 0x1d5   : >> { %2209 = vst [vmem:[#allocation3 + $0xf4] sm:$0xf] %v2098_v41  ;;  %v12328_v10 = vor.u32 %v13805_v36, %v12327_v63  ;;  %v2101_v1 = vsel %vm15322_vm1, %v2099_v23, %v2100_v43  ;;  %v3911_v33 = vpack.c.b16 %v3879_v61, %v3879_v61  ;;  %v18406_v8 = vunpack.c.l.b16 %v15778_v50  ;;  %v18478_v43 = vld [vmem:[#allocation9_spill] sm:$0xff] }
 0x1d6   : >> { %3397 = vst [vmem:[#allocation3 + $0x10c] sm:$0xf] %v3135_v31  ;;  %v3912_v18 = vpack.c.b16 %v3880_v12, %v3880_v12  ;;  %v3762_v41 = vsel %vm1101_vm9, %v3757_v32, %v3761_v40  ;;  %5592 = vmatmul.bf16.gmra.mxu1 %v12324_v11  ;;  %v2385_v46 = vunpack.c.l.b16 %v11955_v26  ;;  %v2451_v62 = vunpack.c.l.b16 %v11973_v42  ;;  %v15814_v31 = vpop.f32.mrf.mxu0  ;;  %v15816_v32 = vpop.f32.mrf.mxu1 }
 0x1d7   : >> { %2210 = vst [vmem:[#allocation3 + $0x108] sm:$0xf] %v2101_v1  ;;  %5681 = vmatmul.bf16.gmra.mxu2 %v12328_v10  ;;  %v2649_v63 = vshrl.u32 %v15655_v37, 16  ;;  %3813 = vrot.lane.b32.xlu1 %v3762_v41, %s14370_s7  ;;  %v2794_v34 = vsel %vm1326_vm10, %v14165_v2, %v2722_v45  ;;  %v4273_v60 = vsel %vm1326_vm10, %v15376_v17, %v4196_v35  ;;  %v4132_v36 = vunpack.c.l.b16 %v12129_v20  ;;  %v15810_v45 = vpop.f32.mrf.mxu3  ;;  %v13803_v41 = vld [vmem:[#allocation3 + $0xd4] sm:$0xf] }
 0x1d8   : >> { %3975 = vst [vmem:[#allocation3 + $0xfc] sm:$0xf] %v3911_v33  ;;  %v4276_v19 = vsel %vm1326_vm10, %v18478_v43, %v4198_v0  ;;  %v15805_v40 = vpack.c.b16 %v2385_v46, %v2385_v46  ;;  %v2467_v23 = vpack.c.b16 %v18406_v8, %v2451_v62  ;;  %v2890_v61 = vunpack.c.l.b16 %v2794_v34  ;;  %v12329_v46 = vld [vmem:[#allocation3 + $0xe4] sm:$0xf0]  ;;  %v12335_v43 = vld [vmem:[#allocation3 + $0xd8] sm:$0xf] }
 0x1d9   : >> { %18479 = vst [vmem:[#allocation9_spill] sm:$0xff] %v15803_v38  ;;  %2743 = vrot.lane.b32.xlu2 %v2649_v63, %s14370_s7  ;;  %v2891_v12 = vunpack.c.h.b16 %v2794_v34  ;;  %v4381_v26 = vunpack.c.l.b16 %v4273_v60  ;;  %v4382_v17 = vunpack.c.h.b16 %v4273_v60  ;;  %v15812_v20 = vpack.c.b16 %v4132_v36, %v4132_v36  ;;  %v15820_v62 = vld [vmem:[%s14754_s6 + $0xb4] sm:$0xff] }
 0x1da   : >> { %3976 = vst [vmem:[#allocation3 + $0x110] sm:$0xf] %v3912_v18  ;;  %v4383_v42 = vunpack.c.l.b16 %v4276_v19  ;;  %v2666_v11 = vshrl.u32 %v2467_v23, 16  ;;  %v2668_v10 = vshll.u32 %v2467_v23, 16  ;;  %v2673_v2 = vshll.u32 %v15805_v40, 16 }
 0x1db   : >> { %18480 = vst [vmem:[#allocation18_spill] sm:$0xff] %v15805_v40  ;;  %v2938_v35 = vpack.c.b16 %v2890_v61, %v2890_v61  ;;  %v2939_v0 = vpack.c.b16 %v2891_v12, %v2891_v12  ;;  %v4429_v1 = vpack.c.b16 %v4381_v26, %v4381_v26  ;;  %v4430_v33 = vpack.c.b16 %v4382_v17, %v4382_v17  ;;  %v12186_v19 = vld [vmem:[%s14754_s6 + $0xa8] sm:$0xe]  ;;  %v13773_v23 = vld [vmem:[%s14754_s6 + $0xa8] sm:$0xf0] }
 0x1dc   : >> { %18481 = vst [vmem:[#allocation19_spill] sm:$0xff] %v15810_v45  ;;  %v4431_v18 = vpack.c.b16 %v4383_v42, %v4383_v42  ;;  %v2670_v63 = vrot.slane %v2668_v10, 1  ;;  %v2675_v34 = vrot.slane %v2673_v2, 1  ;;  %v13806_v26 = vld [vmem:[#allocation3 + $0xe8] sm:$0xf0]  ;;  %v1825_v2 = vpop.permute.xlu0 %1824  ;;  %v15840_v47 = vpop.f32.mrf.mxu2 }
 0x1dd   : >> { %18482 = vst [vmem:[#allocation20_spill] sm:$0xff] %v15812_v20  ;;  %v3137_v60 = vshrl.u32 %v2938_v35, 16  ;;  %v3140_v36 = vshll.u32 %v2938_v35, 16  ;;  %v3146_v8 = vshll.u32 %v2939_v0, 16  ;;  %v3150_v45 = vshrl.u32 %v2939_v0, 16 }
 0x1de   : >> { %18483 = vst [vmem:[#allocation21_spill] sm:$0xff] %v15816_v32  ;;  %v12206_v61 = vrot.slane %v4429_v1, 9  ;;  %v4503_v12 = vrot.slane %v4430_v33, 5  ;;  %v11797_v17 = vld [vmem:[%s14754_s6 + $0x54] sm:$0xe]  ;;  %v2671_v42 = vor.u32 %v2670_v63, %v2666_v11  ;;  %v4506_v51 = vrot.slane %v4431_v18, 5  ;;  %v2724_v1 = vpop.permute.xlu2 %2723  ;;  %v3802_v33 = vpop.permute.xlu1 %3801 }
 0x1df   : >> { %v3139_v14 = vrot.slane %v3137_v60, 4  ;;  %v3142_v38 = vrot.slane %v3140_v36, 5  ;;  %v13720_v10 = vld [vmem:[%s14754_s6 + $0x54] sm:$0xf0]  ;;  %v3148_v30 = vrot.slane %v3146_v8, 5  ;;  %v3152_v35 = vrot.slane %v3150_v45, 4  ;;  %4225 = vrot.lane.b32.xlu1 %v15812_v20, %s14370_s7 }
 0x1e0   : >> { %v4504_v55 = vsel %vm15322_vm1, %v12206_v61, %v4503_v12  ;;  %v4505_v32 = vrot.slane %v4503_v12, 4  ;;  %v1526_v0 = vld [vmem:[%s14754_s6 + $0x5c] sm:$0x1]  ;;  %v2676_v11 = vsel %vm1101_vm9, %v2671_v42, %v2675_v34  ;;  %v12332_v18 = vor.u32 %v13803_v41, %v12329_v46  ;;  %v13759_v36 = vld [vmem:[%s14754_s6 + $0xc0] sm:$0xff]  ;;  %18484 = vst [vmem:[#allocation22_spill] sm:$0xff] %v15840_v47  ;;  %v15844_v41 = vpop.f32.mrf.mxu3 }
 0x1e1   : >> { %v3143_v63 = vor.u32 %v3142_v38, %v3139_v14  ;;  %4615 = vst [vmem:[#allocation3 + $0x100] sm:$0xf] %v4504_v55  ;;  %v12336_v60 = vor.u32 %v13806_v26, %v12335_v43  ;;  %2749 = vrot.lane.b32.xlu0 %v2676_v11, %s14370_s7  ;;  %v3153_v8 = vor.u32 %v3152_v35, %v3148_v30  ;;  %v1808_v61 = vrot.slane %v15820_v62, 7  ;;  %v13807_v34 = vld [vmem:[#allocation3 + $0xf4] sm:$0xf] }
 0x1e2   : >> { %v4507_v45 = vsel %vm15322_vm1, %v4505_v32, %v4506_v51  ;;  %v15838_v12 = vor.u32 %v13773_v23, %v12186_v19  ;;  %5770 = vmatmul.bf16.gmra.mxu3 %v12332_v18  ;;  %v1657_v55 = vunpack.c.l.b16 %v1526_v0  ;;  %v11798_v14 = vor.u32 %v13720_v10, %v11797_v17  ;;  %18485 = vst [vmem:[#allocation23_spill] sm:$0xff] %v15844_v41  ;;  %v12341_v43 = vld [vmem:[#allocation3 + $0x104] sm:$0xf0]  ;;  %v15850_v19 = vpop.f32.mrf.mxu0  ;;  %v15852_v23 = vpop.f32.mrf.mxu1 }
 0x1e3   : >> { %v3144_v21 = vrot.slane %v3143_v63, 4  ;;  %4616 = vst [vmem:[#allocation3 + $0x114] sm:$0xf] %v4507_v45  ;;  %5859 = vmatmul.bf16.gmra.mxu0 %v12336_v60  ;;  %v2796_v38 = vsel %vm1326_vm10, %v15096_v6, %v2724_v1  ;;  %v15846_v46 = vrot.slane %v3153_v8, 4  ;;  %v3577_v32 = vunpack.c.l.b16 %v12022_v7  ;;  %v14311_v63 = vld [vmem:[%s14754_s6 + $0x6c] sm:$0xff] }
 0x1e4   : >> { %4219 = vrot.lane.b32.xlu2 %v15838_v12, %s14370_s7  ;;  %v2892_v51 = vunpack.c.l.b16 %v2796_v38  ;;  %v3764_v62 = vshrl.u32 %v13759_v36, 16  ;;  %18486 = vst [vmem:[#allocation24_spill] sm:$0xff] %v15852_v23  ;;  %v1697_v26 = vpack.c.b16 %v1657_v55, %v1657_v55  ;;  %v1879_v17 = vsel %vm1326_vm10, %v11798_v14, %v1825_v2  ;;  %v13810_v55 = vld [vmem:[#allocation3 + $0x108] sm:$0xf0] }
 0x1e5   : >> { %v3149_v6 = vsel %vm15312_vm15, %v3144_v21, %v3148_v30  ;;  %v3766_v42 = vshll.u32 %v13759_v36, 16  ;;  %v1975_v10 = vunpack.c.l.b16 %v1879_v17  ;;  %v1976_v35 = vunpack.c.h.b16 %v1879_v17  ;;  %v12347_v36 = vld [vmem:[#allocation3 + $0xf8] sm:$0xf] }
 0x1e6   : >> { %3398 = vst [vmem:[#allocation3 + $0x120] sm:$0xf] %v3149_v6  ;;  %v2940_v0 = vpack.c.b16 %v2892_v51, %v2892_v51  ;;  %v3593_v7 = vpack.c.b16 %v3577_v32, %v3577_v32  ;;  %v1881_v1 = vsel %vm1326_vm10, %v1697_v26, %v1825_v2  ;;  %v3834_v18 = vsel %vm1326_vm10, %v14311_v63, %v3802_v33  ;;  %v14191_v2 = vld [vmem:[%s14754_s6 + $0xc0] sm:$0xf0]  ;;  %v11958_v6 = vld [vmem:[%s14754_s6 + $0xc8] sm:$0x1]  ;;  %v2726_v26 = vpop.permute.xlu0 %2725 }
 0x1e7   : >> { %v3768_v11 = vrot.slane %v3766_v42, 1  ;;  %v12344_v60 = vor.u32 %v13807_v34, %v12341_v43  ;;  %v1977_v8 = vunpack.c.l.b16 %v1881_v1  ;;  %v2023_v21 = vpack.c.b16 %v1975_v10, %v1975_v10  ;;  %v14192_v42 = vld [vmem:[%s14754_s6 + $0xc0] sm:$0xe]  ;;  %v4200_v10 = vpop.permute.xlu2 %4199  ;;  %v12132_v63 = vld [vmem:[%s14754_s6 + $0xc8] sm:$0x1] }
 0x1e8   : >> { %v2024_v30 = vpack.c.b16 %v1976_v35, %v1976_v35  ;;  %v3156_v45 = vshll.u32 %v2940_v0, 16  ;;  %v3771_v38 = vshll.u32 %v3593_v7, 16  ;;  %v3881_v51 = vunpack.c.l.b16 %v3834_v18  ;;  %v4202_v35 = vpop.permute.xlu1 %4201 }
 0x1e9   : >> { %v3769_v14 = vor.u32 %v3768_v11, %v3764_v62  ;;  %v3882_v32 = vunpack.c.h.b16 %v3834_v18  ;;  %5597 = vmatmul.bf16.gmra.mxu1 %v12344_v60  ;;  %1838 = vrot.lane.b32.xlu0 %v1808_v61, %s14370_s7  ;;  %v2025_v33 = vpack.c.b16 %v1977_v8, %v1977_v8  ;;  %v11902_v34 = vrot.slane %v2023_v21, 9  ;;  %v11935_v11 = vld [vmem:[%s14754_s6 + $0x6c] sm:$0xf]  ;;  %v15871_v8 = vpop.f32.mrf.mxu2 }
 0x1ea   : >> { %v2104_v43 = vrot.slane %v2024_v30, 5  ;;  %v3158_v17 = vrot.slane %v3156_v45, 5  ;;  %v3773_v0 = vrot.slane %v3771_v38, 1  ;;  %v3913_v62 = vpack.c.b16 %v3881_v51, %v3881_v51  ;;  %18487 = vst [vmem:[#allocation25_spill] sm:$0xff] %v15871_v8  ;;  %v15875_v38 = vpop.f32.mrf.mxu3 }
 0x1eb   : >> { %v3914_v7 = vpack.c.b16 %v3882_v32, %v3882_v32  ;;  %v12348_v1 = vor.u32 %v13810_v55, %v12347_v36  ;;  %v2107_v41 = vrot.slane %v2025_v33, 5  ;;  %v2388_v30 = vunpack.c.l.b16 %v11958_v6  ;;  %v13808_v55 = vld [vmem:[#allocation3 + $0xfc] sm:$0xf]  ;;  %18488 = vst [vmem:[#allocation26_spill] sm:$0xff] %v15875_v38  ;;  %v12355_v6 = vld [vmem:[#allocation3 + $0x100] sm:$0xf] }
 0x1ec   : >> { %v2105_v18 = vsel %vm15322_vm1, %v11902_v34, %v2104_v43  ;;  %v2106_v60 = vrot.slane %v2104_v43, 4  ;;  %v3159_v61 = vsel %vm15312_vm15, %v15846_v46, %v3158_v17  ;;  %v3774_v21 = vsel %vm1101_vm9, %v3769_v14, %v3773_v0  ;;  %v12349_v14 = vld [vmem:[#allocation3 + $0x10c] sm:$0xf0]  ;;  %v15884_v34 = vpop.f32.mrf.mxu1  ;;  %v13811_v0 = vld [vmem:[#allocation3 + $0x110] sm:$0xf0] }
 0x1ed   : >> { %2211 = vst [vmem:[#allocation3 + $0x11c] sm:$0xf] %v2105_v18  ;;  %5686 = vmatmul.bf16.gmra.mxu2 %v12348_v1  ;;  %v14193_v45 = vor.u32 %v14192_v42, %v14191_v2  ;;  %v2663_v36 = vshrl.u32 %v15722_v49, 16  ;;  %3815 = vrot.lane.b32.xlu1 %v3774_v21, %s14370_s7  ;;  %v2365_v46 = vunpack.c.l.b16 %v11935_v11  ;;  %v4279_v32 = vsel %vm1326_vm10, %v15470_v58, %v4200_v10  ;;  %v15882_v2 = vpop.f32.mrf.mxu0  ;;  %v18490_v58 = vld [vmem:[#allocation10_spill] sm:$0xff] }
 0x1ee   : >> { %v2108_v51 = vsel %vm15322_vm1, %v2106_v60, %v2107_v41  ;;  %3399 = vst [vmem:[#allocation3 + $0x134] sm:$0xf] %v3159_v61  ;;  %v4135_v33 = vunpack.c.l.b16 %v12132_v63  ;;  %v15886_v43 = vpack.c.b16 %v2388_v30, %v2388_v30  ;;  %v4384_v42 = vunpack.c.l.b16 %v4279_v32  ;;  %v15896_v60 = vld [vmem:[%s14754_s6 + $0xc0] sm:$0xff] }
 0x1ef   : >> { %18489 = vst [vmem:[#allocation27_spill] sm:$0xff] %v15884_v34  ;;  %v2680_v17 = vshrl.u32 %v14193_v45, 16  ;;  %v2682_v41 = vshll.u32 %v14193_v45, 16  ;;  %2747 = vrot.lane.b32.xlu2 %v2663_v36, %s14370_s7  ;;  %v18491_v10 = vunpack.c.l.b16 %v18490_v58  ;;  %v4385_v11 = vunpack.c.h.b16 %v4279_v32  ;;  %v12190_v32 = vld [vmem:[%s14754_s6 + $0xb4] sm:$0xe] }
 0x1f0   : >> { %2212 = vst [vmem:[#allocation3 + $0x130] sm:$0xf] %v2108_v51  ;;  %v15891_v63 = vpack.c.b16 %v4135_v33, %v4135_v33  ;;  %v4282_v18 = vsel %vm1326_vm10, %v15285_v24, %v4202_v35  ;;  %v2687_v21 = vshll.u32 %v15886_v43, 16  ;;  %v4432_v30 = vpack.c.b16 %v4384_v42, %v4384_v42  ;;  %v13774_v33 = vld [vmem:[%s14754_s6 + $0xb4] sm:$0xf0]  ;;  %v2728_v42 = vpop.permute.xlu2 %2727 }
 0x1f1   : >> { %3977 = vst [vmem:[#allocation3 + $0x124] sm:$0xf] %v3913_v62  ;;  %v2405_v1 = vpack.c.b16 %v18491_v10, %v2365_v46  ;;  %v2684_v61 = vrot.slane %v2682_v41, 1  ;;  %v4386_v45 = vunpack.c.l.b16 %v4282_v18  ;;  %v4433_v36 = vpack.c.b16 %v4385_v11, %v4385_v11  ;;  %v1529_v35 = vld [vmem:[%s14754_s6 + $0x68] sm:$0x1] }
 0x1f2   : >> { %18492 = vst [vmem:[#allocation10_spill] sm:$0xff] %v15891_v63  ;;  %v12352_v51 = vor.u32 %v13808_v55, %v12349_v14  ;;  %v12356_v46 = vor.u32 %v13811_v0, %v12355_v6  ;;  %v2689_v10 = vrot.slane %v2687_v21, 1  ;;  %v12207_v41 = vrot.slane %v4432_v30, 9  ;;  %v3804_v55 = vpop.permute.xlu1 %3803  ;;  %v13721_v11 = vld [vmem:[%s14754_s6 + $0x60] sm:$0xf0]  ;;  %v15914_v30 = vpop.f32.mrf.mxu2 }
 0x1f3   : >> { %3978 = vst [vmem:[#allocation3 + $0x138] sm:$0xf] %v3914_v7  ;;  %v2799_v62 = vsel %vm1326_vm10, %v2405_v1, %v2726_v26  ;;  %v2685_v58 = vor.u32 %v2684_v61, %v2680_v17  ;;  %v1827_v7 = vpop.permute.xlu0 %1826  ;;  %v4510_v8 = vrot.slane %v4433_v36, 5  ;;  %v4434_v47 = vpack.c.b16 %v4386_v45, %v4386_v45  ;;  %v11801_v1 = vld [vmem:[%s14754_s6 + $0x60] sm:$0xe] }
 0x1f4   : >> { %v2893_v38 = vunpack.c.l.b16 %v2799_v62  ;;  %v2894_v24 = vunpack.c.h.b16 %v2799_v62  ;;  %5775 = vmatmul.bf16.gmra.mxu3 %v12352_v51  ;;  %5864 = vmatmul.bf16.gmra.mxu0 %v12356_v46  ;;  %v1809_v26 = vrot.slane %v15896_v60, 7  ;;  %v15905_v0 = vor.u32 %v13774_v33, %v12190_v32  ;;  %18494 = vst [vmem:[#allocation29_spill] sm:$0xff] %v15914_v30  ;;  %v15918_v51 = vpop.f32.mrf.mxu3 }
 0x1f5   : >> { %v2690_v14 = vsel %vm1101_vm9, %v2685_v58, %v2689_v10  ;;  %v4511_v18 = vsel %vm15322_vm1, %v12207_v41, %v4510_v8  ;;  %v4512_v61 = vrot.slane %v4510_v8, 4  ;;  %4229 = vrot.lane.b32.xlu1 %v15891_v63, %s14370_s7  ;;  %v4513_v60 = vrot.slane %v4434_v47, 5  ;;  %18495 = vst [vmem:[#allocation30_spill] sm:$0xff] %v15918_v51  ;;  %v15924_v33 = vpop.f32.mrf.mxu0  ;;  %v15926_v58 = vpop.f32.mrf.mxu1 }
 0x1f6   : >> { %v2941_v6 = vpack.c.b16 %v2893_v38, %v2893_v38  ;;  %v2942_v17 = vpack.c.b16 %v2894_v24, %v2894_v24  ;;  %18493 = vst [vmem:[#allocation28_spill] sm:$0xff] %v15905_v0  ;;  %2753 = vrot.lane.b32.xlu0 %v2690_v14, %s14370_s7  ;;  %v1660_v21 = vunpack.c.l.b16 %v1529_v35  ;;  %v11802_v46 = vor.u32 %v13721_v11, %v11801_v1 }
 0x1f7   : >> { %4617 = vst [vmem:[#allocation3 + $0x128] sm:$0xf] %v4511_v18  ;;  %4223 = vrot.lane.b32.xlu2 %v15905_v0, %s14370_s7  ;;  %v4514_v8 = vsel %vm15322_vm1, %v4512_v61, %v4513_v60  ;;  %v2801_v47 = vsel %vm1326_vm10, %v15254_v56, %v2728_v42  ;;  %v14312_v18 = vld [vmem:[%s14754_s6 + $0x78] sm:$0xff] }
 0x1f8   : >> { %v3161_v45 = vshrl.u32 %v2941_v6, 16  ;;  %v3164_v38 = vshll.u32 %v2941_v6, 16  ;;  %v3170_v62 = vshll.u32 %v2942_v17, 16  ;;  %v3174_v36 = vshrl.u32 %v2942_v17, 16  ;;  %18496 = vst [vmem:[#allocation31_spill] sm:$0xff] %v15926_v58 }
 0x1f9   : >> { %v1699_v32 = vpack.c.b16 %v1660_v21, %v1660_v21  ;;  %4618 = vst [vmem:[#allocation3 + $0x13c] sm:$0xf] %v4514_v8  ;;  %v1884_v14 = vsel %vm1326_vm10, %v11802_v46, %v1827_v7  ;;  %v2895_v17 = vunpack.c.l.b16 %v2801_v47  ;;  %v3836_v1 = vsel %vm1326_vm10, %v14312_v18, %v3804_v55  ;;  %v13815_v47 = vld [vmem:[#allocation3 + $0x130] sm:$0xf0] }
 0x1fa   : >> { %v3163_v10 = vrot.slane %v3161_v45, 4  ;;  %v3166_v24 = vrot.slane %v3164_v38, 5  ;;  %v3172_v35 = vrot.slane %v3170_v62, 5  ;;  %v3176_v41 = vrot.slane %v3174_v36, 4  ;;  %v13812_v38 = vld [vmem:[#allocation3 + $0x11c] sm:$0xf]  ;;  %v4206_v18 = vpop.permute.xlu1 %4205 }
 0x1fb   : >> { %v1886_v6 = vsel %vm1326_vm10, %v1699_v32, %v1827_v7  ;;  %v1978_v56 = vunpack.c.l.b16 %v1884_v14  ;;  %v1979_v42 = vunpack.c.h.b16 %v1884_v14  ;;  %v2943_v21 = vpack.c.b16 %v2895_v17, %v2895_v17  ;;  %v12361_v62 = vld [vmem:[#allocation3 + $0x12c] sm:$0xf0]  ;;  %v12367_v32 = vld [vmem:[#allocation3 + $0x120] sm:$0xf]  ;;  %v2730_v30 = vpop.permute.xlu0 %2729  ;;  %v12135_v14 = vld [vmem:[%s14754_s6 + $0xd4] sm:$0x1]  ;;  %v4204_v17 = vpop.permute.xlu2 %4203 }
 0x1fc   : >> { %v3167_v11 = vor.u32 %v3166_v24, %v3163_v10  ;;  %v3177_v61 = vor.u32 %v3176_v41, %v3172_v35  ;;  %v1980_v60 = vunpack.c.l.b16 %v1886_v6  ;;  %v3883_v51 = vunpack.c.l.b16 %v3836_v1  ;;  %v14166_v6 = vld [vmem:[%s14754_s6 + $0x78] sm:$0xff]  }
 0x1fd   : >> { %v3884_v45 = vunpack.c.h.b16 %v3836_v1  ;;  %v2026_v46 = vpack.c.b16 %v1978_v56, %v1978_v56  ;;  %v2027_v7 = vpack.c.b16 %v1979_v42, %v1979_v42  ;;  %v3180_v10 = vshll.u32 %v2943_v21, 16 }
 0x1fe   : >> { %v3168_v36 = vrot.slane %v3167_v11, 4  ;;  %v3178_v8 = vrot.slane %v3177_v61, 4  ;;  %1840 = vrot.lane.b32.xlu0 %v1809_v26, %s14370_s7  ;;  %v2028_v55 = vpack.c.b16 %v1980_v60, %v1980_v60  ;;  %v3915_v24 = vpack.c.b16 %v3883_v51, %v3883_v51  ;;  %v15938_v60 = vpop.f32.mrf.mxu2 }
 0x1ff   : >> { %v3916_v41 = vpack.c.b16 %v3884_v45, %v3884_v45  ;;  %v11903_v11 = vrot.slane %v2026_v46, 9  ;;  %v2111_v61 = vrot.slane %v2027_v7, 5  ;;  %v12364_v56 = vor.u32 %v13812_v38, %v12361_v62  ;;  %18497 = vst [vmem:[#allocation32_spill] sm:$0xff] %v15938_v60  ;;  %v15944_v38 = vpop.f32.mrf.mxu3 }
 0x200   : >> { %v3173_v1 = vsel %vm15312_vm15, %v3168_v36, %v3172_v35  ;;  %v2114_v42 = vrot.slane %v2028_v55, 5  ;;  %v3182_v58 = vrot.slane %v3180_v10, 5  ;;  %v12368_v34 = vor.u32 %v13815_v47, %v12367_v32  ;;  %3979 = vst [vmem:[#allocation3 + $0x14c] sm:$0xf] %v3915_v24  ;;  %v12023_v36 = vld [vmem:[%s14754_s6 + $0xd4] sm:$0x1]  ;;  %v15951_v47 = vpop.f32.mrf.mxu0  ;;  %v15953_v55 = vpop.f32.mrf.mxu1 }
 0x201   : >> { %3400 = vst [vmem:[#allocation3 + $0x148] sm:$0xf] %v3173_v1  ;;  %v2677_v26 = vshrl.u32 %v15805_v40, 16  ;;  %v2112_v51 = vsel %vm15322_vm1, %v11903_v11, %v2111_v61  ;;  %v2113_v21 = vrot.slane %v2111_v61, 4  ;;  %5602 = vmatmul.bf16.gmra.mxu1 %v12364_v56  ;;  %v4138_v45 = vunpack.c.l.b16 %v12135_v14 }
 0x202   : >> { %v2804_v35 = vsel %vm1326_vm10, %v14166_v6, %v2730_v30  ;;  %18498 = vst [vmem:[#allocation33_spill] sm:$0xff] %v15944_v38  ;;  %v3183_v62 = vsel %vm15312_vm15, %v3178_v8, %v3182_v58  ;;  %5691 = vmatmul.bf16.gmra.mxu2 %v12368_v34  ;;  %v4285_v32 = vsel %vm1326_vm10, %v15542_v3, %v4204_v17  ;;  %v13760_v34 = vld [vmem:[%s14754_s6 + $0xcc] sm:$0xff]  ;;  %v3578_v6 = vunpack.c.l.b16 %v12023_v36  ;;  %v12375_v36 = vld [vmem:[#allocation3 + $0x128] sm:$0xf]  ;;  %v3806_v38 = vpop.permute.xlu1 %3805 }
 0x203   : >> { %2213 = vst [vmem:[#allocation3 + $0x144] sm:$0xf] %v2112_v51  ;;  %2751 = vrot.lane.b32.xlu2 %v2677_v26, %s14370_s7  ;;  %v2896_v46 = vunpack.c.l.b16 %v2804_v35  ;;  %v2897_v7 = vunpack.c.h.b16 %v2804_v35  ;;  %v2115_v30 = vsel %vm15322_vm1, %v2113_v21, %v2114_v42  ;;  %v15957_v10 = vpack.c.b16 %v4138_v45, %v4138_v45  ;;  %v13813_v21 = vld [vmem:[#allocation3 + $0x124] sm:$0xf]  ;;  %v12194_v45 = vld [vmem:[%s14754_s6 + $0xc0] sm:$0xe] }
 0x204   : >> { %3401 = vst [vmem:[#allocation3 + $0x15c] sm:$0xf] %v3183_v62  ;;  %v4387_v24 = vunpack.c.l.b16 %v4285_v32  ;;  %v4388_v58 = vunpack.c.h.b16 %v4285_v32  ;;  %v4288_v3 = vsel %vm1326_vm10, %v15457_v57, %v4206_v18  ;;  %v3776_v61 = vshrl.u32 %v13760_v34, 16  ;;  %v13775_v35 = vld [vmem:[%s14754_s6 + $0xc0] sm:$0xf0] }
 0x205   : >> { %18499 = vst [vmem:[#allocation34_spill] sm:$0xff] %v15957_v10  ;;  %v2944_v8 = vpack.c.b16 %v2896_v46, %v2896_v46  ;;  %v2945_v14 = vpack.c.b16 %v2897_v7, %v2897_v7  ;;  %v4389_v11 = vunpack.c.l.b16 %v4288_v3  ;;  %v3594_v18 = vpack.c.b16 %v3578_v6, %v3578_v6  ;;  %v1829_v7 = vpop.permute.xlu0 %1828  ;;  %v11805_v3 = vld [vmem:[%s14754_s6 + $0x6c] sm:$0xe]  ;;  %v1532_v6 = vld [vmem:[%s14754_s6 + $0x74] sm:$0x1] }
 0x206   : >> { %2214 = vst [vmem:[#allocation3 + $0x158] sm:$0xf] %v2115_v30  ;;  %v4435_v17 = vpack.c.b16 %v4387_v24, %v4387_v24  ;;  %v4436_v1 = vpack.c.b16 %v4388_v58, %v4388_v58  ;;  %4233 = vrot.lane.b32.xlu0 %v15957_v10, %s14370_s7  ;;  %v15973_v50 = vor.u32 %v13775_v35, %v12194_v45 }
 0x207   : >> { %3980 = vst [vmem:[#allocation3 + $0x160] sm:$0xf] %v3916_v41  ;;  %v3185_v56 = vshrl.u32 %v2944_v8, 16  ;;  %v3188_v42 = vshll.u32 %v2944_v8, 16  ;;  %v3194_v26 = vshll.u32 %v2945_v14, 16  ;;  %v3198_v51 = vshrl.u32 %v2945_v14, 16  ;;  %v2732_v14 = vpop.permute.xlu2 %2731 }
 0x208   : >> { %v12208_v62 = vrot.slane %v4435_v17, 9  ;;  %v4517_v46 = vrot.slane %v4436_v1, 5  ;;  %v4437_v57 = vpack.c.b16 %v4389_v11, %v4389_v11  ;;  %v12369_v41 = vld [vmem:[#allocation3 + $0x134] sm:$0xf0]  ;;  %v13816_v8 = vld [vmem:[#allocation3 + $0x138] sm:$0xf0] }
 0x209   : >> { %v3187_v32 = vrot.slane %v3185_v56, 4  ;;  %v3190_v30 = vrot.slane %v3188_v42, 5  ;;  %v3196_v24 = vrot.slane %v3194_v26, 5  ;;  %v3200_v58 = vrot.slane %v3198_v51, 4  ;;  %v13722_v42 = vld [vmem:[%s14754_s6 + $0x6c] sm:$0xf0]  ;;  %v5657_v26 = vpop.f32.mrf.mxu2 }
 0x20a   : >> { %v4518_v60 = vsel %vm15322_vm1, %v12208_v62, %v4517_v46  ;;  %v4519_v17 = vrot.slane %v4517_v46, 4  ;;  %v4520_v1 = vrot.slane %v4437_v57, 5  ;;  %v3778_v11 = vshll.u32 %v13760_v34, 16  ;;  %v13817_v0 = vld [vmem:[#allocation3 + $0x144] sm:$0xf]  ;;  %v15975_v46 = vpop.f32.mrf.mxu3 }
 0x20b   : >> { %v3191_v23 = vor.u32 %v3190_v30, %v3187_v32  ;;  %v3201_v10 = vor.u32 %v3200_v58, %v3196_v24  ;;  %4619 = vst [vmem:[#allocation3 + $0x150] sm:$0xf] %v4518_v60  ;;  %v3783_v63 = vshll.u32 %v3594_v18, 16  ;;  %v12372_v56 = vor.u32 %v13813_v21, %v12369_v41  ;;  %v5570_v18 = vpop.f32.mrf.mxu1  ;;  %v15979_v41 = vpop.f32.mrf.mxu0  ;;  %4227 = vrot.lane.b32.xlu2 %v15973_v50, %s14370_s7 }
 0x20c   : >> { %v4521_v51 = vsel %vm15322_vm1, %v4519_v17, %v4520_v1  ;;  %v3780_v40 = vrot.slane %v3778_v11, 1  ;;  %v12376_v20 = vor.u32 %v13816_v8, %v12375_v36  ;;  %v1663_v21 = vunpack.c.l.b16 %v1532_v6  ;;  %v14313_v8 = vld [vmem:[%s14754_s6 + $0x84] sm:$0xff] }
 0x20d   : >> { %v12381_v62 = vld [vmem:[#allocation3 + $0x154] sm:$0xf0]  ;;  %v3192_v34 = vrot.slane %v3191_v23, 4  ;;  %v15977_v57 = vrot.slane %v3201_v10, 4  ;;  %4620 = vst [vmem:[#allocation3 + $0x164] sm:$0xf] %v4521_v51  ;;  %5780 = vmatmul.bf16.gmra.mxu3 %v12372_v56  ;;  %v11806_v45 = vor.u32 %v13722_v42, %v11805_v3  ;;  %v2806_v23 = vsel %vm1326_vm10, %v15432_v44, %v2732_v14  ;;  %v2734_v42 = vpop.permute.xlu0 %2733 }
 0x20e   : >> { %v3785_v60 = vrot.slane %v3783_v63, 1  ;;  %v3781_v32 = vor.u32 %v3780_v40, %v3776_v61  ;;  %5869 = vmatmul.bf16.gmra.mxu0 %v12376_v20  ;;  %v2691_v10 = vshrl.u32 %v15886_v43, 16  ;;  %v1701_v35 = vpack.c.b16 %v1663_v21, %v1663_v21  ;;  %v12387_v40 = vld [vmem:[#allocation3 + $0x148] sm:$0xf]  ;;  %v13820_v20 = vld [vmem:[#allocation3 + $0x158] sm:$0xf0] }
 0x20f   : >> { %v3197_v63 = vsel %vm15312_vm15, %v3192_v34, %v3196_v24  ;;  %v2898_v36 = vunpack.c.l.b16 %v2806_v23  ;;  %v5569_v30 = vadd.f32 %v15953_v55, %v15702_v22  ;;  %v1889_v58 = vsel %vm1326_vm10, %v11806_v45, %v1829_v7  ;;  %v11941_v14 = vld [vmem:[%s14754_s6 + $0x84] sm:$0xf] }
 0x210   : >> { %3402 = vst [vmem:[#allocation3 + $0x170] sm:$0xf] %v3197_v63  ;;  %v3786_v61 = vsel %vm1101_vm9, %v3781_v32, %v3785_v60  ;;  %v3838_v44 = vsel %vm1326_vm10, %v14313_v8, %v3806_v38  ;;  %v12384_v3 = vor.u32 %v13817_v0, %v12381_v62  ;;  %v1891_v24 = vsel %vm1326_vm10, %v1701_v35, %v1829_v7  ;;  %v4208_v38 = vpop.permute.xlu2 %4207  ;;  %v4210_v0 = vpop.permute.xlu1 %4209  ;;  %v13818_v23 = vld [vmem:[#allocation3 + $0x14c] sm:$0xf]  ;;  %v12389_v63 = vld [vmem:[#allocation3 + $0x15c] sm:$0xf0] }
 0x211   : >> { %3817 = vrot.lane.b32.xlu1 %v3786_v61, %s14370_s7  ;;  %v1981_v17 = vunpack.c.l.b16 %v1889_v58  ;;  %v1982_v1 = vunpack.c.h.b16 %v1889_v58  ;;  %v2946_v11 = vpack.c.b16 %v2898_v36, %v2898_v36  ;;  %v1983_v22 = vunpack.c.l.b16 %v1891_v24  ;;  %v16001_v8 = vpop.f32.mrf.mxu2  ;;  %v13776_v24 = vld [vmem:[%s14754_s6 + $0xcc] sm:$0xf0] }
 0x212   : >> { %v3885_v55 = vunpack.c.l.b16 %v3838_v44  ;;  %v3886_v6 = vunpack.c.h.b16 %v3838_v44  ;;  %5607 = vmatmul.bf16.gmra.mxu1 %v12384_v3  ;;  %v12388_v56 = vor.u32 %v13820_v20, %v12387_v40  ;;  %v2371_v21 = vunpack.c.l.b16 %v11941_v14  ;;  %v12395_v58 = vld [vmem:[#allocation3 + $0x150] sm:$0xf] }
 0x213   : >> { %v2029_v51 = vpack.c.b16 %v1981_v17, %v1981_v17  ;;  %v2030_v34 = vpack.c.b16 %v1982_v1, %v1982_v1  ;;  %v3204_v60 = vshll.u32 %v2946_v11, 16  ;;  %v2031_v62 = vpack.c.b16 %v1983_v22, %v1983_v22  ;;  %2755 = vrot.lane.b32.xlu2 %v2691_v10, %s14370_s7  ;;  %v16013_v17 = vpop.f32.mrf.mxu3  ;;  %v16024_v11 = vpop.f32.mrf.mxu0 }
 0x214   : >> { %v3917_v32 = vpack.c.b16 %v3885_v55, %v3885_v55  ;;  %v3918_v45 = vpack.c.b16 %v3886_v6, %v3886_v6  ;;  %5696 = vmatmul.bf16.gmra.mxu2 %v12388_v56  ;;  %v15997_v7 = vadd.f32 %v5657_v26, %v5569_v30  ;;  %v18500_v20 = vunpack.c.l.b16 %v15492_v4  ;;  %v13821_v14 = vld [vmem:[#allocation3 + $0x160] sm:$0xf0]  ;;  %v12198_v4 = vld [vmem:[%s14754_s6 + $0xcc] sm:$0xe] }
 0x215   : >> { %v11904_v35 = vrot.slane %v2029_v51, 9  ;;  %v2118_v36 = vrot.slane %v2030_v34, 5  ;;  %v3206_v40 = vrot.slane %v3204_v60, 5  ;;  %v2121_v44 = vrot.slane %v2031_v62, 5  ;;  %v13723_v51 = vld [vmem:[%s14754_s6 + $0x78] sm:$0xf0] }
 0x216   : >> { %v2409_v61 = vpack.c.b16 %v18500_v20, %v2371_v21  ;;  %3981 = vst [vmem:[#allocation3 + $0x174] sm:$0xf] %v3917_v32  ;;  %v4291_v26 = vsel %vm1326_vm10, %v15597_v39, %v4208_v38  ;;  %v16007_v30 = vadd.f32 %v5570_v18, %v15743_v59  ;;  %v4294_v3 = vsel %vm1326_vm10, %v15524_v52, %v4210_v0  ;;  %v11809_v18 = vld [vmem:[%s14754_s6 + $0x78] sm:$0xe]  ;;  %v16022_v52 = vpop.f32.mrf.mxu1  ;;  %v1535_v34 = vld [vmem:[%s14754_s6 + $0x80] sm:$0x1] }
 0x217   : >> { %v2119_v1 = vsel %vm15322_vm1, %v11904_v35, %v2118_v36  ;;  %v2120_v10 = vrot.slane %v2118_v36, 4  ;;  %v3207_v39 = vsel %vm15312_vm15, %v15977_v57, %v3206_v40  ;;  %3982 = vst [vmem:[#allocation3 + $0x188] sm:$0xf] %v3918_v45  ;;  %v4390_v6 = vunpack.c.l.b16 %v4291_v26 }
 0x218   : >> { %v2809_v59 = vsel %vm1326_vm10, %v2409_v61, %v2734_v42  ;;  %2215 = vst [vmem:[#allocation3 + $0x16c] sm:$0xf] %v2119_v1  ;;  %v4391_v56 = vunpack.c.h.b16 %v4291_v26  ;;  %v4392_v57 = vunpack.c.l.b16 %v4294_v3  ;;  %v12392_v21 = vor.u32 %v13818_v23, %v12389_v63  ;;  %v2736_v63 = vpop.permute.xlu2 %2735 }
 0x219   : >> { %v2899_v22 = vunpack.c.l.b16 %v2809_v59  ;;  %v2900_v55 = vunpack.c.h.b16 %v2809_v59  ;;  %v2122_v60 = vsel %vm15322_vm1, %v2120_v10, %v2121_v44  ;;  %3403 = vst [vmem:[#allocation3 + $0x184] sm:$0xf] %v3207_v39  ;;  %v12396_v38 = vor.u32 %v13821_v14, %v12395_v58  ;;  %v1831_v59 = vpop.permute.xlu0 %1830  ;;  %v3808_v58 = vpop.permute.xlu1 %3807 }
 0x21a   : >> { %2216 = vst [vmem:[#allocation3 + $0x180] sm:$0xf] %v2122_v60  ;;  %v4438_v62 = vpack.c.b16 %v4390_v6, %v4390_v6  ;;  %v4439_v32 = vpack.c.b16 %v4391_v56, %v4391_v56  ;;  %v4440_v45 = vpack.c.b16 %v4392_v57, %v4392_v57  ;;  %v16030_v35 = vor.u32 %v13776_v24, %v12198_v4  ;;  %v5662_v56 = vpop.f32.mrf.mxu2 }
 0x21b   : >> { %v2947_v42 = vpack.c.b16 %v2899_v22, %v2899_v22  ;;  %v2948_v0 = vpack.c.b16 %v2900_v55, %v2900_v55  ;;  %v1666_v36 = vunpack.c.l.b16 %v1535_v34  ;;  %v11810_v40 = vor.u32 %v13723_v51, %v11809_v18 }
 0x21c   : >> { %v12209_v44 = vrot.slane %v4438_v62, 9  ;;  %v4524_v10 = vrot.slane %v4439_v32, 5  ;;  %v4527_v3 = vrot.slane %v4440_v45, 5  ;;  %4231 = vrot.lane.b32.xlu2 %v16030_v35, %s14370_s7  ;;  %v2811_v62 = vsel %vm1326_vm10, %v15519_v13, %v2736_v63  ;;  %v16044_v45 = vpop.f32.mrf.mxu0  ;;  %v14314_v63 = vld [vmem:[%s14754_s6 + $0x90] sm:$0xff] }
 0x21d   : >> { %v3209_v20 = vshrl.u32 %v2947_v42, 16  ;;  %v3212_v61 = vshll.u32 %v2947_v42, 16  ;;  %v3218_v26 = vshll.u32 %v2948_v0, 16  ;;  %v3222_v1 = vshrl.u32 %v2948_v0, 16  ;;  %5785 = vmatmul.bf16.gmra.mxu3 %v12392_v21  ;;  %v5748_v21 = vpop.f32.mrf.mxu3 }
 0x21e   : >> { %v1703_v23 = vpack.c.b16 %v1666_v36, %v1666_v36  ;;  %5874 = vmatmul.bf16.gmra.mxu0 %v12396_v38  ;;  %v4525_v4 = vsel %vm15322_vm1, %v12209_v44, %v4524_v10  ;;  %v4526_v24 = vrot.slane %v4524_v10, 4  ;;  %v1894_v18 = vsel %vm1326_vm10, %v11810_v40, %v1831_v59  ;;  %v5575_v32 = vpop.f32.mrf.mxu1 }
 0x21f   : >> { %v3211_v14 = vrot.slane %v3209_v20, 4  ;;  %v3214_v39 = vrot.slane %v3212_v61, 5  ;;  %v3220_v22 = vrot.slane %v3218_v26, 5  ;;  %v3224_v55 = vrot.slane %v3222_v1, 4  ;;  %4621 = vst [vmem:[#allocation3 + $0x178] sm:$0xf] %v4525_v4 }
 0x220   : >> { %v1896_v6 = vsel %vm1326_vm10, %v1703_v23, %v1831_v59  ;;  %v1984_v60 = vunpack.c.l.b16 %v1894_v18  ;;  %v1985_v57 = vunpack.c.h.b16 %v1894_v18  ;;  %v4528_v38 = vsel %vm15322_vm1, %v4526_v24, %v4527_v3  ;;  %v14167_v24 = vld [vmem:[%s14754_s6 + $0x90] sm:$0xff]  }
 0x221   : >> { %v3215_v51 = vor.u32 %v3214_v39, %v3211_v14  ;;  %v3225_v34 = vor.u32 %v3224_v55, %v3220_v22  ;;  %v1986_v42 = vunpack.c.l.b16 %v1896_v6  ;;  %v5660_v0 = vadd.f32 %v16001_v8, %v16007_v30  ;;  %4622 = vst [vmem:[#allocation3 + $0x18c] sm:$0xf] %v4528_v38  ;;  %v16051_v8 = vld [vmem:[%s15633_s14] ss:$0 sm:$0xff]  ;;  %v13822_v30 = vld [vmem:[#allocation3 + $0x16c] sm:$0xf] }
 0x222   : >> { %v2032_v20 = vpack.c.b16 %v1984_v60, %v1984_v60  ;;  %v2033_v61 = vpack.c.b16 %v1985_v57, %v1985_v57  ;;  %v2901_v1 = vunpack.c.l.b16 %v2811_v62  ;;  %v5747_v59 = vadd.f32 %v16013_v17, %v15997_v7  ;;  %v12401_v44 = vld [vmem:[#allocation3 + $0x17c] sm:$0xf0]  ;;  %v12407_v39 = vld [vmem:[#allocation3 + $0x170] sm:$0xf]  ;;  %v13825_v7 = vld [vmem:[#allocation3 + $0x180] sm:$0xf0] }
 0x223   : >> { %v3216_v36 = vrot.slane %v3215_v51, 4  ;;  %v16046_v40 = vrot.slane %v3225_v34, 4  ;;  %v2034_v26 = vpack.c.b16 %v1986_v42, %v1986_v42  ;;  %v5574_v13 = vadd.f32 %v16022_v52, %v15772_v16  ;;  %v16061_v16 = vld [vmem:[%s15645_s18] ss:$0 sm:$0xff]  ;;  %v2738_v34 = vpop.permute.xlu0 %2737  ;;  %v4212_v42 = vpop.permute.xlu2 %4211 }
 0x224   : >> { %v11905_v3 = vrot.slane %v2032_v20, 9  ;;  %v2125_v23 = vrot.slane %v2033_v61, 5  ;;  %v3840_v14 = vsel %vm1326_vm10, %v14314_v63, %v3808_v58  ;;  %v2949_v55 = vpack.c.b16 %v2901_v1, %v2901_v1 }
 0x225   : >> { %v3221_v10 = vsel %vm15312_vm15, %v3216_v36, %v3220_v22  ;;  %v2128_v17 = vrot.slane %v2034_v26, 5  ;;  %v5836_v4 = vadd.f32 %v15979_v41, %v5747_v59  ;;  %v3887_v52 = vunpack.c.l.b16 %v3840_v14  ;;  %v4214_v41 = vpop.permute.xlu1 %4213 }
 0x226   : >> { %3404 = vst [vmem:[#allocation3 + $0x198] sm:$0xf] %v3221_v10  ;;  %v2126_v22 = vsel %vm15322_vm1, %v11905_v3, %v2125_v23  ;;  %v2127_v18 = vrot.slane %v2125_v23, 4  ;;  %v3888_v6 = vunpack.c.h.b16 %v3840_v14  ;;  %v12404_v51 = vor.u32 %v13822_v30, %v12401_v44  ;;  %v16076_v44 = vpop.f32.mrf.mxu2 }
 0x227   : >> { %2217 = vst [vmem:[#allocation3 + $0x194] sm:$0xf] %v2126_v22  ;;  %v3228_v58 = vshll.u32 %v2949_v55, 16  ;;  %v5920_v60 = vmul.f32 %v16051_v8, %v5836_v4  ;;  %v3919_v57 = vpack.c.b16 %v3887_v52, %v3887_v52  ;;  %v12408_v38 = vor.u32 %v13825_v7, %v12407_v39 }
 0x228   : >> { %v2129_v62 = vsel %vm15322_vm1, %v2127_v18, %v2128_v17  ;;  %v3920_v36 = vpack.c.b16 %v3888_v6, %v3888_v6  ;;  %5612 = vmatmul.bf16.gmra.mxu1 %v12404_v51  ;;  %v2814_v20 = vsel %vm1326_vm10, %v14167_v24, %v2738_v34  ;;  %v16071_v61 = vadd.f32 %v5662_v56, %v5574_v13  ;;  %v16085_v13 = vpop.f32.mrf.mxu3  ;;  %v16090_v17 = vpop.f32.mrf.mxu1  ;;  %v13823_v6 = vld [vmem:[#allocation3 + $0x174] sm:$0xf] }
 0x229   : >> { %2218 = vst [vmem:[#allocation3 + $0x1a8] sm:$0xf] %v2129_v62  ;;  %v3230_v26 = vrot.slane %v3228_v58, 5  ;;  %v5957_v1 = vadd.f32 %v16061_v16, %v5920_v60  ;;  %5701 = vmatmul.bf16.gmra.mxu2 %v12408_v38  ;;  %v2902_v59 = vunpack.c.l.b16 %v2814_v20  ;;  %v2903_v30 = vunpack.c.h.b16 %v2814_v20  ;;  %v1538_v20 = vld [vmem:[%s14754_s6 + $0x8c] sm:$0x1] }
 0x22a   : >> { %3983 = vst [vmem:[#allocation3 + $0x19c] sm:$0xf] %v3919_v57  ;;  %v4297_v10 = vsel %vm1326_vm10, %v15684_v54, %v4212_v42  ;;  %v5749_v3 = vadd.f32 %v5748_v21, %v5660_v0  ;;  %v16081_v23 = vadd.f32 %v5575_v32, %v15814_v31  ;;  %v4300_v56 = vsel %vm1326_vm10, %v15583_v9, %v4214_v41  ;;  %v16092_v54 = vpop.f32.mrf.mxu0  ;;  %v12409_v57 = vld [vmem:[#allocation3 + $0x184] sm:$0xf0] }
 0x22b   : >> { %v3231_v63 = vsel %vm15312_vm15, %v16046_v40, %v3230_v26  ;;  %v5989_v14 = vmax.f32 %v5957_v1, 0.0  ;;  %3984 = vst [vmem:[#allocation3 + $0x1b0] sm:$0xf] %v3920_v36  ;;  %v2950_v39 = vpack.c.b16 %v2902_v59, %v2902_v59  ;;  %v2951_v7 = vpack.c.b16 %v2903_v30, %v2903_v30  ;;  %v11813_v36 = vld [vmem:[%s14754_s6 + $0x84] sm:$0xe] }
 0x22c   : >> { %3405 = vst [vmem:[#allocation3 + $0x1ac] sm:$0xf] %v3231_v63  ;;  %v4393_v31 = vunpack.c.l.b16 %v4297_v10  ;;  %v4394_v21 = vunpack.c.h.b16 %v4297_v10  ;;  %v5838_v0 = vadd.f32 %v16024_v11, %v5749_v3  ;;  %v4395_v9 = vunpack.c.l.b16 %v4300_v56  ;;  %v12698_v11 = vld [vmem:[%s16097_s22 + $0xc] sm:$0xf]  ;;  %v12415_v10 = vld [vmem:[#allocation3 + $0x178] sm:$0xf] }
 0x22d   : >> { %v6021_v32 = vpack.c.bf16 %v5989_v14, %v5989_v14  ;;  %v3233_v55 = vshrl.u32 %v2950_v39, 16  ;;  %v3236_v4 = vshll.u32 %v2950_v39, 16  ;;  %v3242_v52 = vshll.u32 %v2951_v7, 16  ;;  %v13826_v3 = vld [vmem:[#allocation3 + $0x188] sm:$0xf0] }
 0x22e   : >> { %v3246_v40 = vshrl.u32 %v2951_v7, 16  ;;  %v4441_v24 = vpack.c.b16 %v4393_v31, %v4393_v31  ;;  %v4442_v22 = vpack.c.b16 %v4394_v21, %v4394_v21  ;;  %v5921_v18 = vmul.f32 %v16051_v8, %v5838_v0  ;;  %v13724_v7 = vld [vmem:[%s14754_s6 + $0x84] sm:$0xf0]  ;;  %v16109_v31 = vld [vmem:[%s14754_s6 + $0x9c] sm:$0xf] }
 0x22f   : >> { %v6055_v51 = vshrl.u32 %v6021_v32, 16  ;;  %v6058_v34 = vshll.u32 %v6021_v32, 16  ;;  %v3235_v58 = vrot.slane %v3233_v55, 4  ;;  %v3238_v60 = vrot.slane %v3236_v4, 5  ;;  %v16113_v4 = vpop.f32.mrf.mxu2 }
 0x230   : >> { %v3244_v38 = vrot.slane %v3242_v52, 5  ;;  %v3248_v42 = vrot.slane %v3246_v40, 4  ;;  %v12210_v41 = vrot.slane %v4441_v24, 9  ;;  %v4531_v62 = vrot.slane %v4442_v22, 5 }
 0x231   : >> { %v16102_v26 = vrot.slane %v6055_v51, 7  ;;  %v3239_v1 = vor.u32 %v3238_v60, %v3235_v58  ;;  %v5958_v59 = vadd.f32 %v16061_v16, %v5921_v18  ;;  %v4443_v30 = vpack.c.b16 %v4395_v9, %v4395_v9  ;;  %v1833_v9 = vpop.permute.xlu0 %1832  ;;  %v2740_v18 = vpop.permute.xlu2 %2739 }
 0x232   : >> { %v3249_v56 = vor.u32 %v3248_v42, %v3244_v38  ;;  %v4532_v63 = vsel %vm15322_vm1, %v12210_v41, %v4531_v62  ;;  %v4533_v14 = vrot.slane %v4531_v62, 4  ;;  %v12412_v39 = vor.u32 %v13823_v6, %v12409_v57  ;;  %v16117_v6 = vpop.f32.mrf.mxu3  ;;  %v16123_v42 = vpop.f32.mrf.mxu1 }
 0x233   : >> { %v6060_v21 = vor.u32 %v6058_v34, %v16102_v26  ;;  %v6061_v0 = vrot.slane %v16102_v26, 4  ;;  %v3240_v32 = vrot.slane %v3239_v1, 4  ;;  %4623 = vst [vmem:[#allocation3 + $0x1a0] sm:$0xf] %v4532_v63  ;;  %v5990_v55 = vmax.f32 %v5958_v59, 0.0  ;;  %v16125_v41 = vpop.f32.mrf.mxu0 }
 0x234   : >> { %v16115_v52 = vrot.slane %v3249_v56, 4  ;;  %v4534_v40 = vrot.slane %v4443_v30, 5  ;;  %5790 = vmatmul.bf16.gmra.mxu3 %v12412_v39  ;;  %v12416_v24 = vor.u32 %v13826_v3, %v12415_v10  ;;  %v1669_v22 = vunpack.c.l.b16 %v1538_v20  ;;  %v3810_v30 = vpop.permute.xlu1 %3809 }
 0x235   : >> { %v6379_v34 = vsel %vm14590_vm7, %v6060_v21, %v12698_v11  ;;  %v3245_v58 = vsel %vm15312_vm15, %v3240_v32, %v3244_v38  ;;  %v6022_v60 = vpack.c.bf16 %v5990_v55, %v5990_v55  ;;  %v11814_v57 = vor.u32 %v13724_v7, %v11813_v36  ;;  %v12701_v7 = vld [vmem:[%s16097_s22 + $0x14] sm:$0x1] }
 0x236   : >> { %12699 = vst [vmem:[%s16097_s22 + $0xc] sm:$0xf] %v6379_v34  ;;  %v4535_v62 = vsel %vm15322_vm1, %v4533_v14, %v4534_v40  ;;  %5879 = vmatmul.bf16.gmra.mxu0 %v12416_v24  ;;  %v1705_v20 = vpack.c.b16 %v1669_v22, %v1669_v22  ;;  %v16132_v26 = vadd.f32 %v16076_v44, %v16081_v23  ;;  %v2377_v11 = vunpack.c.l.b16 %v16109_v31  ;;  %v12427_v40 = vld [vmem:[#allocation3 + $0x198] sm:$0xf]  ;;  %v13827_v34 = vld [vmem:[#allocation3 + $0x194] sm:$0xf] }
 0x237   : >> { %3406 = vst [vmem:[#allocation3 + $0x1c0] sm:$0xf] %v3245_v58  ;;  %v6063_v38 = vshrl.u32 %v6022_v60, 16  ;;  %v6066_v36 = vshll.u32 %v6022_v60, 16  ;;  %v1899_v1 = vsel %vm1326_vm10, %v11814_v57, %v1833_v9  ;;  %v2816_v59 = vsel %vm1326_vm10, %v15578_v15, %v2740_v18  ;;  %v12421_v58 = vld [vmem:[#allocation3 + $0x1a4] sm:$0xf0] }
 0x238   : >> { %4624 = vst [vmem:[#allocation3 + $0x1b4] sm:$0xf] %v4535_v62  ;;  %v1901_v10 = vsel %vm1326_vm10, %v1705_v20, %v1833_v9  ;;  %v1987_v3 = vunpack.c.l.b16 %v1899_v1  ;;  %v1988_v56 = vunpack.c.h.b16 %v1899_v1  ;;  %v2904_v44 = vunpack.c.l.b16 %v2816_v59  ;;  %v13830_v60 = vld [vmem:[#allocation3 + $0x1a8] sm:$0xf0]  ;;  %v16152_v59 = vpop.f32.mrf.mxu2 }
 0x239   : >> { %v6065_v23 = vrot.slane %v6063_v38, 7  ;;  %v1989_v63 = vunpack.c.l.b16 %v1901_v10  ;;  %v5752_v14 = vadd.f32 %v16085_v13, %v16071_v61  ;;  %v5579_v39 = vadd.f32 %v16090_v17, %v15850_v19 }
 0x23a   : >> { %v2035_v31 = vpack.c.b16 %v1987_v3, %v1987_v3  ;;  %v2036_v21 = vpack.c.b16 %v1988_v56, %v1988_v56  ;;  %v2952_v32 = vpack.c.b16 %v2904_v44, %v2904_v44  ;;  %v4216_v56 = vpop.permute.xlu2 %4215 }
 0x23b   : >> { %v6068_v9 = vor.u32 %v6066_v36, %v6065_v23  ;;  %v6070_v24 = vrot.slane %v6065_v23, 4  ;;  %v2037_v22 = vpack.c.b16 %v1989_v63, %v1989_v63  ;;  %v5841_v18 = vadd.f32 %v16044_v45, %v5752_v14 }
 0x23c   : >> { %v11906_v61 = vrot.slane %v2035_v31, 9  ;;  %v2132_v13 = vrot.slane %v2036_v21, 5  ;;  %v3252_v19 = vshll.u32 %v2952_v32, 16  ;;  %v12424_v14 = vor.u32 %v13827_v34, %v12421_v58  ;;  %v16165_v31 = vpop.f32.mrf.mxu1  ;;  %v16167_v21 = vpop.f32.mrf.mxu0 }
 0x23d   : >> { %v14315_v15 = vld [vmem:[%s14754_s6 + $0x9c] sm:$0xff]  ;;  %v6069_v62 = vsel %vm14598_vm8, %v6061_v0, %v6068_v9  ;;  %v6383_v38 = vsel %vm14422_vm3, %v6070_v24, %v12701_v7  ;;  %v2135_v36 = vrot.slane %v2037_v22, 5  ;;  %v5922_v1 = vmul.f32 %v16051_v8, %v5841_v18  ;;  %v16161_v0 = vpop.f32.mrf.mxu3  ;;  %v4218_v58 = vpop.permute.xlu1 %4217 }
 0x23e   : >> { %v3842_v55 = vsel %vm1326_vm10, %v14315_v15, %v3810_v30  ;;  %12700 = vst.msk [vmem:[%s16097_s22 + $0x10] sm:$0xf] %vm199_vm0, %v6069_v62  ;;  %v2133_v45 = vsel %vm15322_vm1, %v11906_v61, %v2132_v13  ;;  %v2134_v30 = vrot.slane %v2132_v13, 4  ;;  %v3254_v10 = vrot.slane %v3252_v19, 5  ;;  %5617 = vmatmul.bf16.gmra.mxu1 %v12424_v14 }
 0x23f   : >> { %v3889_v17 = vunpack.c.l.b16 %v3842_v55  ;;  %v3890_v3 = vunpack.c.h.b16 %v3842_v55  ;;  %v5959_v23 = vadd.f32 %v16061_v16, %v5922_v1  ;;  %v12428_v7 = vor.u32 %v13830_v60, %v12427_v40  ;;  %2219 = vst [vmem:[#allocation3 + $0x1bc] sm:$0xf] %v2133_v45  ;;  %v2742_v40 = vpop.permute.xlu0 %2741  ;;  %v12703_v45 = vld [vmem:[%s16097_s22 + $0x18] sm:$0xf] }
 0x240   : >> { %v2136_v32 = vsel %vm15322_vm1, %v2134_v30, %v2135_v36  ;;  %v3255_v15 = vsel %vm15312_vm15, %v16115_v52, %v3254_v10  ;;  %v18504_v9 = vunpack.c.l.b16 %v15618_v5  ;;  %v16177_v18 = vadd.f32 %v16113_v4, %v5579_v39 }
 0x241   : >> { %v3921_v63 = vpack.c.b16 %v3889_v17, %v3889_v17  ;;  %v3922_v55 = vpack.c.b16 %v3890_v3, %v3890_v3  ;;  %2220 = vst [vmem:[#allocation3 + $0x1d0] sm:$0xf] %v2136_v32  ;;  %v5991_v22 = vmax.f32 %v5959_v23, 0.0  ;;  %5706 = vmatmul.bf16.gmra.mxu2 %v12428_v7  ;;  %v4303_v34 = vsel %vm1326_vm10, %v15749_v25, %v4216_v56  ;;  %v12429_v56 = vld [vmem:[#allocation3 + $0x1ac] sm:$0xf0]  ;;  %v16196_v32 = vpop.f32.mrf.mxu2 }
 0x242   : >> { %v2413_v24 = vpack.c.b16 %v18504_v9, %v2377_v11  ;;  %3407 = vst [vmem:[#allocation3 + $0x1d4] sm:$0xf] %v3255_v15  ;;  %v4396_v13 = vunpack.c.l.b16 %v4303_v34  ;;  %v4397_v5 = vunpack.c.h.b16 %v4303_v34  ;;  %v5754_v11 = vadd.f32 %v16117_v6, %v16132_v26 }
 0x243   : >> { %v6023_v19 = vpack.c.bf16 %v5991_v22, %v5991_v22  ;;  %3985 = vst [vmem:[#allocation3 + $0x1c4] sm:$0xf] %v3921_v63  ;;  %v5581_v39 = vadd.f32 %v16123_v42, %v15882_v2  ;;  %v13828_v42 = vld [vmem:[#allocation3 + $0x19c] sm:$0xf]  ;;  %v12435_v22 = vld [vmem:[#allocation3 + $0x1a0] sm:$0xf] }
 0x244   : >> { %v2819_v52 = vsel %vm1326_vm10, %v2413_v24, %v2742_v40  ;;  %3986 = vst [vmem:[#allocation3 + $0x1d8] sm:$0xf] %v3922_v55  ;;  %v4444_v25 = vpack.c.b16 %v4396_v13, %v4396_v13  ;;  %v4445_v60 = vpack.c.b16 %v4397_v5, %v4397_v5  ;;  %v5843_v62 = vadd.f32 %v16092_v54, %v5754_v11  ;;  %v13831_v40 = vld [vmem:[#allocation3 + $0x1b0] sm:$0xf0]  ;;  %v16205_v11 = vpop.f32.mrf.mxu1 }
 0x245   : >> { %v16159_v44 = vld [vmem:[%s14754_s6 + $0x98] sm:$0x1]  ;;  %v2905_v17 = vunpack.c.l.b16 %v2819_v52  ;;  %v2906_v4 = vunpack.c.h.b16 %v2819_v52  ;;  %v6072_v36 = vshrl.u32 %v6023_v19, 16  ;;  %v6075_v1 = vshll.u32 %v6023_v19, 16  ;;  %v16201_v34 = vpop.f32.mrf.mxu3  ;;  %v16207_v19 = vpop.f32.mrf.mxu0 }
 0x246   : >> { %12702 = vst [vmem:[%s16097_s22 + $0x14] sm:$0x1] %v6383_v38  ;;  %v1672_v61 = vunpack.c.l.b16 %v16159_v44  ;;  %v4306_v38 = vsel %vm1326_vm10, %v15660_v29, %v4218_v58  ;;  %v12211_v30 = vrot.slane %v4444_v25, 9  ;;  %v4538_v10 = vrot.slane %v4445_v60, 5 }
 0x247   : >> { %v2953_v6 = vpack.c.b16 %v2905_v17, %v2905_v17  ;;  %v2954_v26 = vpack.c.b16 %v2906_v4, %v2906_v4  ;;  %v5923_v3 = vmul.f32 %v16051_v8, %v5843_v62  ;;  %v4398_v2 = vunpack.c.l.b16 %v4306_v38  ;;  %v2744_v62 = vpop.permute.xlu2 %2743 }
 0x248   : >> { %v16192_v23 = vrot.slane %v6072_v36, 7  ;;  %v4539_v55 = vsel %vm15322_vm1, %v12211_v30, %v4538_v10  ;;  %v4540_v9 = vrot.slane %v4538_v10, 4 }
 0x249   : >> { %v3257_v54 = vshrl.u32 %v2953_v6, 16  ;;  %v3260_v63 = vshll.u32 %v2953_v6, 16  ;;  %v3266_v14 = vshll.u32 %v2954_v26, 16  ;;  %v3270_v15 = vshrl.u32 %v2954_v26, 16  ;;  %4625 = vst [vmem:[#allocation3 + $0x1c8] sm:$0xf] %v4539_v55 }
 0x24a   : >> { %v5960_v24 = vadd.f32 %v16061_v16, %v5923_v3  ;;  %v6077_v58 = vor.u32 %v6075_v1, %v16192_v23  ;;  %v6078_v52 = vrot.slane %v16192_v23, 4  ;;  %v4446_v60 = vpack.c.b16 %v4398_v2, %v4398_v2 }
 0x24b   : >> { %v3259_v13 = vrot.slane %v3257_v54, 4  ;;  %v3262_v5 = vrot.slane %v3260_v63, 5  ;;  %v3268_v17 = vrot.slane %v3266_v14, 5  ;;  %v3272_v4 = vrot.slane %v3270_v15, 4  ;;  %v1835_v54 = vpop.permute.xlu0 %1834 }
 0x24c   : >> { %v5992_v25 = vmax.f32 %v5960_v24, 0.0  ;;  %v6386_v38 = vsel %vm14590_vm7, %v6077_v58, %v12703_v45  ;;  %v12432_v1 = vor.u32 %v13828_v42, %v12429_v56  ;;  %v12436_v6 = vor.u32 %v13831_v40, %v12435_v22  ;;  %v12706_v40 = vld [vmem:[%s16097_s22 + $0x20] sm:$0x1] }
 0x24d   : >> { %v11817_v29 = vld [vmem:[%s14754_s6 + $0x90] sm:$0xe]  ;;  %v13725_v7 = vld [vmem:[%s14754_s6 + $0x90] sm:$0xf0]  ;;  %v3263_v36 = vor.u32 %v3262_v5, %v3259_v13  ;;  %v3273_v26 = vor.u32 %v3272_v4, %v3268_v17  ;;  %v4541_v10 = vrot.slane %v4446_v60, 5  ;;  %v1707_v2 = vpack.c.b16 %v1672_v61, %v1672_v61  ;;  %v16233_v4 = vpop.f32.mrf.mxu2 }
 0x24e   : >> { %12704 = vst [vmem:[%s16097_s22 + $0x18] sm:$0xf] %v6386_v38  ;;  %v6024_v30 = vpack.c.bf16 %v5992_v25, %v5992_v25  ;;  %v11818_v3 = vor.u32 %v13725_v7, %v11817_v29  ;;  %5795 = vmatmul.bf16.gmra.mxu3 %v12432_v1  ;;  %5884 = vmatmul.bf16.gmra.mxu0 %v12436_v6  ;;  %v3812_v7 = vpop.permute.xlu1 %3811 }
 0x24f   : >> { %v3264_v63 = vrot.slane %v3263_v36, 4  ;;  %v16216_v14 = vadd.f32 %v16152_v59, %v5581_v39  ;;  %v2821_v45 = vsel %vm1326_vm10, %v15655_v37, %v2744_v62  ;;  %v3274_v42 = vrot.slane %v3273_v26, 4  ;;  %v16235_v36 = vpop.f32.mrf.mxu3 }
 0x250   : >> { %v6080_v56 = vshrl.u32 %v6024_v30, 16  ;;  %v6083_v15 = vshll.u32 %v6024_v30, 16  ;;  %v4542_v29 = vsel %vm15322_vm1, %v4540_v9, %v4541_v10  ;;  %v1904_v61 = vsel %vm1326_vm10, %v11818_v3, %v1835_v54  ;;  %v16240_v30 = vpop.f32.mrf.mxu0 }
 0x251   : >> { %v3269_v44 = vsel %vm15312_vm15, %v3264_v63, %v3268_v17  ;;  %4626 = vst [vmem:[#allocation3 + $0x1dc] sm:$0xf] %v4542_v29  ;;  %v1906_v59 = vsel %vm1326_vm10, %v1707_v2, %v1835_v54  ;;  %v2907_v39 = vunpack.c.l.b16 %v2821_v45  ;;  %v1990_v55 = vunpack.c.l.b16 %v1904_v61  ;;  %v13835_v2 = vld [vmem:[#allocation3 + $0x1d0] sm:$0xf0] }
 0x252   : >> { %3408 = vst [vmem:[#allocation3 + $0x1e8] sm:$0xf] %v3269_v44  ;;  %v6082_v37 = vrot.slane %v6080_v56, 7  ;;  %v1991_v24 = vunpack.c.h.b16 %v1904_v61  ;;  %v1992_v22 = vunpack.c.l.b16 %v1906_v59  ;;  %v5757_v9 = vadd.f32 %v16161_v0, %v16177_v18  ;;  %v13832_v18 = vld [vmem:[#allocation3 + $0x1bc] sm:$0xf]  ;;  %v4220_v59 = vpop.permute.xlu2 %4219 }
 0x253   : >> { %v2955_v58 = vpack.c.b16 %v2907_v39, %v2907_v39  ;;  %v5584_v13 = vadd.f32 %v16165_v31, %v15924_v33  ;;  %v2038_v62 = vpack.c.b16 %v1990_v55, %v1990_v55  ;;  %v12441_v33 = vld [vmem:[#allocation3 + $0x1cc] sm:$0xf0]  ;;  %v16238_v31 = vpop.f32.mrf.mxu1 }
 0x254   : >> { %v6085_v25 = vor.u32 %v6083_v15, %v6082_v37  ;;  %v6087_v60 = vrot.slane %v6082_v37, 4  ;;  %v2039_v38 = vpack.c.b16 %v1991_v24, %v1991_v24  ;;  %v2040_v1 = vpack.c.b16 %v1992_v22, %v1992_v22  ;;  %v2746_v22 = vpop.permute.xlu0 %2745 }
 0x255   : >> { %v14316_v5 = vld [vmem:[%s14754_s6 + $0xa8] sm:$0xff]  ;;  %v3276_v6 = vshll.u32 %v2955_v58, 16  ;;  %v5846_v26 = vadd.f32 %v16125_v41, %v5757_v9  ;;  %v11907_v54 = vrot.slane %v2038_v62, 9  ;;  %v12447_v41 = vld [vmem:[#allocation3 + $0x1c0] sm:$0xf]  ;;  %v12444_v61 = vor.u32 %v13832_v18, %v12441_v33  ;;  %v16274_v33 = vpop.f32.mrf.mxu2 }
 0x256   : >> { %v3844_v17 = vsel %vm1326_vm10, %v14316_v5, %v3812_v7  ;;  %v6086_v10 = vsel %vm14598_vm8, %v6078_v52, %v6085_v25  ;;  %v6390_v3 = vsel %vm14422_vm3, %v6087_v60, %v12706_v40  ;;  %v2139_v63 = vrot.slane %v2039_v38, 5 }
 0x257   : >> { %v3891_v0 = vunpack.c.l.b16 %v3844_v17  ;;  %12705 = vst.msk [vmem:[%s16097_s22 + $0x1c] sm:$0xf] %vm199_vm0, %v6086_v10  ;;  %v2142_v45 = vrot.slane %v2040_v1, 5  ;;  %v3278_v56 = vrot.slane %v3276_v6, 5  ;;  %v5924_v15 = vmul.f32 %v16051_v8, %v5846_v26  ;;  %5622 = vmatmul.bf16.gmra.mxu1 %v12444_v61 }
 0x258   : >> { %v3892_v29 = vunpack.c.h.b16 %v3844_v17  ;;  %v2140_v23 = vsel %vm15322_vm1, %v11907_v54, %v2139_v63  ;;  %v2141_v52 = vrot.slane %v2139_v63, 4  ;;  %v12448_v24 = vor.u32 %v13835_v2, %v12447_v41  ;;  %v4222_v17 = vpop.permute.xlu1 %4221  ;;  %v16277_v63 = vpop.f32.mrf.mxu3 }
 0x259   : >> { %v3923_v44 = vpack.c.b16 %v3891_v0, %v3891_v0  ;;  %2221 = vst [vmem:[#allocation3 + $0x1e4] sm:$0xf] %v2140_v23  ;;  %v3279_v39 = vsel %vm15312_vm15, %v3274_v42, %v3278_v56  ;;  %v5961_v37 = vadd.f32 %v16061_v16, %v5924_v15  ;;  %v16265_v5 = vadd.f32 %v16196_v32, %v5584_v13  ;;  %v12449_v56 = vld [vmem:[#allocation3 + $0x1d4] sm:$0xf0] }
 0x25a   : >> { %v3924_v55 = vpack.c.b16 %v3892_v29, %v3892_v29  ;;  %v2143_v58 = vsel %vm15322_vm1, %v2141_v52, %v2142_v45  ;;  %3409 = vst [vmem:[#allocation3 + $0x1fc] sm:$0xf] %v3279_v39  ;;  %5711 = vmatmul.bf16.gmra.mxu2 %v12448_v24  ;;  %v4309_v62 = vsel %vm1326_vm10, %v15838_v12, %v4220_v59  ;;  %v13833_v45 = vld [vmem:[#allocation3 + $0x1c4] sm:$0xf]  ;;  %v16281_v29 = vpop.f32.mrf.mxu0 }
 0x25b   : >> { %2222 = vst [vmem:[#allocation3 + $0x1f8] sm:$0xf] %v2143_v58  ;;  %v5993_v42 = vmax.f32 %v5961_v37, 0.0  ;;  %v4399_v38 = vunpack.c.l.b16 %v4309_v62  ;;  %v4400_v1 = vunpack.c.h.b16 %v4309_v62  ;;  %v5759_v6 = vadd.f32 %v16201_v34, %v16216_v14  ;;  %v16279_v15 = vpop.f32.mrf.mxu1 }
 0x25c   : >> { %3987 = vst [vmem:[#allocation3 + $0x1ec] sm:$0xf] %v3923_v44  ;;  %v4312_v18 = vsel %vm1326_vm10, %v15727_v28, %v4222_v17  ;;  %v12708_v28 = vld [vmem:[%s16097_s22 + $0x24] sm:$0xf]  ;;  %v12455_v44 = vld [vmem:[#allocation3 + $0x1c8] sm:$0xf]  ;;  %v5586_v58 = vadd.f32 %v16205_v11, %v15951_v47 }
 0x25d   : >> { %v6025_v0 = vpack.c.bf16 %v5993_v42, %v5993_v42  ;;  %3988 = vst [vmem:[#allocation3 + $0x200] sm:$0xf] %v3924_v55  ;;  %v4447_v10 = vpack.c.b16 %v4399_v38, %v4399_v38  ;;  %v4448_v12 = vpack.c.b16 %v4400_v1, %v4400_v1  ;;  %v4401_v54 = vunpack.c.l.b16 %v4312_v18  ;;  %v13836_v55 = vld [vmem:[#allocation3 + $0x1d8] sm:$0xf0] }
 0x25e   : >> { %v14168_v7 = vld [vmem:[%s14754_s6 + $0xa8] sm:$0xff]  }
 0x25f   : >> { %12707 = vst [vmem:[%s16097_s22 + $0x20] sm:$0x1] %v6390_v3  ;;  %v2824_v9 = vsel %vm1326_vm10, %v14168_v7, %v2746_v22  ;;  %v5848_v3 = vadd.f32 %v16167_v21, %v5759_v6  ;;  %v6089_v34 = vshrl.u32 %v6025_v0, 16  ;;  %v6092_v14 = vshll.u32 %v6025_v0, 16 }
 0x260   : >> { %v2908_v25 = vunpack.c.l.b16 %v2824_v9  ;;  %v2909_v60 = vunpack.c.h.b16 %v2824_v9  ;;  %v12212_v52 = vrot.slane %v4447_v10, 9  ;;  %v4545_v21 = vrot.slane %v4448_v12, 5 }
 0x261   : >> { %v16284_v61 = vrot.slane %v6089_v34, 7  ;;  %v5925_v37 = vmul.f32 %v16051_v8, %v5848_v3  ;;  %v4449_v1 = vpack.c.b16 %v4401_v54, %v4401_v54  ;;  %v12452_v6 = vor.u32 %v13833_v45, %v12449_v56  ;;  %v3814_v54 = vpop.permute.xlu1 %3813 }
 0x262   : >> { %v2956_v32 = vpack.c.b16 %v2908_v25, %v2908_v25  ;;  %v2957_v13 = vpack.c.b16 %v2909_v60, %v2909_v60  ;;  %v4547_v60 = vrot.slane %v4545_v21, 4  ;;  %v12456_v0 = vor.u32 %v13836_v55, %v12455_v44 }
 0x263   : >> { %v6094_v42 = vor.u32 %v6092_v14, %v16284_v61  ;;  %v5962_v62 = vadd.f32 %v16061_v16, %v5925_v37  ;;  %v6095_v12 = vrot.slane %v16284_v61, 4  ;;  %v4548_v34 = vrot.slane %v4449_v1, 5  ;;  %5800 = vmatmul.bf16.gmra.mxu3 %v12452_v6  ;;  %v16316_v37 = vpop.f32.mrf.mxu0  ;;  %v13837_v6 = vld [vmem:[#allocation3 + $0x1e4] sm:$0xf] }
 0x264   : >> { %v3281_v41 = vshrl.u32 %v2956_v32, 16  ;;  %v3284_v2 = vshll.u32 %v2956_v32, 16  ;;  %v3290_v7 = vshll.u32 %v2957_v13, 16  ;;  %v3294_v23 = vshrl.u32 %v2957_v13, 16  ;;  %v1837_v32 = vpop.permute.xlu0 %1836  ;;  %v2748_v13 = vpop.permute.xlu2 %2747  ;;  %5889 = vmatmul.bf16.gmra.mxu0 %v12456_v0 }
 0x265   : >> { %v6393_v18 = vsel %vm14590_vm7, %v6094_v42, %v12708_v28  ;;  %v5994_v11 = vmax.f32 %v5962_v62, 0.0  ;;  %v2826_v56 = vsel %vm1326_vm10, %v15722_v49, %v2748_v13  ;;  %v16306_v28 = vpop.f32.mrf.mxu2 }
 0x266   : >> { %v16259_v40 = vld [vmem:[%s14754_s6 + $0xa4] sm:$0x1]  ;;  %v3283_v59 = vrot.slane %v3281_v41, 4  ;;  %v3286_v39 = vrot.slane %v3284_v2, 5  ;;  %v3292_v24 = vrot.slane %v3290_v7, 5  ;;  %v3296_v22 = vrot.slane %v3294_v23, 4 }
 0x267   : >> { %v1675_v26 = vunpack.c.l.b16 %v16259_v40  ;;  %v4546_v40 = vsel %vm15322_vm1, %v12212_v52, %v4545_v21  ;;  %v11821_v9 = vld [vmem:[%s14754_s6 + $0x9c] sm:$0xe]  ;;  %v13726_v17 = vld [vmem:[%s14754_s6 + $0x9c] sm:$0xf0]  ;;  %v6026_v2 = vpack.c.bf16 %v5994_v11, %v5994_v11  ;;  %v4549_v7 = vsel %vm15322_vm1, %v4547_v60, %v4548_v34  ;;  %v16311_v21 = vpop.f32.mrf.mxu3 }
 0x268   : >> { %v3287_v25 = vor.u32 %v3286_v39, %v3283_v59  ;;  %4627 = vst [vmem:[#allocation3 + $0x1f0] sm:$0xf] %v4546_v40  ;;  %v3297_v38 = vor.u32 %v3296_v22, %v3292_v24  ;;  %v11822_v10 = vor.u32 %v13726_v17, %v11821_v9  ;;  %v5675_v59 = vadd.f32 %v16233_v4, %v5586_v58  ;;  %v16314_v39 = vpop.f32.mrf.mxu1  ;;  %v12711_v17 = vld [vmem:[%s16097_s22 + $0x2c] sm:$0x1] }
 0x269   : >> { %12709 = vst [vmem:[%s16097_s22 + $0x24] sm:$0xf] %v6393_v18  ;;  %v1709_v14 = vpack.c.b16 %v1675_v26, %v1675_v26  ;;  %v6097_v44 = vshrl.u32 %v6026_v2, 16  ;;  %v2910_v49 = vunpack.c.l.b16 %v2826_v56  ;;  %v6100_v55 = vshll.u32 %v6026_v2, 16 }
 0x26a   : >> { %v3288_v47 = vrot.slane %v3287_v25, 4  ;;  %v16299_v3 = vrot.slane %v3297_v38, 4  ;;  %v1909_v45 = vsel %vm1326_vm10, %v11822_v10, %v1837_v32  ;;  %4628 = vst [vmem:[#allocation3 + $0x204] sm:$0xf] %v4549_v7  ;;  %v5762_v40 = vadd.f32 %v16235_v36, %v16265_v5  ;;  %v12461_v36 = vld [vmem:[#allocation3 + $0x1f4] sm:$0xf0] }
 0x26b   : >> { %v1911_v23 = vsel %vm1326_vm10, %v1709_v14, %v1837_v32  ;;  %v1993_v26 = vunpack.c.l.b16 %v1909_v45  ;;  %v1994_v52 = vunpack.c.h.b16 %v1909_v45  ;;  %v6099_v9 = vrot.slane %v6097_v44, 7  ;;  %v12467_v14 = vld [vmem:[#allocation3 + $0x1e8] sm:$0xf] }
 0x26c   : >> { %v3293_v41 = vsel %vm15312_vm15, %v3288_v47, %v3292_v24  ;;  %v1995_v61 = vunpack.c.l.b16 %v1911_v23  ;;  %v2958_v25 = vpack.c.b16 %v2910_v49, %v2910_v49  ;;  %v5851_v38 = vadd.f32 %v16207_v19, %v5762_v40  ;;  %v4224_v56 = vpop.permute.xlu2 %4223  ;;  %v2750_v44 = vpop.permute.xlu0 %2749 }
 0x26d   : >> { %3410 = vst [vmem:[#allocation3 + $0x210] sm:$0xf] %v3293_v41  ;;  %v2041_v24 = vpack.c.b16 %v1993_v26, %v1993_v26  ;;  %v2042_v22 = vpack.c.b16 %v1994_v52, %v1994_v52  ;;  %v6102_v32 = vor.u32 %v6100_v55, %v6099_v9  ;;  %v6104_v13 = vrot.slane %v6099_v9, 4  ;;  %v16343_v40 = vpop.f32.mrf.mxu2 }
 0x26e   : >> { %v2043_v42 = vpack.c.b16 %v1995_v61, %v1995_v61  ;;  %v3300_v47 = vshll.u32 %v2958_v25, 16  ;;  %v5926_v10 = vmul.f32 %v16051_v8, %v5851_v38  ;;  %v5589_v45 = vadd.f32 %v16238_v31, %v15670_v48  ;;  %v13838_v61 = vld [vmem:[#allocation3 + $0x1ec] sm:$0xf] }
 0x26f   : >> { %v11908_v4 = vrot.slane %v2041_v24, 9  ;;  %v2146_v58 = vrot.slane %v2042_v22, 5  ;;  %v6103_v19 = vsel %vm14598_vm8, %v6095_v12, %v6102_v32  ;;  %v6397_v41 = vsel %vm14422_vm3, %v6104_v13, %v12711_v17  ;;  %v4226_v12 = vpop.permute.xlu1 %4225  ;;  %v12469_v24 = vld [vmem:[#allocation3 + $0x1fc] sm:$0xf0]  ;;  %v12475_v22 = vld [vmem:[#allocation3 + $0x1f0] sm:$0xf]  ;;  %v16359_v13 = vpop.f32.mrf.mxu0 }
 0x270   : >> { %v14317_v60 = vld [vmem:[%s14754_s6 + $0xb4] sm:$0xff]  ;;  %v2149_v18 = vrot.slane %v2043_v42, 5  ;;  %v3302_v2 = vrot.slane %v3300_v47, 5  ;;  %v5963_v23 = vadd.f32 %v16061_v16, %v5926_v10  ;;  %v12464_v52 = vor.u32 %v13837_v6, %v12461_v36  ;;  %v16357_v32 = vpop.f32.mrf.mxu1 }
 0x271   : >> { %v3846_v62 = vsel %vm1326_vm10, %v14317_v60, %v3814_v54  ;;  %v11953_v0 = vld [vmem:[%s14754_s6 + $0xb4] sm:$0xf]  ;;  %v2147_v5 = vsel %vm15322_vm1, %v11908_v4, %v2146_v58  ;;  %v2148_v11 = vrot.slane %v2146_v58, 4  ;;  %v16346_v17 = vadd.f32 %v16274_v33, %v5589_v45  ;;  %v18506_v4 = vld [vmem:[#allocation17_spill] sm:$0xff] }
 0x272   : >> { %v3893_v1 = vunpack.c.l.b16 %v3846_v62  ;;  %v3894_v34 = vunpack.c.h.b16 %v3846_v62  ;;  %v13840_v54 = vld [vmem:[#allocation3 + $0x1f8] sm:$0xf0]  ;;  %2223 = vst [vmem:[#allocation3 + $0x20c] sm:$0xf] %v2147_v5  ;;  %v3303_v49 = vsel %vm15312_vm15, %v16299_v3, %v3302_v2  ;;  %v2383_v31 = vunpack.c.l.b16 %v11953_v0  ;;  %5627 = vmatmul.bf16.gmra.mxu1 %v12464_v52  ;;  %v18505_v42 = vld [vmem:[#allocation28_spill] sm:$0xff]  ;;  %v16351_v3 = vpop.f32.mrf.mxu3 }
 0x273   : >> { %12710 = vst.msk [vmem:[%s16097_s22 + $0x28] sm:$0xf] %vm199_vm0, %v6103_v19  ;;  %v2150_v7 = vsel %vm15322_vm1, %v2148_v11, %v2149_v18  ;;  %v12468_v48 = vor.u32 %v13840_v54, %v12467_v14  ;;  %v5995_v9 = vmax.f32 %v5963_v23, 0.0  ;;  %v4315_v25 = vsel %vm1326_vm10, %v18505_v42, %v4224_v56  ;;  %v13841_v62 = vld [vmem:[#allocation3 + $0x200] sm:$0xf0] }
 0x274   : >> { %v3925_v26 = vpack.c.b16 %v3893_v1, %v3893_v1  ;;  %12712 = vst [vmem:[%s16097_s22 + $0x2c] sm:$0x1] %v6397_v41  ;;  %v3926_v55 = vpack.c.b16 %v3894_v34, %v3894_v34  ;;  %v5764_v60 = vadd.f32 %v16277_v63, %v5675_v59  ;;  %v18507_v58 = vunpack.c.l.b16 %v18506_v4  ;;  %v18508_v0 = vld [vmem:[#allocation20_spill] sm:$0xff] }
 0x275   : >> { %2224 = vst [vmem:[#allocation3 + $0x220] sm:$0xf] %v2150_v7  ;;  %5716 = vmatmul.bf16.gmra.mxu2 %v12468_v48  ;;  %v4402_v1 = vunpack.c.l.b16 %v4315_v25  ;;  %v4403_v6 = vunpack.c.h.b16 %v4315_v25  ;;  %v4318_v33 = vsel %vm1326_vm10, %v18508_v0, %v4226_v12  ;;  %v6027_v18 = vpack.c.bf16 %v5995_v9, %v5995_v9  ;;  %v12713_v23 = vld [vmem:[%s16097_s22 + $0x30] sm:$0xf]  ;;  %v1839_v25 = vpop.permute.xlu0 %1838 }
 0x276   : >> { %3411 = vst [vmem:[#allocation3 + $0x224] sm:$0xf] %v3303_v49  ;;  %v2417_v38 = vpack.c.b16 %v18507_v58, %v2383_v31  ;;  %v5853_v63 = vadd.f32 %v16240_v30, %v5764_v60  ;;  %v4404_v59 = vunpack.c.l.b16 %v4318_v33  ;;  %v12472_v47 = vor.u32 %v13838_v61, %v12469_v24  ;;  %v18509_v9 = vld [vmem:[#allocation12_spill] sm:$0xff] }
 0x277   : >> { %3989 = vst [vmem:[#allocation3 + $0x214] sm:$0xf] %v3925_v26  ;;  %v4450_v5 = vpack.c.b16 %v4402_v1, %v4402_v1  ;;  %v4451_v11 = vpack.c.b16 %v4403_v6, %v4403_v6  ;;  %v12476_v10 = vor.u32 %v13841_v62, %v12475_v22  ;;  %v6106_v14 = vshrl.u32 %v6027_v18, 16 }
 0x278   : >> { %3990 = vst [vmem:[#allocation3 + $0x228] sm:$0xf] %v3926_v55  ;;  %v2829_v36 = vsel %vm1326_vm10, %v2417_v38, %v2750_v44  ;;  %v6109_v54 = vshll.u32 %v6027_v18, 16  ;;  %5805 = vmatmul.bf16.gmra.mxu3 %v12472_v47  ;;  %v5927_v30 = vmul.f32 %v16051_v8, %v5853_v63  ;;  %v4452_v56 = vpack.c.b16 %v4404_v59, %v4404_v59  ;;  %v16378_v38 = vpop.f32.mrf.mxu2 }
 0x279   : >> { %v2911_v19 = vunpack.c.l.b16 %v2829_v36  ;;  %v2912_v41 = vunpack.c.h.b16 %v2829_v36  ;;  %v12213_v2 = vrot.slane %v4450_v5, 9  ;;  %v4552_v45 = vrot.slane %v4451_v11, 5  ;;  %5894 = vmatmul.bf16.gmra.mxu0 %v12476_v10  ;;  %v16385_v36 = vpop.f32.mrf.mxu1  ;;  %v16387_v5 = vpop.f32.mrf.mxu0 }
 0x27a   : >> { %v16365_v7 = vrot.slane %v6106_v14, 7  ;;  %v5964_v49 = vadd.f32 %v16061_v16, %v5927_v30  ;;  %v4555_v55 = vrot.slane %v4452_v56, 5  ;;  %v5591_v42 = vadd.f32 %v16279_v15, %v18509_v9  ;;  %v2752_v16 = vpop.permute.xlu2 %2751  ;;  %v16382_v18 = vpop.f32.mrf.mxu3  ;;  %v18510_v14 = vld [vmem:[#allocation18_spill] sm:$0xff] }
 0x27b   : >> { %v1547_v34 = vld [vmem:[%s14754_s6 + $0xb0] sm:$0x1]  ;;  %v2959_v26 = vpack.c.b16 %v2911_v19, %v2911_v19  ;;  %v2960_v52 = vpack.c.b16 %v2912_v41, %v2912_v41  ;;  %v4553_v12 = vsel %vm15322_vm1, %v12213_v2, %v4552_v45  ;;  %v4554_v61 = vrot.slane %v4552_v45, 4  ;;  %v11825_v48 = vld [vmem:[%s14754_s6 + $0xa8] sm:$0xe]  ;;  %v3816_v30 = vpop.permute.xlu1 %3815 }
 0x27c   : >> { %v1678_v44 = vunpack.c.l.b16 %v1547_v34  ;;  %v13727_v31 = vld [vmem:[%s14754_s6 + $0xa8] sm:$0xf0]  ;;  %v6111_v24 = vor.u32 %v6109_v54, %v16365_v7  ;;  %4629 = vst [vmem:[#allocation3 + $0x218] sm:$0xf] %v4553_v12  ;;  %v5996_v4 = vmax.f32 %v5964_v49, 0.0  ;;  %v6112_v11 = vrot.slane %v16365_v7, 4 }
 0x27d   : >> { %v3305_v8 = vshrl.u32 %v2959_v26, 16  ;;  %v3308_v22 = vshll.u32 %v2959_v26, 16  ;;  %v3314_v60 = vshll.u32 %v2960_v52, 16  ;;  %v3318_v62 = vshrl.u32 %v2960_v52, 16 }
 0x27e   : >> { %v4556_v58 = vsel %vm15322_vm1, %v4554_v61, %v4555_v55  ;;  %v6400_v1 = vsel %vm14590_vm7, %v6111_v24, %v12713_v23  ;;  %v11826_v33 = vor.u32 %v13727_v31, %v11825_v48  ;;  %v6028_v59 = vpack.c.bf16 %v5996_v4, %v5996_v4  ;;  %v12716_v55 = vld [vmem:[%s16097_s22 + $0x38] sm:$0x1] }
 0x27f   : >> { %v3307_v6 = vrot.slane %v3305_v8, 4  ;;  %v3310_v0 = vrot.slane %v3308_v22, 5  ;;  %4630 = vst [vmem:[#allocation3 + $0x22c] sm:$0xf] %v4556_v58  ;;  %v3316_v15 = vrot.slane %v3314_v60, 5  ;;  %v3320_v63 = vrot.slane %v3318_v62, 4 }
 0x280   : >> { %12714 = vst [vmem:[%s16097_s22 + $0x30] sm:$0xf] %v6400_v1  ;;  %v1711_v47 = vpack.c.b16 %v1678_v44, %v1678_v44  ;;  %v1914_v34 = vsel %vm1326_vm10, %v11826_v33, %v1839_v25  ;;  %v2831_v54 = vsel %vm1326_vm10, %v18510_v14, %v2752_v16  ;;  %v6114_v41 = vshrl.u32 %v6028_v59, 16  ;;  %v16403_v60 = vpop.f32.mrf.mxu2  ;;  %v12487_v33 = vld [vmem:[#allocation3 + $0x210] sm:$0xf] }
 0x281   : >> { %v3311_v10 = vor.u32 %v3310_v0, %v3307_v6  ;;  %v3321_v19 = vor.u32 %v3320_v63, %v3316_v15  ;;  %v16395_v45 = vadd.f32 %v16306_v28, %v5591_v42  ;;  %v1996_v23 = vunpack.c.l.b16 %v1914_v34  ;;  %v13842_v28 = vld [vmem:[#allocation3 + $0x20c] sm:$0xf] }
 0x282   : >> { %v1916_v2 = vsel %vm1326_vm10, %v1711_v47, %v1839_v25  ;;  %v1997_v26 = vunpack.c.h.b16 %v1914_v34  ;;  %v6116_v7 = vrot.slane %v6114_v41, 7  ;;  %v6117_v44 = vshll.u32 %v6028_v59, 16  ;;  %v12481_v25 = vld [vmem:[#allocation3 + $0x21c] sm:$0xf0]  ;;  %v16405_v58 = vpop.f32.mrf.mxu3  ;;  %v16416_v59 = vpop.f32.mrf.mxu1  ;;  %v16428_v41 = vld [vmem:[%s15645_s18] ss:$0 sm:$0xff] }
 0x283   : >> { %v3312_v56 = vrot.slane %v3311_v10, 4  ;;  %v1998_v52 = vunpack.c.l.b16 %v1916_v2  ;;  %v2913_v12 = vunpack.c.l.b16 %v2831_v54  ;;  %v5767_v61 = vadd.f32 %v16311_v21, %v16346_v17  ;;  %v16424_v54 = vpop.f32.mrf.mxu0 }
 0x284   : >> { %v2044_v48 = vpack.c.b16 %v1996_v23, %v1996_v23  ;;  %v2045_v31 = vpack.c.b16 %v1997_v26, %v1997_v26  ;;  %v6119_v8 = vor.u32 %v6117_v44, %v6116_v7  ;;  %v6121_v22 = vrot.slane %v6116_v7, 4  ;;  %v2754_v26 = vpop.permute.xlu0 %2753 }
 0x285   : >> { %v3317_v49 = vsel %vm15312_vm15, %v3312_v56, %v3316_v15  ;;  %v2046_v24 = vpack.c.b16 %v1998_v52, %v1998_v52  ;;  %v2961_v9 = vpack.c.b16 %v2913_v12, %v2913_v12  ;;  %v5856_v42 = vadd.f32 %v16281_v29, %v5767_v61  ;;  %v16412_v29 = vld [vmem:[%s15633_s14] ss:$0 sm:$0xff]  ;;  %v13845_v15 = vld [vmem:[#allocation3 + $0x220] sm:$0xf0]  ;;  %v4228_v52 = vpop.permute.xlu2 %4227 }
 0x286   : >> { %3412 = vst [vmem:[#allocation3 + $0x238] sm:$0xf] %v3317_v49  ;;  %v3322_v21 = vrot.slane %v3321_v19, 4  ;;  %v11909_v17 = vrot.slane %v2044_v48, 9  ;;  %v2153_v62 = vrot.slane %v2045_v31, 5  ;;  %v6120_v16 = vsel %vm14598_vm8, %v6112_v11, %v6119_v8  ;;  %v4230_v48 = vpop.permute.xlu1 %4229 }
 0x287   : >> { %v2156_v4 = vrot.slane %v2046_v24, 5  ;;  %v6404_v1 = vsel %vm14422_vm3, %v6121_v22, %v12716_v55  ;;  %v3324_v6 = vshll.u32 %v2961_v9, 16  ;;  %v5928_v0 = vmul.f32 %v16412_v29, %v5856_v42  ;;  %v14169_v63 = vld [vmem:[%s14754_s6 + $0xc0] sm:$0xff]  }
 0x288   : >> { %12715 = vst.msk [vmem:[%s16097_s22 + $0x34] sm:$0xf] %vm199_vm0, %v6120_v16  ;;  %v2154_v47 = vsel %vm15322_vm1, %v11909_v17, %v2153_v62  ;;  %v2155_v11 = vrot.slane %v2153_v62, 4  ;;  %v12484_v14 = vor.u32 %v13842_v28, %v12481_v25  ;;  %v2834_v44 = vsel %vm1326_vm10, %v14169_v63, %v2754_v26  ;;  %v18511_v24 = vld [vmem:[#allocation14_spill] sm:$0xff]  ;;  %v16445_v62 = vpop.f32.mrf.mxu2 }
 0x289   : >> { %v3326_v19 = vrot.slane %v3324_v6, 5  ;;  %v5965_v2 = vadd.f32 %v16428_v41, %v5928_v0  ;;  %2225 = vst [vmem:[#allocation3 + $0x234] sm:$0xf] %v2154_v47  ;;  %v5594_v28 = vadd.f32 %v16314_v39, %v18511_v24  ;;  %v2914_v8 = vunpack.c.l.b16 %v2834_v44  ;;  %v18512_v39 = vld [vmem:[#allocation10_spill] sm:$0xff] }
 0x28a   : >> { %v2157_v7 = vsel %vm15322_vm1, %v2155_v11, %v2156_v4  ;;  %5632 = vmatmul.bf16.gmra.mxu1 %v12484_v14  ;;  %v2915_v22 = vunpack.c.h.b16 %v2834_v44  ;;  %v4321_v9 = vsel %vm1326_vm10, %v15973_v50, %v4228_v52  ;;  %v5769_v17 = vadd.f32 %v16351_v3, %v16395_v45  ;;  %v16450_v6 = vpop.f32.mrf.mxu3  ;;  %v16452_v47 = vpop.f32.mrf.mxu1  ;;  %v12718_v3 = vld [vmem:[%s16097_s22 + $0x3c] sm:$0xf]  ;;  %v13843_v14 = vld [vmem:[#allocation3 + $0x214] sm:$0xf]  ;;  %v12495_v44 = vld [vmem:[#allocation3 + $0x218] sm:$0xf] }
 0x28b   : >> { %2226 = vst [vmem:[#allocation3 + $0x248] sm:$0xf] %v2157_v7  ;;  %v3327_v12 = vsel %vm15312_vm15, %v3322_v21, %v3326_v19  ;;  %v5997_v61 = vmax.f32 %v5965_v2, 0.0  ;;  %v4405_v25 = vunpack.c.l.b16 %v4321_v9  ;;  %v4406_v21 = vunpack.c.h.b16 %v4321_v9  ;;  %v12489_v19 = vld [vmem:[#allocation3 + $0x224] sm:$0xf0] }
 0x28c   : >> { %3413 = vst [vmem:[#allocation3 + $0x24c] sm:$0xf] %v3327_v12  ;;  %v2962_v4 = vpack.c.b16 %v2914_v8, %v2914_v8  ;;  %v2963_v16 = vpack.c.b16 %v2915_v22, %v2915_v22  ;;  %v5683_v24 = vadd.f32 %v16343_v40, %v5594_v28  ;;  %v18513_v22 = vld [vmem:[#allocation16_spill] sm:$0xff] }
 0x28d   : >> { %v6029_v42 = vpack.c.bf16 %v5997_v61, %v5997_v61  ;;  %v4454_v63 = vpack.c.b16 %v4406_v21, %v4406_v21  ;;  %v5596_v9 = vadd.f32 %v16357_v32, %v18513_v22 }
 0x28e   : >> { %v3329_v45 = vshrl.u32 %v2962_v4, 16  ;;  %v3332_v11 = vshll.u32 %v2962_v4, 16  ;;  %v1841_v4 = vpop.permute.xlu0 %1840 }
 0x28f   : >> { %v14319_v10 = vld [vmem:[%s14754_s6 + $0xc0] sm:$0xff]  ;;  %v6123_v0 = vshrl.u32 %v6029_v42, 16  ;;  %v4559_v7 = vrot.slane %v4454_v63, 5  ;;  %v5685_v22 = vadd.f32 %v16378_v38, %v5596_v9 }
 0x290   : >> { %v3848_v34 = vsel %vm1326_vm10, %v14319_v10, %v3816_v30  ;;  %12717 = vst [vmem:[%s16097_s22 + $0x38] sm:$0x1] %v6404_v1  ;;  %v12488_v30 = vor.u32 %v13845_v15, %v12487_v33  ;;  %v4324_v1 = vsel %vm1326_vm10, %v18512_v39, %v4230_v48  ;;  %v6126_v33 = vshll.u32 %v6029_v42, 16  ;;  %v13846_v48 = vld [vmem:[#allocation3 + $0x228] sm:$0xf0]  ;;  %v2756_v42 = vpop.permute.xlu2 %2755  ;;  %v16471_v28 = vpop.f32.mrf.mxu2 }
 0x291   : >> { %v3895_v56 = vunpack.c.l.b16 %v3848_v34  ;;  %v3896_v23 = vunpack.c.h.b16 %v3848_v34  ;;  %v4453_v15 = vpack.c.b16 %v4405_v25, %v4405_v25  ;;  %v3338_v10 = vshll.u32 %v2963_v16, 16 }
 0x292   : >> { %5721 = vmatmul.bf16.gmra.mxu2 %v12488_v30  ;;  %v3342_v34 = vshrl.u32 %v2963_v16, 16  ;;  %v16459_v26 = vrot.slane %v6123_v0, 7  ;;  %v5858_v30 = vadd.f32 %v16316_v37, %v5769_v17  ;;  %v3331_v12 = vrot.slane %v3329_v45, 4  ;;  %v16475_v45 = vpop.f32.mrf.mxu3 }
 0x293   : >> { %v3927_v49 = vpack.c.b16 %v3895_v56, %v3895_v56  ;;  %v3928_v55 = vpack.c.b16 %v3896_v23, %v3896_v23  ;;  %v16457_v23 = vpop.f32.mrf.mxu0  ;;  %v12214_v52 = vrot.slane %v4453_v15, 9  ;;  %v3334_v61 = vrot.slane %v3332_v11, 5 }
 0x294   : >> { %v5929_v21 = vmul.f32 %v16412_v29, %v5858_v30  ;;  %v4407_v17 = vunpack.c.l.b16 %v4324_v1  ;;  %v12492_v39 = vor.u32 %v13843_v14, %v12489_v19  ;;  %v12496_v0 = vor.u32 %v13846_v48, %v12495_v44  ;;  %v13847_v48 = vld [vmem:[#allocation3 + $0x234] sm:$0xf] }
 0x295   : >> { %3991 = vst [vmem:[#allocation3 + $0x23c] sm:$0xf] %v3927_v49  ;;  %v3340_v49 = vrot.slane %v3338_v10, 5  ;;  %v4560_v8 = vsel %vm15322_vm1, %v12214_v52, %v4559_v7  ;;  %v3335_v25 = vor.u32 %v3334_v61, %v3331_v12  ;;  %v4561_v15 = vrot.slane %v4559_v7, 4 }
 0x296   : >> { %3992 = vst [vmem:[#allocation3 + $0x250] sm:$0xf] %v3928_v55  ;;  %v3344_v55 = vrot.slane %v3342_v34, 4  ;;  %v5966_v32 = vadd.f32 %v16428_v41, %v5929_v21  ;;  %v4455_v63 = vpack.c.b16 %v4407_v17, %v4407_v17  ;;  %v6129_v11 = vrot.slane %v16459_v26, 4  ;;  %5810 = vmatmul.bf16.gmra.mxu3 %v12492_v39  ;;  %5899 = vmatmul.bf16.gmra.mxu0 %v12496_v0  ;;  %v12507_v21 = vld [vmem:[#allocation3 + $0x238] sm:$0xf] }
 0x297   : >> { %v16437_v31 = vld [vmem:[%s14754_s6 + $0xbc] sm:$0x1]  ;;  %v11829_v2 = vld [vmem:[%s14754_s6 + $0xb4] sm:$0xe]  ;;  %v13728_v56 = vld [vmem:[%s14754_s6 + $0xb4] sm:$0xf0]  ;;  %v2836_v44 = vsel %vm1326_vm10, %v15886_v43, %v2756_v42 }
 0x298   : >> { %v1681_v50 = vunpack.c.l.b16 %v16437_v31  ;;  %v6128_v31 = vor.u32 %v6126_v33, %v16459_v26  ;;  %v3345_v37 = vor.u32 %v3344_v55, %v3340_v49  ;;  %4631 = vst [vmem:[#allocation3 + $0x240] sm:$0xf] %v4560_v8  ;;  %v11830_v40 = vor.u32 %v13728_v56, %v11829_v2  ;;  %v16483_v56 = vpop.f32.mrf.mxu1  ;;  %v13850_v17 = vld [vmem:[#allocation3 + $0x248] sm:$0xf0] }
 0x299   : >> { %v3336_v33 = vrot.slane %v3335_v25, 4  ;;  %v5998_v14 = vmax.f32 %v5966_v32, 0.0  ;;  %v4562_v19 = vrot.slane %v4455_v63, 5  ;;  %v2916_v25 = vunpack.c.l.b16 %v2836_v44  ;;  %v18514_v42 = vld [vmem:[#allocation21_spill] sm:$0xff]  ;;  %v4234_v44 = vpop.permute.xlu0 %4233 }
 0x29a   : >> { %v6407_v16 = vsel %vm14590_vm7, %v6128_v31, %v12718_v3  ;;  %v16478_v1 = vrot.slane %v3345_v37, 4  ;;  %v1713_v3 = vpack.c.b16 %v1681_v50, %v1681_v50  ;;  %v1919_v10 = vsel %vm1326_vm10, %v11830_v40, %v1841_v4  ;;  %v12501_v31 = vld [vmem:[#allocation3 + $0x244] sm:$0xf0]  ;;  %v16500_v63 = vpop.f32.mrf.mxu3 }
 0x29b   : >> { %12719 = vst [vmem:[%s16097_s22 + $0x3c] sm:$0xf] %v6407_v16  ;;  %v3341_v34 = vsel %vm15312_vm15, %v3336_v33, %v3340_v49  ;;  %v1999_v2 = vunpack.c.l.b16 %v1919_v10  ;;  %v16485_v52 = vpop.f32.mrf.mxu0  ;;  %v2000_v30 = vunpack.c.h.b16 %v1919_v10  ;;  %v5772_v50 = vadd.f32 %v16382_v18, %v5683_v24  ;;  %v4232_v33 = vpop.permute.xlu2 %4231 }
 0x29c   : >> { %3414 = vst [vmem:[#allocation3 + $0x260] sm:$0xf] %v3341_v34  ;;  %v1921_v7 = vsel %vm1326_vm10, %v1713_v3, %v1841_v4  ;;  %v6030_v12 = vpack.c.bf16 %v5998_v14, %v5998_v14  ;;  %v4563_v61 = vsel %vm15322_vm1, %v4561_v15, %v4562_v19  ;;  %v5599_v4 = vadd.f32 %v16385_v36, %v18514_v42  ;;  %v16498_v15 = vpop.f32.mrf.mxu2  ;;  %v12721_v3 = vld [vmem:[%s16097_s22 + $0x44] sm:$0x1] }
 0x29d   : >> { %v2001_v49 = vunpack.c.l.b16 %v1921_v7  ;;  %v2047_v55 = vpack.c.b16 %v1999_v2, %v1999_v2  ;;  %4632 = vst [vmem:[#allocation3 + $0x254] sm:$0xf] %v4563_v61  ;;  %v2048_v8 = vpack.c.b16 %v2000_v30, %v2000_v30  ;;  %v5861_v37 = vadd.f32 %v16359_v13, %v5772_v50 }
 0x29e   : >> { %v6131_v43 = vshrl.u32 %v6030_v12, 16  ;;  %v2964_v39 = vpack.c.b16 %v2916_v25, %v2916_v25  ;;  %v12504_v40 = vor.u32 %v13847_v48, %v12501_v31  ;;  %v6134_v9 = vshll.u32 %v6030_v12, 16 }
 0x29f   : >> { %v2049_v18 = vpack.c.b16 %v2001_v49, %v2001_v49  ;;  %v11910_v24 = vrot.slane %v2047_v55, 9  ;;  %v2160_v16 = vrot.slane %v2048_v8, 5  ;;  %v5930_v0 = vmul.f32 %v16412_v29, %v5861_v37  ;;  %v13848_v8 = vld [vmem:[#allocation3 + $0x23c] sm:$0xf] }
 0x2a0   : >> { %v6133_v38 = vrot.slane %v6131_v43, 7  ;;  %v12508_v32 = vor.u32 %v13850_v17, %v12507_v21  ;;  %v3348_v36 = vshll.u32 %v2964_v39, 16  ;;  %5637 = vmatmul.bf16.gmra.mxu1 %v12504_v40  ;;  %v4327_v7 = vsel %vm1326_vm10, %v16030_v35, %v4232_v33  ;;  %v16520_v25 = vpop.f32.mrf.mxu1  ;;  %v12515_v43 = vld [vmem:[#allocation3 + $0x240] sm:$0xf]  ;;  %v3818_v39 = vpop.permute.xlu1 %3817 }
 0x2a1   : >> { %v2163_v13 = vrot.slane %v2049_v18, 5  ;;  %v2161_v10 = vsel %vm15322_vm1, %v11910_v24, %v2160_v16  ;;  %v2162_v34 = vrot.slane %v2160_v16, 4  ;;  %v5967_v14 = vadd.f32 %v16428_v41, %v5930_v0  ;;  %v18516_v40 = vld [vmem:[#allocation24_spill] sm:$0xff] }
 0x2a2   : >> { %v6136_v19 = vor.u32 %v6134_v9, %v6133_v38  ;;  %v6138_v2 = vrot.slane %v6133_v38, 4  ;;  %2227 = vst [vmem:[#allocation3 + $0x25c] sm:$0xf] %v2161_v10  ;;  %5726 = vmatmul.bf16.gmra.mxu2 %v12508_v32  ;;  %v5774_v30 = vadd.f32 %v16405_v58, %v5685_v22  ;;  %v3350_v61 = vrot.slane %v3348_v36, 5  ;;  %v12509_v22 = vld [vmem:[#allocation3 + $0x24c] sm:$0xf0] }
 0x2a3   : >> { %v16509_v50 = vpop.f32.mrf.mxu0  ;;  %v2164_v12 = vsel %vm15322_vm1, %v2162_v34, %v2163_v13  ;;  %v5999_v49 = vmax.f32 %v5967_v14, 0.0  ;;  %v4408_v55 = vunpack.c.l.b16 %v4327_v7  ;;  %v4409_v58 = vunpack.c.h.b16 %v4327_v7  ;;  %v12723_v36 = vld [vmem:[%s16097_s22 + $0x48] sm:$0xf] }
 0x2a4   : >> { %v6137_v48 = vsel %vm14598_vm8, %v6129_v11, %v6136_v19  ;;  %v6411_v35 = vsel %vm14422_vm3, %v6138_v2, %v12721_v3  ;;  %2228 = vst [vmem:[#allocation3 + $0x270] sm:$0xf] %v2164_v12  ;;  %v5863_v31 = vadd.f32 %v16387_v5, %v5774_v30  ;;  %v3351_v26 = vsel %vm15312_vm15, %v16478_v1, %v3350_v61  ;;  %v18515_v11 = vld [vmem:[#allocation34_spill] sm:$0xff]  ;;  %v5697_v9 = vpop.f32.mrf.mxu2 }
 0x2a5   : >> { %12720 = vst.msk [vmem:[%s16097_s22 + $0x40] sm:$0xf] %vm199_vm0, %v6137_v48  ;;  %v6031_v37 = vpack.c.bf16 %v5999_v49, %v5999_v49  ;;  %v4456_v21 = vpack.c.b16 %v4408_v55, %v4408_v55  ;;  %v4330_v17 = vsel %vm1326_vm10, %v18515_v11, %v4234_v44  ;;  %v13851_v18 = vld [vmem:[#allocation3 + $0x250] sm:$0xf0]  ;;  %v5688_v5 = vadd.f32 %v16403_v60, %v5599_v4  ;;  %v5783_v4 = vpop.f32.mrf.mxu3 }
 0x2a6   : >> { %12722 = vst [vmem:[%s16097_s22 + $0x44] sm:$0x1] %v6411_v35  ;;  %v4457_v24 = vpack.c.b16 %v4409_v58, %v4409_v58  ;;  %v5931_v42 = vmul.f32 %v16412_v29, %v5863_v31  ;;  %v4410_v16 = vunpack.c.l.b16 %v4330_v17  ;;  %v5601_v33 = vadd.f32 %v16416_v59, %v18516_v40 }
 0x2a7   : >> { %3415 = vst [vmem:[#allocation3 + $0x274] sm:$0xf] %v3351_v26  ;;  %v6140_v0 = vshrl.u32 %v6031_v37, 16  ;;  %v12215_v1 = vrot.slane %v4456_v21, 9  ;;  %v12512_v38 = vor.u32 %v13848_v8, %v12509_v22  ;;  %v12516_v60 = vor.u32 %v13851_v18, %v12515_v43  ;;  %v18517_v8 = vld [vmem:[#allocation27_spill] sm:$0xff] }
 0x2a8   : >> { %v4566_v13 = vrot.slane %v4457_v24, 5  ;;  %v5968_v32 = vadd.f32 %v16428_v41, %v5931_v42  ;;  %v4458_v3 = vpack.c.b16 %v4410_v16, %v4410_v16  ;;  %v6143_v34 = vshll.u32 %v6031_v37, 16  ;;  %v12527_v26 = vld [vmem:[#allocation3 + $0x260] sm:$0xf]  ;;  %v5610_v24 = vpop.f32.mrf.mxu1  ;;  %v18518_v16 = vld [vmem:[#allocation31_spill] sm:$0xff] }
 0x2a9   : >> { %v16535_v10 = vrot.slane %v6140_v0, 7  ;;  %5815 = vmatmul.bf16.gmra.mxu3 %v12512_v38  ;;  %v5777_v2 = vadd.f32 %v16450_v6, %v5688_v5  ;;  %5904 = vmatmul.bf16.gmra.mxu0 %v12516_v60  ;;  %v13852_v12 = vld [vmem:[#allocation3 + $0x25c] sm:$0xf]  ;;  %v5690_v48 = vadd.f32 %v16445_v62, %v5601_v33  ;;  %v5604_v22 = vadd.f32 %v16452_v47, %v18517_v8  ;;  %v12726_v60 = vld [vmem:[%s16097_s22 + $0x50] sm:$0x1] }
 0x2aa   : >> { %v4567_v59 = vsel %vm15322_vm1, %v12215_v1, %v4566_v13  ;;  %v4568_v7 = vrot.slane %v4566_v13, 4  ;;  %v6000_v30 = vmax.f32 %v5968_v32, 0.0  ;;  %v4569_v44 = vrot.slane %v4458_v3, 5  ;;  %v18519_v0 = vld [vmem:[#allocation11_spill] sm:$0xff] }
 0x2ab   : >> { %v6145_v61 = vor.u32 %v6143_v34, %v16535_v10  ;;  %4633 = vst [vmem:[#allocation3 + $0x268] sm:$0xf] %v4567_v59  ;;  %v12521_v35 = vld [vmem:[#allocation3 + $0x26c] sm:$0xf0]  ;;  %v5866_v31 = vadd.f32 %v16424_v54, %v5777_v2  ;;  %v5875_v37 = vpop.f32.mrf.mxu0  ;;  %v5693_v54 = vadd.f32 %v16471_v28, %v5604_v22  ;;  %v5779_v42 = vadd.f32 %v16475_v45, %v5690_v48 }
 0x2ac   : >> { %v6032_v58 = vpack.c.bf16 %v6000_v30, %v6000_v30  ;;  %v4570_v6 = vsel %vm15322_vm1, %v4568_v7, %v4569_v44  ;;  %v12524_v43 = vor.u32 %v13852_v12, %v12521_v35  ;;  %v5609_v1 = vadd.f32 %v16520_v25, %v18519_v0  ;;  %v5699_v32 = vpop.f32.mrf.mxu2  ;;  %v18520_v12 = vld [vmem:[#allocation8_spill] sm:$0xff] }
 0x2ad   : >> { %v14321_v14 = vld [vmem:[%s14754_s6 + $0xcc] sm:$0xff]  ;;  %v6414_v21 = vsel %vm14590_vm7, %v6145_v61, %v12723_v36  ;;  %4634 = vst [vmem:[#allocation3 + $0x27c] sm:$0xf] %v4570_v6  ;;  %v5932_v18 = vmul.f32 %v16412_v29, %v5866_v31  ;;  %v5782_v13 = vadd.f32 %v16500_v63, %v5693_v54  ;;  %v5786_v28 = vpop.f32.mrf.mxu3  ;;  %v6146_v3 = vrot.slane %v16535_v10, 4 }
 0x2ae   : >> { %v3850_v19 = vsel %vm1326_vm10, %v14321_v14, %v3818_v39  ;;  %12724 = vst [vmem:[%s16097_s22 + $0x48] sm:$0xf] %v6414_v21  ;;  %v6148_v62 = vshrl.u32 %v6032_v58, 16  ;;  %v13855_v5 = vld [vmem:[#allocation3 + $0x270] sm:$0xf0]  ;;  %v5606_v39 = vadd.f32 %v16483_v56, %v18518_v16  ;;  %v6151_v33 = vshll.u32 %v6032_v58, 16 }
 0x2af   : >> { %v3897_v49 = vunpack.c.l.b16 %v3850_v19  ;;  %v3898_v55 = vunpack.c.h.b16 %v3850_v19  ;;  %v12528_v47 = vor.u32 %v13855_v5, %v12527_v26  ;;  %v5969_v38 = vadd.f32 %v16428_v41, %v5932_v18 }
 0x2b0   : >> { %v6150_v40 = vrot.slane %v6148_v62, 7  ;;  %5642 = vmatmul.bf16.gmra.mxu1 %v12524_v43  ;;  %v5868_v45 = vadd.f32 %v16457_v23, %v5779_v42  ;;  %v5695_v56 = vadd.f32 %v16498_v15, %v5606_v39  ;;  %v5698_v34 = vadd.f32 %v5697_v9, %v5609_v1  ;;  %v12728_v62 = vld [vmem:[%s16097_s22 + $0x54] sm:$0xf] }
 0x2b1   : >> { %v3929_v11 = vpack.c.b16 %v3897_v49, %v3897_v49  ;;  %v3930_v17 = vpack.c.b16 %v3898_v55, %v3898_v55  ;;  %v6001_v14 = vmax.f32 %v5969_v38, 0.0  ;;  %v5871_v19 = vadd.f32 %v16485_v52, %v5782_v13 }
 0x2b2   : >> { %v6153_v25 = vor.u32 %v6151_v33, %v6150_v40  ;;  %v6155_v36 = vrot.slane %v6150_v40, 4  ;;  %5731 = vmatmul.bf16.gmra.mxu2 %v12528_v47  ;;  %v5933_v63 = vmul.f32 %v16412_v29, %v5868_v45  ;;  %v12535_v2 = vld [vmem:[#allocation3 + $0x268] sm:$0xf]  ;;  %v5784_v59 = vadd.f32 %v5783_v4, %v5695_v56 }
 0x2b3   : >> { %3993 = vst [vmem:[#allocation3 + $0x264] sm:$0xf] %v3929_v11  ;;  %v5787_v10 = vadd.f32 %v5786_v28, %v5698_v34  ;;  %v6033_v15 = vpack.c.bf16 %v6001_v14, %v6001_v14  ;;  %v5934_v30 = vmul.f32 %v16412_v29, %v5871_v19  ;;  %v5611_v61 = vadd.f32 %v5610_v24, %v18520_v12  ;;  %v5877_v58 = vpop.f32.mrf.mxu0  ;;  %v18521_v34 = vld [vmem:[#allocation7_spill] sm:$0xff] }
 0x2b4   : >> { %3994 = vst [vmem:[#allocation3 + $0x278] sm:$0xf] %v3930_v17  ;;  %v6154_v7 = vsel %vm14598_vm8, %v6146_v3, %v6153_v25  ;;  %v6418_v23 = vsel %vm14422_vm3, %v6155_v36, %v12726_v60  ;;  %v13856_v9 = vld [vmem:[#allocation3 + $0x278] sm:$0xf0]  ;;  %v5970_v44 = vadd.f32 %v16428_v41, %v5933_v63  ;;  %v5873_v52 = vadd.f32 %v16509_v50, %v5784_v59  ;;  %v5702_v16 = vpop.f32.mrf.mxu2  ;;  %v12731_v60 = vld [vmem:[%s16097_s22 + $0x5c] sm:$0x1] }
 0x2b5   : >> { %12725 = vst.msk [vmem:[%s16097_s22 + $0x4c] sm:$0xf] %vm199_vm0, %v6154_v7  ;;  %v5876_v4 = vadd.f32 %v5875_v37, %v5787_v10  ;;  %v6157_v49 = vshrl.u32 %v6033_v15, 16  ;;  %v12536_v48 = vor.u32 %v13856_v9, %v12535_v2  ;;  %v5971_v35 = vadd.f32 %v16428_v41, %v5934_v30  ;;  %v5613_v37 = vpop.f32.mrf.mxu1  ;;  %v5788_v43 = vpop.f32.mrf.mxu3  ;;  %v12733_v2 = vld [vmem:[%s16097_s22 + $0x60] sm:$0xf] }
 0x2b6   : >> { %12727 = vst [vmem:[%s16097_s22 + $0x50] sm:$0x1] %v6418_v23  ;;  %v6002_v6 = vmax.f32 %v5970_v44, 0.0  ;;  %v5935_v8 = vmul.f32 %v16412_v29, %v5873_v52  ;;  %v5700_v22 = vadd.f32 %v5699_v32, %v5611_v61  ;;  %v6160_v50 = vshll.u32 %v6033_v15, 16  ;;  %v12736_v61 = vld [vmem:[%s16097_s22 + $0x68] sm:$0x1] }
 0x2b7   : >> { %v5936_v26 = vmul.f32 %v16412_v29, %v5876_v4  ;;  %v6159_v21 = vrot.slane %v6157_v49, 7  ;;  %v6003_v17 = vmax.f32 %v5971_v35, 0.0  ;;  %v5614_v25 = vadd.f32 %v5613_v37, %v18521_v34  ;;  %v12738_v35 = vld [vmem:[%s16097_s22 + $0x6c] sm:$0xf] }
 0x2b8   : >> { %v6034_v18 = vpack.c.bf16 %v6002_v6, %v6002_v6  ;;  %v5972_v5 = vadd.f32 %v16428_v41, %v5935_v8  ;;  %v5789_v24 = vadd.f32 %v5788_v43, %v5700_v22 }
 0x2b9   : >> { %v5973_v54 = vadd.f32 %v16428_v41, %v5936_v26  ;;  %v6162_v47 = vor.u32 %v6160_v50, %v6159_v21  ;;  %5909 = vmatmul.bf16.gmra.mxu0 %v12536_v48  ;;  %v6035_v42 = vpack.c.bf16 %v6003_v17, %v6003_v17  ;;  %v6163_v14 = vrot.slane %v6159_v21, 4 }
 0x2ba   : >> { %v13853_v55 = vld [vmem:[#allocation3 + $0x264] sm:$0xf]  ;;  %v6165_v39 = vshrl.u32 %v6034_v18, 16  ;;  %v6004_v0 = vmax.f32 %v5972_v5, 0.0  ;;  %v5878_v38 = vadd.f32 %v5877_v58, %v5789_v24  ;;  %v6168_v32 = vshll.u32 %v6034_v18, 16 }
 0x2bb   : >> { %v12529_v31 = vld [vmem:[#allocation3 + $0x274] sm:$0xf0]  ;;  %v6005_v1 = vmax.f32 %v5973_v54, 0.0  ;;  %v6421_v40 = vsel %vm14590_vm7, %v6162_v47, %v12728_v62  ;;  %v6174_v33 = vshrl.u32 %v6035_v42, 16  ;;  %v6177_v56 = vshll.u32 %v6035_v42, 16  ;;  %v5880_v9 = vpop.f32.mrf.mxu0  ;;  %v18522_v62 = vld [vmem:[#allocation9_spill] sm:$0xff] }
 0x2bc   : >> { %v12532_v11 = vor.u32 %v13853_v55, %v12529_v31  ;;  %12729 = vst [vmem:[%s16097_s22 + $0x54] sm:$0xf] %v6421_v40  ;;  %v6167_v13 = vrot.slane %v6165_v39, 7  ;;  %v6036_v28 = vpack.c.bf16 %v6004_v0, %v6004_v0  ;;  %v5937_v36 = vmul.f32 %v16412_v29, %v5878_v38  ;;  %v5704_v50 = vpop.f32.mrf.mxu2  ;;  %v12741_v40 = vld [vmem:[%s16097_s22 + $0x74] sm:$0x1] }
 0x2bd   : >> { %v6037_v3 = vpack.c.bf16 %v6005_v1, %v6005_v1  ;;  %v6176_v45 = vrot.slane %v6174_v33, 7  ;;  %v5703_v15 = vadd.f32 %v5702_v16, %v5614_v25  ;;  %v5791_v30 = vpop.f32.mrf.mxu3  ;;  %v5615_v58 = vpop.f32.mrf.mxu1 }
 0x2be   : >> { %5820 = vmatmul.bf16.gmra.mxu3 %v12532_v11  ;;  %v6170_v19 = vor.u32 %v6168_v32, %v6167_v13  ;;  %v6172_v63 = vrot.slane %v6167_v13, 4  ;;  %v6182_v59 = vshrl.u32 %v6036_v28, 16  ;;  %v6185_v7 = vshll.u32 %v6036_v28, 16 }
 0x2bf   : >> { %v6179_v10 = vor.u32 %v6177_v56, %v6176_v45  ;;  %v6191_v23 = vshrl.u32 %v6037_v3, 16  ;;  %v5974_v4 = vadd.f32 %v16428_v41, %v5937_v36  ;;  %v6194_v48 = vshll.u32 %v6037_v3, 16 }
 0x2c0   : >> { %v6171_v44 = vsel %vm14598_vm8, %v6163_v14, %v6170_v19  ;;  %v6425_v52 = vsel %vm14422_vm3, %v6172_v63, %v12731_v60  ;;  %v6184_v12 = vrot.slane %v6182_v59, 7  ;;  %v5792_v6 = vadd.f32 %v5791_v30, %v5703_v15  ;;  %v12743_v59 = vld [vmem:[%s16097_s22 + $0x78] sm:$0xf] }
 0x2c1   : >> { %12730 = vst.msk [vmem:[%s16097_s22 + $0x58] sm:$0xf] %vm199_vm0, %v6171_v44  ;;  %v6428_v49 = vsel %vm14590_vm7, %v6179_v10, %v12733_v2  ;;  %v6193_v55 = vrot.slane %v6191_v23, 7  ;;  %v6180_v31 = vrot.slane %v6176_v45, 4  ;;  %v6006_v26 = vmax.f32 %v5974_v4, 0.0  ;;  %v18523_v23 = vld [vmem:[#allocation22_spill] sm:$0xff] }
 0x2c2   : >> { %12732 = vst [vmem:[%s16097_s22 + $0x5c] sm:$0x1] %v6425_v52  ;;  %v6187_v8 = vor.u32 %v6185_v7, %v6184_v12  ;;  %v6189_v22 = vrot.slane %v6184_v12, 4  ;;  %v5881_v11 = vadd.f32 %v5880_v9, %v5792_v6  ;;  %v5616_v18 = vadd.f32 %v5615_v58, %v18522_v62 }
 0x2c3   : >> { %12734 = vst [vmem:[%s16097_s22 + $0x60] sm:$0xf] %v6428_v49  ;;  %v6196_v21 = vor.u32 %v6194_v48, %v6193_v55  ;;  %v6038_v43 = vpack.c.bf16 %v6006_v26, %v6006_v26  ;;  %v5882_v38 = vpop.f32.mrf.mxu0  ;;  %v6197_v13 = vrot.slane %v6193_v55, 4 }
 0x2c4   : >> { %v6188_v17 = vsel %vm14598_vm8, %v6180_v31, %v6187_v8  ;;  %v6432_v37 = vsel %vm14422_vm3, %v6189_v22, %v12736_v61  ;;  %v5938_v54 = vmul.f32 %v16412_v29, %v5881_v11  ;;  %v5705_v47 = vadd.f32 %v5704_v50, %v5616_v18  ;;  %v5707_v2 = vpop.f32.mrf.mxu2  ;;  %v18524_v50 = vld [vmem:[#allocation25_spill] sm:$0xff] }
 0x2c5   : >> { %12735 = vst.msk [vmem:[%s16097_s22 + $0x64] sm:$0xf] %vm199_vm0, %v6188_v17  ;;  %v6435_v5 = vsel %vm14590_vm7, %v6196_v21, %v12738_v35  ;;  %v6199_v24 = vshrl.u32 %v6038_v43, 16  ;;  %v5793_v16 = vpop.f32.mrf.mxu3  ;;  %v6202_v0 = vshll.u32 %v6038_v43, 16  ;;  %v5618_v34 = vpop.f32.mrf.mxu1  ;;  %v12746_v35 = vld [vmem:[%s16097_s22 + $0x80] sm:$0x1] }
 0x2c6   : >> { %12737 = vst [vmem:[%s16097_s22 + $0x68] sm:$0x1] %v6432_v37  ;;  %v5975_v42 = vadd.f32 %v16428_v41, %v5938_v54  ;;  %v5794_v1 = vadd.f32 %v5793_v16, %v5705_v47  ;;  %v5619_v15 = vadd.f32 %v5618_v34, %v18523_v23 }
 0x2c7   : >> { %12739 = vst [vmem:[%s16097_s22 + $0x6c] sm:$0xf] %v6435_v5  ;;  %v6201_v39 = vrot.slane %v6199_v24, 7 }
 0x2c8   : >> { %v6007_v33 = vmax.f32 %v5975_v42, 0.0  ;;  %v5883_v3 = vadd.f32 %v5882_v38, %v5794_v1  ;;  %v5708_v44 = vadd.f32 %v5707_v2, %v5619_v15  ;;  %v12751_v2 = vld [vmem:[%s16097_s22 + $0x8c] sm:$0x1] }
 0x2c9   : >> { %v6204_v32 = vor.u32 %v6202_v0, %v6201_v39  ;;  %v6206_v28 = vrot.slane %v6201_v39, 4 }
 0x2ca   : >> { %v6039_v60 = vpack.c.bf16 %v6007_v33, %v6007_v33  ;;  %v5939_v25 = vmul.f32 %v16412_v29, %v5883_v3  ;;  %v12748_v33 = vld [vmem:[%s16097_s22 + $0x84] sm:$0xf] }
 0x2cb   : >> { %v6205_v45 = vsel %vm14598_vm8, %v6197_v13, %v6204_v32  ;;  %v6439_v56 = vsel %vm14422_vm3, %v6206_v28, %v12741_v40  ;;  %v5885_v12 = vpop.f32.mrf.mxu0 }
 0x2cc   : >> { %12740 = vst.msk [vmem:[%s16097_s22 + $0x70] sm:$0xf] %vm199_vm0, %v6205_v45  ;;  %v6208_v36 = vshrl.u32 %v6039_v60, 16  ;;  %v5976_v14 = vadd.f32 %v16428_v41, %v5939_v25  ;;  %v6211_v63 = vshll.u32 %v6039_v60, 16  ;;  %v5709_v22 = vpop.f32.mrf.mxu2  ;;  %v18525_v45 = vld [vmem:[#allocation29_spill] sm:$0xff] }
 0x2cd   : >> { %12742 = vst [vmem:[%s16097_s22 + $0x74] sm:$0x1] %v6439_v56  ;;  %v5620_v55 = vpop.f32.mrf.mxu1 }
 0x2ce   : >> { %v6210_v19 = vrot.slane %v6208_v36, 7  ;;  %v6008_v10 = vmax.f32 %v5976_v14, 0.0  ;;  %v5621_v11 = vadd.f32 %v5620_v55, %v18524_v50 }
 0x2d0   : >> { %v6213_v7 = vor.u32 %v6211_v63, %v6210_v19  ;;  %v6040_v9 = vpack.c.bf16 %v6008_v10, %v6008_v10  ;;  %v6214_v58 = vrot.slane %v6210_v19, 4  ;;  %v5710_v37 = vadd.f32 %v5709_v22, %v5621_v11 }
 0x2d1   : >> { %v5796_v61 = vpop.f32.mrf.mxu3 }
 0x2d2   : >> { %v6442_v30 = vsel %vm14590_vm7, %v6213_v7, %v12743_v59  ;;  %v6216_v52 = vshrl.u32 %v6040_v9, 16  ;;  %v6219_v49 = vshll.u32 %v6040_v9, 16  ;;  %v5797_v48 = vadd.f32 %v5796_v61, %v5708_v44 }
 0x2d3   : >> { %12744 = vst [vmem:[%s16097_s22 + $0x78] sm:$0xf] %v6442_v30  ;;  %v5887_v5 = vpop.f32.mrf.mxu0 }
 0x2d4   : >> { %v6218_v4 = vrot.slane %v6216_v52, 7  ;;  %v5886_v8 = vadd.f32 %v5885_v12, %v5797_v48  ;;  %v18526_v52 = vld [vmem:[#allocation32_spill] sm:$0xff] }
 0x2d5   : >> { %v5623_v47 = vpop.f32.mrf.mxu1 }
 0x2d6   : >> { %v6221_v6 = vor.u32 %v6219_v49, %v6218_v4  ;;  %v6223_v31 = vrot.slane %v6218_v4, 4  ;;  %v5940_v17 = vmul.f32 %v16412_v29, %v5886_v8  ;;  %v5624_v56 = vadd.f32 %v5623_v47, %v18525_v45 }
 0x2d8   : >> { %v6222_v26 = vsel %vm14598_vm8, %v6214_v58, %v6221_v6  ;;  %v6446_v21 = vsel %vm14422_vm3, %v6223_v31, %v12746_v35  ;;  %v5977_v43 = vadd.f32 %v16428_v41, %v5940_v17 }
 0x2d9   : >> { %12745 = vst.msk [vmem:[%s16097_s22 + $0x7c] sm:$0xf] %vm199_vm0, %v6222_v26  ;;  %v5798_v62 = vpop.f32.mrf.mxu3  ;;  %v18527_v26 = vld [vmem:[#allocation13_spill] sm:$0xff] }
 0x2da   : >> { %12747 = vst [vmem:[%s16097_s22 + $0x80] sm:$0x1] %v6446_v21  ;;  %v6009_v18 = vmax.f32 %v5977_v43, 0.0  ;;  %v5799_v54 = vadd.f32 %v5798_v62, %v5710_v37 }
 0x2dc   : >> { %v6041_v24 = vpack.c.bf16 %v6009_v18, %v6009_v18  ;;  %v5888_v42 = vadd.f32 %v5887_v5, %v5799_v54  ;;  %v12753_v18 = vld [vmem:[%s16097_s22 + $0x90] sm:$0xf] }
 0x2dd   : >> { %v5712_v38 = vpop.f32.mrf.mxu2  ;;  %v5625_v25 = vpop.f32.mrf.mxu1 }
 0x2de   : >> { %v6225_v16 = vshrl.u32 %v6041_v24, 16  ;;  %v5941_v39 = vmul.f32 %v16412_v29, %v5888_v42  ;;  %v6228_v1 = vshll.u32 %v6041_v24, 16  ;;  %v5713_v36 = vadd.f32 %v5712_v38, %v5624_v56 }
 0x2df   : >> { %v5626_v12 = vadd.f32 %v5625_v25, %v18526_v52 }
 0x2e0   : >> { %v6227_v0 = vrot.slane %v6225_v16, 7  ;;  %v5978_v40 = vadd.f32 %v16428_v41, %v5941_v39 }
 0x2e1   : >> { %v5890_v60 = vpop.f32.mrf.mxu0 }
 0x2e2   : >> { %v6230_v13 = vor.u32 %v6228_v1, %v6227_v0  ;;  %v6010_v32 = vmax.f32 %v5978_v40, 0.0  ;;  %v6231_v10 = vrot.slane %v6227_v0, 4 }
 0x2e4   : >> { %v6449_v28 = vsel %vm14590_vm7, %v6230_v13, %v12748_v33  ;;  %v6042_v3 = vpack.c.bf16 %v6010_v32, %v6010_v32  ;;  %v18528_v33 = vld [vmem:[#allocation15_spill] sm:$0xff] }
 0x2e5   : >> { %12749 = vst [vmem:[%s16097_s22 + $0x84] sm:$0xf] %v6449_v28  ;;  %v5714_v15 = vpop.f32.mrf.mxu2 }
 0x2e6   : >> { %v6233_v34 = vshrl.u32 %v6042_v3, 16  ;;  %v6236_v19 = vshll.u32 %v6042_v3, 16  ;;  %v5801_v63 = vpop.f32.mrf.mxu3  ;;  %v5715_v49 = vadd.f32 %v5714_v15, %v5626_v12  ;;  %v12758_v12 = vld [vmem:[%s16097_s22 + $0x9c] sm:$0xf] }
 0x2e7   : >> { %v5802_v59 = vadd.f32 %v5801_v63, %v5713_v36 }
 0x2e8   : >> { %v6235_v14 = vrot.slane %v6233_v34, 7  ;;  %v12756_v34 = vld [vmem:[%s16097_s22 + $0x98] sm:$0x1] }
 0x2e9   : >> { %v5891_v9 = vadd.f32 %v5890_v60, %v5802_v59  ;;  %v5892_v4 = vpop.f32.mrf.mxu0 }
 0x2ea   : >> { %v6238_v7 = vor.u32 %v6236_v19, %v6235_v14  ;;  %v6240_v23 = vrot.slane %v6235_v14, 4 }
 0x2eb   : >> { %v5942_v61 = vmul.f32 %v16412_v29, %v5891_v9 }
 0x2ec   : >> { %v6239_v30 = vsel %vm14598_vm8, %v6231_v10, %v6238_v7  ;;  %v6453_v44 = vsel %vm14422_vm3, %v6240_v23, %v12751_v2 }
 0x2ed   : >> { %12750 = vst.msk [vmem:[%s16097_s22 + $0x88] sm:$0xf] %vm199_vm0, %v6239_v30  ;;  %v5979_v55 = vadd.f32 %v16428_v41, %v5942_v61 }
 0x2ee   : >> { %12752 = vst [vmem:[%s16097_s22 + $0x8c] sm:$0x1] %v6453_v44  ;;  %v5803_v35 = vpop.f32.mrf.mxu3 }
 0x2ef   : >> { %v5628_v48 = vpop.f32.mrf.mxu1  ;;  %v6011_v58 = vmax.f32 %v5979_v55, 0.0  ;;  %v5804_v6 = vadd.f32 %v5803_v35, %v5715_v49 }
 0x2f0   : >> { %v5629_v21 = vadd.f32 %v5628_v48, %v18527_v26 }
 0x2f1   : >> { %v6043_v31 = vpack.c.bf16 %v6011_v58, %v6011_v58  ;;  %v5893_v8 = vadd.f32 %v5892_v4, %v5804_v6 }
 0x2f3   : >> { %v6242_v22 = vshrl.u32 %v6043_v31, 16  ;;  %v5943_v11 = vmul.f32 %v16412_v29, %v5893_v8  ;;  %v6245_v37 = vshll.u32 %v6043_v31, 16 }
 0x2f5   : >> { %v6244_v17 = vrot.slane %v6242_v22, 7  ;;  %v5980_v62 = vadd.f32 %v16428_v41, %v5943_v11 }
 0x2f6   : >> { %v5895_v5 = vpop.f32.mrf.mxu0 }
 0x2f7   : >> { %v6247_v24 = vor.u32 %v6245_v37, %v6244_v17  ;;  %v6012_v47 = vmax.f32 %v5980_v62, 0.0  ;;  %v5630_v16 = vpop.f32.mrf.mxu1  ;;  %v6248_v56 = vrot.slane %v6244_v17, 4  ;;  %v18529_v17 = vld [vmem:[#allocation19_spill] sm:$0xff] }
 0x2f8   : >> { %v5717_v50 = vpop.f32.mrf.mxu2  ;;  %v5631_v38 = vadd.f32 %v5630_v16, %v18528_v33  ;;  %v16697_v16 = vld [vmem:[%s15633_s14] ss:$0 sm:$0xff] }
 0x2f9   : >> { %v5718_v43 = vadd.f32 %v5717_v50, %v5629_v21  ;;  %v6456_v39 = vsel %vm14590_vm7, %v6247_v24, %v12753_v18  ;;  %v6044_v0 = vpack.c.bf16 %v6012_v47, %v6012_v47  ;;  %v18530_v47 = vld [vmem:[#allocation23_spill] sm:$0xff] }
 0x2fa   : >> { %12754 = vst [vmem:[%s16097_s22 + $0x90] sm:$0xf] %v6456_v39 }
 0x2fb   : >> { %v5806_v54 = vpop.f32.mrf.mxu3  ;;  %v6250_v40 = vshrl.u32 %v6044_v0, 16  ;;  %v6253_v3 = vshll.u32 %v6044_v0, 16 }
 0x2fc   : >> { %v5807_v42 = vadd.f32 %v5806_v54, %v5718_v43 }
 0x2fd   : >> { %v6252_v28 = vrot.slane %v6250_v40, 7  ;;  %v16701_v40 = vld [vmem:[%s15645_s18] ss:$0 sm:$0xff] }
 0x2fe   : >> { %v5896_v1 = vadd.f32 %v5895_v5, %v5807_v42  ;;  %v5897_v2 = vpop.f32.mrf.mxu0 }
 0x2ff   : >> { %v6255_v36 = vor.u32 %v6253_v3, %v6252_v28  ;;  %v6257_v14 = vrot.slane %v6252_v28, 4 }
 0x300   : >> { %v5719_v13 = vpop.f32.mrf.mxu2  ;;  %v5944_v32 = vmul.f32 %v16412_v29, %v5896_v1 }
 0x301   : >> { %v5720_v60 = vadd.f32 %v5719_v13, %v5631_v38  ;;  %v6256_v59 = vsel %vm14598_vm8, %v6248_v56, %v6255_v36  ;;  %v6460_v10 = vsel %vm14422_vm3, %v6257_v14, %v12756_v34  ;;  %v18531_v56 = vld [vmem:[#allocation26_spill] sm:$0xff] }
 0x302   : >> { %v5981_v45 = vadd.f32 %v16428_v41, %v5944_v32  ;;  %12755 = vst.msk [vmem:[%s16097_s22 + $0x94] sm:$0xf] %vm199_vm0, %v6256_v59 }
 0x303   : >> { %v5808_v25 = vpop.f32.mrf.mxu3  ;;  %12757 = vst [vmem:[%s16097_s22 + $0x98] sm:$0x1] %v6460_v10  ;;  %v12763_v10 = vld [vmem:[%s16097_s22 + $0xa8] sm:$0xf] }
 0x304   : >> { %v6013_v19 = vmax.f32 %v5981_v45, 0.0  ;;  %v5809_v63 = vadd.f32 %v5808_v25, %v5720_v60 }
 0x306   : >> { %v6045_v7 = vpack.c.bf16 %v6013_v19, %v6013_v19  ;;  %v5898_v23 = vadd.f32 %v5897_v2, %v5809_v63 }
 0x307   : >> { %v5633_v61 = vpop.f32.mrf.mxu1 }
 0x308   : >> { %v6259_v15 = vshrl.u32 %v6045_v7, 16  ;;  %v5945_v9 = vmul.f32 %v16412_v29, %v5898_v23  ;;  %v6262_v44 = vshll.u32 %v6045_v7, 16  ;;  %v12761_v29 = vld [vmem:[%s16097_s22 + $0xa4] sm:$0x1]  ;;  %v5634_v37 = vadd.f32 %v5633_v61, %v18529_v17 }
 0x30a   : >> { %v6261_v30 = vrot.slane %v6259_v15, 7  ;;  %v5982_v52 = vadd.f32 %v16428_v41, %v5945_v9 }
 0x30c   : >> { %v6264_v4 = vor.u32 %v6262_v44, %v6261_v30  ;;  %v6014_v49 = vmax.f32 %v5982_v52, 0.0  ;;  %v6265_v8 = vrot.slane %v6261_v30, 4 }
 0x30e   : >> { %v6463_v55 = vsel %vm14590_vm7, %v6264_v4, %v12758_v12  ;;  %v6046_v48 = vpack.c.bf16 %v6014_v49, %v6014_v49  ;;  %v18532_v4 = vld [vmem:[#allocation30_spill] sm:$0xff] }
 0x30f   : >> { %12759 = vst [vmem:[%s16097_s22 + $0x9c] sm:$0xf] %v6463_v55  ;;  %v5635_v21 = vpop.f32.mrf.mxu1 }
 0x310   : >> { %v6267_v58 = vshrl.u32 %v6046_v48, 16  ;;  %v6270_v31 = vshll.u32 %v6046_v48, 16  ;;  %v5636_v42 = vadd.f32 %v5635_v21, %v18530_v47 }
 0x312   : >> { %v6269_v6 = vrot.slane %v6267_v58, 7 }
 0x313   : >> { %v5900_v26 = vpop.f32.mrf.mxu0 }
 0x314   : >> { %v6272_v22 = vor.u32 %v6270_v31, %v6269_v6  ;;  %v6274_v41 = vrot.slane %v6269_v6, 4 }
 0x315   : >> { %v5722_v35 = vpop.f32.mrf.mxu2 }
 0x316   : >> { %v6273_v50 = vsel %vm14598_vm8, %v6265_v8, %v6272_v22  ;;  %v6467_v11 = vsel %vm14422_vm3, %v6274_v41, %v12761_v29  ;;  %v5723_v43 = vadd.f32 %v5722_v35, %v5634_v37  ;;  %v12766_v8 = vld [vmem:[%s16097_s22 + $0xb0] sm:$0x1] }
 0x317   : >> { %12760 = vst.msk [vmem:[%s16097_s22 + $0xa0] sm:$0xf] %vm199_vm0, %v6273_v50 }
 0x318   : >> { %12762 = vst [vmem:[%s16097_s22 + $0xa4] sm:$0x1] %v6467_v11 }
 0x319   : >> { %v5811_v18 = vpop.f32.mrf.mxu3 }
 0x31a   : >> { %v5812_v5 = vadd.f32 %v5811_v18, %v5723_v43 }
 0x31b   : >> { %v5902_v24 = vpop.f32.mrf.mxu0 }
 0x31c   : >> { %v5901_v54 = vadd.f32 %v5900_v26, %v5812_v5 }
 0x31d   : >> { %v5724_v62 = vpop.f32.mrf.mxu2  ;;  %v5638_v0 = vpop.f32.mrf.mxu1 }
 0x31e   : >> { %v5946_v39 = vmul.f32 %v16697_v16, %v5901_v54  ;;  %v5725_v1 = vadd.f32 %v5724_v62, %v5636_v42  ;;  %v5639_v34 = vadd.f32 %v5638_v0, %v18531_v56 }
 0x320   : >> { %v5983_v33 = vadd.f32 %v16701_v40, %v5946_v39 }
 0x321   : >> { %v5813_v38 = vpop.f32.mrf.mxu3 }
 0x322   : >> { %v6015_v13 = vmax.f32 %v5983_v33, 0.0  ;;  %v5814_v28 = vadd.f32 %v5813_v38, %v5725_v1  ;;  %v12768_v1 = vld [vmem:[%s16097_s22 + $0xb4] sm:$0xf] }
 0x324   : >> { %v6047_v3 = vpack.c.bf16 %v6015_v13, %v6015_v13  ;;  %v5903_v60 = vadd.f32 %v5902_v24, %v5814_v28  ;;  %v18533_v24 = vld [vmem:[#allocation33_spill] sm:$0xff] }
 0x325   : >> { %v5727_v32 = vpop.f32.mrf.mxu2  ;;  %v5640_v59 = vpop.f32.mrf.mxu1 }
 0x326   : >> { %v6276_v45 = vshrl.u32 %v6047_v3, 16  ;;  %v5947_v25 = vmul.f32 %v16697_v16, %v5903_v60  ;;  %v5905_v36 = vpop.f32.mrf.mxu0  ;;  %v6279_v19 = vshll.u32 %v6047_v3, 16  ;;  %v5728_v63 = vadd.f32 %v5727_v32, %v5639_v34 }
 0x327   : >> { %v5641_v49 = vadd.f32 %v5640_v59, %v18532_v4  ;;  %v12771_v59 = vld [vmem:[%s16097_s22 + $0xbc] sm:$0x1] }
 0x328   : >> { %v6278_v14 = vrot.slane %v6276_v45, 7  ;;  %v5984_v2 = vadd.f32 %v16701_v40, %v5947_v25 }
 0x32a   : >> { %v6281_v23 = vor.u32 %v6279_v19, %v6278_v14  ;;  %v6016_v15 = vmax.f32 %v5984_v2, 0.0  ;;  %v6282_v29 = vrot.slane %v6278_v14, 4 }
 0x32c   : >> { %v5816_v7 = vpop.f32.mrf.mxu3  ;;  %v6470_v44 = vsel %vm14590_vm7, %v6281_v23, %v12763_v10  ;;  %v6048_v52 = vpack.c.bf16 %v6016_v15, %v6016_v15 }
 0x32d   : >> { %v5729_v9 = vpop.f32.mrf.mxu2  ;;  %v5817_v30 = vadd.f32 %v5816_v7, %v5728_v63  ;;  %12764 = vst [vmem:[%s16097_s22 + $0xa8] sm:$0xf] %v6470_v44  ;;  %v5643_v50 = vpop.f32.mrf.mxu1 }
 0x32e   : >> { %v6284_v61 = vshrl.u32 %v6048_v52, 16  ;;  %v6287_v35 = vshll.u32 %v6048_v52, 16  ;;  %v5730_v58 = vadd.f32 %v5729_v9, %v5641_v49  ;;  %v5907_v31 = vpop.f32.mrf.mxu0  ;;  %v5644_v47 = vadd.f32 %v5643_v50, %v18533_v24 }
 0x32f   : >> { %v5906_v12 = vadd.f32 %v5905_v36, %v5817_v30 }
 0x330   : >> { %v6286_v48 = vrot.slane %v6284_v61, 7 }
 0x331   : >> { %v5948_v55 = vmul.f32 %v16697_v16, %v5906_v12 }
 0x332   : >> { %v6289_v41 = vor.u32 %v6287_v35, %v6286_v48  ;;  %v6291_v26 = vrot.slane %v6286_v48, 4 }
 0x333   : >> { %v5985_v6 = vadd.f32 %v16701_v40, %v5948_v55 }
 0x334   : >> { %v5818_v22 = vpop.f32.mrf.mxu3  ;;  %v6290_v17 = vsel %vm14598_vm8, %v6282_v29, %v6289_v41  ;;  %v6474_v37 = vsel %vm14422_vm3, %v6291_v26, %v12766_v8 }
 0x335   : >> { %v6017_v21 = vmax.f32 %v5985_v6, 0.0  ;;  %v5819_v11 = vadd.f32 %v5818_v22, %v5730_v58  ;;  %v5732_v62 = vpop.f32.mrf.mxu2  ;;  %12765 = vst.msk [vmem:[%s16097_s22 + $0xac] sm:$0xf] %vm199_vm0, %v6290_v17  ;;  %v5645_v56 = vpop.f32.mrf.mxu1 }
 0x336   : >> { %12767 = vst [vmem:[%s16097_s22 + $0xb0] sm:$0x1] %v6474_v37  ;;  %v5733_v33 = vadd.f32 %v5732_v62, %v5644_v47  ;;  %v5910_v32 = vpop.f32.mrf.mxu0  ;;  %v5646_v14 = vadd.f32 %v5645_v56, %v15975_v46 }
 0x337   : >> { %v6049_v43 = vpack.c.bf16 %v6017_v21, %v6017_v21  ;;  %v5908_v18 = vadd.f32 %v5907_v31, %v5819_v11  ;;  %v12773_v31 = vld [vmem:[%s16097_s22 + $0xc0] sm:$0xf]  ;;  %v12776_v11 = vld [vmem:[%s16097_s22 + $0xc8] sm:$0x1] }
 0x339   : >> { %v6293_v5 = vshrl.u32 %v6049_v43, 16  ;;  %v5949_v54 = vmul.f32 %v16697_v16, %v5908_v18  ;;  %v6296_v39 = vshll.u32 %v6049_v43, 16 }
 0x33b   : >> { %v6295_v42 = vrot.slane %v6293_v5, 7  ;;  %v5986_v0 = vadd.f32 %v16701_v40, %v5949_v54 }
 0x33d   : >> { %v6298_v38 = vor.u32 %v6296_v39, %v6295_v42  ;;  %v6018_v13 = vmax.f32 %v5986_v0, 0.0  ;;  %v5734_v36 = vpop.f32.mrf.mxu2  ;;  %v6299_v23 = vrot.slane %v6295_v42, 4 }
 0x33e   : >> { %v5735_v10 = vadd.f32 %v5734_v36, %v5646_v14  ;;  %v5912_v61 = vpop.f32.mrf.mxu0 }
 0x33f   : >> { %v6477_v60 = vsel %vm14590_vm7, %v6298_v38, %v12768_v1  ;;  %v6050_v45 = vpack.c.bf16 %v6018_v13, %v6018_v13 }
 0x340   : >> { %12769 = vst [vmem:[%s16097_s22 + $0xb4] sm:$0xf] %v6477_v60 }
 0x341   : >> { %v5821_v28 = vpop.f32.mrf.mxu3  ;;  %v6301_v25 = vshrl.u32 %v6050_v45, 16  ;;  %v6304_v2 = vshll.u32 %v6050_v45, 16 }
 0x342   : >> { %v5822_v3 = vadd.f32 %v5821_v28, %v5733_v33 }
 0x343   : >> { %v6303_v63 = vrot.slane %v6301_v25, 7 }
 0x344   : >> { %v5911_v34 = vadd.f32 %v5910_v32, %v5822_v3 }
 0x345   : >> { %v6306_v15 = vor.u32 %v6304_v2, %v6303_v63  ;;  %v6308_v9 = vrot.slane %v6303_v63, 4 }
 0x346   : >> { %v5950_v19 = vmul.f32 %v16697_v16, %v5911_v34 }
 0x347   : >> { %v6307_v46 = vsel %vm14598_vm8, %v6299_v23, %v6306_v15  ;;  %v6481_v12 = vsel %vm14422_vm3, %v6308_v9, %v12771_v59 }
 0x348   : >> { %v5987_v7 = vadd.f32 %v16701_v40, %v5950_v19  ;;  %12770 = vst.msk [vmem:[%s16097_s22 + $0xb8] sm:$0xf] %vm199_vm0, %v6307_v46 }
 0x349   : >> { %v5823_v30 = vpop.f32.mrf.mxu3  ;;  %12772 = vst [vmem:[%s16097_s22 + $0xbc] sm:$0x1] %v6481_v12 }
 0x34a   : >> { %v6019_v44 = vmax.f32 %v5987_v7, 0.0  ;;  %v5824_v52 = vadd.f32 %v5823_v30, %v5735_v10 }
 0x34c   : >> { %v6051_v4 = vpack.c.bf16 %v6019_v44, %v6019_v44  ;;  %v5913_v49 = vadd.f32 %v5912_v61, %v5824_v52 }
 0x34e   : >> { %v6310_v55 = vshrl.u32 %v6051_v4, 16  ;;  %v5951_v48 = vmul.f32 %v16697_v16, %v5913_v49  ;;  %v6313_v58 = vshll.u32 %v6051_v4, 16 }
 0x350   : >> { %v6312_v35 = vrot.slane %v6310_v55, 7  ;;  %v5988_v6 = vadd.f32 %v16701_v40, %v5951_v48 }
 0x352   : >> { %v6315_v29 = vor.u32 %v6313_v58, %v6312_v35  ;;  %v6020_v8 = vmax.f32 %v5988_v6, 0.0  ;;  %v6316_v17 = vrot.slane %v6312_v35, 4 }
 0x354   : >> { %v6484_v22 = vsel %vm14590_vm7, %v6315_v29, %v12773_v31  ;;  %v6052_v41 = vpack.c.bf16 %v6020_v8, %v6020_v8 }
 0x355   : >> { %12774 = vst [vmem:[%s16097_s22 + $0xc0] sm:$0xf] %v6484_v22 }
 0x356   : >> { %v6318_v26 = vshrl.u32 %v6052_v41, 16  ;;  %v6321_v50 = vshll.u32 %v6052_v41, 16 }
 0x358   : >> { %v6320_v21 = vrot.slane %v6318_v26, 7 }
 0x35a   : >> { %v6323_v16 = vor.u32 %v6321_v50, %v6320_v21  ;;  %v6325_v37 = vrot.slane %v6320_v21, 4  ;;  %908 = sbr.rel (!%p906_p6) target bundleno = 147 (0x93), region = 86 }
 0x35c   : >> { %v6324_v40 = vsel %vm14598_vm8, %v6316_v17, %v6323_v16  ;;  %v6488_v43 = vsel %vm14422_vm3, %v6325_v37, %v12776_v11 }
 0x35d   : >> { %12775 = vst.msk [vmem:[%s16097_s22 + $0xc4] sm:$0xf] %vm199_vm0, %v6324_v40 }
 0x35e   : >> { %12777 = vst [vmem:[%s16097_s22 + $0xc8] sm:$0x1] %v6488_v43 }
 0x365   : > { %v16757_v62 = vld [vmem:[#allocation2 + $0x60] sm:$0xff]  ;;  %v6530_v18 = vld [vmem:[#allocation2 + $0x68] sm:$0x1]  ;;  %v16759_v5 = vld [vmem:[#allocation2 + $0x30] sm:$0xff] }
 0x366   : > { %v6642_v54 = vunpack.c.l.b16 %v6530_v18  ;;  %v6526_v24 = vld [vmem:[#allocation2 + $0x38] sm:$0x1]  ;;  %v13910_v47 = vld [vmem:[#allocation2 + $0x90] sm:$0xff]  ;;  %v6764_v39 = vshrl.u32 %v16757_v62, 16  ;;  %v6766_v0 = vshll.u32 %v16757_v62, 16  ;;  %v6716_v33 = vshrl.u32 %v16759_v5, 16 }
 0x367   : > { %v6534_v42 = vld [vmem:[#allocation2 + $0x98] sm:$0x1]  ;;  %v6638_v1 = vunpack.c.l.b16 %v6526_v24  ;;  %v6522_v38 = vld [vmem:[#allocation2 + $0x8] sm:$0x1]  ;;  %v6718_v32 = vshll.u32 %v16759_v5, 16  ;;  %v6812_v57 = vshrl.u32 %v13910_v47, 16 }
 0x368   : > { %v6658_v13 = vpack.c.b16 %v6642_v54, %v6642_v54  ;;  %v6646_v51 = vunpack.c.l.b16 %v6534_v42  ;;  %v13898_v20 = vld [vmem:[#allocation2] sm:$0xff]  ;;  %v6768_v28 = vrot.slane %v6766_v0, 1  ;;  %v6814_v60 = vshll.u32 %v13910_v47, 16  ;;  %v13899_v30 = vld [vmem:[#allocation2 + $0xc] sm:$0xff]  ;;  %v6523_v44 = vld [vmem:[#allocation2 + $0x14] sm:$0x1] }
 0x369   : > { %v6654_v3 = vpack.c.b16 %v6638_v1, %v6638_v1  ;;  %v6634_v45 = vunpack.c.l.b16 %v6522_v38  ;;  %v6720_v34 = vrot.slane %v6718_v32, 1  ;;  %v6668_v36 = vshrl.u32 %v13898_v20, 16  ;;  %v6527_v14 = vld [vmem:[#allocation2 + $0x44] sm:$0x1]  ;;  %v13903_v10 = vld [vmem:[#allocation2 + $0x3c] sm:$0xff]  ;;  %v16769_v21 = vld [vmem:[#allocation2 + $0x48] sm:$0xff] }
 0x36a   : > { %v6771_v56 = vshll.u32 %v6658_v13, 16  ;;  %v6662_v25 = vpack.c.b16 %v6646_v51, %v6646_v51  ;;  %v6769_v19 = vor.u32 %v6768_v28, %v6764_v39  ;;  %v6816_v2 = vrot.slane %v6814_v60, 1  ;;  %v6528_v22 = vld [vmem:[#allocation2 + $0x50] sm:$0x1]  ;;  %v13912_v17 = vld [vmem:[#allocation2 + $0xa8] sm:$0xff] }
 0x36b   : > { %v6723_v63 = vshll.u32 %v6654_v3, 16  ;;  %v6650_v59 = vpack.c.b16 %v6634_v45, %v6634_v45  ;;  %v6721_v23 = vor.u32 %v6720_v34, %v6716_v33  ;;  %v6670_v9 = vshll.u32 %v13898_v20, 16  ;;  %v6536_v41 = vld [vmem:[#allocation2 + $0xb0] sm:$0x1]  ;;  %v6531_v37 = vld [vmem:[#allocation2 + $0x74] sm:$0x1] }
 0x36c   : > { %v6773_v7 = vrot.slane %v6771_v56, 1  ;;  %v6819_v15 = vshll.u32 %v6662_v25, 16  ;;  %v6639_v12 = vunpack.c.l.b16 %v6527_v14  ;;  %v6817_v55 = vor.u32 %v6816_v2, %v6812_v57  ;;  %v16772_v16 = vld [vmem:[#allocation2 + $0x6c] sm:$0xff]  ;;  %v6537_v25 = vld [vmem:[#allocation2 + $0xbc] sm:$0x1] }
 0x36d   : > { %v6725_v52 = vrot.slane %v6723_v63, 1  ;;  %v6675_v46 = vshll.u32 %v6650_v59, 16  ;;  %v6672_v4 = vrot.slane %v6670_v9, 1  ;;  %v6730_v58 = vshll.u32 %v13903_v10, 16  ;;  %v6533_v33 = vld [vmem:[#allocation2 + $0x8c] sm:$0x1] }
 0x36e   : > { %v6774_v61 = vsel %vm1101_vm9, %v6769_v19, %v6773_v7  ;;  %v6821_v48 = vrot.slane %v6819_v15, 1  ;;  %v6655_v35 = vpack.c.b16 %v6639_v12, %v6639_v12  ;;  %v6635_v6 = vunpack.c.l.b16 %v6523_v44  ;;  %v13909_v19 = vld [vmem:[#allocation2 + $0x84] sm:$0xff]  ;;  %v16781_v63 = vld [vmem:[#allocation2 + $0x9c] sm:$0xff]  ;;  %v13913_v44 = vld [vmem:[#allocation2 + $0xb4] sm:$0xff] }
 0x36f   : > { %6875 = vrot.lane.b32.xlu0 %v6774_v61, %s14371_s23  ;;  %v6726_v49 = vsel %vm1101_vm9, %v6721_v23, %v6725_v52  ;;  %v6673_v31 = vor.u32 %v6672_v4, %v6668_v36  ;;  %v6677_v29 = vrot.slane %v6675_v46, 1  ;;  %v6682_v8 = vshll.u32 %v13899_v30, 16  ;;  %v6535_v2 = vld [vmem:[#allocation2 + $0xa4] sm:$0x1]  ;;  %v16784_v46 = vld [vmem:[#allocation2 + $0x10] sm:$0xf] }
 0x370   : > { %6867 = vrot.lane.b32.xlu1 %v6726_v49, %s14371_s23  ;;  %v6651_v26 = vpack.c.b16 %v6635_v6, %v6635_v6  ;;  %v6822_v50 = vsel %vm1101_vm9, %v6817_v55, %v6821_v48  ;;  %v6728_v11 = vshrl.u32 %v13903_v10, 16  ;;  %v6732_v40 = vrot.slane %v6730_v58, 1  ;;  %v7839_v55 = vld [vmem:[#allocation2 + $0xc] sm:$0xe] }
 0x371   : > { %v6735_v43 = vshll.u32 %v6655_v35, 16  ;;  %v6640_v18 = vunpack.c.l.b16 %v6528_v22  ;;  %v6648_v54 = vunpack.c.l.b16 %v6536_v41  ;;  %v6678_v24 = vsel %vm1101_vm9, %v6673_v31, %v6677_v29 }
 0x372   : > { %v6680_v47 = vshrl.u32 %v13899_v30, 16  ;;  %v6684_v42 = vrot.slane %v6682_v8, 1  ;;  %v6687_v39 = vshll.u32 %v6651_v26, 16  ;;  %v6742_v0 = vshll.u32 %v16769_v21, 16 }
 0x373   : > { %v6643_v1 = vunpack.c.l.b16 %v6531_v37  ;;  %v6664_v38 = vpack.c.b16 %v6648_v54, %v6648_v54  ;;  %v6838_v13 = vshll.u32 %v13912_v17, 16  ;;  %v6776_v32 = vshrl.u32 %v16772_v16, 16 }
 0x374   : > { %v6778_v51 = vshll.u32 %v16772_v16, 16  ;;  %v6733_v57 = vor.u32 %v6732_v40, %v6728_v11  ;;  %v6737_v20 = vrot.slane %v6735_v43, 1  ;;  %v6656_v28 = vpack.c.b16 %v6640_v18, %v6640_v18 }
 0x375   : > { %v6659_v3 = vpack.c.b16 %v6643_v1, %v6643_v1  ;;  %v6685_v60 = vor.u32 %v6684_v42, %v6680_v47  ;;  %v6689_v45 = vrot.slane %v6687_v39, 1  ;;  %v6645_v34 = vunpack.c.l.b16 %v6533_v33  ;;  %v6525_v42 = vld [vmem:[#allocation2 + $0x2c] sm:$0x1]  ;;  %v16794_v39 = vld [vmem:[#allocation2 + $0x78] sm:$0xff] }
 0x376   : > { %v6780_v56 = vrot.slane %v6778_v51, 1  ;;  %v6740_v36 = vshrl.u32 %v16769_v21, 16  ;;  %v6836_v59 = vshrl.u32 %v13912_v17, 16  ;;  %v6840_v10 = vrot.slane %v6838_v13, 1  ;;  %v6532_v17 = vld [vmem:[#allocation2 + $0x80] sm:$0x1] }
 0x377   : > { %6883 = vrot.lane.b32.xlu0 %v6822_v50, %s14371_s23  ;;  %v6783_v14 = vshll.u32 %v6659_v3, 16  ;;  %v6843_v7 = vshll.u32 %v6664_v38, 16  ;;  %v6738_v15 = vsel %vm1101_vm9, %v6733_v57, %v6737_v20  ;;  %v6744_v9 = vrot.slane %v6742_v0, 1  ;;  %v7793_v50 = vld [vmem:[#allocation2 + $0x14] sm:$0x1]  ;;  %v13901_v20 = vld [vmem:[#allocation2 + $0x24] sm:$0xff] }
 0x378   : > { %6859 = vrot.lane.b32.xlu1 %v6678_v24, %s14371_s23  ;;  %v6781_v23 = vor.u32 %v6780_v56, %v6776_v32  ;;  %v6649_v52 = vunpack.c.l.b16 %v6537_v25  ;;  %v6690_v12 = vsel %vm1101_vm9, %v6685_v60, %v6689_v45  ;;  %v6747_v61 = vshll.u32 %v6656_v28, 16 }
 0x379   : > { %v6785_v30 = vrot.slane %v6783_v14, 1  ;;  %v6661_v4 = vpack.c.b16 %v6645_v34, %v6645_v34  ;;  %v6647_v49 = vunpack.c.l.b16 %v6535_v2  ;;  %v6802_v35 = vshll.u32 %v13909_v19, 16  ;;  %v6524_v14 = vld [vmem:[#allocation2 + $0x20] sm:$0x1] }
 0x37a   : > { %v6824_v58 = vshrl.u32 %v16781_v63, 16  ;;  %v6826_v6 = vshll.u32 %v16781_v63, 16  ;;  %v6841_v31 = vor.u32 %v6840_v10, %v6836_v59  ;;  %v6845_v29 = vrot.slane %v6843_v7, 1  ;;  %v16807_v10 = vld [vmem:[#allocation2 + $0x18] sm:$0xff] }
 0x37b   : > { %v6786_v48 = vsel %vm1101_vm9, %v6781_v23, %v6785_v30  ;;  %v6663_v8 = vpack.c.b16 %v6647_v49, %v6647_v49  ;;  %v7904_v22 = vunpack.c.l.b16 %v16784_v46  ;;  %v6665_v41 = vpack.c.b16 %v6649_v52, %v6649_v52  ;;  %v13072_v46 = vld [vmem:[#allocation2 + $0x54] sm:$0xe] }
 0x37c   : > { %6877 = vrot.lane.b32.xlu2 %v6786_v48, %s14371_s23  ;;  %v6850_v26 = vshll.u32 %v13913_v44, 16  ;;  %v6828_v21 = vrot.slane %v6826_v6, 1  ;;  %v7999_v11 = vunpack.c.l.b16 %v7839_v55  ;;  %v6745_v37 = vor.u32 %v6744_v9, %v6740_v36  ;;  %v9011_v55 = vld [vmem:[#allocation2 + $0x20] sm:$0x1] }
 0x37d   : > { %v6749_v40 = vrot.slane %v6747_v61, 1  ;;  %v6831_v43 = vshll.u32 %v6663_v8, 16  ;;  %v6800_v18 = vshrl.u32 %v13909_v19, 16  ;;  %v6804_v54 = vrot.slane %v6802_v35, 1 }
 0x37e   : > { %v6807_v24 = vshll.u32 %v6661_v4, 16  ;;  %v6829_v47 = vor.u32 %v6828_v21, %v6824_v58  ;;  %v7905_v1 = vunpack.c.l.b16 %v7793_v50  ;;  %v8015_v33 = vpack.c.b16 %v7904_v22, %v7999_v11  ;;  %v16816_v21 = vld [vmem:[#allocation2 + $0x54] sm:$0xff] }
 0x37f   : > { %6869 = vrot.lane.b32.xlu0 %v6738_v15, %s14371_s23  ;;  %v6833_v0 = vrot.slane %v6831_v43, 1  ;;  %v6644_v38 = vunpack.c.l.b16 %v6532_v17  ;;  %v6846_v13 = vsel %vm1101_vm9, %v6841_v31, %v6845_v29  ;;  %v6848_v32 = vshrl.u32 %v13913_v44, 16  ;;  %v6529_v31 = vld [vmem:[#allocation2 + $0x5c] sm:$0x1] }
 0x380   : > { %6861 = vrot.lane.b32.xlu1 %v6690_v12, %s14371_s23  ;;  %v6852_v51 = vrot.slane %v6850_v26, 1  ;;  %v6855_v57 = vshll.u32 %v6665_v41, 16  ;;  %v6750_v28 = vsel %vm1101_vm9, %v6745_v37, %v6749_v40  ;;  %v6637_v60 = vunpack.c.l.b16 %v6525_v42  ;;  %v13946_v11 = vld [vmem:[#allocation2 + $0x18] sm:$0xff] }
 0x381   : > { %v6834_v3 = vsel %vm1101_vm9, %v6829_v47, %v6833_v0  ;;  %v6660_v45 = vpack.c.b16 %v6644_v38, %v6644_v38  ;;  %v6805_v56 = vor.u32 %v6804_v54, %v6800_v18  ;;  %v6809_v34 = vrot.slane %v6807_v24, 1  ;;  %v14202_v24 = vld [vmem:[#allocation2 + $0x18] sm:$0xf0]  ;;  %v7796_v0 = vld [vmem:[#allocation2 + $0x20] sm:$0x1] }
 0x382   : > { %v6788_v25 = vshrl.u32 %v16794_v39, 16  ;;  %v6790_v36 = vshll.u32 %v16794_v39, 16  ;;  %v16805_v19 = vpack.c.b16 %v7905_v1, %v7905_v1  ;;  %v8034_v2 = vshll.u32 %v8015_v33, 16  ;;  %v14203_v1 = vld [vmem:[#allocation2 + $0x18] sm:$0xe] }
 0x383   : > { %v6795_v59 = vshll.u32 %v6660_v45, 16  ;;  %v6853_v7 = vor.u32 %v6852_v51, %v6848_v32  ;;  %v6857_v23 = vrot.slane %v6855_v57, 1  ;;  %v6706_v15 = vshll.u32 %v13901_v20, 16 }
 0x384   : > { %6885 = vrot.lane.b32.xlu2 %v6834_v3, %s14371_s23  ;;  %v6792_v9 = vrot.slane %v6790_v36, 1  ;;  %v6653_v30 = vpack.c.b16 %v6637_v60, %v6637_v60  ;;  %v6636_v52 = vunpack.c.l.b16 %v6524_v14  ;;  %v6810_v12 = vsel %vm1101_vm9, %v6805_v56, %v6809_v34 }
 0x385   : > { %v6797_v44 = vrot.slane %v6795_v59, 1  ;;  %v8032_v61 = vshrl.u32 %v8015_v33, 16  ;;  %v6704_v4 = vshrl.u32 %v13901_v20, 16  ;;  %v8036_v48 = vrot.slane %v8034_v2, 1  ;;  %v13930_v59 = vld [vmem:[#allocation2 + $0xc] sm:$0xff] }
 0x386   : > { %v6793_v49 = vor.u32 %v6792_v9, %v6788_v25  ;;  %v8039_v35 = vshll.u32 %v16805_v19, 16  ;;  %v6652_v58 = vpack.c.b16 %v6636_v52, %v6636_v52  ;;  %v6694_v6 = vshll.u32 %v16807_v10, 16  ;;  %v9012_v52 = vld [vmem:[#allocation2 + $0x2c] sm:$0x1] }
 0x387   : > { %6887 = vrot.lane.b32.xlu0 %v6846_v13, %s14371_s23  ;;  %v6858_v29 = vsel %vm1101_vm9, %v6853_v7, %v6857_v23  ;;  %v6708_v8 = vrot.slane %v6706_v15, 1  ;;  %v6692_v26 = vshrl.u32 %v16807_v10, 16  ;;  %v6711_v50 = vshll.u32 %v6653_v30, 16 }
 0x388   : > { %6871 = vrot.lane.b32.xlu1 %v6750_v28, %s14371_s23  ;;  %v6798_v41 = vsel %vm1101_vm9, %v6793_v49, %v6797_v44  ;;  %v9123_v17 = vunpack.c.l.b16 %v9011_v55  ;;  %v6696_v37 = vrot.slane %v6694_v6, 1  ;;  %v6699_v40 = vshll.u32 %v6652_v58, 16  ;;  %v9557_v55 = vld [vmem:[#allocation2 + $0x20] sm:$0x1]  ;;  %v13947_v58 = vld [vmem:[#allocation2 + $0x24] sm:$0xff] }
 0x389   : > { %v6641_v43 = vunpack.c.l.b16 %v6529_v31  ;;  %v8037_v18 = vor.u32 %v8036_v48, %v8032_v61  ;;  %v8041_v54 = vrot.slane %v8039_v35, 1  ;;  %v6754_v38 = vshll.u32 %v16816_v21, 16  ;;  %v16834_v31 = vld [vmem:[#allocation2 + $0x28] sm:$0xf] }
 0x38a   : > { %v6697_v47 = vor.u32 %v6696_v37, %v6692_v26  ;;  %v6701_v42 = vrot.slane %v6699_v40, 1  ;;  %v6709_v13 = vor.u32 %v6708_v8, %v6704_v4  ;;  %v6713_v32 = vrot.slane %v6711_v50, 1 }
 0x38b   : > { %v6657_v33 = vpack.c.b16 %v6641_v43, %v6641_v43  ;;  %v9139_v51 = vpack.c.b16 %v9123_v17, %v9123_v17  ;;  %v9158_v57 = vshll.u32 %v13946_v11, 16  ;;  %v8042_v20 = vsel %vm1101_vm9, %v8037_v18, %v8041_v54  ;;  %v14065_v17 = vld [vmem:[%s18386_s1 + $0x1438] sm:$0xff]  ;;  %v7799_v43 = vld [vmem:[#allocation2 + $0x2c] sm:$0x1] }
 0x38c   : > { %6879 = vrot.lane.b32.xlu2 %v6798_v41, %s14371_s23  ;;  %v7908_v28 = vunpack.c.l.b16 %v7796_v0  ;;  %v14204_v3 = vor.u32 %v14203_v1, %v14202_v24  ;;  %v6702_v60 = vsel %vm1101_vm9, %v6697_v47, %v6701_v42  ;;  %v6752_v45 = vshrl.u32 %v16816_v21, 16  ;;  %14250 = vmatpush.bf16.msra.mxu1 %v14065_v17 }
 0x38d   : > { %v6756_v56 = vrot.slane %v6754_v38, 1  ;;  %v6759_v34 = vshll.u32 %v6657_v33, 16  ;;  %v6714_v25 = vsel %vm1101_vm9, %v6709_v13, %v6713_v32  ;;  %v9156_v36 = vshrl.u32 %v13946_v11, 16  ;;  %14251 = vmatpush.bf16.msra.mxu2 %v14065_v17  ;;  %11028 = vmatpush.bf16.msra.mxu0 %v14065_v17  ;;  %v13931_v38 = vld [vmem:[#allocation2 + $0x18] sm:$0xff] }
 0x38e   : > { %v9160_v14 = vrot.slane %v9158_v57, 1  ;;  %v9163_v2 = vshll.u32 %v9139_v51, 16  ;;  %v16829_v7 = vpack.c.b16 %v7908_v28, %v7908_v28  ;;  %v8048_v23 = vshll.u32 %v14204_v3, 16  ;;  %14252 = vmatpush.bf16.msra.mxu3 %v14065_v17  ;;  %v13052_v51 = vld [vmem:[#allocation2 + $0x18] sm:$0xe] }
 0x38f   : > { %6881 = vrot.lane.b32.xlu0 %v6810_v12, %s14371_s23  ;;  %v6757_v15 = vor.u32 %v6756_v56, %v6752_v45  ;;  %v6761_v9 = vrot.slane %v6759_v34, 1  ;;  %v7356_v12 = vrot.slane %v13930_v59, 7  ;;  %v8046_v61 = vshrl.u32 %v14204_v3, 16  ;;  %v13962_v57 = vld [vmem:[#allocation2 + $0x18] sm:$0xf0]  ;;  %v14063_v45 = vld [vmem:[%s18386_s1 + $0x1428] sm:$0xff] }
 0x390   : > { %6889 = vrot.lane.b32.xlu1 %v6858_v29, %s14371_s23  ;;  %v9161_v30 = vor.u32 %v9160_v14, %v9156_v36  ;;  %v9165_v44 = vrot.slane %v9163_v2, 1  ;;  %v8050_v4 = vrot.slane %v8048_v23, 1  ;;  %v8053_v49 = vshll.u32 %v16829_v7, 16  ;;  %v7841_v29 = vld [vmem:[#allocation2 + $0x24] sm:$0xe]  ;;  %v13948_v23 = vld [vmem:[#allocation2 + $0x30] sm:$0xff] }
 0x391   : > { %v6762_v48 = vsel %vm1101_vm9, %v6757_v15, %v6761_v9  ;;  %v9124_v6 = vunpack.c.l.b16 %v9012_v52  ;;  %v9653_v8 = vunpack.c.l.b16 %v9557_v55  ;;  %v18415_v50 = vunpack.c.l.b16 %v16834_v31  ;;  %v9560_v59 = vld [vmem:[#allocation2 + $0x2c] sm:$0x1]  ;;  %v14205_v52 = vld [vmem:[#allocation2 + $0x30] sm:$0xf0]  ;;  %v14206_v55 = vld [vmem:[#allocation2 + $0x30] sm:$0xe] }
 0x392   : > { %v9166_v35 = vsel %vm1101_vm9, %v9161_v30, %v9165_v44  ;;  %v8051_v41 = vor.u32 %v8050_v4, %v8046_v61  ;;  %v8055_v26 = vrot.slane %v8053_v49, 1  ;;  %v8001_v11 = vunpack.c.l.b16 %v7841_v29  ;;  %v7802_v49 = vld [vmem:[#allocation2 + $0x38] sm:$0x1] }
 0x393   : > { %v9140_v37 = vpack.c.b16 %v9124_v6, %v9124_v6  ;;  %v9170_v40 = vshll.u32 %v13947_v58, 16  ;;  %v8043_v18 = vshrl.u32 %v16805_v19, 16  ;;  %v16845_v24 = vpack.c.b16 %v9653_v8, %v9653_v8 }
 0x394   : > { %6863 = vrot.lane.b32.xlu2 %v6702_v60, %s14371_s23  ;;  %v8056_v54 = vsel %vm1101_vm9, %v8051_v41, %v8055_v26  ;;  %v7911_v47 = vunpack.c.l.b16 %v7799_v43  ;;  %v8017_v42 = vpack.c.b16 %v18415_v50, %v8001_v11  ;;  %v9168_v0 = vshrl.u32 %v13947_v58, 16  ;;  %v9013_v60 = vld [vmem:[#allocation2 + $0x38] sm:$0x1]  ;;  %v13932_v11 = vld [vmem:[#allocation2 + $0x24] sm:$0xff] }
 0x395   : > { %v9172_v1 = vrot.slane %v9170_v40, 1  ;;  %v9175_v33 = vshll.u32 %v9140_v37, 16  ;;  %v7357_v56 = vrot.slane %v13931_v38, 7  ;;  %v16861_v34 = vor.u32 %v13962_v57, %v13052_v51  ;;  %v13056_v40 = vld [vmem:[#allocation2 + $0x24] sm:$0xe] }
 0x396   : > { %v16853_v13 = vpack.c.b16 %v7911_v47, %v7911_v47  ;;  %v8062_v32 = vshll.u32 %v8017_v42, 16  ;;  %v9125_v15 = vunpack.c.l.b16 %v9013_v60  ;;  %v9656_v44 = vunpack.c.l.b16 %v9560_v59  ;;  %v13963_v43 = vld [vmem:[#allocation2 + $0x24] sm:$0xf0]  ;;  %v9014_v47 = vld [vmem:[#allocation2 + $0x44] sm:$0x1] }
 0x397   : > { %8255 = vrot.lane.b32.xlu0 %v8042_v20, %s14371_s23  ;;  %v14064_v20 = vld [vmem:[%s18386_s1 + $0x1430] sm:$0xff]  ;;  %v9173_v28 = vor.u32 %v9172_v1, %v9168_v0  ;;  %v9177_v3 = vrot.slane %v9175_v33, 1  ;;  %v9182_v4 = vshll.u32 %v13948_v23, 16  ;;  %v7914_v6 = vunpack.c.l.b16 %v7802_v49  ;;  %v7843_v51 = vld [vmem:[#allocation2 + $0x3c] sm:$0xe] }
 0x398   : > { %6865 = vrot.lane.b32.xlu1 %v6714_v25, %s14371_s23  ;;  %14253 = vmatpush.bf16.msra.mxu1 %v14064_v20  ;;  %v8060_v25 = vshrl.u32 %v8017_v42, 16  ;;  %v8064_v36 = vrot.slane %v8062_v32, 1  ;;  %v8067_v14 = vshll.u32 %v16853_v13, 16  ;;  %v9141_v61 = vpack.c.b16 %v9125_v15, %v9125_v15  ;;  %v16885_v32 = vld [vmem:[#allocation2 + $0x40] sm:$0xf]  ;;  %v13933_v49 = vld [vmem:[#allocation2 + $0x30] sm:$0xff] }
 0x399   : > { %14254 = vmatpush.bf16.msra.mxu2 %v14064_v20  ;;  %11029 = vmatpush.bf16.msra.mxu0 %v14064_v20  ;;  %v9178_v2 = vsel %vm1101_vm9, %v9173_v28, %v9177_v3  ;;  %v16874_v58 = vpack.c.b16 %v9656_v44, %v9656_v44  ;;  %v14207_v29 = vor.u32 %v14206_v55, %v14205_v52  ;;  %v9180_v8 = vshrl.u32 %v13948_v23, 16  ;;  %v13949_v28 = vld [vmem:[#allocation2 + $0x3c] sm:$0xff]  ;;  %v7805_v59 = vld [vmem:[#allocation2 + $0x44] sm:$0x1] }
 0x39a   : > { %14255 = vmatpush.bf16.msra.mxu3 %v14064_v20  ;;  %v8065_v9 = vor.u32 %v8064_v36, %v8060_v25  ;;  %v8069_v30 = vrot.slane %v8067_v14, 1  ;;  %v9184_v41 = vrot.slane %v9182_v4, 1  ;;  %v9187_v26 = vshll.u32 %v9141_v61, 16  ;;  %v9563_v20 = vld [vmem:[#allocation2 + $0x38] sm:$0x1] }
 0x39b   : > { %v16880_v17 = vpack.c.b16 %v7914_v6, %v7914_v6  ;;  %v8076_v37 = vshll.u32 %v14207_v29, 16  ;;  %v7358_v42 = vrot.slane %v13932_v11, 7  ;;  %v8074_v0 = vshrl.u32 %v14207_v29, 16  ;;  %v14061_v23 = vld [vmem:[%s18386_s1 + $0x1418] sm:$0xff]  ;;  %v9015_v6 = vld [vmem:[#allocation2 + $0x50] sm:$0x1] }
 0x39c   : > { %6873 = vrot.lane.b32.xlu2 %v6762_v48, %s14371_s23  ;;  %14256 = vmatpush.bf16.msra.mxu1 %v14063_v45  ;;  %v8057_v48 = vshrl.u32 %v16829_v7, 16  ;;  %v16882_v1 = vor.u32 %v13963_v43, %v13056_v40  ;;  %v9126_v3 = vunpack.c.l.b16 %v9014_v47  ;;  %v18414_v60 = vunpack.c.l.b16 %v16885_v32  ;;  %v13964_v11 = vld [vmem:[#allocation2 + $0x30] sm:$0xf0]  ;;  %v14059_v43 = vld [vmem:[%s18386_s1 + $0x1408] sm:$0xff] }
 0x39d   : > { %14257 = vmatpush.bf16.msra.mxu2 %v14063_v45  ;;  %11030 = vmatpush.bf16.msra.mxu0 %v14063_v45  ;;  %v8078_v33 = vrot.slane %v8076_v37, 1  ;;  %v8081_v38 = vshll.u32 %v16880_v17, 16  ;;  %v9659_v36 = vunpack.c.l.b16 %v9563_v20  ;;  %v7917_v52 = vunpack.c.l.b16 %v7805_v59 }
 0x39e   : > { %14258 = vmatpush.bf16.msra.mxu3 %v14063_v45  ;;  %v8003_v45 = vunpack.c.l.b16 %v7843_v51  ;;  %v9142_v14 = vpack.c.b16 %v9126_v3, %v9126_v3  ;;  %v9127_v47 = vunpack.c.l.b16 %v9015_v6  ;;  %v7808_v51 = vld [vmem:[#allocation2 + $0x50] sm:$0x1] }
 0x39f   : > { %7372 = vrot.lane.b32.xlu0 %v7356_v12, %s14371_s23  ;;  %v14062_v12 = vld [vmem:[%s18386_s1 + $0x1420] sm:$0xff]  ;;  %v8083_v25 = vrot.slane %v8081_v38, 1  ;;  %v16900_v44 = vpack.c.b16 %v9659_v36, %v9659_v36  ;;  %v14208_v38 = vld [vmem:[#allocation2 + $0x48] sm:$0xf0]  ;;  %v7920_v36 = vunpack.c.l.b16 %v7808_v51 }
 0x3a0   : > { %9347 = vrot.lane.b32.xlu1 %v9166_v35, %s14371_s23  ;;  %14259 = vmatpush.bf16.msra.mxu1 %v14062_v12  ;;  %v8070_v35 = vsel %vm1101_vm9, %v8065_v9, %v8069_v30  ;;  %v8019_v15 = vpack.c.b16 %v18414_v60, %v8003_v45  ;;  %v8071_v9 = vshrl.u32 %v16853_v13, 16  ;;  %v9199_v4 = vshll.u32 %v9142_v14, 16  ;;  %v14058_v45 = vld [vmem:[%s18386_s1 + $0x1400] sm:$0xff] }
 0x3a1   : > { %14260 = vmatpush.bf16.msra.mxu2 %v14062_v12  ;;  %11031 = vmatpush.bf16.msra.mxu0 %v14062_v12 }
 0x3a2   : > { %14261 = vmatpush.bf16.msra.mxu3 %v14062_v12  ;;  %v9192_v12 = vshrl.u32 %v13949_v28, 16  ;;  %v8090_v55 = vshll.u32 %v8019_v15, 16  ;;  %v8088_v37 = vshrl.u32 %v8019_v15, 16  ;;  %v8085_v15 = vshrl.u32 %v16880_v17, 16 }
 0x3a4   : > { %8257 = vrot.lane.b32.xlu2 %v8043_v18, %s14371_s23  ;;  %v9185_v18 = vor.u32 %v9184_v41, %v9180_v8  ;;  %14262 = vmatpush.bf16.msra.mxu1 %v14061_v23  ;;  %v9201_v8 = vrot.slane %v9199_v4, 1  ;;  %v7359_v41 = vrot.slane %v13933_v49, 7  ;;  %v8092_v40 = vrot.slane %v8090_v55, 1  ;;  %v13934_v4 = vld [vmem:[#allocation2 + $0x3c] sm:$0xff]  ;;  %v16931_v49 = vld [vmem:[#allocation2 + $0x54] sm:$0xff] }
 0x3a5   : > { %14263 = vmatpush.bf16.msra.mxu2 %v14061_v23  ;;  %11032 = vmatpush.bf16.msra.mxu0 %v14061_v23 }
 0x3a6   : > { %14264 = vmatpush.bf16.msra.mxu3 %v14061_v23  ;;  %v8093_v20 = vor.u32 %v8092_v40, %v8088_v37  ;;  %v9569_v40 = vld [vmem:[#allocation2 + $0x50] sm:$0x1] }
 0x3a7   : > { %8259 = vrot.lane.b32.xlu0 %v8056_v54, %s14371_s23  ;;  %v9189_v54 = vrot.slane %v9187_v26, 1  ;;  %v13060_v26 = vld [vmem:[#allocation2 + $0x30] sm:$0xe] }
 0x3a8   : > { %9733 = vrot.lane.b32.xlu1 %v16845_v24, %s14371_s23 }
 0x3a9   : > { %v9190_v57 = vsel %vm1101_vm9, %v9185_v18, %v9189_v54  ;;  %v16914_v18 = vor.u32 %v13964_v11, %v13060_v26  ;;  %v13950_v54 = vld [vmem:[#allocation2 + $0x48] sm:$0xff]  ;;  %v14089_v26 = vld [vmem:[%s18386_s1 + $0x14f8] sm:$0xff] }
 0x3aa   : > { %v9206_v3 = vshll.u32 %v13950_v54, 16 }
 0x3ac   : > { %9731 = vrot.lane.b32.xlu2 %v16861_v34, %s14371_s23  ;;  %v9208_v59 = vrot.slane %v9206_v3, 1 }
 0x3af   : > { %7374 = vrot.lane.b32.xlu0 %v7357_v56, %s14371_s23  ;;  %v8079_v56 = vor.u32 %v8078_v33, %v8074_v0  ;;  %v9566_v0 = vld [vmem:[#allocation2 + $0x44] sm:$0x1] }
 0x3b0   : > { %9349 = vrot.lane.b32.xlu1 %v9178_v2, %s14371_s23  ;;  %v9194_v2 = vshll.u32 %v13949_v28, 16  ;;  %v9143_v28 = vpack.c.b16 %v9127_v47, %v9127_v47  ;;  %v7360_v47 = vrot.slane %v13934_v4, 7  ;;  %v9216_v4 = vshrl.u32 %v16931_v49, 16 }
 0x3b1   : > { %v8084_v30 = vsel %vm1101_vm9, %v8079_v56, %v8083_v25  ;;  %v9662_v25 = vunpack.c.l.b16 %v9566_v0  ;;  %v13064_v0 = vld [vmem:[#allocation2 + $0x3c] sm:$0xe] }
 0x3b2   : > { %v9196_v61 = vrot.slane %v9194_v2, 1  ;;  %v9204_v2 = vshrl.u32 %v13950_v54, 16  ;;  %v9211_v23 = vshll.u32 %v9143_v28, 16  ;;  %v7845_v54 = vld [vmem:[#allocation2 + $0x54] sm:$0xe] }
 0x3b4   : > { %8261 = vrot.lane.b32.xlu2 %v8057_v48, %s14371_s23  ;;  %v14060_v48 = vld [vmem:[%s18386_s1 + $0x1410] sm:$0xff]  ;;  %v9197_v29 = vor.u32 %v9196_v61, %v9192_v12  ;;  %v9016_v61 = vld [vmem:[#allocation2 + $0x5c] sm:$0x1]  ;;  %v9209_v55 = vor.u32 %v9208_v59, %v9204_v2  ;;  %v8005_v59 = vunpack.c.l.b16 %v7845_v54 }
 0x3b5   : > { %14265 = vmatpush.bf16.msra.mxu1 %v14060_v48  ;;  %14266 = vmatpush.bf16.msra.mxu2 %v14060_v48  ;;  %v9128_v11 = vunpack.c.l.b16 %v9016_v61  ;;  %v14088_v2 = vld [vmem:[%s18386_s1 + $0x14f0] sm:$0xff] }
 0x3b6   : > { %11033 = vmatpush.bf16.msra.mxu0 %v14060_v48  ;;  %14267 = vmatpush.bf16.msra.mxu3 %v14060_v48  ;;  %v9202_v33 = vsel %vm1101_vm9, %v9197_v29, %v9201_v8  ;;  %v9213_v48 = vrot.slane %v9211_v23, 1 }
 0x3b7   : > { %8263 = vrot.lane.b32.xlu0 %v8070_v35, %s14371_s23  ;;  %v16909_v35 = vpack.c.b16 %v7917_v52, %v7917_v52  ;;  %v16929_v52 = vpack.c.b16 %v7920_v36, %v7920_v36  ;;  %v9144_v36 = vpack.c.b16 %v9128_v11, %v9128_v11 }
 0x3b8   : > { %9737 = vrot.lane.b32.xlu1 %v16874_v58, %s14371_s23 }
 0x3b9   : > { %14268 = vmatpush.bf16.msra.mxu1 %v14059_v43  ;;  %14269 = vmatpush.bf16.msra.mxu2 %v14059_v43  ;;  %v8109_v8 = vshll.u32 %v16929_v52, 16 }
 0x3ba   : > { %11034 = vmatpush.bf16.msra.mxu0 %v14059_v43  ;;  %14270 = vmatpush.bf16.msra.mxu3 %v14059_v43  ;;  %v16944_v43 = vld [vmem:[#allocation2 + $0x58] sm:$0xf] }
 0x3bb   : > { %v18413_v51 = vunpack.c.l.b16 %v16944_v43 }
 0x3bc   : > { %9735 = vrot.lane.b32.xlu2 %v16882_v1, %s14371_s23 }
 0x3bd   : > { %14271 = vmatpush.bf16.msra.mxu1 %v14058_v45  ;;  %14272 = vmatpush.bf16.msra.mxu2 %v14058_v45 }
 0x3be   : > { %11035 = vmatpush.bf16.msra.mxu0 %v14058_v45  ;;  %14273 = vmatpush.bf16.msra.mxu3 %v14058_v45  ;;  %v7811_v45 = vld [vmem:[#allocation2 + $0x5c] sm:$0x1] }
 0x3bf   : > { %7376 = vrot.lane.b32.xlu0 %v7358_v42, %s14371_s23  ;;  %v8095_v42 = vshll.u32 %v16909_v35, 16  ;;  %v7923_v61 = vunpack.c.l.b16 %v7811_v45 }
 0x3c0   : > { %9351 = vrot.lane.b32.xlu1 %v9190_v57, %s14371_s23  ;;  %v14209_v57 = vld [vmem:[#allocation2 + $0x48] sm:$0xe] }
 0x3c1   : > { %v8097_v56 = vrot.slane %v8095_v42, 1  ;;  %v14210_v14 = vor.u32 %v14209_v57, %v14208_v38  ;;  %v9218_v38 = vshll.u32 %v16931_v49, 16  ;;  %v9214_v57 = vsel %vm1101_vm9, %v9209_v55, %v9213_v48 }
 0x3c2   : > { %11295 = vmatpush.bf16.msrb.mxu3 %v14089_v26  ;;  %v16968_v48 = vpack.c.b16 %v18413_v51, %v8005_v59  ;;  %v16977_v26 = vpack.c.b16 %v7923_v61, %v7923_v61 }
 0x3c3   : > { %v8104_v12 = vshll.u32 %v14210_v14, 16  ;;  %v8102_v6 = vshrl.u32 %v14210_v14, 16  ;;  %v14080_v14 = vld [vmem:[%s18386_s1 + $0x14b0] sm:$0xff]  ;;  %v9220_v55 = vrot.slane %v9218_v38, 1 }
 0x3c4   : > { %8265 = vrot.lane.b32.xlu2 %v8071_v9, %s14371_s23  ;;  %v8098_v9 = vsel %vm1101_vm9, %v8093_v20, %v8097_v56  ;;  %18534 = vst [vmem:[#allocation4_spill] sm:$0xff] %v16977_v26  ;;  %v8116_v59 = vshrl.u32 %v16968_v48, 16 }
 0x3c5   : > { %v8106_v29 = vrot.slane %v8104_v12, 1  ;;  %v14097_v12 = vld [vmem:[%s18386_s1 + $0x1538] sm:$0xff]  ;;  %v9221_v54 = vor.u32 %v9220_v55, %v9216_v4  ;;  %v17003_v4 = vld [vmem:[#allocation2 + $0x60] sm:$0xff] }
 0x3c6   : > { %11296 = vmatpush.bf16.msrb.mxu3 %v14088_v2  ;;  %11384 = vmatpush.bf16.msrb.mxu0 %v14097_v12  ;;  %v16999_v12 = vld [vmem:[#allocation2 + $0x5c] sm:$0x1] }
 0x3c7   : > { %8267 = vrot.lane.b32.xlu0 %v8084_v30, %s14371_s23  ;;  %v16927_v30 = vpack.c.b16 %v9662_v25, %v9662_v25  ;;  %v8107_v56 = vor.u32 %v8106_v29, %v8102_v6  ;;  %v8111_v25 = vrot.slane %v8109_v8, 1  ;;  %v9223_v6 = vshll.u32 %v9144_v36, 16 }
 0x3c8   : > { %9741 = vrot.lane.b32.xlu1 %v16900_v44, %s14371_s23  ;;  %v8123_v36 = vshll.u32 %v16977_v26, 16 }
 0x3c9   : > { %v8112_v49 = vsel %vm1101_vm9, %v8107_v56, %v8111_v25  ;;  %v9225_v45 = vrot.slane %v9223_v6, 1 }
 0x3cb   : > { %v9226_v6 = vsel %vm1101_vm9, %v9221_v54, %v9225_v45  ;;  %v14087_v54 = vld [vmem:[%s18386_s1 + $0x14e8] sm:$0xff]  ;;  %v14327_v45 = vld [vmem:[#allocation2] sm:$0xff] }
 0x3cc   : > { %9739 = vrot.lane.b32.xlu2 %v16914_v18, %s14371_s23  ;;  %11297 = vmatpush.bf16.msrb.mxu3 %v14087_v54 }
 0x3cf   : > { %7378 = vrot.lane.b32.xlu0 %v7359_v41, %s14371_s23  ;;  %v14081_v41 = vld [vmem:[%s18386_s1 + $0x14b8] sm:$0xff] }
 0x3d0   : > { %9353 = vrot.lane.b32.xlu1 %v9202_v33, %s14371_s23  ;;  %11206 = vmatpush.bf16.msrb.mxu2 %v14081_v41  ;;  %v13965_v33 = vld [vmem:[#allocation2 + $0x3c] sm:$0xf0] }
 0x3d1   : > { %v16951_v3 = vor.u32 %v13965_v33, %v13064_v0 }
 0x3d4   : > { %8269 = vrot.lane.b32.xlu2 %v8085_v15, %s14371_s23  ;;  %11207 = vmatpush.bf16.msrb.mxu2 %v14080_v14 }
 0x3d6   : > { %v6878_v37 = vpop.permute.xlu2 %6877 }
 0x3d7   : > { %8271 = vrot.lane.b32.xlu0 %v8098_v9, %s14371_s23  ;;  %v6911_v42 = vsel %vm1326_vm10, %v16772_v16, %v6878_v37  ;;  %v14073_v16 = vld [vmem:[%s18386_s1 + $0x1478] sm:$0xff]  ;;  %v9665_v9 = vunpack.c.l.b16 %v9569_v40 }
 0x3d8   : > { %9745 = vrot.lane.b32.xlu1 %v16927_v30, %s14371_s23  ;;  %v6958_v20 = vunpack.c.l.b16 %v6911_v42  ;;  %v6959_v28 = vunpack.c.h.b16 %v6911_v42  ;;  %11117 = vmatpush.bf16.msrb.mxu1 %v14073_v16  ;;  %v16992_v16 = vld [vmem:[#allocation2 + $0x48] sm:$0xff] }
 0x3d9   : > { %v16975_v8 = vpack.c.b16 %v9665_v9, %v9665_v9 }
 0x3da   : > { %v6990_v23 = vpack.c.b16 %v6958_v20, %v6958_v20  ;;  %v6991_v15 = vpack.c.b16 %v6959_v28, %v6959_v28 }
 0x3dc   : > { %7054 = vst [vmem:[#allocation3 + $0x168] sm:$0xf] %v6990_v23  ;;  %9743 = vrot.lane.b32.xlu2 %v16951_v3, %s14371_s23 }
 0x3dd   : > { %7055 = vst [vmem:[#allocation3 + $0x17c] sm:$0xf] %v6991_v15  ;;  %v9017_v15 = vld [vmem:[#allocation2 + $0x68] sm:$0x1] }
 0x3de   : > { %v6886_v41 = vpop.permute.xlu2 %6885 }
 0x3df   : > { %7380 = vrot.lane.b32.xlu0 %v7360_v47, %s14371_s23  ;;  %v6919_v40 = vsel %vm1326_vm10, %v16781_v63, %v6886_v41  ;;  %v8118_v47 = vshll.u32 %v16968_v48, 16  ;;  %v14079_v63 = vld [vmem:[%s18386_s1 + $0x14a8] sm:$0xff]  ;;  %v7361_v48 = vrot.slane %v16992_v16, 7  ;;  %v9129_v41 = vunpack.c.l.b16 %v9017_v15  ;;  %v17029_v15 = vld [vmem:[#allocation2 + $0x54] sm:$0xff] }
 0x3e0   : > { %9355 = vrot.lane.b32.xlu1 %v9214_v57, %s14371_s23  ;;  %v6966_v38 = vunpack.c.l.b16 %v6919_v40  ;;  %v6967_v28 = vunpack.c.h.b16 %v6919_v40  ;;  %11208 = vmatpush.bf16.msrb.mxu2 %v14079_v63 }
 0x3e1   : > { %v6876_v29 = vpop.permute.xlu0 %6875  ;;  %v8120_v23 = vrot.slane %v8118_v47, 1 }
 0x3e2   : > { %v6909_v11 = vsel %vm1326_vm10, %v16757_v62, %v6876_v29  ;;  %v6868_v37 = vpop.permute.xlu1 %6867  ;;  %v14072_v62 = vld [vmem:[%s18386_s1 + $0x1470] sm:$0xff]  ;;  %v6998_v9 = vpack.c.b16 %v6966_v38, %v6966_v38  ;;  %v6999_v61 = vpack.c.b16 %v6967_v28, %v6967_v28 }
 0x3e3   : > { %v6956_v42 = vunpack.c.l.b16 %v6909_v11  ;;  %v6957_v0 = vunpack.c.h.b16 %v6909_v11  ;;  %v6901_v33 = vsel %vm1326_vm10, %v16759_v5, %v6868_v37  ;;  %v8099_v5 = vshrl.u32 %v16909_v35, 16  ;;  %11118 = vmatpush.bf16.msrb.mxu1 %v14072_v62  ;;  %v14326_v11 = vld [vmem:[#allocation2 + $0x90] sm:$0xff] }
 0x3e4   : > { %v6948_v57 = vunpack.c.l.b16 %v6901_v33  ;;  %v6949_v20 = vunpack.c.h.b16 %v6901_v33  ;;  %v9668_v33 = vunpack.c.l.b16 %v16999_v12  ;;  %v14096_v38 = vld [vmem:[%s18386_s1 + $0x1530] sm:$0xff]  ;;  %7062 = vst [vmem:[#allocation3 + $0x208] sm:$0xf] %v6998_v9  ;;  %v17020_v63 = vld [vmem:[#allocation3 + $0x178] sm:$0xf0]  ;;  %v9145_v12 = vpack.c.b16 %v9129_v41, %v9129_v41 }
 0x3e5   : > { %v6988_v56 = vpack.c.b16 %v6956_v42, %v6956_v42  ;;  %v6989_v25 = vpack.c.b16 %v6957_v0, %v6957_v0  ;;  %8273 = vrot.lane.b32.xlu2 %v8099_v5, %s14371_s23  ;;  %v17010_v42 = vld [vmem:[#allocation3 + $0x168] sm:$0xf]  ;;  %v8121_v0 = vor.u32 %v8120_v23, %v8116_v59  ;;  %7063 = vst [vmem:[#allocation3 + $0x21c] sm:$0xf] %v6999_v61  ;;  %v14071_v5 = vld [vmem:[%s18386_s1 + $0x1468] sm:$0xff] }
 0x3e6   : > { %v6980_v14 = vpack.c.b16 %v6948_v57, %v6948_v57  ;;  %v6981_v2 = vpack.c.b16 %v6949_v20, %v6949_v20  ;;  %v6880_v29 = vpop.permute.xlu2 %6879  ;;  %v13068_v57 = vld [vmem:[#allocation2 + $0x48] sm:$0xe]  ;;  %11385 = vmatpush.bf16.msrb.mxu0 %v14096_v38  ;;  %v7814_v61 = vld [vmem:[#allocation2 + $0x68] sm:$0x1] }
 0x3e7   : > { %7052 = vst [vmem:[#allocation3 + $0x140] sm:$0xf] %v6988_v56  ;;  %8275 = vrot.lane.b32.xlu0 %v8112_v49, %s14371_s23  ;;  %v8125_v49 = vrot.slane %v8123_v36, 1  ;;  %v6913_v47 = vsel %vm1326_vm10, %v16794_v39, %v6880_v29  ;;  %v13966_v56 = vld [vmem:[#allocation2 + $0x48] sm:$0xf0]  ;;  %11119 = vmatpush.bf16.msrb.mxu1 %v14071_v5  ;;  %v7926_v41 = vunpack.c.l.b16 %v7814_v61 }
 0x3e8   : > { %7053 = vst [vmem:[#allocation3 + $0x154] sm:$0xf] %v6989_v25  ;;  %9749 = vrot.lane.b32.xlu1 %v16975_v8, %s14371_s23  ;;  %v6960_v39 = vunpack.c.l.b16 %v6913_v47  ;;  %v6961_v36 = vunpack.c.h.b16 %v6913_v47  ;;  %v17031_v9 = vor.u32 %v13966_v56, %v13068_v57  ;;  %v14212_v47 = vld [vmem:[#allocation2 + $0x60] sm:$0xe] }
 0x3e9   : > { %7044 = vst [vmem:[#allocation3 + $0xa0] sm:$0xf] %v6980_v14  ;;  %v6884_v55 = vpop.permute.xlu0 %6883  ;;  %v9230_v14 = vshll.u32 %v17003_v4, 16 }
 0x3ea   : > { %7045 = vst [vmem:[#allocation3 + $0xb4] sm:$0xf] %v6981_v2  ;;  %v6917_v37 = vsel %vm1326_vm10, %v14326_v11, %v6884_v55  ;;  %v6860_v40 = vpop.permute.xlu1 %6859  ;;  %v14078_v2 = vld [vmem:[%s18386_s1 + $0x14a0] sm:$0xff]  ;;  %v6992_v38 = vpack.c.b16 %v6960_v39, %v6960_v39  ;;  %v17043_v39 = vpack.c.b16 %v9668_v33, %v9668_v33 }
 0x3eb   : > { %v6964_v20 = vunpack.c.l.b16 %v6917_v37  ;;  %v6965_v28 = vunpack.c.h.b16 %v6917_v37  ;;  %v6893_v62 = vsel %vm1326_vm10, %v14327_v45, %v6860_v40  ;;  %v17034_v37 = vsel %vm1101_vm9, %v8121_v0, %v8125_v49  ;;  %11209 = vmatpush.bf16.msrb.mxu2 %v14078_v2  ;;  %v14211_v40 = vld [vmem:[#allocation2 + $0x60] sm:$0xf0]  ;;  %v14328_v2 = vld [vmem:[#allocation2 + $0x3c] sm:$0xff] }
 0x3ec   : > { %v6940_v25 = vunpack.c.l.b16 %v6893_v62  ;;  %v6941_v16 = vunpack.c.h.b16 %v6893_v62  ;;  %v6993_v0 = vpack.c.b16 %v6961_v36, %v6961_v36  ;;  %v9232_v45 = vrot.slane %v9230_v14, 1  ;;  %18535 = vst [vmem:[#allocation5_spill] sm:$0xff] %v17043_v39  ;;  %v14086_v33 = vld [vmem:[%s18386_s1 + $0x14e0] sm:$0xff] }
 0x3ed   : > { %v6996_v59 = vpack.c.b16 %v6964_v20, %v6964_v20  ;;  %v6997_v23 = vpack.c.b16 %v6965_v28, %v6965_v28  ;;  %9747 = vrot.lane.b32.xlu2 %v17031_v9, %s14371_s23  ;;  %v9228_v28 = vshrl.u32 %v17003_v4, 16  ;;  %v17047_v5 = vor.u32 %v14212_v47, %v14211_v40  ;;  %7056 = vst [vmem:[#allocation3 + $0x190] sm:$0xf] %v6992_v38  ;;  %v17062_v40 = vld [vmem:[#allocation3 + $0x218] sm:$0xf0] }
 0x3ee   : > { %v6972_v55 = vpack.c.b16 %v6940_v25, %v6940_v25  ;;  %v6973_v29 = vpack.c.b16 %v6941_v16, %v6941_v16  ;;  %v13372_v11 = vld [vmem:[#allocation3 + $0x140] sm:$0xf]  ;;  %v6864_v56 = vpop.permute.xlu2 %6863  ;;  %v9235_v25 = vshll.u32 %v9145_v12, 16  ;;  %v17045_v16 = vpack.c.b16 %v7926_v41, %v7926_v41  ;;  %7057 = vst [vmem:[#allocation3 + $0x1a4] sm:$0xf] %v6993_v0  ;;  %11298 = vmatpush.bf16.msrb.mxu3 %v14086_v33 }
 0x3ef   : > { %7060 = vst [vmem:[#allocation3 + $0x1e0] sm:$0xf] %v6996_v59  ;;  %v14020_v54 = vld [vmem:[#allocation3 + $0x150] sm:$0xf0]  ;;  %7382 = vrot.lane.b32.xlu0 %v7361_v48, %s14371_s23  ;;  %v6897_v4 = vsel %vm1326_vm10, %v16807_v10, %v6864_v56 }
 0x3f0   : > { %7061 = vst [vmem:[#allocation3 + $0x1f4] sm:$0xf] %v6997_v23  ;;  %v13373_v20 = vor.u32 %v14020_v54, %v13372_v11  ;;  %v13292_v49 = vld [vmem:[#allocation3 + $0xa0] sm:$0xf]  ;;  %9357 = vrot.lane.b32.xlu1 %v9226_v6, %s14371_s23  ;;  %v14095_v23 = vld [vmem:[%s18386_s1 + $0x1528] sm:$0xff]  ;;  %v6944_v10 = vunpack.c.l.b16 %v6897_v4  ;;  %v6945_v41 = vunpack.c.h.b16 %v6897_v4  ;;  %v9237_v38 = vrot.slane %v9235_v25, 1 }
 0x3f1   : > { %7036 = vst [vmem:[#allocation3] sm:$0xf] %v6972_v55  ;;  %v6870_v62 = vpop.permute.xlu0 %6869  ;;  %v14000_v48 = vld [vmem:[#allocation3 + $0xb0] sm:$0xf0]  ;;  %v14329_v55 = vld [vmem:[#allocation2 + $0xc] sm:$0xff]  ;;  %11386 = vmatpush.bf16.msrb.mxu0 %v14095_v23  ;;  %v8137_v33 = vshll.u32 %v17045_v16, 16 }
 0x3f2   : > { %7037 = vst [vmem:[#allocation3 + $0x14] sm:$0xf] %v6973_v29  ;;  %11076 = vmatmul.bf16.vlgmr.msra.gmra.mxu2 %v13373_v20  ;;  %v6903_v6 = vsel %vm1326_vm10, %v14328_v2, %v6870_v62  ;;  %v13293_v36 = vor.u32 %v14000_v48, %v13292_v49  ;;  %v6862_v59 = vpop.permute.xlu1 %6861  ;;  %v17060_v11 = vld [vmem:[#allocation3 + $0x208] sm:$0xf]  ;;  %v9233_v20 = vor.u32 %v9232_v45, %v9228_v28  ;;  %v14070_v49 = vld [vmem:[%s18386_s1 + $0x1460] sm:$0xff]  ;;  %v8130_v2 = vshrl.u32 %v17047_v5, 16 }
 0x3f3   : > { %v6950_v12 = vunpack.c.l.b16 %v6903_v6  ;;  %v6951_v61 = vunpack.c.h.b16 %v6903_v6  ;;  %v6895_v29 = vsel %vm1326_vm10, %v14329_v55, %v6862_v59  ;;  %v7791_v62 = vld [vmem:[#allocation2 + $0xc] sm:$0xf]  ;;  %v9575_v6 = vld [vmem:[#allocation2 + $0x68] sm:$0x1]  ;;  %v8132_v28 = vshll.u32 %v17047_v5, 16  ;;  %11120 = vmatpush.bf16.msrb.mxu1 %v14070_v49 }
 0x3f4   : > { %11056 = vmatmul.bf16.vlgmr.msra.gmra.mxu1 %v13293_v36  ;;  %v6942_v47 = vunpack.c.l.b16 %v6895_v29  ;;  %v6943_v54 = vunpack.c.h.b16 %v6895_v29  ;;  %v17071_v45 = vld [vmem:[#allocation2 + $0x74] sm:$0x1]  ;;  %v6976_v25 = vpack.c.b16 %v6944_v10, %v6944_v10  ;;  %v8113_v23 = vshrl.u32 %v16929_v52, 16  ;;  %v17119_v14 = vld [vmem:[#allocation2] sm:$0xf0] }
 0x3f5   : > { %v6982_v48 = vpack.c.b16 %v6950_v12, %v6950_v12  ;;  %v6983_v56 = vpack.c.b16 %v6951_v61, %v6951_v61  ;;  %v7903_v12 = vunpack.c.l.b16 %v7791_v62  ;;  %v9671_v49 = vunpack.c.l.b16 %v9575_v6 }
 0x3f6   : > { %v13452_v59 = vld [vmem:[#allocation3 + $0x1e0] sm:$0xf]  ;;  %v6974_v36 = vpack.c.b16 %v6942_v47, %v6942_v47  ;;  %v6975_v55 = vpack.c.b16 %v6943_v54, %v6943_v54  ;;  %v6977_v47 = vpack.c.b16 %v6945_v41, %v6945_v41  ;;  %v8134_v54 = vrot.slane %v8132_v28, 1  ;;  %v6874_v60 = vpop.permute.xlu2 %6873  ;;  %8277 = vrot.lane.b32.xlu2 %v8113_v23, %s14371_s23  ;;  %v17088_v41 = vld [vmem:[#allocation2 + $0x60] sm:$0xff]  ;;  %7040 = vst [vmem:[#allocation3 + $0x50] sm:$0xf] %v6976_v25 }
 0x3f7   : > { %7046 = vst [vmem:[#allocation3 + $0xc8] sm:$0xf] %v6982_v48  ;;  %v14040_v4 = vld [vmem:[#allocation3 + $0x1f0] sm:$0xf0]  ;;  %8279 = vrot.lane.b32.xlu0 %v17034_v37, %s14371_s23  ;;  %v14077_v48 = vld [vmem:[%s18386_s1 + $0x1498] sm:$0xff]  ;;  %v9238_v51 = vsel %vm1101_vm9, %v9233_v20, %v9237_v38  ;;  %v8139_v62 = vrot.slane %v8137_v33, 1  ;;  %v6907_v38 = vsel %vm1326_vm10, %v16816_v21, %v6874_v60  ;;  %v17101_v21 = vpack.c.b16 %v9671_v49, %v9671_v49 }
 0x3f8   : > { %7047 = vst [vmem:[#allocation3 + $0xdc] sm:$0xf] %v6983_v56  ;;  %v13212_v61 = vld [vmem:[#allocation3] sm:$0xf]  ;;  %v13453_v29 = vor.u32 %v14040_v4, %v13452_v59  ;;  %9753 = vrot.lane.b32.xlu1 %v17043_v39, %s14371_s23  ;;  %v17086_v56 = vpack.c.b16 %v7904_v22, %v7903_v12  ;;  %v17092_v20 = vld [vmem:[#allocation3 + $0x190] sm:$0xf]  ;;  %11210 = vmatpush.bf16.msrb.mxu2 %v14077_v48  ;;  %v6955_v50 = vunpack.c.h.b16 %v6907_v38 }
 0x3f9   : > { %v13980_v37 = vld [vmem:[#allocation3 + $0x10] sm:$0xf0]  ;;  %7038 = vst [vmem:[#allocation3 + $0x28] sm:$0xf] %v6974_v36  ;;  %v6888_v10 = vpop.permute.xlu0 %6887  ;;  %v14330_v36 = vld [vmem:[#allocation2 + $0xa8] sm:$0xff]  ;;  %v14085_v60 = vld [vmem:[%s18386_s1 + $0x14d8] sm:$0xff]  ;;  %v8135_v49 = vor.u32 %v8134_v54, %v8130_v2 }
 0x3fa   : > { %v13213_v59 = vor.u32 %v13980_v37, %v13212_v61  ;;  %11096 = vmatmul.bf16.vlgmr.msra.gmra.mxu3 %v13453_v29  ;;  %7039 = vst [vmem:[#allocation3 + $0x3c] sm:$0xf] %v6975_v55  ;;  %v6872_v28 = vpop.permute.xlu1 %6871  ;;  %v6921_v4 = vsel %vm1326_vm10, %v14330_v36, %v6888_v10  ;;  %v17096_v22 = vld [vmem:[#allocation2 + $0x6c] sm:$0xff]  ;;  %v17099_v55 = vld [vmem:[#allocation3 + $0x1a0] sm:$0xf0]  ;;  %v6954_v29 = vunpack.c.l.b16 %v6907_v38  ;;  %v14094_v48 = vld [vmem:[%s18386_s1 + $0x1520] sm:$0xff]  ;;  %v6987_v2 = vpack.c.b16 %v6955_v50, %v6955_v50 }
 0x3fb   : > { %v14331_v33 = vld [vmem:[#allocation2 + $0x48] sm:$0xff]  ;;  %v6968_v12 = vunpack.c.l.b16 %v6921_v4  ;;  %v6969_v61 = vunpack.c.h.b16 %v6921_v4  ;;  %v13967_v37 = vld [vmem:[#allocation2 + $0x54] sm:$0xf0]  ;;  %7041 = vst [vmem:[#allocation3 + $0x64] sm:$0xf] %v6977_v47  ;;  %11299 = vmatpush.bf16.msrb.mxu3 %v14085_v60  ;;  %11387 = vmatpush.bf16.msrb.mxu0 %v14094_v48  ;;  %v18537_v5 = vrot.slane %v17029_v15, 7  ;;  %v8140_v48 = vsel %vm1101_vm9, %v8135_v49, %v8139_v62 }
 0x3fc   : > { %v6905_v23 = vsel %vm1326_vm10, %v14331_v33, %v6872_v28  ;;  %11036 = vmatmul.bf16.vlgmr.msra.gmra.mxu0 %v13213_v59  ;;  %18536 = vst [vmem:[#allocation6_spill] sm:$0xff] %v17101_v21  ;;  %v14069_v25 = vld [vmem:[%s18386_s1 + $0x1458] sm:$0xff]  ;;  %v17116_v4 = vld [vmem:[#allocation2] sm:$0xe]  ;;  %v7070_v38 = vld [vmem:[#allocation2 + $0x8] sm:$0x1]  ;;  %v6986_v57 = vpack.c.b16 %v6954_v29, %v6954_v29  ;;  %v17127_v54 = vor.u32 %v13967_v37, %v13072_v46 }
 0x3fd   : > { %v6952_v10 = vunpack.c.l.b16 %v6905_v23  ;;  %v6953_v36 = vunpack.c.h.b16 %v6905_v23  ;;  %v7000_v28 = vpack.c.b16 %v6968_v12, %v6968_v12  ;;  %v7001_v59 = vpack.c.b16 %v6969_v61, %v6969_v61  ;;  %v14076_v12 = vld [vmem:[%s18386_s1 + $0x1490] sm:$0xff]  ;;  %11121 = vmatpush.bf16.msrb.mxu1 %v14069_v25  ;;  %7051 = vst [vmem:[#allocation3 + $0x12c] sm:$0xf] %v6987_v2 }
 0x3fe   : > { %v13312_v33 = vld [vmem:[#allocation3 + $0xc8] sm:$0xf]  ;;  %v7198_v29 = vunpack.c.l.b16 %v7070_v38  ;;  %v9242_v15 = vshll.u32 %v17096_v22, 16  ;;  %9751 = vrot.lane.b32.xlu2 %v17127_v54, %s14371_s23  ;;  %v8258_v38 = vpop.permute.xlu2 %8257  ;;  %11211 = vmatpush.bf16.msrb.mxu2 %v14076_v12  ;;  %v7817_v49 = vld [vmem:[#allocation2 + $0x74] sm:$0x1] }
 0x3ff   : > { %v6984_v23 = vpack.c.b16 %v6952_v10, %v6952_v10  ;;  %v6985_v0 = vpack.c.b16 %v6953_v36, %v6953_v36  ;;  %v14005_v61 = vld [vmem:[#allocation3 + $0xd8] sm:$0xf0]  ;;  %7064 = vst [vmem:[#allocation3 + $0x230] sm:$0xf] %v7000_v28  ;;  %7384 = vrot.lane.b32.xlu0 %v18537_v5, %s14371_s23  ;;  %v17129_v10 = vld [vmem:[#allocation2 + $0x70] sm:$0xf]  ;;  %v8323_v5 = vsel %vm1326_vm10, %v16805_v19, %v8258_v38 }
 0x400   : > { %18538 = vst [vmem:[#allocation35_spill] sm:$0xff] %v17129_v10  ;;  %v13313_v36 = vor.u32 %v14005_v61, %v13312_v33  ;;  %v17131_v60 = vld [vmem:[#allocation3 + $0x28] sm:$0xf]  ;;  %9359 = vrot.lane.b32.xlu1 %v9238_v51, %s14371_s23  ;;  %v9240_v28 = vshrl.u32 %v17096_v22, 16  ;;  %v17143_v25 = vpack.c.b16 %v7198_v29, %v7198_v29  ;;  %v18539_v51 = vunpack.c.l.b16 %v17071_v45  ;;  %v14332_v22 = vld [vmem:[#allocation2 + $0x84] sm:$0xff] }
 0x401   : > { %7048 = vst [vmem:[#allocation3 + $0xf0] sm:$0xf] %v6984_v23  ;;  %v17137_v50 = vld [vmem:[#allocation3 + $0x38] sm:$0xf0]  ;;  %v6882_v46 = vpop.permute.xlu0 %6881  ;;  %v17152_v61 = vld [vmem:[#allocation3 + $0x50] sm:$0xf]  ;;  %v18416_v45 = vunpack.c.l.b16 %v17129_v10 }
 0x402   : > { %7049 = vst [vmem:[#allocation3 + $0x104] sm:$0xf] %v6985_v0  ;;  %v9146_v62 = vpack.c.b16 %v18539_v51, %v18539_v51  ;;  %v18540_v0 = vor.u32 %v17020_v63, %v17010_v42  ;;  %v6915_v33 = vsel %vm1326_vm10, %v14332_v22, %v6882_v46  ;;  %v6890_v23 = vpop.permute.xlu1 %6889  ;;  %v9244_v29 = vrot.slane %v9242_v15, 1  ;;  %v14333_v37 = vld [vmem:[#allocation2 + $0xb4] sm:$0xff] }
 0x403   : > { %7065 = vst [vmem:[#allocation3 + $0x244] sm:$0xf] %v7001_v59  ;;  %v6962_v51 = vunpack.c.l.b16 %v6915_v33  ;;  %v6963_v12 = vunpack.c.h.b16 %v6915_v33  ;;  %v6923_v47 = vsel %vm1326_vm10, %v14333_v37, %v6890_v23  ;;  %v17158_v42 = vld [vmem:[#allocation3 + $0x60] sm:$0xf0]  ;;  %v8433_v63 = vunpack.c.l.b16 %v8323_v5  ;;  %v7847_v59 = vld [vmem:[#allocation2 + $0x6c] sm:$0xe] }
 0x404   : > { %11081 = vmatmul.bf16.gmra.mxu2 %v18540_v0  ;;  %7050 = vst [vmem:[#allocation3 + $0x118] sm:$0xf] %v6986_v57  ;;  %11061 = vmatmul.bf16.gmra.mxu1 %v13313_v36  ;;  %v13233_v46 = vor.u32 %v17137_v50, %v17131_v60  ;;  %v6970_v0 = vunpack.c.l.b16 %v6923_v47  ;;  %v6971_v22 = vunpack.c.h.b16 %v6923_v47  ;;  %v9245_v19 = vor.u32 %v9244_v29, %v9240_v28  ;;  %v14084_v15 = vld [vmem:[%s18386_s1 + $0x14d0] sm:$0xff]  ;;  %v14093_v57 = vld [vmem:[%s18386_s1 + $0x1518] sm:$0xff]  ;;  %v17171_v47 = vld [vmem:[#allocation2 + $0x80] sm:$0x1] }
 0x405   : > { %v14068_v37 = vld [vmem:[%s18386_s1 + $0x1450] sm:$0xff]  ;;  %v6994_v36 = vpack.c.b16 %v6962_v51, %v6962_v51  ;;  %v6995_v38 = vpack.c.b16 %v6963_v12, %v6963_v12  ;;  %v8481_v33 = vpack.c.b16 %v8433_v63, %v8433_v63  ;;  %v9247_v60 = vshll.u32 %v9146_v62, 16  ;;  %11300 = vmatpush.bf16.msrb.mxu3 %v14084_v15  ;;  %11388 = vmatpush.bf16.msrb.mxu0 %v14093_v57  ;;  %v14334_v51 = vld [vmem:[#allocation2 + $0x24] sm:$0xff] }
 0x406   : > { %v9578_v50 = vld [vmem:[#allocation2 + $0x74] sm:$0x1]  ;;  %v7002_v2 = vpack.c.b16 %v6970_v0, %v6970_v0  ;;  %v7003_v28 = vpack.c.b16 %v6971_v22, %v6971_v22  ;;  %v17173_v23 = vld [vmem:[#allocation3 + $0x230] sm:$0xf]  ;;  %v7929_v5 = vunpack.c.l.b16 %v7817_v49  ;;  %v8007_v29 = vunpack.c.l.b16 %v7847_v59  ;;  %11122 = vmatpush.bf16.msrb.mxu1 %v14068_v37  ;;  %v14075_v22 = vld [vmem:[%s18386_s1 + $0x1488] sm:$0xff] }
 0x407   : > { %7058 = vst [vmem:[#allocation3 + $0x1b8] sm:$0xf] %v6994_v36  ;;  %8283 = vrot.lane.b32.xlu0 %v8140_v48, %s14371_s23  ;;  %v8550_v62 = vshll.u32 %v8481_v33, 16  ;;  %v9249_v12 = vrot.slane %v9247_v60, 1  ;;  %v9674_v63 = vunpack.c.l.b16 %v9578_v50  ;;  %v8127_v48 = vshrl.u32 %v16977_v26, 16  ;;  %11212 = vmatpush.bf16.msrb.mxu2 %v14075_v22 }
 0x408   : > { %v17175_v6 = vld [vmem:[#allocation3 + $0xf0] sm:$0xf]  ;;  %7059 = vst [vmem:[#allocation3 + $0x1cc] sm:$0xf] %v6995_v38  ;;  %9757 = vrot.lane.b32.xlu1 %v17101_v21, %s14371_s23  ;;  %v17184_v49 = vpack.c.b16 %v7929_v5, %v7929_v5  ;;  %v8023_v59 = vpack.c.b16 %v18416_v45, %v8007_v29  ;;  %v18541_v50 = vor.u32 %v17062_v40, %v17060_v11  ;;  %v17213_v40 = vld [vmem:[#allocation3 + $0x128] sm:$0xf0] }
 0x409   : > { %v17180_v0 = vld [vmem:[#allocation3 + $0x100] sm:$0xf0]  ;;  %7066 = vst [vmem:[#allocation3 + $0x258] sm:$0xf] %v7002_v2  ;;  %v8256_v37 = vpop.permute.xlu0 %8255  ;;  %v17197_v38 = vrot.slane %v8550_v62, 5  ;;  %v9250_v33 = vsel %vm1101_vm9, %v9245_v19, %v9249_v12  ;;  %v17200_v60 = vpack.c.b16 %v9674_v63, %v9674_v63  ;;  %8281 = vrot.lane.b32.xlu2 %v8127_v48, %s14371_s23  ;;  %v9732_v19 = vpop.permute.xlu2 %9731 }
 0x40a   : > { %v17195_v36 = vld [vmem:[#allocation3 + $0x240] sm:$0xf0]  ;;  %11101 = vmatmul.bf16.gmra.mxu3 %v18541_v50  ;;  %7067 = vst [vmem:[#allocation3 + $0x26c] sm:$0xf] %v7003_v28  ;;  %v8321_v2 = vsel %vm1326_vm10, %v17086_v56, %v8256_v37  ;;  %v6866_v5 = vpop.permute.xlu1 %6865  ;;  %v8144_v62 = vshrl.u32 %v8023_v59, 16  ;;  %v8146_v15 = vshll.u32 %v8023_v59, 16 }
 0x40b   : > { %v17209_v45 = vld [vmem:[#allocation3 + $0x118] sm:$0xf]  ;;  %v8431_v12 = vunpack.c.l.b16 %v8321_v2  ;;  %v8432_v63 = vunpack.c.h.b16 %v8321_v2  ;;  %v6899_v11 = vsel %vm1326_vm10, %v14334_v51, %v6866_v5  ;;  %v8151_v56 = vshll.u32 %v17184_v49, 16  ;;  %v14092_v2 = vld [vmem:[%s18386_s1 + $0x1510] sm:$0xff] }
 0x40c   : > { %v14067_v28 = vld [vmem:[%s18386_s1 + $0x1448] sm:$0xff]  ;;  %11041 = vmatmul.bf16.gmra.mxu0 %v13233_v46  ;;  %v6946_v37 = vunpack.c.l.b16 %v6899_v11  ;;  %v6947_v59 = vunpack.c.h.b16 %v6899_v11  ;;  %v8148_v50 = vrot.slane %v8146_v15, 1  ;;  %v9797_v46 = vsel %vm1326_vm10, %v16861_v34, %v9732_v19  ;;  %v14066_v11 = vld [vmem:[%s18386_s1 + $0x1440] sm:$0xff] }
 0x40d   : > { %v14083_v51 = vld [vmem:[%s18386_s1 + $0x14c8] sm:$0xff]  ;;  %v8479_v22 = vpack.c.b16 %v8431_v12, %v8431_v12  ;;  %v8480_v5 = vpack.c.b16 %v8432_v63, %v8432_v63  ;;  %v8153_v29 = vrot.slane %v8151_v56, 1  ;;  %11123 = vmatpush.bf16.msrb.mxu1 %v14067_v28  ;;  %v9923_v21 = vunpack.c.l.b16 %v9797_v46  ;;  %11389 = vmatpush.bf16.msrb.mxu0 %v14092_v2  ;;  %v14074_v12 = vld [vmem:[%s18386_s1 + $0x1480] sm:$0xff] }
 0x40e   : > { %v6978_v15 = vpack.c.b16 %v6946_v37, %v6946_v37  ;;  %v6979_v48 = vpack.c.b16 %v6947_v59, %v6947_v59  ;;  %v17232_v57 = vld [vmem:[#allocation3 + $0x1b8] sm:$0xf]  ;;  %v8149_v10 = vor.u32 %v8148_v50, %v8144_v62  ;;  %11301 = vmatpush.bf16.msrb.mxu3 %v14083_v51  ;;  %v18542_v28 = vrot.slane %v17088_v41, 7  ;;  %11213 = vmatpush.bf16.msrb.mxu2 %v14074_v12 }
 0x40f   : > { %v8531_v63 = vshrl.u32 %v8479_v22, 16  ;;  %v8534_v56 = vshll.u32 %v8479_v22, 16  ;;  %v8540_v34 = vshll.u32 %v8480_v5, 16  ;;  %v8544_v19 = vshrl.u32 %v8480_v5, 16  ;;  %v17240_v37 = vld [vmem:[#allocation3 + $0x1c8] sm:$0xf0] }
 0x410   : > { %7386 = vrot.lane.b32.xlu0 %v18542_v28, %s14371_s23  ;;  %7042 = vst [vmem:[#allocation3 + $0x78] sm:$0xf] %v6978_v15  ;;  %9361 = vrot.lane.b32.xlu1 %v9250_v33, %s14371_s23  ;;  %v13433_v62 = vor.u32 %v17240_v37, %v17232_v57  ;;  %v8154_v59 = vsel %vm1101_vm9, %v8149_v10, %v8153_v29  ;;  %v9924_v50 = vunpack.c.h.b16 %v9797_v46  ;;  %v17246_v2 = vld [vmem:[#allocation3 + $0x258] sm:$0xf] }
 0x411   : > { %v9971_v51 = vpack.c.b16 %v9923_v21, %v9923_v21  ;;  %v8533_v22 = vrot.slane %v8531_v63, 4  ;;  %v8536_v5 = vrot.slane %v8534_v56, 5  ;;  %v8542_v26 = vrot.slane %v8540_v34, 5  ;;  %7043 = vst [vmem:[#allocation3 + $0x8c] sm:$0xf] %v6979_v48  ;;  %v7373_v41 = vpop.permute.xlu0 %7372  ;;  %11124 = vmatpush.bf16.msrb.mxu1 %v14066_v11 }
 0x412   : > { %v8546_v39 = vrot.slane %v8544_v19, 4  ;;  %v18543_v33 = vor.u32 %v17099_v55, %v17092_v20  ;;  %v18544_v15 = vor.u32 %v17119_v14, %v17116_v4  ;;  %v7408_v21 = vsel %vm1326_vm10, %v17143_v25, %v7373_v41  ;;  %v9348_v29 = vpop.permute.xlu1 %9347  ;;  %v17257_v56 = vld [vmem:[#allocation3 + $0x268] sm:$0xf0]  ;;  %v14091_v20 = vld [vmem:[%s18386_s1 + $0x1508] sm:$0xff] }
 0x413   : > { %v9972_v46 = vpack.c.b16 %v9924_v50, %v9924_v50  ;;  %v13114_v63 = vrot.slane %v9971_v51, 9  ;;  %v8537_v48 = vor.u32 %v8536_v5, %v8533_v22  ;;  %v18545_v14 = vor.u32 %v17180_v0, %v17175_v6  ;;  %v14335_v4 = vld [vmem:[#allocation2 + $0x18] sm:$0xff]  ;;  %v17268_v50 = vld [vmem:[#allocation2 + $0x6c] sm:$0xff]  ;;  %v13076_v0 = vld [vmem:[#allocation2 + $0x60] sm:$0xe]  ;;  %11390 = vmatpush.bf16.msrb.mxu0 %v14091_v20 }
 0x414   : > { %11086 = vmatmul.bf16.gmra.mxu2 %v18543_v33  ;;  %v7406_v10 = vsel %vm1326_vm10, %v18544_v15, %v7373_v41  ;;  %v8547_v11 = vor.u32 %v8546_v39, %v8542_v26  ;;  %v7518_v55 = vunpack.c.l.b16 %v7408_v21  ;;  %v9380_v25 = vsel %vm1326_vm10, %v14335_v4, %v9348_v29  ;;  %v14082_v39 = vld [vmem:[%s18386_s1 + $0x14c0] sm:$0xff]  ;;  %v14194_v6 = vld [vmem:[#allocation2 + $0x18] sm:$0xff]   ;;  %v7073_v4 = vld [vmem:[#allocation2 + $0x14] sm:$0x1] }
 0x415   : > { %v7516_v12 = vunpack.c.l.b16 %v7406_v10  ;;  %v7517_v34 = vunpack.c.h.b16 %v7406_v10  ;;  %11066 = vmatmul.bf16.gmra.mxu1 %v18545_v14  ;;  %v10021_v19 = vrot.slane %v9972_v46, 5  ;;  %v8538_v51 = vrot.slane %v8537_v48, 4  ;;  %v13968_v33 = vld [vmem:[#allocation2 + $0x60] sm:$0xf0]  ;;  %v17275_v46 = vld [vmem:[#allocation2 + $0xc] sm:$0xe]  ;;  %11302 = vmatpush.bf16.msrb.mxu3 %v14082_v39 }
 0x416   : > { %v8548_v41 = vrot.slane %v8547_v11, 4  ;;  %v7566_v15 = vpack.c.b16 %v7518_v55, %v7518_v55  ;;  %v9427_v10 = vunpack.c.l.b16 %v9380_v25  ;;  %v9428_v21 = vunpack.c.h.b16 %v9380_v25  ;;  %v17277_v14 = vld [vmem:[#allocation2 + $0xc] sm:$0xf0] }
 0x417   : > { %v7564_v22 = vpack.c.b16 %v7516_v12, %v7516_v12  ;;  %v7565_v5 = vpack.c.b16 %v7517_v34, %v7517_v34  ;;  %v10022_v29 = vsel %vm15322_vm1, %v13114_v63, %v10021_v19  ;;  %v8543_v48 = vsel %vm15312_vm15, %v8538_v51, %v8542_v26  ;;  %v17285_v20 = vld [vmem:[#allocation3 + $0x78] sm:$0xf] }
 0x418   : > { %v8553_v34 = vsel %vm15312_vm15, %v8548_v41, %v17197_v38  ;;  %8287 = vrot.lane.b32.xlu0 %v8154_v59, %s14371_s23  ;;  %10163 = vst [vmem:[#allocation3 + $0x10] sm:$0xf] %v10022_v29  ;;  %v7620_v63 = vrot.slane %v7566_v15, 5  ;;  %v9459_v55 = vpack.c.b16 %v9427_v10, %v9427_v10  ;;  %v9460_v25 = vpack.c.b16 %v9428_v21, %v9428_v21  ;;  %v17289_v26 = vld [vmem:[#allocation3 + $0x88] sm:$0xf0] }
 0x419   : > { %v12970_v11 = vrot.slane %v7564_v22, 9  ;;  %v7617_v12 = vrot.slane %v7565_v5, 5  ;;  %8946 = vst [vmem:[#allocation3 + $0x8] sm:$0xf] %v8543_v48  ;;  %v10023_v28 = vrot.slane %v10021_v19, 4  ;;  %9761 = vrot.lane.b32.xlu1 %v17200_v60, %s14371_s23  ;;  %v8260_v38 = vpop.permute.xlu0 %8259  ;;  %v7364_v22 = vrot.slane %v17268_v50, 7  ;;  %v8262_v5 = vpop.permute.xlu2 %8261 }
 0x41a   : > { %8947 = vst [vmem:[#allocation3 + $0x1c] sm:$0xf] %v8553_v34  ;;  %v14090_v19 = vld [vmem:[%s18386_s1 + $0x1500] sm:$0xff]  ;;  %v18546_v41 = vor.u32 %v17195_v36, %v17173_v23  ;;  %v8326_v15 = vsel %vm1326_vm10, %v14194_v6, %v8260_v38  ;;  %v9734_v10 = vpop.permute.xlu1 %9733  ;;  %v17303_v21 = vor.u32 %v13968_v33, %v13076_v0  ;;  %v7201_v29 = vunpack.c.l.b16 %v7073_v4  ;;  %v13954_v50 = vld [vmem:[#allocation2 + $0x78] sm:$0xff] }
 0x41b   : > { %v7618_v39 = vsel %vm15322_vm1, %v12970_v11, %v7617_v12  ;;  %v7619_v51 = vrot.slane %v7617_v12, 4  ;;  %v12849_v48 = vor.u32 %v17277_v14, %v17275_v46  ;;  %v14214_v11 = vld [vmem:[#allocation2 + $0x78] sm:$0xf0]  ;;  %9523 = vst [vmem:[#allocation3 + $0xc] sm:$0xf] %v9459_v55  ;;  %v8434_v34 = vunpack.c.l.b16 %v8326_v15  ;;  %11391 = vmatpush.bf16.msrb.mxu0 %v14090_v19 }
 0x41c   : > { %11106 = vmatmul.bf16.gmra.mxu3 %v18546_v41  ;;  %7759 = vst [vmem:[#allocation3 + $0x4] sm:$0xf] %v7618_v39  ;;  %v8435_v59 = vunpack.c.h.b16 %v8326_v15  ;;  %v9800_v23 = vsel %vm1326_vm10, %v16845_v24, %v9734_v10  ;;  %v17311_v36 = vld [vmem:[#allocation2 + $0x80] sm:$0x1]  ;;  %v14215_v6 = vld [vmem:[#allocation2 + $0x78] sm:$0xe]  ;;  %v18547_v0 = vor.u32 %v17158_v42, %v17152_v61  ;;  %9755 = vrot.lane.b32.xlu2 %v17303_v21, %s14371_s23  ;;  %v18548_v39 = vunpack.c.l.b16 %v17171_v47 }
 0x41d   : > { %v7621_v12 = vsel %vm15322_vm1, %v7619_v51, %v7620_v63  ;;  %v9925_v33 = vunpack.c.l.b16 %v9800_v23  ;;  %v7247_v46 = vpack.c.b16 %v7201_v29, %v7201_v29  ;;  %v8328_v14 = vsel %vm1326_vm10, %v16829_v7, %v8262_v5  ;;  %9524 = vst [vmem:[#allocation3 + $0x20] sm:$0xf] %v9460_v25 }
 0x41e   : > { %11046 = vmatmul.bf16.gmra.mxu0 %v18547_v0  ;;  %7760 = vst [vmem:[#allocation3 + $0x18] sm:$0xf] %v7621_v12  ;;  %v9252_v4 = vshrl.u32 %v13954_v50, 16  ;;  %v8482_v24 = vpack.c.b16 %v8434_v34, %v8434_v34  ;;  %v8483_v63 = vpack.c.b16 %v8435_v59, %v8435_v59  ;;  %v8436_v55 = vunpack.c.l.b16 %v8328_v14 }
 0x41f   : > { %v9147_v51 = vpack.c.b16 %v18548_v39, %v18548_v39  ;;  %v9973_v61 = vpack.c.b16 %v9925_v33, %v9925_v33  ;;  %v9254_v42 = vshll.u32 %v13954_v50, 16  ;;  %v7932_v38 = vunpack.c.l.b16 %v17311_v36 }
 0x420   : > { %v17324_v19 = vor.u32 %v14215_v6, %v14214_v11  ;;  %v8555_v41 = vshrl.u32 %v8482_v24, 16  ;;  %v8558_v15 = vshll.u32 %v8482_v24, 16  ;;  %v8564_v10 = vshll.u32 %v8483_v63, 16  ;;  %7388 = vrot.lane.b32.xlu0 %v7364_v22, %s14371_s23 }
 0x421   : > { %v8568_v29 = vshrl.u32 %v8483_v63, 16  ;;  %v10024_v7 = vrot.slane %v9973_v61, 5  ;;  %v8484_v25 = vpack.c.b16 %v8436_v55, %v8436_v55  ;;  %v9256_v59 = vrot.slane %v9254_v42, 1  ;;  %v7375_v0 = vpop.permute.xlu0 %7374 }
 0x422   : > { %v9259_v5 = vshll.u32 %v9147_v51, 16  ;;  %v8557_v12 = vrot.slane %v8555_v41, 4  ;;  %v8560_v47 = vrot.slane %v8558_v15, 5  ;;  %v8566_v34 = vrot.slane %v8564_v10, 5  ;;  %v9350_v6 = vpop.permute.xlu1 %9349  ;;  %v17341_v41 = vld [vmem:[#allocation3 + $0x8] sm:$0xf]  ;;  %v9736_v10 = vpop.permute.xlu2 %9735 }
 0x423   : > { %v8570_v23 = vrot.slane %v8568_v29, 4  ;;  %v10025_v50 = vsel %vm15322_vm1, %v10023_v28, %v10024_v7  ;;  %v7411_v11 = vsel %vm1326_vm10, %v12849_v48, %v7375_v0  ;;  %v7413_v22 = vsel %vm1326_vm10, %v7247_v46, %v7375_v0  ;;  %v17334_v55 = vld [vmem:[#allocation3 + $0x4] sm:$0xf]  ;;  %v17343_v15 = vld [vmem:[#allocation3 + $0x18] sm:$0xf0] }
 0x424   : > { %11091 = vmatmul.bf16.gmra.mxu2 %v13433_v62  ;;  %v8574_v36 = vshll.u32 %v8484_v25, 16  ;;  %v8561_v33 = vor.u32 %v8560_v47, %v8557_v12  ;;  %10164 = vst [vmem:[#allocation3 + $0x24] sm:$0xf] %v10025_v50  ;;  %v7519_v24 = vunpack.c.l.b16 %v7411_v11  ;;  %v7520_v63 = vunpack.c.h.b16 %v7411_v11  ;;  %v14336_v25 = vld [vmem:[#allocation2 + $0x24] sm:$0xff]  ;;  %v9581_v47 = vld [vmem:[#allocation2 + $0x80] sm:$0x1] }
 0x425   : > { %v8571_v14 = vor.u32 %v8570_v23, %v8566_v34  ;;  %v17336_v39 = vld [vmem:[#allocation3 + $0x14] sm:$0xf0]  ;;  %v18549_v57 = vor.u32 %v17213_v40, %v17209_v45  ;;  %v7521_v37 = vunpack.c.l.b16 %v7413_v22  ;;  %v9257_v28 = vor.u32 %v9256_v59, %v9252_v4  ;;  %v7797_v22 = vld [vmem:[#allocation2 + $0x24] sm:$0xf] }
 0x426   : > { %v8576_v62 = vrot.slane %v8574_v36, 5  ;;  %v9261_v48 = vrot.slane %v9259_v5, 1  ;;  %v8562_v46 = vrot.slane %v8561_v33, 4  ;;  %v7567_v51 = vpack.c.b16 %v7519_v24, %v7519_v24  ;;  %v17361_v24 = vld [vmem:[#allocation3 + $0xc] sm:$0xf] }
 0x427   : > { %11071 = vmatmul.bf16.gmra.mxu1 %v18549_v57  ;;  %v7568_v61 = vpack.c.b16 %v7520_v63, %v7520_v63  ;;  %v8572_v42 = vrot.slane %v8571_v14, 4  ;;  %v7569_v29 = vpack.c.b16 %v7521_v37, %v7521_v37  ;;  %v9382_v45 = vsel %vm1326_vm10, %v14336_v25, %v9350_v6 }
 0x428   : > { %v9262_v7 = vsel %vm1101_vm9, %v9257_v28, %v9261_v48  ;;  %v13217_v40 = vor.u32 %v17334_v55, %v17336_v39  ;;  %v8567_v4 = vsel %vm15312_vm15, %v8562_v46, %v8566_v34  ;;  %v12971_v59 = vrot.slane %v7567_v51, 9  ;;  %v17368_v46 = vld [vmem:[#allocation3 + $0x1c] sm:$0xf0] }
 0x429   : > { %v7624_v5 = vrot.slane %v7568_v61, 5  ;;  %v8577_v12 = vsel %vm15312_vm15, %v8572_v42, %v8576_v62  ;;  %9363 = vrot.lane.b32.xlu1 %v9262_v7, %s14371_s23  ;;  %8948 = vst [vmem:[#allocation3 + $0x30] sm:$0xf] %v8567_v4  ;;  %v7627_v23 = vrot.slane %v7569_v29, 5  ;;  %v9429_v0 = vunpack.c.l.b16 %v9382_v45  ;;  %v8264_v14 = vpop.permute.xlu0 %8263  ;;  %v17377_v42 = vld [vmem:[#allocation2 + $0x78] sm:$0xff] }
 0x42a   : > { %v9430_v50 = vunpack.c.h.b16 %v9382_v45  ;;  %v13221_v11 = vor.u32 %v17343_v15, %v17341_v41  ;;  %8949 = vst [vmem:[#allocation3 + $0x44] sm:$0xf] %v8577_v12  ;;  %v17358_v6 = vpack.c.b16 %v7932_v38, %v7932_v38  ;;  %v8158_v33 = vshrl.u32 %v17324_v19, 16  ;;  %v9738_v48 = vpop.permute.xlu1 %9737 }
 0x42b   : > { %v7625_v36 = vsel %vm15322_vm1, %v12971_v59, %v7624_v5  ;;  %v7626_v34 = vrot.slane %v7624_v5, 4  ;;  %v18550_v63 = vor.u32 %v17257_v56, %v17246_v2  ;;  %v9461_v57 = vpack.c.b16 %v9429_v0, %v9429_v0  ;;  %v17375_v56 = vld [vmem:[#allocation3 + $0x10] sm:$0xf]  ;;  %v17383_v25 = vld [vmem:[#allocation3 + $0x20] sm:$0xf0] }
 0x42c   : > { %7761 = vst [vmem:[#allocation3 + $0x2c] sm:$0xf] %v7625_v36  ;;  %v9462_v37 = vpack.c.b16 %v9430_v50, %v9430_v50  ;;  %v8160_v62 = vshll.u32 %v17324_v19, 16  ;;  %v8141_v28 = vshrl.u32 %v17045_v16, 16  ;;  %v8165_v51 = vshll.u32 %v17358_v6, 16 }
 0x42d   : > { %11111 = vmatmul.bf16.gmra.mxu3 %v18550_v63  ;;  %v7628_v38 = vsel %vm15322_vm1, %v7626_v34, %v7627_v23  ;;  %v7909_v61 = vunpack.c.l.b16 %v7797_v22  ;;  %v9803_v2 = vsel %vm1326_vm10, %v16882_v1, %v9736_v10  ;;  %v18551_v19 = vor.u32 %v17289_v26, %v17285_v20  ;;  %9525 = vst [vmem:[#allocation3 + $0x34] sm:$0xf] %v9461_v57  ;;  %v13080_v26 = vld [vmem:[#allocation2 + $0x6c] sm:$0xe]  ;;  %v7076_v0 = vld [vmem:[#allocation2 + $0x20] sm:$0x1]  ;;  %v8266_v63 = vpop.permute.xlu2 %8265 }
 0x42e   : > { %7762 = vst [vmem:[#allocation3 + $0x40] sm:$0xf] %v7628_v38  ;;  %v8162_v41 = vrot.slane %v8160_v62, 1  ;;  %8285 = vrot.lane.b32.xlu2 %v8141_v28, %s14371_s23  ;;  %v9926_v15 = vunpack.c.l.b16 %v9803_v2  ;;  %v9927_v29 = vunpack.c.h.b16 %v9803_v2  ;;  %v9677_v7 = vunpack.c.l.b16 %v9581_v47  ;;  %v13969_v47 = vld [vmem:[#allocation2 + $0x6c] sm:$0xf0] }
 0x42f   : > { %11051 = vmatmul.bf16.gmra.mxu0 %v18551_v19  ;;  %v8167_v45 = vrot.slane %v8165_v51, 1  ;;  %v18552_v1 = vunpack.c.l.b16 %v16834_v31  ;;  %v9806_v4 = vsel %vm1326_vm10, %v16874_v58, %v9738_v48  ;;  %v13225_v20 = vor.u32 %v17361_v24, %v17368_v46  ;;  %9526 = vst [vmem:[#allocation3 + $0x48] sm:$0xf] %v9462_v37  ;;  %v12852_v36 = vld [vmem:[#allocation2 + $0x18] sm:$0xe] }
 0x430   : > { %v8163_v59 = vor.u32 %v8162_v41, %v8158_v33  ;;  %v9974_v5 = vpack.c.b16 %v9926_v15, %v9926_v15  ;;  %v9975_v12 = vpack.c.b16 %v9927_v29, %v9927_v29  ;;  %v17391_v23 = vpack.c.b16 %v9677_v7, %v9677_v7  ;;  %v13916_v34 = vld [vmem:[#allocation2 + $0x18] sm:$0xf0] }
 0x431   : > { %v7955_v10 = vpack.c.b16 %v18552_v1, %v7909_v61  ;;  %v9928_v22 = vunpack.c.l.b16 %v9806_v4  ;;  %v13229_v31 = vor.u32 %v17383_v25, %v17375_v56  ;;  %v7365_v58 = vrot.slane %v17377_v42, 7  ;;  %v7377_v42 = vpop.permute.xlu0 %7376 }
 0x432   : > { %v8168_v57 = vsel %vm1101_vm9, %v8163_v59, %v8167_v45  ;;  %v13115_v62 = vrot.slane %v9974_v5, 9  ;;  %9765 = vrot.lane.b32.xlu1 %v17391_v23, %s14371_s23  ;;  %v17401_v48 = vor.u32 %v13969_v47, %v13080_v26  ;;  %v7204_v38 = vunpack.c.l.b16 %v7076_v0  ;;  %v13955_v5 = vld [vmem:[#allocation2 + $0x84] sm:$0xff]  ;;  %v9352_v0 = vpop.permute.xlu1 %9351 }
 0x433   : > { %v8331_v50 = vsel %vm1326_vm10, %v7955_v10, %v8264_v14  ;;  %8291 = vrot.lane.b32.xlu0 %v8168_v57, %s14371_s23  ;;  %v10028_v14 = vrot.slane %v9975_v12, 5  ;;  %v9976_v28 = vpack.c.b16 %v9928_v22, %v9928_v22  ;;  %v12853_v2 = vor.u32 %v13916_v34, %v12852_v36  ;;  %v9020_v12 = vld [vmem:[#allocation2 + $0x8c] sm:$0x1] }
 0x434   : > { %v8437_v33 = vunpack.c.l.b16 %v8331_v50  ;;  %v8438_v37 = vunpack.c.h.b16 %v8331_v50  ;;  %11214 = vmatmul.bf16.vlgmr.msrb.gmra.mxu2 %v13221_v11  ;;  %v8333_v19 = vsel %vm1326_vm10, %v16853_v13, %v8266_v63  ;;  %v7249_v7 = vpack.c.b16 %v7204_v38, %v7204_v38 }
 0x435   : > { %v10029_v41 = vsel %vm15322_vm1, %v13115_v62, %v10028_v14  ;;  %v10030_v15 = vrot.slane %v10028_v14, 4  ;;  %v10031_v29 = vrot.slane %v9976_v28, 5  ;;  %v7416_v4 = vsel %vm1326_vm10, %v12853_v2, %v7377_v42 }
 0x436   : > { %v8485_v51 = vpack.c.b16 %v8437_v33, %v8437_v33  ;;  %v8486_v61 = vpack.c.b16 %v8438_v37, %v8438_v37  ;;  %10165 = vst [vmem:[#allocation3 + $0x38] sm:$0xf] %v10029_v41  ;;  %9759 = vrot.lane.b32.xlu2 %v17401_v48, %s14371_s23  ;;  %v7418_v26 = vsel %vm1326_vm10, %v7249_v7, %v7377_v42  ;;  %v8439_v59 = vunpack.c.l.b16 %v8333_v19  ;;  %v13983_v19 = vld [vmem:[#allocation3 + $0x2c] sm:$0xf]  ;;  %v17420_v41 = vld [vmem:[#allocation2 + $0x88] sm:$0xf] }
 0x437   : > { %11125 = vmatmul.bf16.vlgmr.msrb.gmra.mxu1 %v13217_v40  ;;  %v10032_v13 = vsel %vm15322_vm1, %v10030_v15, %v10031_v29  ;;  %v7522_v50 = vunpack.c.l.b16 %v7416_v4  ;;  %v7523_v22 = vunpack.c.h.b16 %v7416_v4  ;;  %v7524_v36 = vunpack.c.l.b16 %v7418_v26  ;;  %v13986_v4 = vld [vmem:[#allocation3 + $0x40] sm:$0xf0] }
 0x438   : > { %v8579_v45 = vshrl.u32 %v8485_v51, 16  ;;  %v8582_v1 = vshll.u32 %v8485_v51, 16  ;;  %v8588_v11 = vshll.u32 %v8486_v61, 16  ;;  %v8592_v10 = vshrl.u32 %v8486_v61, 16  ;;  %10166 = vst [vmem:[#allocation3 + $0x4c] sm:$0xf] %v10032_v13 }
 0x439   : > { %v8487_v34 = vpack.c.b16 %v8439_v59, %v8439_v59  ;;  %v9132_v33 = vunpack.c.l.b16 %v9020_v12  ;;  %v9264_v37 = vshrl.u32 %v13955_v5, 16  ;;  %v7570_v62 = vpack.c.b16 %v7522_v50, %v7522_v50  ;;  %v13240_v13 = vld [vmem:[#allocation3 + $0x30] sm:$0xf] }
 0x43a   : > { %v8581_v55 = vrot.slane %v8579_v45, 4  ;;  %v8584_v39 = vrot.slane %v8582_v1, 5  ;;  %v8590_v40 = vrot.slane %v8588_v11, 5  ;;  %v8594_v47 = vrot.slane %v8592_v10, 4  ;;  %v7849_v1 = vld [vmem:[#allocation2 + $0x84] sm:$0xe] }
 0x43b   : > { %7390 = vrot.lane.b32.xlu0 %v7365_v58, %s14371_s23  ;;  %v7571_v14 = vpack.c.b16 %v7523_v22, %v7523_v22  ;;  %v7572_v28 = vpack.c.b16 %v7524_v36, %v7524_v36  ;;  %v8598_v38 = vshll.u32 %v8487_v34, 16  ;;  %v9148_v2 = vpack.c.b16 %v9132_v33, %v9132_v33  ;;  %v13234_v58 = vld [vmem:[#allocation3 + $0x3c] sm:$0xf0] }
 0x43c   : > { %v8585_v63 = vor.u32 %v8584_v39, %v8581_v55  ;;  %v8595_v57 = vor.u32 %v8594_v47, %v8590_v40  ;;  %v9266_v42 = vshll.u32 %v13955_v5, 16  ;;  %v12972_v15 = vrot.slane %v7570_v62, 9  ;;  %v7823_v55 = vld [vmem:[#allocation2 + $0x8c] sm:$0x1]  ;;  %v9740_v47 = vpop.permute.xlu2 %9739  ;;  %v8268_v62 = vpop.permute.xlu0 %8267 }
 0x43d   : > { %11303 = vmatmul.bf16.vlgmr.msrb.gmra.mxu3 %v13225_v20  ;;  %v7631_v29 = vrot.slane %v7571_v14, 5  ;;  %v7634_v7 = vrot.slane %v7572_v28, 5  ;;  %v8600_v45 = vrot.slane %v8598_v38, 5  ;;  %v9271_v46 = vshll.u32 %v9148_v2, 16  ;;  %v14337_v20 = vld [vmem:[#allocation2 + $0x30] sm:$0xff]  ;;  %v9742_v14 = vpop.permute.xlu1 %9741 }
 0x43e   : > { %v8586_v51 = vrot.slane %v8585_v63, 4  ;;  %v8596_v61 = vrot.slane %v8595_v57, 4  ;;  %v9268_v24 = vrot.slane %v9266_v42, 1  ;;  %v9384_v10 = vsel %vm1326_vm10, %v14337_v20, %v9352_v0  ;;  %v9584_v0 = vld [vmem:[#allocation2 + $0x8c] sm:$0x1] }
 0x43f   : > { %11392 = vmatmul.bf16.vlgmr.msrb.gmra.mxu0 %v13229_v31  ;;  %v7632_v26 = vsel %vm15322_vm1, %v12972_v15, %v7631_v29  ;;  %v7633_v59 = vrot.slane %v7631_v29, 4  ;;  %v9431_v12 = vunpack.c.l.b16 %v9384_v10  ;;  %v9273_v25 = vrot.slane %v9271_v46, 1 }
 0x440   : > { %v8591_v11 = vsel %vm15312_vm15, %v8586_v51, %v8590_v40  ;;  %v8601_v5 = vsel %vm15312_vm15, %v8596_v61, %v8600_v45  ;;  %7763 = vst [vmem:[#allocation3 + $0x54] sm:$0xf] %v7632_v26  ;;  %v9269_v56 = vor.u32 %v9268_v24, %v9264_v37  ;;  %v9432_v31 = vunpack.c.h.b16 %v9384_v10  ;;  %v14195_v40 = vld [vmem:[#allocation2 + $0x30] sm:$0xff]   ;;  %v17451_v26 = vld [vmem:[#allocation2 + $0x84] sm:$0xff] }
 0x441   : > { %8950 = vst [vmem:[#allocation3 + $0x58] sm:$0xf] %v8591_v11  ;;  %v13237_v39 = vor.u32 %v13983_v19, %v13234_v58  ;;  %v7635_v50 = vsel %vm15322_vm1, %v7633_v59, %v7634_v7  ;;  %v9463_v22 = vpack.c.b16 %v9431_v12, %v9431_v12  ;;  %v13241_v36 = vor.u32 %v13986_v4, %v13240_v13  ;;  %v13984_v4 = vld [vmem:[#allocation3 + $0x34] sm:$0xf] }
 0x442   : > { %8951 = vst [vmem:[#allocation3 + $0x6c] sm:$0xf] %v8601_v5  ;;  %v18422_v34 = vunpack.c.l.b16 %v17420_v41  ;;  %v9274_v63 = vsel %vm1101_vm9, %v9269_v56, %v9273_v25  ;;  %v9464_v57 = vpack.c.b16 %v9432_v31, %v9432_v31  ;;  %v7935_v33 = vunpack.c.l.b16 %v7823_v55  ;;  %v13242_v56 = vld [vmem:[#allocation3 + $0x44] sm:$0xf0] }
 0x443   : > { %7764 = vst [vmem:[#allocation3 + $0x68] sm:$0xf] %v7635_v50  ;;  %v8009_v37 = vunpack.c.l.b16 %v7849_v1  ;;  %9365 = vrot.lane.b32.xlu1 %v9274_v63, %s14371_s23  ;;  %v8155_v28 = vshrl.u32 %v17184_v49, 16  ;;  %v8336_v38 = vsel %vm1326_vm10, %v14195_v40, %v8268_v62  ;;  %v9809_v51 = vsel %vm1326_vm10, %v16914_v18, %v9740_v47  ;;  %v13084_v25 = vld [vmem:[#allocation2 + $0x78] sm:$0xe] }
 0x444   : > { %9527 = vst [vmem:[#allocation3 + $0x5c] sm:$0xf] %v9463_v22  ;;  %v9680_v61 = vunpack.c.l.b16 %v9584_v0  ;;  %11219 = vmatmul.bf16.gmra.mxu2 %v13241_v36  ;;  %v17441_v2 = vpack.c.b16 %v7935_v33, %v7935_v33  ;;  %v8440_v19 = vunpack.c.l.b16 %v8336_v38  ;;  %v8441_v15 = vunpack.c.h.b16 %v8336_v38  ;;  %v12856_v0 = vld [vmem:[#allocation2 + $0x24] sm:$0xe]  ;;  %v13917_v50 = vld [vmem:[#allocation2 + $0x24] sm:$0xf0] }
 0x445   : > { %9528 = vst [vmem:[#allocation3 + $0x70] sm:$0xf] %v9464_v57  ;;  %v8025_v42 = vpack.c.b16 %v18422_v34, %v8009_v37  ;;  %8289 = vrot.lane.b32.xlu2 %v8155_v28, %s14371_s23  ;;  %v9929_v29 = vunpack.c.l.b16 %v9809_v51  ;;  %v9930_v7 = vunpack.c.h.b16 %v9809_v51  ;;  %v9812_v58 = vsel %vm1326_vm10, %v16900_v44, %v9742_v14  ;;  %v13970_v44 = vld [vmem:[#allocation2 + $0x78] sm:$0xf0]  ;;  %v13248_v33 = vld [vmem:[#allocation3 + $0x38] sm:$0xf] }
 0x446   : > { %v17446_v45 = vpack.c.b16 %v9680_v61, %v9680_v61  ;;  %v8179_v11 = vshll.u32 %v17441_v2, 16  ;;  %v8488_v24 = vpack.c.b16 %v8440_v19, %v8440_v19  ;;  %v8489_v46 = vpack.c.b16 %v8441_v15, %v8441_v15  ;;  %v13987_v37 = vld [vmem:[#allocation3 + $0x48] sm:$0xf0]  ;;  %v7079_v51 = vld [vmem:[#allocation2 + $0x2c] sm:$0x1] }
 0x447   : > { %11130 = vmatmul.bf16.gmra.mxu1 %v13237_v39  ;;  %v8172_v18 = vshrl.u32 %v8025_v42, 16  ;;  %v8174_v1 = vshll.u32 %v8025_v42, 16  ;;  %v9977_v20 = vpack.c.b16 %v9929_v29, %v9929_v29  ;;  %v9978_v10 = vpack.c.b16 %v9930_v7, %v9930_v7  ;;  %v8270_v29 = vpop.permute.xlu2 %8269  ;;  %v9021_v7 = vld [vmem:[#allocation2 + $0x98] sm:$0x1] }
 0x448   : > { %v9931_v13 = vunpack.c.l.b16 %v9812_v58  ;;  %v8181_v5 = vrot.slane %v8179_v11, 1  ;;  %v8603_v12 = vshrl.u32 %v8488_v24, 16  ;;  %v8606_v55 = vshll.u32 %v8488_v24, 16  ;;  %v7379_v24 = vpop.permute.xlu0 %7378 }
 0x449   : > { %v8176_v59 = vrot.slane %v8174_v1, 1  ;;  %v8612_v31 = vshll.u32 %v8489_v46, 16  ;;  %v8616_v39 = vshrl.u32 %v8489_v46, 16  ;;  %v13116_v40 = vrot.slane %v9977_v20, 9  ;;  %v13956_v46 = vld [vmem:[#allocation2 + $0x90] sm:$0xff] }
 0x44a   : > { %v10035_v47 = vrot.slane %v9978_v10, 5  ;;  %v8605_v36 = vrot.slane %v8603_v12, 4  ;;  %v8608_v63 = vrot.slane %v8606_v55, 5  ;;  %v9979_v57 = vpack.c.b16 %v9931_v13, %v9931_v13 }
 0x44b   : > { %v8177_v22 = vor.u32 %v8176_v59, %v8172_v18  ;;  %v8614_v62 = vrot.slane %v8612_v31, 5  ;;  %v8618_v14 = vrot.slane %v8616_v39, 4  ;;  %9769 = vrot.lane.b32.xlu1 %v17446_v45, %s14371_s23  ;;  %v13245_v15 = vor.u32 %v13984_v4, %v13242_v56  ;;  %v9354_v4 = vpop.permute.xlu1 %9353 }
 0x44c   : > { %v10036_v28 = vsel %vm15322_vm1, %v13116_v40, %v10035_v47  ;;  %v10037_v38 = vrot.slane %v10035_v47, 4  ;;  %v8609_v42 = vor.u32 %v8608_v63, %v8605_v36  ;;  %v10038_v19 = vrot.slane %v9979_v57, 5  ;;  %v14338_v57 = vld [vmem:[#allocation2 + $0x3c] sm:$0xff] }
 0x44d   : > { %v8182_v61 = vsel %vm1101_vm9, %v8177_v22, %v8181_v5  ;;  %10167 = vst [vmem:[#allocation3 + $0x60] sm:$0xf] %v10036_v28  ;;  %v8619_v58 = vor.u32 %v8618_v14, %v8614_v62  ;;  %v13249_v18 = vor.u32 %v13987_v37, %v13248_v33  ;;  %v7366_v1 = vrot.slane %v17451_v26, 7  ;;  %11308 = vmatmul.bf16.gmra.mxu3 %v13245_v15  ;;  %v13988_v5 = vld [vmem:[#allocation3 + $0x54] sm:$0xf] }
 0x44e   : > { %8295 = vrot.lane.b32.xlu0 %v8182_v61, %s14371_s23  ;;  %v17460_v11 = vor.u32 %v13970_v44, %v13084_v25  ;;  %v8610_v20 = vrot.slane %v8609_v42, 4  ;;  %v10039_v10 = vsel %vm15322_vm1, %v10037_v38, %v10038_v19  ;;  %v7207_v13 = vunpack.c.l.b16 %v7079_v51  ;;  %v13254_v25 = vld [vmem:[#allocation3 + $0x64] sm:$0xf0]  ;;  %v14217_v38 = vld [vmem:[#allocation2 + $0x90] sm:$0xf0] }
 0x44f   : > { %v12857_v59 = vor.u32 %v13917_v50, %v12856_v0  ;;  %10168 = vst [vmem:[#allocation3 + $0x74] sm:$0xf] %v10039_v10  ;;  %11397 = vmatmul.bf16.gmra.mxu0 %v13249_v18  ;;  %v8620_v12 = vrot.slane %v8619_v58, 4  ;;  %v8338_v26 = vsel %vm1326_vm10, %v16880_v17, %v8270_v29  ;;  %v9133_v55 = vunpack.c.l.b16 %v9021_v7  ;;  %v13260_v15 = vld [vmem:[#allocation3 + $0x58] sm:$0xf] }
 0x450   : > { %9763 = vrot.lane.b32.xlu2 %v17460_v11, %s14371_s23  ;;  %v9276_v56 = vshrl.u32 %v13956_v46, 16  ;;  %v8615_v44 = vsel %vm15312_vm15, %v8610_v20, %v8614_v62  ;;  %v7251_v31 = vpack.c.b16 %v7207_v13, %v7207_v13  ;;  %v8442_v40 = vunpack.c.l.b16 %v8338_v26  ;;  %v13991_v29 = vld [vmem:[#allocation3 + $0x68] sm:$0xf0]  ;;  %v14218_v20 = vld [vmem:[#allocation2 + $0x90] sm:$0xe]  ;;  %v9744_v26 = vpop.permute.xlu2 %9743 }
 0x451   : > { %v7421_v39 = vsel %vm1326_vm10, %v12857_v59, %v7379_v24  ;;  %8952 = vst [vmem:[#allocation3 + $0x80] sm:$0xf] %v8615_v44  ;;  %v9149_v50 = vpack.c.b16 %v9133_v55, %v9133_v55  ;;  %v9278_v22 = vshll.u32 %v13956_v46, 16  ;;  %v9386_v17 = vsel %vm1326_vm10, %v14338_v57, %v9354_v4  ;;  %v7826_v46 = vld [vmem:[#allocation2 + $0x98] sm:$0x1] }
 0x452   : > { %v7525_v47 = vunpack.c.l.b16 %v7421_v39  ;;  %v7526_v0 = vunpack.c.h.b16 %v7421_v39  ;;  %v7423_v36 = vsel %vm1326_vm10, %v7251_v31, %v7379_v24  ;;  %v8490_v63 = vpack.c.b16 %v8442_v40, %v8442_v40  ;;  %v13989_v57 = vld [vmem:[#allocation3 + $0x5c] sm:$0xf] }
 0x453   : > { %v13257_v33 = vor.u32 %v13988_v5, %v13254_v25  ;;  %v7527_v37 = vunpack.c.l.b16 %v7423_v36  ;;  %v9280_v62 = vrot.slane %v9278_v22, 1  ;;  %v9283_v61 = vshll.u32 %v9149_v50, 16  ;;  %v7803_v5 = vld [vmem:[#allocation2 + $0x3c] sm:$0xf]  ;;  %v9746_v50 = vpop.permute.xlu1 %9745 }
 0x454   : > { %v7573_v14 = vpack.c.b16 %v7525_v47, %v7525_v47  ;;  %v7574_v28 = vpack.c.b16 %v7526_v0, %v7526_v0  ;;  %v8622_v51 = vshll.u32 %v8490_v63, 16  ;;  %v9433_v42 = vunpack.c.l.b16 %v9386_v17  ;;  %v8272_v47 = vpop.permute.xlu0 %8271  ;;  %v9587_v0 = vld [vmem:[#allocation2 + $0x98] sm:$0x1] }
 0x455   : > { %v9434_v19 = vunpack.c.h.b16 %v9386_v17  ;;  %v7575_v7 = vpack.c.b16 %v7527_v37, %v7527_v37  ;;  %v9281_v24 = vor.u32 %v9280_v62, %v9276_v56  ;;  %v9285_v13 = vrot.slane %v9283_v61, 1 }
 0x456   : > { %7392 = vrot.lane.b32.xlu0 %v7366_v1, %s14371_s23  ;;  %v12973_v58 = vrot.slane %v7573_v14, 9  ;;  %v7638_v18 = vrot.slane %v7574_v28, 5  ;;  %v8624_v10 = vrot.slane %v8622_v51, 5  ;;  %v9465_v59 = vpack.c.b16 %v9433_v42, %v9433_v42  ;;  %v13262_v28 = vld [vmem:[#allocation3 + $0x6c] sm:$0xf0] }
 0x457   : > { %v9466_v4 = vpack.c.b16 %v9434_v19, %v9434_v19  ;;  %11135 = vmatmul.bf16.gmra.mxu1 %v13257_v33  ;;  %v7641_v44 = vrot.slane %v7575_v7, 5  ;;  %v13261_v31 = vor.u32 %v13991_v29, %v13260_v15  ;;  %v9286_v56 = vsel %vm1101_vm9, %v9281_v24, %v9285_v13  ;;  %v17492_v19 = vld [vmem:[#allocation2 + $0x90] sm:$0xff] }
 0x458   : > { %v7639_v55 = vsel %vm15322_vm1, %v12973_v58, %v7638_v18  ;;  %v7640_v25 = vrot.slane %v7638_v18, 4  ;;  %v8625_v1 = vsel %vm15312_vm15, %v8620_v12, %v8624_v10  ;;  %v7938_v39 = vunpack.c.l.b16 %v7826_v46  ;;  %9367 = vrot.lane.b32.xlu1 %v9286_v56, %s14371_s23  ;;  %9529 = vst [vmem:[#allocation3 + $0x84] sm:$0xf] %v9465_v59  ;;  %v13992_v18 = vld [vmem:[#allocation3 + $0x70] sm:$0xf0] }
 0x459   : > { %7765 = vst [vmem:[#allocation3 + $0x7c] sm:$0xf] %v7639_v55  ;;  %v14219_v40 = vor.u32 %v14218_v20, %v14217_v38  ;;  %11224 = vmatmul.bf16.gmra.mxu2 %v13261_v31  ;;  %v8169_v36 = vshrl.u32 %v17358_v6, 16  ;;  %v7915_v63 = vunpack.c.l.b16 %v7803_v5  ;;  %v9815_v12 = vsel %vm1326_vm10, %v16951_v3, %v9744_v26  ;;  %v13268_v3 = vld [vmem:[#allocation3 + $0x60] sm:$0xf] }
 0x45a   : > { %v7642_v22 = vsel %vm15322_vm1, %v7640_v25, %v7641_v44  ;;  %8953 = vst [vmem:[#allocation3 + $0x94] sm:$0xf] %v8625_v1  ;;  %v17485_v17 = vpack.c.b16 %v7938_v39, %v7938_v39  ;;  %v9932_v14 = vunpack.c.l.b16 %v9815_v12  ;;  %v18553_v62 = vunpack.c.l.b16 %v16885_v32  ;;  %v13088_v5 = vld [vmem:[#allocation2 + $0x84] sm:$0xe]  ;;  %v13971_v26 = vld [vmem:[#allocation2 + $0x84] sm:$0xf0] }
 0x45b   : > { %7766 = vst [vmem:[#allocation3 + $0x90] sm:$0xf] %v7642_v22  ;;  %v8186_v33 = vshrl.u32 %v14219_v40, 16  ;;  %v8188_v37 = vshll.u32 %v14219_v40, 16  ;;  %8293 = vrot.lane.b32.xlu2 %v8169_v36, %s14371_s23  ;;  %v9933_v51 = vunpack.c.h.b16 %v9815_v12  ;;  %v9683_v61 = vunpack.c.l.b16 %v9587_v0  ;;  %v12860_v31 = vld [vmem:[#allocation2 + $0x30] sm:$0xe] }
 0x45c   : > { %v7959_v38 = vpack.c.b16 %v18553_v62, %v7915_v63  ;;  %v9818_v42 = vsel %vm1326_vm10, %v16927_v30, %v9746_v50  ;;  %9530 = vst [vmem:[#allocation3 + $0x98] sm:$0xf] %v9466_v4  ;;  %v8193_v29 = vshll.u32 %v17485_v17, 16  ;;  %v9980_v7 = vpack.c.b16 %v9932_v14, %v9932_v14  ;;  %v7082_v0 = vld [vmem:[#allocation2 + $0x38] sm:$0x1]  ;;  %v8274_v50 = vpop.permute.xlu2 %8273  ;;  %v7381_v62 = vpop.permute.xlu0 %7380 }
 0x45d   : > { %v8190_v15 = vrot.slane %v8188_v37, 1  ;;  %v9934_v58 = vunpack.c.l.b16 %v9818_v42  ;;  %v9981_v46 = vpack.c.b16 %v9933_v51, %v9933_v51  ;;  %v17496_v32 = vpack.c.b16 %v9683_v61, %v9683_v61 }
 0x45e   : > { %v8341_v24 = vsel %vm1326_vm10, %v7959_v38, %v8272_v47  ;;  %v13265_v20 = vor.u32 %v13989_v57, %v13262_v28  ;;  %v8195_v13 = vrot.slane %v8193_v29, 1  ;;  %v13117_v55 = vrot.slane %v9980_v7, 9  ;;  %v13918_v47 = vld [vmem:[#allocation2 + $0x30] sm:$0xf0]  ;;  %v9022_v57 = vld [vmem:[#allocation2 + $0xa4] sm:$0x1] }
 0x45f   : > { %v8191_v10 = vor.u32 %v8190_v15, %v8186_v33  ;;  %v8443_v59 = vunpack.c.l.b16 %v8341_v24  ;;  %v8444_v30 = vunpack.c.h.b16 %v8341_v24  ;;  %v10042_v4 = vrot.slane %v9981_v46, 5  ;;  %v13957_v24 = vld [vmem:[#allocation2 + $0x9c] sm:$0xff] }
 0x460   : > { %v9982_v25 = vpack.c.b16 %v9934_v58, %v9934_v58  ;;  %11313 = vmatmul.bf16.gmra.mxu3 %v13265_v20  ;;  %v13269_v44 = vor.u32 %v13992_v18, %v13268_v3  ;;  %v7367_v40 = vrot.slane %v17492_v19, 7  ;;  %9773 = vrot.lane.b32.xlu1 %v17496_v32, %s14371_s23  ;;  %v17505_v12 = vor.u32 %v13971_v26, %v13088_v5  ;;  %v9356_v20 = vpop.permute.xlu1 %9355 }
 0x461   : > { %v8196_v1 = vsel %vm1101_vm9, %v8191_v10, %v8195_v13  ;;  %v8491_v56 = vpack.c.b16 %v8443_v59, %v8443_v59  ;;  %v8492_v39 = vpack.c.b16 %v8444_v30, %v8444_v30  ;;  %v10043_v22 = vsel %vm15322_vm1, %v13117_v55, %v10042_v4 }
 0x462   : > { %8299 = vrot.lane.b32.xlu0 %v8196_v1, %s14371_s23  ;;  %v10044_v36 = vrot.slane %v10042_v4, 4  ;;  %v10045_v63 = vrot.slane %v9982_v25, 5  ;;  %10169 = vst [vmem:[#allocation3 + $0x88] sm:$0xf] %v10043_v22  ;;  %11402 = vmatmul.bf16.gmra.mxu0 %v13269_v44  ;;  %v7210_v51 = vunpack.c.l.b16 %v7082_v0  ;;  %v12861_v61 = vor.u32 %v13918_v47, %v12860_v31  ;;  %v13993_v0 = vld [vmem:[#allocation3 + $0x7c] sm:$0xf] }
 0x463   : > { %v8627_v33 = vshrl.u32 %v8491_v56, 16  ;;  %v8630_v37 = vshll.u32 %v8491_v56, 16  ;;  %v8636_v14 = vshll.u32 %v8492_v39, 16  ;;  %v8640_v28 = vshrl.u32 %v8492_v39, 16  ;;  %9767 = vrot.lane.b32.xlu2 %v17505_v12, %s14371_s23  ;;  %v17516_v22 = vld [vmem:[#allocation2 + $0xa0] sm:$0xf] }
 0x464   : > { %v10046_v38 = vsel %vm15322_vm1, %v10044_v36, %v10045_v63  ;;  %v8343_v42 = vsel %vm1326_vm10, %v16909_v35, %v8274_v50  ;;  %v7253_v7 = vpack.c.b16 %v7210_v51, %v7210_v51  ;;  %v7426_v58 = vsel %vm1326_vm10, %v12861_v61, %v7381_v62  ;;  %v13280_v50 = vld [vmem:[#allocation3 + $0x80] sm:$0xf]  ;;  %v14339_v51 = vld [vmem:[#allocation2 + $0x48] sm:$0xff] }
 0x465   : > { %v8629_v3 = vrot.slane %v8627_v33, 4  ;;  %v8632_v19 = vrot.slane %v8630_v37, 5  ;;  %v8638_v15 = vrot.slane %v8636_v14, 5  ;;  %v8642_v29 = vrot.slane %v8640_v28, 4  ;;  %10170 = vst [vmem:[#allocation3 + $0x9c] sm:$0xf] %v10046_v38  ;;  %v9748_v28 = vpop.permute.xlu2 %9747 }
 0x466   : > { %v8445_v18 = vunpack.c.l.b16 %v8343_v42  ;;  %v9134_v46 = vunpack.c.l.b16 %v9022_v57  ;;  %v7528_v59 = vunpack.c.l.b16 %v7426_v58  ;;  %v7529_v30 = vunpack.c.h.b16 %v7426_v58  ;;  %v13274_v37 = vld [vmem:[#allocation3 + $0x8c] sm:$0xf0]  ;;  %v13996_v14 = vld [vmem:[#allocation3 + $0x90] sm:$0xf0] }
 0x467   : > { %v8633_v10 = vor.u32 %v8632_v19, %v8629_v3  ;;  %v8643_v13 = vor.u32 %v8642_v29, %v8638_v15  ;;  %v7428_v5 = vsel %vm1326_vm10, %v7253_v7, %v7381_v62  ;;  %v9288_v55 = vshrl.u32 %v13957_v24, 16  ;;  %v7851_v7 = vld [vmem:[#allocation2 + $0x9c] sm:$0xe] }
 0x468   : > { %v8493_v26 = vpack.c.b16 %v8445_v18, %v8445_v18  ;;  %v9150_v35 = vpack.c.b16 %v9134_v46, %v9134_v46  ;;  %v7530_v25 = vunpack.c.l.b16 %v7428_v5  ;;  %v7576_v44 = vpack.c.b16 %v7528_v59, %v7528_v59 }
 0x469   : > { %v8634_v4 = vrot.slane %v8633_v10, 4  ;;  %v7577_v31 = vpack.c.b16 %v7529_v30, %v7529_v30  ;;  %v8644_v1 = vrot.slane %v8643_v13, 4  ;;  %v9290_v39 = vshll.u32 %v13957_v24, 16  ;;  %v14196_v10 = vld [vmem:[#allocation2 + $0x48] sm:$0xff]   ;;  %v9590_v13 = vld [vmem:[#allocation2 + $0xa4] sm:$0x1] }
 0x46a   : > { %7394 = vrot.lane.b32.xlu0 %v7367_v40, %s14371_s23  ;;  %v8646_v56 = vshll.u32 %v8493_v26, 16  ;;  %v9295_v47 = vshll.u32 %v9150_v35, 16  ;;  %v7578_v63 = vpack.c.b16 %v7530_v25, %v7530_v25  ;;  %v12974_v57 = vrot.slane %v7576_v44, 9  ;;  %v9750_v44 = vpop.permute.xlu1 %9749 }
 0x46b   : > { %v8639_v36 = vsel %vm15312_vm15, %v8634_v4, %v8638_v15  ;;  %v7645_v33 = vrot.slane %v7577_v31, 5  ;;  %v9292_v40 = vrot.slane %v9290_v39, 1  ;;  %v9388_v61 = vsel %vm1326_vm10, %v14339_v51, %v9356_v20  ;;  %v7829_v15 = vld [vmem:[#allocation2 + $0xa4] sm:$0x1] }
 0x46c   : > { %8954 = vst [vmem:[#allocation3 + $0xa8] sm:$0xf] %v8639_v36  ;;  %v8648_v62 = vrot.slane %v8646_v56, 5  ;;  %v9297_v38 = vrot.slane %v9295_v47, 1  ;;  %v7648_v19 = vrot.slane %v7578_v63, 5  ;;  %v9435_v29 = vunpack.c.l.b16 %v9388_v61 }
 0x46d   : > { %v7646_v42 = vsel %vm15322_vm1, %v12974_v57, %v7645_v33  ;;  %v7647_v3 = vrot.slane %v7645_v33, 4  ;;  %v9293_v18 = vor.u32 %v9292_v40, %v9288_v55  ;;  %v9436_v24 = vunpack.c.h.b16 %v9388_v61  ;;  %v8276_v55 = vpop.permute.xlu0 %8275 }
 0x46e   : > { %7767 = vst [vmem:[#allocation3 + $0xa4] sm:$0xf] %v7646_v42  ;;  %v8649_v58 = vsel %vm15312_vm15, %v8644_v1, %v8648_v62  ;;  %v13277_v46 = vor.u32 %v13993_v0, %v13274_v37  ;;  %v9467_v59 = vpack.c.b16 %v9435_v29, %v9435_v29  ;;  %v13281_v30 = vor.u32 %v13996_v14, %v13280_v50  ;;  %v8278_v29 = vpop.permute.xlu2 %8277 }
 0x46f   : > { %v7649_v20 = vsel %vm15322_vm1, %v7647_v3, %v7648_v19  ;;  %8955 = vst [vmem:[#allocation3 + $0xbc] sm:$0xf] %v8649_v58  ;;  %v18421_v5 = vunpack.c.l.b16 %v17516_v22  ;;  %v9298_v26 = vsel %vm1101_vm9, %v9293_v18, %v9297_v38  ;;  %v9468_v35 = vpack.c.b16 %v9436_v24, %v9436_v24  ;;  %v13994_v3 = vld [vmem:[#allocation3 + $0x84] sm:$0xf]  ;;  %v17546_v19 = vld [vmem:[#allocation2 + $0x9c] sm:$0xff] }
 0x470   : > { %7768 = vst [vmem:[#allocation3 + $0xb8] sm:$0xf] %v7649_v20  ;;  %11140 = vmatmul.bf16.gmra.mxu1 %v13277_v46  ;;  %v7941_v4 = vunpack.c.l.b16 %v7829_v15  ;;  %v8011_v25 = vunpack.c.l.b16 %v7851_v7  ;;  %9369 = vrot.lane.b32.xlu1 %v9298_v26, %s14371_s23  ;;  %v8183_v31 = vshrl.u32 %v17441_v2, 16  ;;  %v8346_v1 = vsel %vm1326_vm10, %v14196_v10, %v8276_v55  ;;  %v13092_v24 = vld [vmem:[#allocation2 + $0x90] sm:$0xe] }
 0x471   : > { %9531 = vst [vmem:[#allocation3 + $0xac] sm:$0xf] %v9467_v59  ;;  %11229 = vmatmul.bf16.gmra.mxu2 %v13281_v30  ;;  %v9821_v56 = vsel %vm1326_vm10, %v17031_v9, %v9748_v28  ;;  %v9686_v39 = vunpack.c.l.b16 %v9590_v13  ;;  %v8446_v50 = vunpack.c.l.b16 %v8346_v1  ;;  %v8447_v36 = vunpack.c.h.b16 %v8346_v1  ;;  %v17544_v40 = vpop.f32.mrf.mxu1  ;;  %v13972_v46 = vld [vmem:[#allocation2 + $0x90] sm:$0xf0]  ;;  %v12864_v30 = vld [vmem:[#allocation2 + $0x3c] sm:$0xe] }
 0x472   : > { %9532 = vst [vmem:[#allocation3 + $0xc0] sm:$0xf] %v9468_v35  ;;  %v17534_v47 = vpack.c.b16 %v7941_v4, %v7941_v4  ;;  %v8027_v0 = vpack.c.b16 %v18421_v5, %v8011_v25  ;;  %8297 = vrot.lane.b32.xlu2 %v8183_v31, %s14371_s23  ;;  %v9935_v63 = vunpack.c.l.b16 %v9821_v56  ;;  %v9936_v57 = vunpack.c.h.b16 %v9821_v56  ;;  %v13919_v26 = vld [vmem:[#allocation2 + $0x3c] sm:$0xf0]  ;;  %v13997_v31 = vld [vmem:[#allocation3 + $0x98] sm:$0xf0] }
 0x473   : > { %v17539_v33 = vpack.c.b16 %v9686_v39, %v9686_v39  ;;  %v9824_v37 = vsel %vm1326_vm10, %v16975_v8, %v9750_v44  ;;  %v8494_v62 = vpack.c.b16 %v8446_v50, %v8446_v50  ;;  %18554 = vst [vmem:[#allocation36_spill] sm:$0xff] %v17544_v40  ;;  %v8495_v38 = vpack.c.b16 %v8447_v36, %v8447_v36  ;;  %v13282_v8 = vld [vmem:[#allocation3 + $0x94] sm:$0xf0]  ;;  %v13288_v44 = vld [vmem:[#allocation3 + $0x88] sm:$0xf] }
 0x474   : > { %v8200_v14 = vshrl.u32 %v8027_v0, 16  ;;  %v8202_v9 = vshll.u32 %v8027_v0, 16  ;;  %v8207_v28 = vshll.u32 %v17534_v47, 16  ;;  %v9983_v51 = vpack.c.b16 %v9935_v63, %v9935_v63  ;;  %v7085_v36 = vld [vmem:[#allocation2 + $0x44] sm:$0x1] }
 0x475   : > { %v9984_v61 = vpack.c.b16 %v9936_v57, %v9936_v57  ;;  %v9937_v42 = vunpack.c.l.b16 %v9824_v37  ;;  %v8651_v58 = vshrl.u32 %v8494_v62, 16  ;;  %v8654_v18 = vshll.u32 %v8494_v62, 16  ;;  %v17548_v1 = vpop.f32.mrf.mxu2 }
 0x476   : > { %v8204_v15 = vrot.slane %v8202_v9, 1  ;;  %v8209_v7 = vrot.slane %v8207_v28, 1  ;;  %v8660_v10 = vshll.u32 %v8495_v38, 16  ;;  %v8664_v13 = vshrl.u32 %v8495_v38, 16  ;;  %18555 = vst [vmem:[#allocation37_spill] sm:$0xff] %v17548_v1 }
 0x477   : > { %v13118_v20 = vrot.slane %v9983_v51, 9  ;;  %v10049_v59 = vrot.slane %v9984_v61, 5  ;;  %v8653_v4 = vrot.slane %v8651_v58, 4  ;;  %v8656_v25 = vrot.slane %v8654_v18, 5  ;;  %v9023_v9 = vld [vmem:[#allocation2 + $0xb0] sm:$0x1]  ;;  %v7383_v61 = vpop.permute.xlu0 %7382 }
 0x478   : > { %v8205_v35 = vor.u32 %v8204_v15, %v8200_v14  ;;  %v9985_v55 = vpack.c.b16 %v9937_v42, %v9937_v42  ;;  %v8662_v56 = vrot.slane %v8660_v10, 5  ;;  %v8666_v39 = vrot.slane %v8664_v13, 4  ;;  %9777 = vrot.lane.b32.xlu1 %v17539_v33, %s14371_s23  ;;  %v13958_v42 = vld [vmem:[#allocation2 + $0xa8] sm:$0xff]  ;;  %v9358_v15 = vpop.permute.xlu1 %9357 }
 0x479   : > { %v10050_v0 = vsel %vm15322_vm1, %v13118_v20, %v10049_v59  ;;  %v10051_v50 = vrot.slane %v10049_v59, 4  ;;  %v8657_v57 = vor.u32 %v8656_v25, %v8653_v4  ;;  %v13285_v14 = vor.u32 %v13994_v3, %v13282_v8  ;;  %v13998_v3 = vld [vmem:[#allocation3 + $0xa4] sm:$0xf]  ;;  %v17561_v8 = vpop.f32.mrf.mxu0  ;;  %v17563_v13 = vpop.f32.mrf.mxu1  ;;  %v13294_v59 = vld [vmem:[#allocation3 + $0xb4] sm:$0xf0] }
 0x47a   : > { %v8210_v63 = vsel %vm1101_vm9, %v8205_v35, %v8209_v7  ;;  %10171 = vst [vmem:[#allocation3 + $0xb0] sm:$0xf] %v10050_v0  ;;  %v10052_v37 = vrot.slane %v9985_v55, 5  ;;  %v8667_v28 = vor.u32 %v8666_v39, %v8662_v56  ;;  %v13289_v62 = vor.u32 %v13997_v31, %v13288_v44  ;;  %v9752_v39 = vpop.permute.xlu2 %9751 }
 0x47b   : > { %8303 = vrot.lane.b32.xlu0 %v8210_v63, %s14371_s23  ;;  %v7368_v38 = vrot.slane %v17546_v19, 7  ;;  %v17557_v51 = vor.u32 %v13972_v46, %v13092_v24  ;;  %v8658_v58 = vrot.slane %v8657_v57, 4  ;;  %11318 = vmatmul.bf16.gmra.mxu3 %v13285_v14  ;;  %v7213_v18 = vunpack.c.l.b16 %v7085_v36  ;;  %18556 = vst [vmem:[#allocation38_spill] sm:$0xff] %v17563_v13 }
 0x47c   : > { %v10053_v7 = vsel %vm15322_vm1, %v10051_v50, %v10052_v37  ;;  %v12865_v10 = vor.u32 %v13919_v26, %v12864_v30  ;;  %11407 = vmatmul.bf16.gmra.mxu0 %v13289_v62  ;;  %v8668_v19 = vrot.slane %v8667_v28, 4  ;;  %v8348_v24 = vsel %vm1326_vm10, %v16929_v52, %v8278_v29  ;;  %v14340_v52 = vld [vmem:[#allocation2 + $0x54] sm:$0xff]  ;;  %v14220_v28 = vld [vmem:[#allocation2 + $0xa8] sm:$0xf0] }
 0x47d   : > { %10172 = vst [vmem:[#allocation3 + $0xc4] sm:$0xf] %v10053_v7  ;;  %9771 = vrot.lane.b32.xlu2 %v17557_v51, %s14371_s23  ;;  %v9135_v46 = vunpack.c.l.b16 %v9023_v9  ;;  %v9300_v20 = vshrl.u32 %v13958_v42, 16  ;;  %v8663_v30 = vsel %vm15312_vm15, %v8658_v58, %v8662_v56  ;;  %v7255_v26 = vpack.c.b16 %v7213_v18, %v7213_v18  ;;  %v17574_v63 = vpop.f32.mrf.mxu2  ;;  %v17576_v56 = vpop.f32.mrf.mxu3  ;;  %v14001_v18 = vld [vmem:[#allocation3 + $0xb8] sm:$0xf0] }
 0x47e   : > { %v7431_v35 = vsel %vm1326_vm10, %v12865_v10, %v7383_v61  ;;  %v8448_v4 = vunpack.c.l.b16 %v8348_v24  ;;  %8956 = vst [vmem:[#allocation3 + $0xd0] sm:$0xf] %v8663_v30  ;;  %v9302_v31 = vshll.u32 %v13958_v42, 16  ;;  %v9390_v29 = vsel %vm1326_vm10, %v14340_v52, %v9358_v15 }
 0x47f   : > { %v7531_v25 = vunpack.c.l.b16 %v7431_v35  ;;  %v7532_v55 = vunpack.c.h.b16 %v7431_v35  ;;  %v9151_v44 = vpack.c.b16 %v9135_v46, %v9135_v46  ;;  %v7433_v0 = vsel %vm1326_vm10, %v7255_v26, %v7383_v61  ;;  %18557 = vst [vmem:[#allocation39_spill] sm:$0xff] %v17574_v63  ;;  %v13300_v61 = vld [vmem:[#allocation3 + $0xa8] sm:$0xf]  ;;  %v7832_v46 = vld [vmem:[#allocation2 + $0xb0] sm:$0x1]  ;;  %v8280_v52 = vpop.permute.xlu0 %8279 }
 0x480   : > { %v8496_v50 = vpack.c.b16 %v8448_v4, %v8448_v4  ;;  %v13297_v36 = vor.u32 %v13998_v3, %v13294_v59  ;;  %18558 = vst [vmem:[#allocation40_spill] sm:$0xff] %v17576_v56  ;;  %v7533_v57 = vunpack.c.l.b16 %v7433_v0  ;;  %v9304_v9 = vrot.slane %v9302_v31, 1  ;;  %v14221_v59 = vld [vmem:[#allocation2 + $0xa8] sm:$0xe] }
 0x481   : > { %v7579_v37 = vpack.c.b16 %v7531_v25, %v7531_v25  ;;  %v7580_v14 = vpack.c.b16 %v7532_v55, %v7532_v55  ;;  %v9307_v58 = vshll.u32 %v9151_v44, 16  ;;  %v9437_v42 = vunpack.c.l.b16 %v9390_v29  ;;  %v7809_v25 = vld [vmem:[#allocation2 + $0x54] sm:$0xf]  ;;  %v17579_v55 = vpop.f32.mrf.mxu0  ;;  %v17581_v44 = vpop.f32.mrf.mxu1 }
 0x482   : > { %v8670_v62 = vshll.u32 %v8496_v50, 16  ;;  %v9438_v7 = vunpack.c.h.b16 %v9390_v29  ;;  %11145 = vmatmul.bf16.gmra.mxu1 %v13297_v36  ;;  %v7581_v15 = vpack.c.b16 %v7533_v57, %v7533_v57  ;;  %v9305_v24 = vor.u32 %v9304_v9, %v9300_v20  ;;  %18559 = vst [vmem:[#allocation41_spill] sm:$0xff] %v17581_v44 }
 0x483   : > { %7396 = vrot.lane.b32.xlu0 %v7368_v38, %s14371_s23  ;;  %v12975_v10 = vrot.slane %v7579_v37, 9  ;;  %v7652_v3 = vrot.slane %v7580_v14, 5  ;;  %v9309_v26 = vrot.slane %v9307_v58, 1  ;;  %v9469_v35 = vpack.c.b16 %v9437_v42, %v9437_v42  ;;  %v9593_v37 = vld [vmem:[#allocation2 + $0xb0] sm:$0x1]  ;;  %v9754_v14 = vpop.permute.xlu1 %9753 }
 0x484   : > { %v8672_v30 = vrot.slane %v8670_v62, 5  ;;  %v9470_v4 = vpack.c.b16 %v9438_v7, %v9438_v7  ;;  %v7655_v38 = vrot.slane %v7581_v15, 5  ;;  %v13301_v50 = vor.u32 %v14001_v18, %v13300_v61  ;;  %v13302_v15 = vld [vmem:[#allocation3 + $0xbc] sm:$0xf0] }
 0x485   : > { %v7653_v31 = vsel %vm15322_vm1, %v12975_v10, %v7652_v3  ;;  %v7654_v0 = vrot.slane %v7652_v3, 4  ;;  %v9310_v29 = vsel %vm1101_vm9, %v9305_v24, %v9309_v26  ;;  %v7944_v36 = vunpack.c.l.b16 %v7832_v46  ;;  %9533 = vst [vmem:[#allocation3 + $0xd4] sm:$0xf] %v9469_v35  ;;  %v17603_v26 = vld [vmem:[#allocation2 + $0xa8] sm:$0xff] }
 0x486   : > { %7769 = vst [vmem:[#allocation3 + $0xcc] sm:$0xf] %v7653_v31  ;;  %v8673_v20 = vsel %vm15312_vm15, %v8668_v19, %v8672_v30  ;;  %v14222_v57 = vor.u32 %v14221_v59, %v14220_v28  ;;  %9371 = vrot.lane.b32.xlu1 %v9310_v29, %s14371_s23  ;;  %11234 = vmatmul.bf16.gmra.mxu2 %v13301_v50  ;;  %v8197_v62 = vshrl.u32 %v17485_v17, 16  ;;  %v7921_v58 = vunpack.c.l.b16 %v7809_v25  ;;  %v13999_v19 = vld [vmem:[#allocation3 + $0xac] sm:$0xf]  ;;  %v17605_v25 = vpop.f32.mrf.mxu3 }
 0x487   : > { %v7656_v9 = vsel %vm15322_vm1, %v7654_v0, %v7655_v38  ;;  %8957 = vst [vmem:[#allocation3 + $0xe4] sm:$0xf] %v8673_v20  ;;  %v9827_v42 = vsel %vm1326_vm10, %v17127_v54, %v9752_v39  ;;  %v17594_v7 = vpack.c.b16 %v7944_v36, %v7944_v36  ;;  %v17596_v10 = vpop.f32.mrf.mxu2  ;;  %v18562_v3 = vunpack.c.l.b16 %v16944_v43  ;;  %v18563_v30 = vld [vmem:[#allocation5_spill] sm:$0xff]  ;;  %v13308_v39 = vld [vmem:[#allocation3 + $0xb0] sm:$0xf]  ;;  %v8282_v20 = vpop.permute.xlu2 %8281 }
 0x488   : > { %7770 = vst [vmem:[#allocation3 + $0xe0] sm:$0xf] %v7656_v9  ;;  %v8214_v28 = vshrl.u32 %v14222_v57, 16  ;;  %v8216_v61 = vshll.u32 %v14222_v57, 16  ;;  %v9938_v18 = vunpack.c.l.b16 %v9827_v42  ;;  %8301 = vrot.lane.b32.xlu2 %v8197_v62, %s14371_s23  ;;  %v9939_v46 = vunpack.c.h.b16 %v9827_v42  ;;  %v14002_v50 = vld [vmem:[#allocation3 + $0xc0] sm:$0xf0] }
 0x489   : > { %18560 = vst [vmem:[#allocation42_spill] sm:$0xff] %v17594_v7  ;;  %v7963_v24 = vpack.c.b16 %v18562_v3, %v7921_v58  ;;  %v9689_v59 = vunpack.c.l.b16 %v9593_v37  ;;  %v9830_v54 = vsel %vm1326_vm10, %v18563_v30, %v9754_v14  ;;  %v8221_v0 = vshll.u32 %v17594_v7, 16  ;;  %v13096_v58 = vld [vmem:[#allocation2 + $0x9c] sm:$0xe]  ;;  %v13973_v42 = vld [vmem:[#allocation2 + $0x9c] sm:$0xf0] }
 0x48a   : > { %18561 = vst [vmem:[#allocation43_spill] sm:$0xff] %v17596_v10  ;;  %v8218_v31 = vrot.slane %v8216_v61, 1  ;;  %v9986_v35 = vpack.c.b16 %v9938_v18, %v9938_v18  ;;  %v9940_v38 = vunpack.c.l.b16 %v9830_v54  ;;  %v9987_v29 = vpack.c.b16 %v9939_v46, %v9939_v46  ;;  %v17613_v61 = vpop.f32.mrf.mxu1 }
 0x48b   : > { %18564 = vst [vmem:[#allocation5_spill] sm:$0xff] %v17605_v25  ;;  %v8351_v43 = vsel %vm1326_vm10, %v7963_v24, %v8280_v52  ;;  %v17609_v36 = vpack.c.b16 %v9689_v59, %v9689_v59  ;;  %v13305_v57 = vor.u32 %v13999_v19, %v13302_v15  ;;  %v8223_v14 = vrot.slane %v8221_v0, 1  ;;  %v12868_v52 = vld [vmem:[#allocation2 + $0x48] sm:$0xe]  ;;  %v13920_v15 = vld [vmem:[#allocation2 + $0x48] sm:$0xf0] }
 0x48c   : > { %9534 = vst [vmem:[#allocation3 + $0xe8] sm:$0xf] %v9470_v4  ;;  %v8219_v37 = vor.u32 %v8218_v31, %v8214_v28  ;;  %v8449_v9 = vunpack.c.l.b16 %v8351_v43  ;;  %v8450_v62 = vunpack.c.h.b16 %v8351_v43  ;;  %v17611_v4 = vpop.f32.mrf.mxu0  ;;  %v13119_v18 = vrot.slane %v9986_v35, 9  ;;  %v7088_v59 = vld [vmem:[#allocation2 + $0x50] sm:$0x1] }
 0x48d   : > { %18565 = vst [vmem:[#allocation44_spill] sm:$0xff] %v17609_v36  ;;  %v10056_v3 = vrot.slane %v9987_v29, 5  ;;  %v9988_v30 = vpack.c.b16 %v9940_v38, %v9940_v38  ;;  %11323 = vmatmul.bf16.gmra.mxu3 %v13305_v57  ;;  %v13309_v54 = vor.u32 %v14002_v50, %v13308_v39  ;;  %v7369_v28 = vrot.slane %v17603_v26, 7  ;;  %v7385_v38 = vpop.permute.xlu0 %7384  ;;  %v9024_v50 = vld [vmem:[#allocation2 + $0xbc] sm:$0x1] }
 0x48e   : > { %18566 = vst [vmem:[#allocation45_spill] sm:$0xff] %v17613_v61  ;;  %v8224_v24 = vsel %vm1101_vm9, %v8219_v37, %v8223_v14  ;;  %v8497_v46 = vpack.c.b16 %v8449_v9, %v8449_v9  ;;  %v8498_v19 = vpack.c.b16 %v8450_v62, %v8450_v62  ;;  %9781 = vrot.lane.b32.xlu1 %v17609_v36, %s14371_s23  ;;  %v7216_v14 = vunpack.c.l.b16 %v7088_v59  ;;  %v18567_v62 = vld [vmem:[#allocation4_spill] sm:$0xff]  ;;  %v17633_v5 = vpop.f32.mrf.mxu3  ;;  %v13320_v25 = vld [vmem:[#allocation3 + $0xd0] sm:$0xf] }
 0x48f   : > { %8307 = vrot.lane.b32.xlu0 %v8224_v24, %s14371_s23  ;;  %v10057_v31 = vsel %vm15322_vm1, %v13119_v18, %v10056_v3  ;;  %v10058_v0 = vrot.slane %v10056_v3, 4  ;;  %v10059_v35 = vrot.slane %v9988_v30, 5  ;;  %v17622_v39 = vor.u32 %v13973_v42, %v13096_v58  ;;  %11412 = vmatmul.bf16.gmra.mxu0 %v13309_v54  ;;  %v9360_v42 = vpop.permute.xlu1 %9359  ;;  %18569 = vst [vmem:[#allocation46_spill] sm:$0xff] %v17633_v5  ;;  %v14003_v5 = vld [vmem:[#allocation3 + $0xcc] sm:$0xf] }
 0x490   : > { %v8675_v43 = vshrl.u32 %v8497_v46, 16  ;;  %v8678_v29 = vshll.u32 %v8497_v46, 16  ;;  %v8684_v57 = vshll.u32 %v8498_v19, 16  ;;  %v8688_v26 = vshrl.u32 %v8498_v19, 16  ;;  %10173 = vst [vmem:[#allocation3 + $0xd8] sm:$0xf] %v10057_v31  ;;  %v17630_v46 = vpop.f32.mrf.mxu2 }
 0x491   : > { %v10060_v37 = vsel %vm15322_vm1, %v10058_v0, %v10059_v35  ;;  %9775 = vrot.lane.b32.xlu2 %v17622_v39, %s14371_s23  ;;  %v12869_v9 = vor.u32 %v13920_v15, %v12868_v52  ;;  %v8353_v58 = vsel %vm1326_vm10, %v18567_v62, %v8282_v20  ;;  %18568 = vst [vmem:[#allocation4_spill] sm:$0xff] %v17630_v46  ;;  %v13959_v0 = vld [vmem:[#allocation2 + $0xb4] sm:$0xff]  ;;  %v9136_v35 = vunpack.c.l.b16 %v9024_v50  ;;  %v17635_v62 = vpop.permute.xlu2 %9755 }
 0x492   : > { %v8677_v18 = vrot.slane %v8675_v43, 4  ;;  %v8680_v3 = vrot.slane %v8678_v29, 5  ;;  %v8686_v30 = vrot.slane %v8684_v57, 5  ;;  %v8690_v24 = vrot.slane %v8688_v26, 4  ;;  %10174 = vst [vmem:[#allocation3 + $0xec] sm:$0xf] %v10060_v37  ;;  %v17640_v50 = vpop.f32.mrf.mxu1 }
 0x493   : > { %v7257_v54 = vpack.c.b16 %v7216_v14, %v7216_v14  ;;  %v7436_v19 = vsel %vm1326_vm10, %v12869_v9, %v7385_v38  ;;  %v8451_v31 = vunpack.c.l.b16 %v8353_v58  ;;  %v9152_v57 = vpack.c.b16 %v9136_v35, %v9136_v35  ;;  %18570 = vst [vmem:[#allocation47_spill] sm:$0xff] %v17640_v50 }
 0x494   : > { %v8681_v52 = vor.u32 %v8680_v3, %v8677_v18  ;;  %v8691_v15 = vor.u32 %v8690_v24, %v8686_v30  ;;  %v7534_v59 = vunpack.c.l.b16 %v7436_v19  ;;  %v7535_v20 = vunpack.c.h.b16 %v7436_v19  ;;  %v17638_v58 = vpop.f32.mrf.mxu0 }
 0x495   : > { %v7438_v43 = vsel %vm1326_vm10, %v7257_v54, %v7385_v38  ;;  %v8499_v29 = vpack.c.b16 %v8451_v31, %v8451_v31  ;;  %v9312_v26 = vshrl.u32 %v13959_v0, 16  ;;  %v9314_v24 = vshll.u32 %v13959_v0, 16  ;;  %v17643_v38 = vld [vmem:[#allocation2 + $0xb8] sm:$0xf] }
 0x496   : > { %v8682_v37 = vrot.slane %v8681_v52, 4  ;;  %v7536_v14 = vunpack.c.l.b16 %v7438_v43  ;;  %v7582_v34 = vpack.c.b16 %v7534_v59, %v7534_v59  ;;  %v7583_v9 = vpack.c.b16 %v7535_v20, %v7535_v20  ;;  %18571 = vst [vmem:[#allocation48_spill] sm:$0xff] %v17643_v38  ;;  %v13314_v59 = vld [vmem:[#allocation3 + $0xdc] sm:$0xf0]  ;;  %v14006_v20 = vld [vmem:[#allocation3 + $0xe0] sm:$0xf0] }
 0x497   : > { %7398 = vrot.lane.b32.xlu0 %v7369_v28, %s14371_s23  ;;  %v8692_v18 = vrot.slane %v8691_v15, 4  ;;  %v8694_v3 = vshll.u32 %v8499_v29, 16  ;;  %v9319_v19 = vshll.u32 %v9152_v57, 16  ;;  %v9316_v56 = vrot.slane %v9314_v24, 1  ;;  %v14341_v15 = vld [vmem:[#allocation2 + $0x60] sm:$0xff]  ;;  %v8284_v29 = vpop.permute.xlu0 %8283 }
 0x498   : > { %v8687_v54 = vsel %vm15312_vm15, %v8682_v37, %v8686_v30  ;;  %v7584_v31 = vpack.c.b16 %v7536_v14, %v7536_v14  ;;  %v12976_v35 = vrot.slane %v7582_v34, 9  ;;  %v7659_v52 = vrot.slane %v7583_v9, 5  ;;  %v7835_v30 = vld [vmem:[#allocation2 + $0xbc] sm:$0x1]  ;;  %v7853_v37 = vld [vmem:[#allocation2 + $0xb4] sm:$0xe] }
 0x499   : > { %8958 = vst [vmem:[#allocation3 + $0xf8] sm:$0xf] %v8687_v54  ;;  %v8696_v43 = vrot.slane %v8694_v3, 5  ;;  %v9321_v28 = vrot.slane %v9319_v19, 1  ;;  %v9392_v0 = vsel %vm1326_vm10, %v14341_v15, %v9360_v42  ;;  %v9317_v14 = vor.u32 %v9316_v56, %v9312_v26  ;;  %v14197_v24 = vld [vmem:[#allocation2 + $0x60] sm:$0xff]   ;;  %v9758_v54 = vpop.permute.xlu1 %9757  ;;  %v17655_v15 = vpop.f32.mrf.mxu2 }
 0x49a   : > { %v7660_v57 = vsel %vm15322_vm1, %v12976_v35, %v7659_v52  ;;  %v7661_v46 = vrot.slane %v7659_v52, 4  ;;  %v7662_v10 = vrot.slane %v7584_v31, 5  ;;  %v9439_v63 = vunpack.c.l.b16 %v9392_v0  ;;  %v9596_v19 = vld [vmem:[#allocation2 + $0xbc] sm:$0x1]  ;;  %18572 = vst [vmem:[#allocation49_spill] sm:$0xff] %v17655_v15  ;;  %v17658_v26 = vpop.f32.mrf.mxu3 }
 0x49b   : > { %7771 = vst [vmem:[#allocation3 + $0xf4] sm:$0xf] %v7660_v57  ;;  %v8697_v34 = vsel %vm15312_vm15, %v8692_v18, %v8696_v43  ;;  %v9440_v9 = vunpack.c.h.b16 %v9392_v0  ;;  %v13317_v3 = vor.u32 %v14003_v5, %v13314_v59  ;;  %v13321_v52 = vor.u32 %v14006_v20, %v13320_v25  ;;  %v17666_v59 = vpop.permute.xlu2 %8285  ;;  %v13328_v50 = vld [vmem:[#allocation3 + $0xd8] sm:$0xf]  ;;  %v14007_v61 = vld [vmem:[#allocation3 + $0xe8] sm:$0xf0] }
 0x49c   : > { %v7663_v42 = vsel %vm15322_vm1, %v7661_v46, %v7662_v10  ;;  %8959 = vst [vmem:[#allocation3 + $0x10c] sm:$0xf] %v8697_v34  ;;  %v9471_v35 = vpack.c.b16 %v9439_v63, %v9439_v63  ;;  %v18423_v31 = vunpack.c.l.b16 %v17643_v38  ;;  %v9322_v57 = vsel %vm1101_vm9, %v9317_v14, %v9321_v28  ;;  %v18576_v34 = vld [vmem:[#allocation6_spill] sm:$0xff]  ;;  %v17679_v14 = vpop.f32.mrf.mxu1 }
 0x49d   : > { %7772 = vst [vmem:[#allocation3 + $0x108] sm:$0xf] %v7663_v42  ;;  %v9472_v18 = vpack.c.b16 %v9440_v9, %v9440_v9  ;;  %11150 = vmatmul.bf16.gmra.mxu1 %v13317_v3  ;;  %v7947_v56 = vunpack.c.l.b16 %v7835_v30  ;;  %v8013_v5 = vunpack.c.l.b16 %v7853_v37  ;;  %9373 = vrot.lane.b32.xlu1 %v9322_v57, %s14371_s23  ;;  %v8211_v63 = vshrl.u32 %v17534_v47, 16 }
 0x49e   : > { %18573 = vst [vmem:[#allocation50_spill] sm:$0xff] %v17658_v26  ;;  %11239 = vmatmul.bf16.gmra.mxu2 %v13321_v52  ;;  %v8356_v10 = vsel %vm1326_vm10, %v14197_v24, %v8284_v29  ;;  %v9833_v25 = vsel %vm1326_vm10, %v17303_v21, %v17635_v62  ;;  %v9692_v46 = vunpack.c.l.b16 %v9596_v19  ;;  %v9836_v21 = vsel %vm1326_vm10, %v18576_v34, %v9758_v54  ;;  %v17677_v62 = vpop.f32.mrf.mxu0  ;;  %v13974_v34 = vld [vmem:[#allocation2 + $0xa8] sm:$0xf0] }
 0x49f   : > { %9535 = vst [vmem:[#allocation3 + $0xfc] sm:$0xf] %v9471_v35  ;;  %v17668_v20 = vpack.c.b16 %v7947_v56, %v7947_v56  ;;  %v8029_v43 = vpack.c.b16 %v18423_v31, %v8013_v5  ;;  %v8452_v28 = vunpack.c.l.b16 %v8356_v10  ;;  %v8453_v0 = vunpack.c.h.b16 %v8356_v10  ;;  %8305 = vrot.lane.b32.xlu2 %v8211_v63, %s14371_s23  ;;  %v17682_v56 = vld [vmem:[#allocation2 + $0xb4] sm:$0xff]  ;;  %v7387_v31 = vpop.permute.xlu0 %7386 }
 0x4a0   : > { %9536 = vst [vmem:[#allocation3 + $0x110] sm:$0xf] %v9472_v18  ;;  %v9941_v30 = vunpack.c.l.b16 %v9833_v25  ;;  %v9942_v37 = vunpack.c.h.b16 %v9833_v25  ;;  %v17673_v29 = vpack.c.b16 %v9692_v46, %v9692_v46  ;;  %v9943_v57 = vunpack.c.l.b16 %v9836_v21  ;;  %v14004_v18 = vld [vmem:[#allocation3 + $0xd4] sm:$0xf]  ;;  %v13322_v25 = vld [vmem:[#allocation3 + $0xe4] sm:$0xf0] }
 0x4a1   : > { %18574 = vst [vmem:[#allocation51_spill] sm:$0xff] %v17668_v20  ;;  %v8228_v9 = vshrl.u32 %v8029_v43, 16  ;;  %v8230_v3 = vshll.u32 %v8029_v43, 16  ;;  %v8235_v24 = vshll.u32 %v17668_v20, 16  ;;  %v8500_v19 = vpack.c.b16 %v8452_v28, %v8452_v28  ;;  %v13100_v46 = vld [vmem:[#allocation2 + $0xa8] sm:$0xe] }
 0x4a2   : > { %18575 = vst [vmem:[#allocation52_spill] sm:$0xff] %v17673_v29  ;;  %v8501_v42 = vpack.c.b16 %v8453_v0, %v8453_v0  ;;  %v9989_v35 = vpack.c.b16 %v9941_v30, %v9941_v30  ;;  %v9990_v52 = vpack.c.b16 %v9942_v37, %v9942_v37  ;;  %v12872_v28 = vld [vmem:[#allocation2 + $0x54] sm:$0xe]  ;;  %v13921_v0 = vld [vmem:[#allocation2 + $0x54] sm:$0xf0] }
 0x4a3   : > { %18577 = vst [vmem:[#allocation6_spill] sm:$0xff] %v17679_v14  ;;  %v8232_v5 = vrot.slane %v8230_v3, 1  ;;  %v8237_v63 = vrot.slane %v8235_v24, 1  ;;  %v8699_v10 = vshrl.u32 %v8500_v19, 16  ;;  %v8702_v54 = vshll.u32 %v8500_v19, 16  ;;  %v9362_v3 = vpop.permute.xlu1 %9361  ;;  %v17697_v38 = vpop.permute.xlu2 %9759 }
 0x4a4   : > { %v8708_v26 = vshll.u32 %v8501_v42, 16  ;;  %v8712_v43 = vshrl.u32 %v8501_v42, 16  ;;  %v13120_v15 = vrot.slane %v9989_v35, 9  ;;  %v10063_v1 = vrot.slane %v9990_v52, 5  ;;  %v7091_v42 = vld [vmem:[#allocation2 + $0x5c] sm:$0x1]  ;;  %v17688_v35 = vpop.f32.mrf.mxu2 }
 0x4a5   : > { %v8233_v30 = vor.u32 %v8232_v5, %v8228_v9  ;;  %v8701_v37 = vrot.slane %v8699_v10, 4  ;;  %v8704_v21 = vrot.slane %v8702_v54, 5  ;;  %v9991_v14 = vpack.c.b16 %v9943_v57, %v9943_v57  ;;  %9785 = vrot.lane.b32.xlu1 %v17673_v29, %s14371_s23  ;;  %18578 = vst [vmem:[#allocation53_spill] sm:$0xff] %v17688_v35  ;;  %v9025_v10 = vld [vmem:[#allocation2 + $0xc8] sm:$0x1]  ;;  %v17691_v54 = vpop.f32.mrf.mxu3  ;;  %v13960_v29 = vld [vmem:[#allocation2 + $0xc0] sm:$0xff] }
 0x4a6   : > { %v8710_v24 = vrot.slane %v8708_v26, 5  ;;  %v8714_v44 = vrot.slane %v8712_v43, 4  ;;  %v10064_v19 = vsel %vm15322_vm1, %v13120_v15, %v10063_v1  ;;  %v10065_v13 = vrot.slane %v10063_v1, 4  ;;  %18579 = vst [vmem:[#allocation54_spill] sm:$0xff] %v17691_v54 }
 0x4a7   : > { %v8238_v9 = vsel %vm1101_vm9, %v8233_v30, %v8237_v63  ;;  %v8705_v52 = vor.u32 %v8704_v21, %v8701_v37  ;;  %10175 = vst [vmem:[#allocation3 + $0x100] sm:$0xf] %v10064_v19  ;;  %v10066_v57 = vrot.slane %v9991_v14, 5  ;;  %v13325_v5 = vor.u32 %v14004_v18, %v13322_v25  ;;  %v14008_v25 = vld [vmem:[#allocation3 + $0xf4] sm:$0xf]  ;;  %v17701_v30 = vpop.f32.mrf.mxu0  ;;  %v17703_v37 = vpop.f32.mrf.mxu1 }
 0x4a8   : > { %8311 = vrot.lane.b32.xlu0 %v8238_v9, %s14371_s23  ;;  %v8715_v26 = vor.u32 %v8714_v44, %v8710_v24  ;;  %v13329_v15 = vor.u32 %v14007_v61, %v13328_v50  ;;  %v7370_v1 = vrot.slane %v17682_v56, 7  ;;  %v17695_v43 = vor.u32 %v13974_v34, %v13100_v46  ;;  %18581 = vst [vmem:[#allocation56_spill] sm:$0xff] %v17703_v37  ;;  %v13334_v56 = vld [vmem:[#allocation3 + $0x104] sm:$0xf0] }
 0x4a9   : > { %v8706_v35 = vrot.slane %v8705_v52, 4  ;;  %v10067_v63 = vsel %vm15322_vm1, %v10065_v13, %v10066_v57  ;;  %11328 = vmatmul.bf16.gmra.mxu3 %v13325_v5  ;;  %v7219_v14 = vunpack.c.l.b16 %v7091_v42  ;;  %v12873_v18 = vor.u32 %v13921_v0, %v12872_v28  ;;  %v14342_v5 = vld [vmem:[#allocation2 + $0x6c] sm:$0xff] }
 0x4aa   : > { %18580 = vst [vmem:[#allocation55_spill] sm:$0xff] %v17695_v43  ;;  %11417 = vmatmul.bf16.gmra.mxu0 %v13329_v15  ;;  %9779 = vrot.lane.b32.xlu2 %v17695_v43, %s14371_s23  ;;  %v8716_v44 = vrot.slane %v8715_v26, 4  ;;  %v8358_v61 = vsel %vm1326_vm10, %v17045_v16, %v17666_v59  ;;  %v9137_v50 = vunpack.c.l.b16 %v9025_v10  ;;  %v9324_v13 = vshrl.u32 %v13960_v29, 16  ;;  %v17715_v10 = vpop.permute.xlu0 %8287  ;;  %v13923_v43 = vld [vmem:[#allocation2 + $0x6c] sm:$0xf0] }
 0x4ab   : > { %10176 = vst [vmem:[#allocation3 + $0x114] sm:$0xf] %v10067_v63  ;;  %v8711_v46 = vsel %vm15312_vm15, %v8706_v35, %v8710_v24  ;;  %v7259_v34 = vpack.c.b16 %v7219_v14, %v7219_v14  ;;  %v7441_v28 = vsel %vm1326_vm10, %v12873_v18, %v7387_v31  ;;  %v8454_v0 = vunpack.c.l.b16 %v8358_v61  ;;  %v14223_v63 = vld [vmem:[#allocation2 + $0xc0] sm:$0xf0] }
 0x4ac   : > { %8960 = vst [vmem:[#allocation3 + $0x120] sm:$0xf] %v8711_v46  ;;  %v7537_v21 = vunpack.c.l.b16 %v7441_v28  ;;  %v7538_v19 = vunpack.c.h.b16 %v7441_v28  ;;  %v9153_v42 = vpack.c.b16 %v9137_v50, %v9137_v50  ;;  %v9326_v9 = vshll.u32 %v13960_v29, 16  ;;  %v13340_v29 = vld [vmem:[#allocation3 + $0xf8] sm:$0xf] }
 0x4ad   : > { %v7443_v52 = vsel %vm1326_vm10, %v7259_v34, %v7387_v31  ;;  %v8502_v57 = vpack.c.b16 %v8454_v0, %v8454_v0  ;;  %v9394_v16 = vsel %vm1326_vm10, %v14342_v5, %v9362_v3  ;;  %v13337_v59 = vor.u32 %v14008_v25, %v13334_v56  ;;  %v14011_v50 = vld [vmem:[#allocation3 + $0x108] sm:$0xf0]  ;;  %v9762_v31 = vpop.permute.xlu1 %9761  ;;  %v17717_v34 = vpop.f32.mrf.mxu2  ;;  %v7838_v0 = vld [vmem:[#allocation2 + $0xc8] sm:$0x1] }
 0x4ae   : > { %v7539_v26 = vunpack.c.l.b16 %v7443_v52  ;;  %v7585_v24 = vpack.c.b16 %v7537_v21, %v7537_v21  ;;  %v7586_v35 = vpack.c.b16 %v7538_v19, %v7538_v19  ;;  %v9328_v15 = vrot.slane %v9326_v9, 1  ;;  %18582 = vst [vmem:[#allocation57_spill] sm:$0xff] %v17717_v34  ;;  %v14224_v21 = vld [vmem:[#allocation2 + $0xc0] sm:$0xe]  ;;  %v17720_v5 = vpop.f32.mrf.mxu3 }
 0x4af   : > { %v8718_v14 = vshll.u32 %v8502_v57, 16  ;;  %v9331_v18 = vshll.u32 %v9153_v42, 16  ;;  %v9441_v61 = vunpack.c.l.b16 %v9394_v16  ;;  %v9442_v46 = vunpack.c.h.b16 %v9394_v16  ;;  %11155 = vmatmul.bf16.gmra.mxu1 %v13337_v59  ;;  %v7815_v57 = vld [vmem:[#allocation2 + $0x6c] sm:$0xf]  ;;  %18583 = vst [vmem:[#allocation58_spill] sm:$0xff] %v17720_v5 }
 0x4b0   : > { %7400 = vrot.lane.b32.xlu0 %v7370_v1, %s14371_s23  ;;  %v7587_v3 = vpack.c.b16 %v7539_v26, %v7539_v26  ;;  %v12977_v25 = vrot.slane %v7585_v24, 9  ;;  %v7666_v56 = vrot.slane %v7586_v35, 5  ;;  %v9329_v28 = vor.u32 %v9328_v15, %v9324_v13  ;;  %v17724_v1 = vpop.permute.xlu2 %8289  ;;  %v9599_v15 = vld [vmem:[#allocation2 + $0xc8] sm:$0x1] }
 0x4b1   : > { %v8720_v19 = vrot.slane %v8718_v14, 5  ;;  %v9333_v9 = vrot.slane %v9331_v18, 1  ;;  %v9473_v52 = vpack.c.b16 %v9441_v61, %v9441_v61  ;;  %v9474_v42 = vpack.c.b16 %v9442_v46, %v9442_v46  ;;  %v17729_v14 = vpop.f32.mrf.mxu0  ;;  %v17731_v18 = vpop.f32.mrf.mxu1 }
 0x4b2   : > { %v7667_v16 = vsel %vm15322_vm1, %v12977_v25, %v7666_v56  ;;  %v7668_v59 = vrot.slane %v7666_v56, 4  ;;  %v7669_v54 = vrot.slane %v7587_v3, 5  ;;  %v13341_v34 = vor.u32 %v14011_v50, %v13340_v29  ;;  %18584 = vst [vmem:[#allocation59_spill] sm:$0xff] %v17729_v14 }
 0x4b3   : > { %7773 = vst [vmem:[#allocation3 + $0x11c] sm:$0xf] %v7667_v16  ;;  %v8721_v13 = vsel %vm15312_vm15, %v8716_v44, %v8720_v19  ;;  %v9334_v26 = vsel %vm1101_vm9, %v9329_v28, %v9333_v9  ;;  %v7950_v24 = vunpack.c.l.b16 %v7838_v0  ;;  %v14225_v35 = vor.u32 %v14224_v21, %v14223_v63  ;;  %v14009_v63 = vld [vmem:[#allocation3 + $0xfc] sm:$0xf]  ;;  %v13342_v28 = vld [vmem:[#allocation3 + $0x10c] sm:$0xf0] }
 0x4b4   : > { %18585 = vst [vmem:[#allocation60_spill] sm:$0xff] %v17731_v18  ;;  %v7670_v61 = vsel %vm15322_vm1, %v7668_v59, %v7669_v54  ;;  %9375 = vrot.lane.b32.xlu1 %v9334_v26, %s14371_s23  ;;  %11244 = vmatmul.bf16.gmra.mxu2 %v13341_v34  ;;  %v8225_v46 = vshrl.u32 %v17594_v7, 16  ;;  %v7927_v29 = vunpack.c.l.b16 %v7815_v57  ;;  %v9839_v44 = vsel %vm1326_vm10, %v17401_v48, %v17697_v38  ;;  %v18586_v54 = vld [vmem:[#allocation35_spill] sm:$0xff]  ;;  %v13348_v48 = vld [vmem:[#allocation3 + $0x100] sm:$0xf]  ;;  %v17747_v38 = vld [vmem:[#allocation2 + $0xc0] sm:$0xff]  ;;  %v7389_v26 = vpop.permute.xlu0 %7388 }
 0x4b5   : > { %8961 = vst [vmem:[#allocation3 + $0x134] sm:$0xf] %v8721_v13  ;;  %v17740_v50 = vpack.c.b16 %v7950_v24, %v7950_v24  ;;  %v8242_v3 = vshrl.u32 %v14225_v35, 16  ;;  %v8244_v25 = vshll.u32 %v14225_v35, 16  ;;  %v9944_v56 = vunpack.c.l.b16 %v9839_v44  ;;  %v12876_v18 = vld [vmem:[#allocation2 + $0x60] sm:$0xe] }
 0x4b6   : > { %7774 = vst [vmem:[#allocation3 + $0x130] sm:$0xf] %v7670_v61  ;;  %8309 = vrot.lane.b32.xlu2 %v8225_v46, %s14371_s23  ;;  %v18587_v34 = vunpack.c.l.b16 %v18586_v54  ;;  %v9945_v21 = vunpack.c.h.b16 %v9839_v44  ;;  %v9695_v19 = vunpack.c.l.b16 %v9599_v15  ;;  %v9842_v9 = vsel %vm1326_vm10, %v17200_v60, %v9762_v31  ;;  %v13104_v44 = vld [vmem:[#allocation2 + $0xb4] sm:$0xe]  ;;  %v17754_v54 = vpop.f32.mrf.mxu2 }
 0x4b7   : > { %9537 = vst [vmem:[#allocation3 + $0x124] sm:$0xf] %v9473_v52  ;;  %v8246_v57 = vrot.slane %v8244_v25, 1  ;;  %v8249_v16 = vshll.u32 %v17740_v50, 16  ;;  %v9992_v59 = vpack.c.b16 %v9944_v56, %v9944_v56  ;;  %v9946_v13 = vunpack.c.l.b16 %v9842_v9  ;;  %v14012_v52 = vld [vmem:[#allocation3 + $0x110] sm:$0xf0]  ;;  %v9364_v25 = vpop.permute.xlu1 %9363 }
 0x4b8   : > { %v7967_v0 = vpack.c.b16 %v18587_v34, %v7927_v29  ;;  %9538 = vst [vmem:[#allocation3 + $0x138] sm:$0xf] %v9474_v42  ;;  %v9993_v35 = vpack.c.b16 %v9945_v21, %v9945_v21  ;;  %v17752_v61 = vpack.c.b16 %v9695_v19, %v9695_v19  ;;  %v13345_v15 = vor.u32 %v14009_v63, %v13342_v28  ;;  %v13975_v42 = vld [vmem:[#allocation2 + $0xb4] sm:$0xf0]  ;;  %v7094_v28 = vld [vmem:[#allocation2 + $0x68] sm:$0x1]  ;;  %v17758_v19 = vpop.f32.mrf.mxu3 }
 0x4b9   : > { %v8247_v46 = vor.u32 %v8246_v57, %v8242_v3  ;;  %v8251_v60 = vrot.slane %v8249_v16, 1  ;;  %18589 = vst [vmem:[#allocation61_spill] sm:$0xff] %v17754_v54  ;;  %v13121_v56 = vrot.slane %v9992_v59, 9  ;;  %v9994_v9 = vpack.c.b16 %v9946_v13, %v9946_v13  ;;  %v13922_v3 = vld [vmem:[#allocation2 + $0x60] sm:$0xf0]  ;;  %v17767_v13 = vpop.permute.xlu2 %9763 }
 0x4ba   : > { %v8361_v24 = vsel %vm1326_vm10, %v7967_v0, %v17715_v10  ;;  %18588 = vst [vmem:[#allocation35_spill] sm:$0xff] %v17752_v61  ;;  %v10070_v34 = vrot.slane %v9993_v35, 5  ;;  %11333 = vmatmul.bf16.gmra.mxu3 %v13345_v15  ;;  %v13349_v5 = vor.u32 %v14012_v52, %v13348_v48  ;;  %v7371_v63 = vrot.slane %v17747_v38, 7  ;;  %v17769_v15 = vpop.f32.mrf.mxu0 }
 0x4bb   : > { %v8455_v31 = vunpack.c.l.b16 %v8361_v24  ;;  %v8456_v29 = vunpack.c.h.b16 %v8361_v24  ;;  %v8252_v10 = vsel %vm1101_vm9, %v8247_v46, %v8251_v60  ;;  %18590 = vst [vmem:[#allocation62_spill] sm:$0xff] %v17758_v19  ;;  %v10073_v48 = vrot.slane %v9994_v9, 5  ;;  %v17771_v46 = vpop.f32.mrf.mxu1 }
 0x4bc   : > { %8315 = vrot.lane.b32.xlu0 %v8252_v10, %s14371_s23  ;;  %v10071_v57 = vsel %vm15322_vm1, %v13121_v56, %v10070_v34  ;;  %v10072_v16 = vrot.slane %v10070_v34, 4  ;;  %9789 = vrot.lane.b32.xlu1 %v17752_v61, %s14371_s23  ;;  %v17765_v59 = vor.u32 %v13975_v42, %v13104_v44  ;;  %18592 = vst [vmem:[#allocation64_spill] sm:$0xff] %v17769_v15  ;;  %v14016_v54 = vld [vmem:[#allocation3 + $0x130] sm:$0xf0]  ;;  %v12880_v15 = vld [vmem:[#allocation2 + $0x6c] sm:$0xe] }
 0x4bd   : > { %v8503_v0 = vpack.c.b16 %v8455_v31, %v8455_v31  ;;  %v8504_v21 = vpack.c.b16 %v8456_v29, %v8456_v29  ;;  %10177 = vst [vmem:[#allocation3 + $0x128] sm:$0xf] %v10071_v57  ;;  %11422 = vmatmul.bf16.gmra.mxu0 %v13349_v5  ;;  %v7222_v31 = vunpack.c.l.b16 %v7094_v28  ;;  %v12877_v29 = vor.u32 %v13922_v3, %v12876_v18  ;;  %v8292_v3 = vpop.permute.xlu0 %8291 }
 0x4be   : > { %18591 = vst [vmem:[#allocation63_spill] sm:$0xff] %v17765_v59  ;;  %v10074_v60 = vsel %vm15322_vm1, %v10072_v16, %v10073_v48  ;;  %9783 = vrot.lane.b32.xlu2 %v17765_v59, %s14371_s23  ;;  %v8363_v44 = vsel %vm1326_vm10, %v17184_v49, %v17724_v1 }
 0x4bf   : > { %v8723_v52 = vshrl.u32 %v8503_v0, 16  ;;  %v8726_v38 = vshll.u32 %v8503_v0, 16  ;;  %v8732_v24 = vshll.u32 %v8504_v21, 16  ;;  %v8736_v35 = vshrl.u32 %v8504_v21, 16  ;;  %10178 = vst [vmem:[#allocation3 + $0x13c] sm:$0xf] %v10074_v60  ;;  %v9766_v37 = vpop.permute.xlu1 %9765 }
 0x4c0   : > { %v7261_v9 = vpack.c.b16 %v7222_v31, %v7222_v31  ;;  %v7446_v10 = vsel %vm1326_vm10, %v12877_v29, %v7389_v26  ;;  %v8457_v0 = vunpack.c.l.b16 %v8363_v44  ;;  %v14343_v21 = vld [vmem:[#allocation2 + $0x78] sm:$0xff]  ;;  %v13354_v44 = vld [vmem:[#allocation3 + $0x12c] sm:$0xf0] }
 0x4c1   : > { %v8725_v42 = vrot.slane %v8723_v52, 4  ;;  %v8728_v56 = vrot.slane %v8726_v38, 5  ;;  %v8734_v34 = vrot.slane %v8732_v24, 5  ;;  %v8738_v5 = vrot.slane %v8736_v35, 4  ;;  %v14013_v38 = vld [vmem:[#allocation3 + $0x11c] sm:$0xf] }
 0x4c2   : > { %v9396_v57 = vsel %vm1326_vm10, %v14343_v21, %v9364_v25  ;;  %v7540_v28 = vunpack.c.l.b16 %v7446_v10  ;;  %v7541_v18 = vunpack.c.h.b16 %v7446_v10  ;;  %v7448_v19 = vsel %vm1326_vm10, %v7261_v9, %v7389_v26  ;;  %v13360_v24 = vld [vmem:[#allocation3 + $0x120] sm:$0xf]  ;;  %v17783_v25 = vpop.f32.mrf.mxu2  ;;  %v9602_v9 = vld [vmem:[#allocation2 + $0xd4] sm:$0x1]  ;;  %v17786_v10 = vpop.f32.mrf.mxu3 }
 0x4c3   : > { %v8729_v16 = vor.u32 %v8728_v56, %v8725_v42  ;;  %v8739_v48 = vor.u32 %v8738_v5, %v8734_v34  ;;  %v8505_v49 = vpack.c.b16 %v8457_v0, %v8457_v0  ;;  %v9443_v1 = vunpack.c.l.b16 %v9396_v57  ;;  %18593 = vst [vmem:[#allocation65_spill] sm:$0xff] %v17786_v10 }
 0x4c4   : > { %v9444_v52 = vunpack.c.h.b16 %v9396_v57  ;;  %v7542_v60 = vunpack.c.l.b16 %v7448_v19  ;;  %v7588_v31 = vpack.c.b16 %v7540_v28, %v7540_v28  ;;  %v7589_v29 = vpack.c.b16 %v7541_v18, %v7541_v18  ;;  %7402 = vrot.lane.b32.xlu0 %v7371_v63, %s14371_s23  ;;  %v17790_v28 = vpop.f32.mrf.mxu1  ;;  %v17792_v18 = vpop.f32.mrf.mxu0 }
 0x4c5   : > { %v8730_v35 = vrot.slane %v8729_v16, 4  ;;  %v8740_v42 = vrot.slane %v8739_v48, 4  ;;  %v8742_v56 = vshll.u32 %v8505_v49, 16  ;;  %v9475_v5 = vpack.c.b16 %v9443_v1, %v9443_v1  ;;  %v14198_v16 = vld [vmem:[#allocation2 + $0x78] sm:$0xff]  }
 0x4c6   : > { %v9476_v26 = vpack.c.b16 %v9444_v52, %v9444_v52  ;;  %v7590_v19 = vpack.c.b16 %v7542_v60, %v7542_v60  ;;  %v12978_v21 = vrot.slane %v7588_v31, 9  ;;  %v7673_v57 = vrot.slane %v7589_v29, 5  ;;  %v17795_v52 = vpop.permute.xlu2 %8293  ;;  %v9026_v31 = vld [vmem:[#allocation2 + $0xd4] sm:$0x1]  ;;  %v14017_v59 = vld [vmem:[#allocation3 + $0x138] sm:$0xf0] }
 0x4c7   : > { %v8735_v0 = vsel %vm15312_vm15, %v8730_v35, %v8734_v34  ;;  %v8744_v63 = vrot.slane %v8742_v56, 5  ;;  %v13357_v48 = vor.u32 %v14013_v38, %v13354_v44  ;;  %v13361_v49 = vor.u32 %v14016_v54, %v13360_v24  ;;  %9539 = vst [vmem:[#allocation3 + $0x14c] sm:$0xf] %v9475_v5  ;;  %v13961_v24 = vld [vmem:[#allocation2 + $0xcc] sm:$0xff] }
 0x4c8   : > { %8962 = vst [vmem:[#allocation3 + $0x148] sm:$0xf] %v8735_v0  ;;  %v8239_v1 = vshrl.u32 %v17668_v20, 16  ;;  %v7674_v10 = vsel %vm15322_vm1, %v12978_v21, %v7673_v57  ;;  %v7675_v34 = vrot.slane %v7673_v57, 4  ;;  %v7676_v35 = vrot.slane %v7590_v19, 5  ;;  %v17812_v57 = vpop.permute.xlu0 %7390 }
 0x4c9   : > { %v9698_v60 = vunpack.c.l.b16 %v9602_v9  ;;  %7775 = vst [vmem:[#allocation3 + $0x144] sm:$0xf] %v7674_v10  ;;  %v8745_v29 = vsel %vm15312_vm15, %v8740_v42, %v8744_v63  ;;  %11160 = vmatmul.bf16.gmra.mxu1 %v13357_v48  ;;  %11249 = vmatmul.bf16.gmra.mxu2 %v13361_v49  ;;  %v8366_v54 = vsel %vm1326_vm10, %v14198_v16, %v8292_v3  ;;  %v9138_v0 = vunpack.c.l.b16 %v9026_v31  ;;  %v13362_v31 = vld [vmem:[#allocation3 + $0x134] sm:$0xf0] }
 0x4ca   : > { %v9845_v38 = vsel %vm1326_vm10, %v17460_v11, %v17767_v13  ;;  %v7677_v44 = vsel %vm15322_vm1, %v7675_v34, %v7676_v35  ;;  %8963 = vst [vmem:[#allocation3 + $0x15c] sm:$0xf] %v8745_v29  ;;  %8313 = vrot.lane.b32.xlu2 %v8239_v1, %s14371_s23  ;;  %v8458_v5 = vunpack.c.l.b16 %v8366_v54  ;;  %v8459_v9 = vunpack.c.h.b16 %v8366_v54  ;;  %v17814_v16 = vpop.f32.mrf.mxu2  ;;  %v14014_v34 = vld [vmem:[#allocation3 + $0x124] sm:$0xf]  ;;  %v17818_v35 = vpop.f32.mrf.mxu3  ;;  %v13108_v29 = vld [vmem:[#allocation2 + $0xc0] sm:$0xe] }
 0x4cb   : > { %v17808_v56 = vpack.c.b16 %v9698_v60, %v9698_v60  ;;  %7776 = vst [vmem:[#allocation3 + $0x158] sm:$0xf] %v7677_v44  ;;  %v9947_v42 = vunpack.c.l.b16 %v9845_v38  ;;  %v9948_v10 = vunpack.c.h.b16 %v9845_v38  ;;  %v9848_v3 = vsel %vm1326_vm10, %v17391_v23, %v9766_v37  ;;  %v13976_v54 = vld [vmem:[#allocation2 + $0xc0] sm:$0xf0]  ;;  %v7097_v38 = vld [vmem:[#allocation2 + $0x74] sm:$0x1]  ;;  %v9366_v44 = vpop.permute.xlu1 %9365 }
 0x4cc   : > { %9540 = vst [vmem:[#allocation3 + $0x160] sm:$0xf] %v9476_v26  ;;  %v8506_v11 = vpack.c.b16 %v8458_v5, %v8458_v5  ;;  %v8507_v13 = vpack.c.b16 %v8459_v9, %v8459_v9  ;;  %v9949_v19 = vunpack.c.l.b16 %v9848_v3  ;;  %v9336_v21 = vshrl.u32 %v13961_v24, 16  ;;  %v17820_v5 = vpop.f32.mrf.mxu1 }
 0x4cd   : > { %18594 = vst [vmem:[#allocation66_spill] sm:$0xff] %v17808_v56  ;;  %9793 = vrot.lane.b32.xlu0 %v17808_v56, %s14371_s23  ;;  %v9995_v63 = vpack.c.b16 %v9947_v42, %v9947_v42  ;;  %v9996_v48 = vpack.c.b16 %v9948_v10, %v9948_v10  ;;  %v9154_v49 = vpack.c.b16 %v9138_v0, %v9138_v0  ;;  %v9338_v1 = vshll.u32 %v13961_v24, 16  ;;  %v13368_v0 = vld [vmem:[#allocation3 + $0x128] sm:$0xf] }
 0x4ce   : > { %v8747_v23 = vshrl.u32 %v8506_v11, 16  ;;  %v8750_v37 = vshll.u32 %v8506_v11, 16  ;;  %v8756_v26 = vshll.u32 %v8507_v13, 16  ;;  %v8760_v60 = vshrl.u32 %v8507_v13, 16  ;;  %v17822_v11 = vpop.f32.mrf.mxu0 }
 0x4cf   : > { %v13122_v9 = vrot.slane %v9995_v63, 9  ;;  %v10077_v3 = vrot.slane %v9996_v48, 5  ;;  %v9997_v42 = vpack.c.b16 %v9949_v19, %v9949_v19  ;;  %v9340_v10 = vrot.slane %v9338_v1, 1  ;;  %v17826_v63 = vpop.permute.xlu2 %9767 }
 0x4d0   : > { %v8749_v24 = vrot.slane %v8747_v23, 4  ;;  %v8752_v56 = vrot.slane %v8750_v37, 5  ;;  %v8758_v61 = vrot.slane %v8756_v26, 5  ;;  %v8762_v20 = vrot.slane %v8760_v60, 4 }
 0x4d1   : > { %v10078_v13 = vsel %vm15322_vm1, %v13122_v9, %v10077_v3  ;;  %v10079_v40 = vrot.slane %v10077_v3, 4  ;;  %v10080_v7 = vrot.slane %v9997_v42, 5  ;;  %v9341_v36 = vor.u32 %v9340_v10, %v9336_v21 }
 0x4d2   : > { %v8753_v19 = vor.u32 %v8752_v56, %v8749_v24  ;;  %v8763_v48 = vor.u32 %v8762_v20, %v8758_v61  ;;  %10179 = vst [vmem:[#allocation3 + $0x150] sm:$0xf] %v10078_v13  ;;  %v9343_v1 = vshll.u32 %v9154_v49, 16  ;;  %v13365_v23 = vor.u32 %v14014_v34, %v13362_v31  ;;  %v17834_v10 = vpop.f32.mrf.mxu2  ;;  %v14018_v31 = vld [vmem:[#allocation3 + $0x144] sm:$0xf] }
 0x4d3   : > { %v10081_v37 = vsel %vm15322_vm1, %v10079_v40, %v10080_v7  ;;  %v13369_v26 = vor.u32 %v14017_v59, %v13368_v0  ;;  %v17830_v60 = vor.u32 %v13976_v54, %v13108_v29  ;;  %v7225_v14 = vunpack.c.l.b16 %v7097_v38  ;;  %v13380_v59 = vld [vmem:[#allocation3 + $0x148] sm:$0xf]  ;;  %v13374_v29 = vld [vmem:[#allocation3 + $0x154] sm:$0xf0] }
 0x4d4   : > { %v8754_v9 = vrot.slane %v8753_v19, 4  ;;  %10180 = vst [vmem:[#allocation3 + $0x164] sm:$0xf] %v10081_v37  ;;  %v9345_v3 = vrot.slane %v9343_v1, 1  ;;  %11338 = vmatmul.bf16.gmra.mxu3 %v13365_v23  ;;  %v12881_v21 = vor.u32 %v13923_v43, %v12880_v15  ;;  %v17832_v42 = vrot.slane %v8763_v48, 4  ;;  %v17844_v43 = vpop.f32.mrf.mxu3  ;;  %v14344_v38 = vld [vmem:[#allocation2 + $0x84] sm:$0xff]  ;;  %v9770_v48 = vpop.permute.xlu1 %9769 }
 0x4d5   : > { %11427 = vmatmul.bf16.gmra.mxu0 %v13369_v26  ;;  %9787 = vrot.lane.b32.xlu2 %v17830_v60, %s14371_s23  ;;  %v7263_v20 = vpack.c.b16 %v7225_v14, %v7225_v14  ;;  %v8368_v40 = vsel %vm1326_vm10, %v17358_v6, %v17795_v52  ;;  %v11127_v7 = vadd.f32 %v17771_v46, %v17561_v8  ;;  %v8253_v56 = vshrl.u32 %v17740_v50, 16  ;;  %v14021_v6 = vld [vmem:[#allocation3 + $0x158] sm:$0xf0]  ;;  %v8296_v52 = vpop.permute.xlu0 %8295  ;;  %v7821_v19 = vld [vmem:[#allocation2 + $0x84] sm:$0xf]  ;;  %v17855_v1 = vpop.f32.mrf.mxu1 }
 0x4d6   : > { %v8759_v15 = vsel %vm15312_vm15, %v8754_v9, %v8758_v61  ;;  %v9346_v49 = vsel %vm1101_vm9, %v9341_v36, %v9345_v3  ;;  %v7451_v14 = vsel %vm1326_vm10, %v12881_v21, %v17812_v57  ;;  %v8460_v34 = vunpack.c.l.b16 %v8368_v40  ;;  %v17857_v40 = vpop.f32.mrf.mxu0 }
 0x4d7   : > { %8964 = vst [vmem:[#allocation3 + $0x170] sm:$0xf] %v8759_v15  ;;  %9377 = vrot.lane.b32.xlu1 %v9346_v49, %s14371_s23  ;;  %v7453_v8 = vsel %vm1326_vm10, %v7263_v20, %v17812_v57  ;;  %v7543_v46 = vunpack.c.l.b16 %v7451_v14  ;;  %v7544_v54 = vunpack.c.h.b16 %v7451_v14  ;;  %v9398_v61 = vsel %vm1326_vm10, %v14344_v38, %v9366_v44  ;;  %v13112_v38 = vld [vmem:[#allocation2 + $0xcc] sm:$0xe] }
 0x4d8   : > { %v7545_v36 = vunpack.c.l.b16 %v7453_v8  ;;  %v8508_v0 = vpack.c.b16 %v8460_v34, %v8460_v34  ;;  %v9445_v24 = vunpack.c.l.b16 %v9398_v61  ;;  %v9446_v13 = vunpack.c.h.b16 %v9398_v61  ;;  %v14019_v34 = vld [vmem:[#allocation3 + $0x14c] sm:$0xf]  ;;  %v13382_v8 = vld [vmem:[#allocation3 + $0x15c] sm:$0xf0] }
 0x4d9   : > { %v7591_v23 = vpack.c.b16 %v7543_v46, %v7543_v46  ;;  %v7592_v37 = vpack.c.b16 %v7544_v54, %v7544_v54  ;;  %v13377_v26 = vor.u32 %v14018_v31, %v13374_v29  ;;  %v13381_v9 = vor.u32 %v14021_v6, %v13380_v59  ;;  %v8298_v46 = vpop.permute.xlu2 %8297  ;;  %v13388_v6 = vld [vmem:[#allocation3 + $0x150] sm:$0xf] }
 0x4da   : > { %v7593_v3 = vpack.c.b16 %v7545_v36, %v7545_v36  ;;  %v8766_v21 = vshll.u32 %v8508_v0, 16  ;;  %v9477_v57 = vpack.c.b16 %v9445_v24, %v9445_v24  ;;  %v9478_v20 = vpack.c.b16 %v9446_v13, %v9446_v13  ;;  %v13977_v13 = vld [vmem:[#allocation2 + $0xcc] sm:$0xf0] }
 0x4db   : > { %v12979_v15 = vrot.slane %v7591_v23, 9  ;;  %v7680_v44 = vrot.slane %v7592_v37, 5  ;;  %11165 = vmatmul.bf16.gmra.mxu1 %v13377_v26  ;;  %11254 = vmatmul.bf16.gmra.mxu2 %v13381_v9  ;;  %v7933_v49 = vunpack.c.l.b16 %v7821_v19  ;;  %v17860_v14 = vadd.f32 %v17783_v25, %v11127_v7  ;;  %v14022_v24 = vld [vmem:[#allocation3 + $0x160] sm:$0xf0]  ;;  %v7100_v19 = vld [vmem:[#allocation2 + $0x80] sm:$0x1]  ;;  %v17877_v23 = vpop.f32.mrf.mxu2 }
 0x4dc   : > { %v7683_v54 = vrot.slane %v7593_v3, 5  ;;  %v8768_v31 = vrot.slane %v8766_v21, 5  ;;  %9541 = vst [vmem:[#allocation3 + $0x174] sm:$0xf] %v9477_v57  ;;  %v9851_v59 = vsel %vm1326_vm10, %v17505_v12, %v17826_v63  ;;  %v11129_v29 = vadd.f32 %v17790_v28, %v17579_v55  ;;  %v12884_v9 = vld [vmem:[#allocation2 + $0x78] sm:$0xe] }
 0x4dd   : > { %v7681_v61 = vsel %vm15322_vm1, %v12979_v15, %v7680_v44  ;;  %v7682_v25 = vrot.slane %v7680_v44, 4  ;;  %9542 = vst [vmem:[#allocation3 + $0x188] sm:$0xf] %v9478_v20  ;;  %8317 = vrot.lane.b32.xlu2 %v8253_v56, %s14371_s23  ;;  %v18595_v7 = vunpack.c.l.b16 %v17420_v41  ;;  %v9950_v0 = vunpack.c.l.b16 %v9851_v59  ;;  %v13924_v3 = vld [vmem:[#allocation2 + $0x78] sm:$0xf0]  ;;  %v7393_v20 = vpop.permute.xlu0 %7392 }
 0x4de   : > { %7777 = vst [vmem:[#allocation3 + $0x16c] sm:$0xf] %v7681_v61  ;;  %v8769_v12 = vsel %vm15312_vm15, %v17832_v42, %v8768_v31  ;;  %v9951_v55 = vunpack.c.h.b16 %v9851_v59  ;;  %v9854_v28 = vsel %vm1326_vm10, %v17446_v45, %v9770_v48  ;;  %v13385_v63 = vor.u32 %v14019_v34, %v13382_v8  ;;  %v17882_v42 = vpop.f32.mrf.mxu3  ;;  %v9368_v59 = vpop.permute.xlu1 %9367 }
 0x4df   : > { %v7971_v36 = vpack.c.b16 %v18595_v7, %v7933_v49  ;;  %v7684_v41 = vsel %vm15322_vm1, %v7682_v25, %v7683_v54  ;;  %8965 = vst [vmem:[#allocation3 + $0x184] sm:$0xf] %v8769_v12  ;;  %v9998_v37 = vpack.c.b16 %v9950_v0, %v9950_v0  ;;  %v9952_v26 = vunpack.c.l.b16 %v9854_v28  ;;  %v17886_v61 = vpop.f32.mrf.mxu1 }
 0x4e0   : > { %7778 = vst [vmem:[#allocation3 + $0x180] sm:$0xf] %v7684_v41  ;;  %v9999_v48 = vpack.c.b16 %v9951_v55, %v9951_v55  ;;  %v13389_v57 = vor.u32 %v14022_v24, %v13388_v6  ;;  %v17884_v49 = vor.u32 %v13977_v13, %v13112_v38  ;;  %v7228_v34 = vunpack.c.l.b16 %v7100_v19  ;;  %v17893_v55 = vpop.f32.mrf.mxu0 }
 0x4e1   : > { %v8371_v56 = vsel %vm1326_vm10, %v7971_v36, %v8296_v52  ;;  %v13123_v15 = vrot.slane %v9998_v37, 9  ;;  %v10000_v44 = vpack.c.b16 %v9952_v26, %v9952_v26  ;;  %v12885_v31 = vor.u32 %v13924_v3, %v12884_v9 }
 0x4e2   : > { %v8461_v21 = vunpack.c.l.b16 %v8371_v56  ;;  %v8462_v45 = vunpack.c.h.b16 %v8371_v56  ;;  %v10084_v52 = vrot.slane %v9999_v48, 5  ;;  %v7265_v7 = vpack.c.b16 %v7228_v34, %v7228_v34 }
 0x4e3   : > { %v10087_v25 = vrot.slane %v10000_v44, 5  ;;  %v17889_v36 = vadd.f32 %v17814_v16, %v11129_v29  ;;  %v8373_v6 = vsel %vm1326_vm10, %v17441_v2, %v8298_v46  ;;  %v7456_v16 = vsel %vm1326_vm10, %v12885_v31, %v7393_v20  ;;  %v17901_v2 = vpop.permute.xlu2 %9771 }
 0x4e4   : > { %v8509_v8 = vpack.c.b16 %v8461_v21, %v8461_v21  ;;  %v8510_v54 = vpack.c.b16 %v8462_v45, %v8462_v45  ;;  %11343 = vmatmul.bf16.gmra.mxu3 %v13385_v63  ;;  %v10085_v28 = vsel %vm15322_vm1, %v13123_v15, %v10084_v52  ;;  %v10086_v13 = vrot.slane %v10084_v52, 4  ;;  %v13400_v52 = vld [vmem:[#allocation3 + $0x170] sm:$0xf] }
 0x4e5   : > { %11432 = vmatmul.bf16.gmra.mxu0 %v13389_v57  ;;  %9791 = vrot.lane.b32.xlu2 %v17884_v49, %s14371_s23  ;;  %v7458_v29 = vsel %vm1326_vm10, %v7265_v7, %v7393_v20  ;;  %10181 = vst [vmem:[#allocation3 + $0x178] sm:$0xf] %v10085_v28  ;;  %v7546_v37 = vunpack.c.l.b16 %v7456_v16  ;;  %v7547_v26 = vunpack.c.h.b16 %v7456_v16  ;;  %v8463_v45 = vunpack.c.l.b16 %v8373_v6  ;;  %v17910_v57 = vld [vmem:[%s18387_s2 + $0x10] ss:$0 sm:$0xff]  ;;  %v17912_v20 = vpop.f32.mrf.mxu2  ;;  %v14023_v6 = vld [vmem:[#allocation3 + $0x16c] sm:$0xf] }
 0x4e6   : > { %v8771_v0 = vshrl.u32 %v8509_v8, 16  ;;  %v8774_v24 = vshll.u32 %v8509_v8, 16  ;;  %v8780_v38 = vshll.u32 %v8510_v54, 16  ;;  %v8784_v12 = vshrl.u32 %v8510_v54, 16  ;;  %v17917_v8 = vld [vmem:[%s18388_s3 + $0x10] ss:$0 sm:$0xff] }
 0x4e7   : > { %v10088_v56 = vsel %vm15322_vm1, %v10086_v13, %v10087_v25  ;;  %v7548_v9 = vunpack.c.l.b16 %v7458_v29  ;;  %v11305_v48 = vadd.f32 %v17818_v35, %v17860_v14  ;;  %v7594_v15 = vpack.c.b16 %v7546_v37, %v7546_v37  ;;  %v17921_v35 = vpop.f32.mrf.mxu3  ;;  %v14345_v13 = vld [vmem:[#allocation2 + $0x90] sm:$0xff] }
 0x4e8   : > { %v8773_v46 = vrot.slane %v8771_v0, 4  ;;  %v8776_v19 = vrot.slane %v8774_v24, 5  ;;  %v8782_v41 = vrot.slane %v8780_v38, 5  ;;  %v8786_v63 = vrot.slane %v8784_v12, 4  ;;  %10182 = vst [vmem:[#allocation3 + $0x18c] sm:$0xf] %v10088_v56  ;;  %v8300_v24 = vpop.permute.xlu0 %8299  ;;  %v9774_v56 = vpop.permute.xlu1 %9773 }
 0x4e9   : > { %v7595_v44 = vpack.c.b16 %v7547_v26, %v7547_v26  ;;  %v7596_v34 = vpack.c.b16 %v7548_v9, %v7548_v9  ;;  %v11132_v54 = vadd.f32 %v17820_v5, %v17611_v4  ;;  %v8511_v25 = vpack.c.b16 %v8463_v45, %v8463_v45  ;;  %v13394_v0 = vld [vmem:[#allocation3 + $0x17c] sm:$0xf0]  ;;  %v14026_v29 = vld [vmem:[#allocation3 + $0x180] sm:$0xf0] }
 0x4ea   : > { %v8777_v3 = vor.u32 %v8776_v19, %v8773_v46  ;;  %v8787_v21 = vor.u32 %v8786_v63, %v8782_v41  ;;  %v11394_v7 = vadd.f32 %v17792_v18, %v11305_v48  ;;  %v12980_v38 = vrot.slane %v7594_v15, 9  ;;  %v14199_v63 = vld [vmem:[#allocation2 + $0x90] sm:$0xff]   ;;  %v17928_v18 = vpop.f32.mrf.mxu1  ;;  %v17933_v48 = vpop.f32.mrf.mxu0 }
 0x4eb   : > { %v7687_v12 = vrot.slane %v7595_v44, 5  ;;  %v7690_v28 = vrot.slane %v7596_v34, 5  ;;  %v9400_v16 = vsel %vm1326_vm10, %v14345_v13, %v9368_v59  ;;  %v8790_v5 = vshll.u32 %v8511_v25, 16  ;;  %v14024_v25 = vld [vmem:[#allocation3 + $0x174] sm:$0xf] }
 0x4ec   : > { %v8778_v14 = vrot.slane %v8777_v3, 4  ;;  %v8788_v31 = vrot.slane %v8787_v21, 4  ;;  %v11478_v46 = vmul.f32 %v17910_v57, %v11394_v7  ;;  %v9447_v19 = vunpack.c.l.b16 %v9400_v16  ;;  %v13402_v7 = vld [vmem:[#allocation3 + $0x184] sm:$0xf0] }
 0x4ed   : > { %v7688_v37 = vsel %vm15322_vm1, %v12980_v38, %v7687_v12  ;;  %v7689_v26 = vrot.slane %v7687_v12, 4  ;;  %v9448_v9 = vunpack.c.h.b16 %v9400_v16  ;;  %v13397_v3 = vor.u32 %v14023_v6, %v13394_v0  ;;  %v8302_v6 = vpop.permute.xlu2 %8301 }
 0x4ee   : > { %v8783_v4 = vsel %vm15312_vm15, %v8778_v14, %v8782_v41  ;;  %7779 = vst [vmem:[#allocation3 + $0x194] sm:$0xf] %v7688_v37  ;;  %v8792_v59 = vrot.slane %v8790_v5, 5  ;;  %v11515_v21 = vadd.f32 %v17917_v8, %v11478_v46  ;;  %v9479_v41 = vpack.c.b16 %v9447_v19, %v9447_v19  ;;  %v12888_v37 = vld [vmem:[#allocation2 + $0x84] sm:$0xe] }
 0x4ef   : > { %8966 = vst [vmem:[#allocation3 + $0x198] sm:$0xf] %v8783_v4  ;;  %v13401_v45 = vor.u32 %v14026_v29, %v13400_v52  ;;  %v7691_v15 = vsel %vm15322_vm1, %v7689_v26, %v7690_v28  ;;  %v9480_v44 = vpack.c.b16 %v9448_v9, %v9448_v9  ;;  %11170 = vmatmul.bf16.gmra.mxu1 %v13397_v3  ;;  %v17954_v4 = vpop.f32.mrf.mxu2 }
 0x4f0   : > { %v8376_v34 = vsel %vm1326_vm10, %v14199_v63, %v8300_v24  ;;  %v17939_v14 = vadd.f32 %v17834_v10, %v11132_v54  ;;  %7780 = vst [vmem:[#allocation3 + $0x1a8] sm:$0xf] %v7691_v15  ;;  %v8793_v52 = vsel %vm15312_vm15, %v8788_v31, %v8792_v59  ;;  %v9857_v12 = vsel %vm1326_vm10, %v17557_v51, %v17901_v2  ;;  %v13408_v59 = vld [vmem:[#allocation3 + $0x178] sm:$0xf] }
 0x4f1   : > { %11259 = vmatmul.bf16.gmra.mxu2 %v13401_v45  ;;  %v8464_v0 = vunpack.c.l.b16 %v8376_v34  ;;  %v8465_v38 = vunpack.c.h.b16 %v8376_v34  ;;  %8967 = vst [vmem:[#allocation3 + $0x1ac] sm:$0xf] %v8793_v52  ;;  %v9953_v24 = vunpack.c.l.b16 %v9857_v12  ;;  %v9954_v28 = vunpack.c.h.b16 %v9857_v12  ;;  %v9370_v34 = vpop.permute.xlu1 %9369 }
 0x4f2   : > { %v11307_v10 = vadd.f32 %v17844_v43, %v17889_v36  ;;  %v11134_v54 = vadd.f32 %v17855_v1, %v17638_v58  ;;  %11547 = vst.msk [vmem:[%s14417_s20] sm:$0xff] %vm1326_vm10, %v11515_v21  ;;  %v9860_v16 = vsel %vm1326_vm10, %v17496_v32, %v9774_v56  ;;  %v13405_v29 = vor.u32 %v14024_v25, %v13402_v7  ;;  %v7103_v43 = vld [vmem:[#allocation2 + $0x8c] sm:$0x1]  ;;  %v17957_v36 = vpop.f32.mrf.mxu3  ;;  %v7395_v32 = vpop.permute.xlu0 %7394  ;;  %v14027_v21 = vld [vmem:[#allocation3 + $0x188] sm:$0xf0] }
 0x4f3   : > { %v8512_v13 = vpack.c.b16 %v8464_v0, %v8464_v0  ;;  %v8513_v31 = vpack.c.b16 %v8465_v38, %v8465_v38  ;;  %9543 = vst [vmem:[#allocation3 + $0x19c] sm:$0xf] %v9479_v41  ;;  %v10001_v51 = vpack.c.b16 %v9953_v24, %v9953_v24  ;;  %v10002_v2 = vpack.c.b16 %v9954_v28, %v9954_v28  ;;  %v17960_v25 = vpop.f32.mrf.mxu1 }
 0x4f4   : > { %v11396_v5 = vadd.f32 %v17822_v11, %v11307_v10  ;;  %v9955_v46 = vunpack.c.l.b16 %v9860_v16  ;;  %9544 = vst [vmem:[#allocation3 + $0x1b0] sm:$0xf] %v9480_v44  ;;  %11348 = vmatmul.bf16.gmra.mxu3 %v13405_v29  ;;  %v13925_v44 = vld [vmem:[#allocation2 + $0x84] sm:$0xf0]  ;;  %v13409_v28 = vor.u32 %v14027_v21, %v13408_v59  ;;  %v7231_v10 = vunpack.c.l.b16 %v7103_v43 }
 0x4f5   : > { %v8795_v58 = vshrl.u32 %v8512_v13, 16  ;;  %v8798_v1 = vshll.u32 %v8512_v13, 16  ;;  %v8804_v19 = vshll.u32 %v8513_v31, 16  ;;  %v8808_v63 = vshrl.u32 %v8513_v31, 16  ;;  %v17965_v13 = vpop.f32.mrf.mxu0 }
 0x4f6   : > { %v13124_v56 = vrot.slane %v10001_v51, 9  ;;  %v10091_v26 = vrot.slane %v10002_v2, 5  ;;  %v11479_v9 = vmul.f32 %v17910_v57, %v11396_v5  ;;  %v10003_v3 = vpack.c.b16 %v9955_v46, %v9955_v46  ;;  %v9776_v2 = vpop.permute.xlu2 %9775  ;;  %11437 = vmatmul.bf16.gmra.mxu0 %v13409_v28 }
 0x4f7   : > { %v8797_v11 = vrot.slane %v8795_v58, 4  ;;  %v8800_v41 = vrot.slane %v8798_v1, 5  ;;  %v8806_v45 = vrot.slane %v8804_v19, 5  ;;  %v8810_v15 = vrot.slane %v8808_v63, 4 }
 0x4f8   : > { %v10092_v7 = vsel %vm15322_vm1, %v13124_v56, %v10091_v26  ;;  %v10093_v52 = vrot.slane %v10091_v26, 4  ;;  %v11516_v0 = vadd.f32 %v17917_v8, %v11479_v9  ;;  %v10094_v38 = vrot.slane %v10003_v3, 5  ;;  %v17985_v3 = vpop.f32.mrf.mxu2  ;;  %v14031_v21 = vld [vmem:[#allocation3 + $0x1a8] sm:$0xf0] }
 0x4f9   : > { %v8801_v12 = vor.u32 %v8800_v41, %v8797_v11  ;;  %v8811_v24 = vor.u32 %v8810_v15, %v8806_v45  ;;  %10183 = vst [vmem:[#allocation3 + $0x1a0] sm:$0xf] %v10092_v7  ;;  %v12889_v16 = vor.u32 %v13925_v44, %v12888_v37  ;;  %v17972_v29 = vadd.f32 %v17877_v23, %v11134_v54  ;;  %v14346_v23 = vld [vmem:[#allocation2 + $0x9c] sm:$0xff]  ;;  %v14028_v37 = vld [vmem:[#allocation3 + $0x194] sm:$0xf] }
 0x4fa   : > { %11548 = vst.msk [vmem:[%s14417_s20 + $0x8] sm:$0xff] %vm1326_vm10, %v11516_v0  ;;  %v10095_v31 = vsel %vm15322_vm1, %v10093_v52, %v10094_v38  ;;  %v8378_v51 = vsel %vm1326_vm10, %v17485_v17, %v8302_v6  ;;  %v7267_v46 = vpack.c.b16 %v7231_v10, %v7231_v10  ;;  %v11310_v19 = vadd.f32 %v17882_v42, %v17939_v14  ;;  %v13414_v17 = vld [vmem:[#allocation3 + $0x1a4] sm:$0xf0]  ;;  %v17988_v11 = vpop.f32.mrf.mxu3  ;;  %v9778_v10 = vpop.permute.xlu1 %9777 }
 0x4fb   : > { %v8802_v5 = vrot.slane %v8801_v12, 4  ;;  %10184 = vst [vmem:[#allocation3 + $0x1b4] sm:$0xf] %v10095_v31  ;;  %v8812_v43 = vrot.slane %v8811_v24, 4  ;;  %v8466_v58 = vunpack.c.l.b16 %v8378_v51  ;;  %v7461_v1 = vsel %vm1326_vm10, %v12889_v16, %v7395_v32  ;;  %v17991_v31 = vpop.f32.mrf.mxu1 }
 0x4fc   : > { %v11137_v63 = vadd.f32 %v17886_v61, %v17677_v62  ;;  %v9402_v54 = vsel %vm1326_vm10, %v14346_v23, %v9370_v34  ;;  %v7463_v56 = vsel %vm1326_vm10, %v7267_v46, %v7395_v32  ;;  %v7549_v26 = vunpack.c.l.b16 %v7461_v1  ;;  %v13420_v61 = vld [vmem:[#allocation3 + $0x198] sm:$0xf]  ;;  %v7827_v34 = vld [vmem:[#allocation2 + $0x9c] sm:$0xf]  ;;  %v8304_v32 = vpop.permute.xlu0 %8303 }
 0x4fd   : > { %v8807_v6 = vsel %vm15312_vm15, %v8802_v5, %v8806_v45  ;;  %v7550_v9 = vunpack.c.h.b16 %v7461_v1  ;;  %v7551_v59 = vunpack.c.l.b16 %v7463_v56  ;;  %v8514_v42 = vpack.c.b16 %v8466_v58, %v8466_v58 }
 0x4fe   : > { %8968 = vst [vmem:[#allocation3 + $0x1c0] sm:$0xf] %v8807_v6  ;;  %v11399_v14 = vadd.f32 %v17857_v40, %v11310_v19  ;;  %v9449_v62 = vunpack.c.l.b16 %v9402_v54  ;;  %v7597_v41 = vpack.c.b16 %v7549_v26, %v7549_v26  ;;  %v9450_v44 = vunpack.c.h.b16 %v9402_v54  ;;  %v18001_v54 = vpop.f32.mrf.mxu0 }
 0x4ff   : > { %v7598_v15 = vpack.c.b16 %v7550_v9, %v7550_v9  ;;  %v13417_v45 = vor.u32 %v14028_v37, %v13414_v17  ;;  %v7599_v7 = vpack.c.b16 %v7551_v59, %v7551_v59  ;;  %v8814_v52 = vshll.u32 %v8514_v42, 16  ;;  %v14029_v9 = vld [vmem:[#allocation3 + $0x19c] sm:$0xf]  ;;  %v13422_v59 = vld [vmem:[#allocation3 + $0x1ac] sm:$0xf0]  ;;  %v18007_v42 = vpop.permute.xlu2 %8305 }
 0x500   : > { %v11480_v0 = vmul.f32 %v17910_v57, %v11399_v14  ;;  %v9481_v38 = vpack.c.b16 %v9449_v62, %v9449_v62  ;;  %v12981_v12 = vrot.slane %v7597_v41, 9  ;;  %v9482_v28 = vpack.c.b16 %v9450_v44, %v9450_v44  ;;  %v7106_v41 = vld [vmem:[#allocation2 + $0x98] sm:$0x1] }
 0x501   : > { %v7694_v24 = vrot.slane %v7598_v15, 5  ;;  %11175 = vmatmul.bf16.gmra.mxu1 %v13417_v45  ;;  %v13421_v40 = vor.u32 %v14031_v21, %v13420_v61  ;;  %v7697_v16 = vrot.slane %v7599_v7, 5  ;;  %v8816_v51 = vrot.slane %v8814_v52, 5  ;;  %v18021_v45 = vpop.f32.mrf.mxu2 }
 0x502   : > { %v11517_v5 = vadd.f32 %v17917_v8, %v11480_v0  ;;  %9545 = vst [vmem:[#allocation3 + $0x1c4] sm:$0xf] %v9481_v38  ;;  %v7939_v46 = vunpack.c.l.b16 %v7827_v34  ;;  %v17997_v19 = vadd.f32 %v17912_v20, %v11137_v63  ;;  %v9863_v23 = vsel %vm1326_vm10, %v17622_v39, %v9776_v2  ;;  %v14032_v63 = vld [vmem:[#allocation3 + $0x1b0] sm:$0xf0] }
 0x503   : > { %v7695_v58 = vsel %vm15322_vm1, %v12981_v12, %v7694_v24  ;;  %v7696_v1 = vrot.slane %v7694_v24, 4  ;;  %9546 = vst [vmem:[#allocation3 + $0x1d8] sm:$0xf] %v9482_v28  ;;  %11264 = vmatmul.bf16.gmra.mxu2 %v13421_v40  ;;  %v8817_v37 = vsel %vm15312_vm15, %v8812_v43, %v8816_v51  ;;  %v18596_v17 = vunpack.c.l.b16 %v17516_v22  ;;  %v13428_v43 = vld [vmem:[#allocation3 + $0x1a0] sm:$0xf] }
 0x504   : > { %7781 = vst [vmem:[#allocation3 + $0x1bc] sm:$0xf] %v7695_v58  ;;  %v9956_v56 = vunpack.c.l.b16 %v9863_v23  ;;  %v9957_v26 = vunpack.c.h.b16 %v9863_v23  ;;  %v11312_v39 = vadd.f32 %v17921_v35, %v17972_v29  ;;  %v11139_v2 = vadd.f32 %v17928_v18, %v17701_v30  ;;  %v12892_v30 = vld [vmem:[#allocation2 + $0x90] sm:$0xe]  ;;  %v13926_v18 = vld [vmem:[#allocation2 + $0x90] sm:$0xf0]  ;;  %v7397_v28 = vpop.permute.xlu0 %7396  ;;  %v18028_v23 = vpop.f32.mrf.mxu1 }
 0x505   : > { %v7975_v6 = vpack.c.b16 %v18596_v17, %v7939_v46  ;;  %v7698_v20 = vsel %vm15322_vm1, %v7696_v1, %v7697_v16  ;;  %8969 = vst [vmem:[#allocation3 + $0x1d4] sm:$0xf] %v8817_v37  ;;  %v9866_v22 = vsel %vm1326_vm10, %v17539_v33, %v9778_v10  ;;  %v13425_v29 = vor.u32 %v14029_v9, %v13422_v59  ;;  %v9372_v1 = vpop.permute.xlu1 %9371 }
 0x506   : > { %7782 = vst [vmem:[#allocation3 + $0x1d0] sm:$0xf] %v7698_v20  ;;  %v10004_v62 = vpack.c.b16 %v9956_v56, %v9956_v56  ;;  %v10005_v61 = vpack.c.b16 %v9957_v26, %v9957_v26  ;;  %v9958_v21 = vunpack.c.l.b16 %v9866_v22  ;;  %v11401_v35 = vadd.f32 %v17893_v55, %v11312_v39  ;;  %v18034_v39 = vpop.f32.mrf.mxu0 }
 0x507   : > { %v8381_v14 = vsel %vm1326_vm10, %v7975_v6, %v8304_v32  ;;  %11549 = vst.msk [vmem:[%s14417_s20 + $0x10] sm:$0xff] %vm1326_vm10, %v11517_v5  ;;  %v13429_v52 = vor.u32 %v14032_v63, %v13428_v43  ;;  %v18023_v32 = vpop.f32.mrf.mxu3  ;;  %11353 = vmatmul.bf16.gmra.mxu3 %v13425_v29  ;;  %v7234_v24 = vunpack.c.l.b16 %v7106_v41  ;;  %v12893_v16 = vor.u32 %v13926_v18, %v12892_v30 }
 0x508   : > { %v8467_v15 = vunpack.c.l.b16 %v8381_v14  ;;  %v8468_v44 = vunpack.c.h.b16 %v8381_v14  ;;  %v13125_v33 = vrot.slane %v10004_v62, 9  ;;  %v10098_v34 = vrot.slane %v10005_v61, 5  ;;  %v9780_v62 = vpop.permute.xlu2 %9779 }
 0x509   : > { %v10006_v7 = vpack.c.b16 %v9958_v21, %v9958_v21  ;;  %v11481_v12 = vmul.f32 %v17910_v57, %v11401_v35  ;;  %11442 = vmatmul.bf16.gmra.mxu0 %v13429_v52  ;;  %v7269_v6 = vpack.c.b16 %v7234_v24, %v7234_v24  ;;  %v7466_v56 = vsel %vm1326_vm10, %v12893_v16, %v7397_v28 }
 0x50a   : > { %v8515_v0 = vpack.c.b16 %v8467_v15, %v8467_v15  ;;  %v8516_v38 = vpack.c.b16 %v8468_v44, %v8468_v44  ;;  %v10099_v55 = vsel %vm15322_vm1, %v13125_v33, %v10098_v34  ;;  %v10100_v40 = vrot.slane %v10098_v34, 4 }
 0x50b   : > { %v10101_v10 = vrot.slane %v10006_v7, 5  ;;  %10185 = vst [vmem:[#allocation3 + $0x1c8] sm:$0xf] %v10099_v55  ;;  %v11518_v37 = vadd.f32 %v17917_v8, %v11481_v12  ;;  %v7468_v22 = vsel %vm1326_vm10, %v7269_v6, %v7397_v28  ;;  %v7552_v43 = vunpack.c.l.b16 %v7466_v56  ;;  %v14033_v18 = vld [vmem:[#allocation3 + $0x1bc] sm:$0xf] }
 0x50c   : > { %v8819_v51 = vshrl.u32 %v8515_v0, 16  ;;  %v8822_v5 = vshll.u32 %v8515_v0, 16  ;;  %v8828_v46 = vshll.u32 %v8516_v38, 16  ;;  %v8832_v58 = vshrl.u32 %v8516_v38, 16  ;;  %v14200_v0 = vld [vmem:[#allocation2 + $0xa8] sm:$0xff]   ;;  %v18047_v38 = vpop.f32.mrf.mxu2 }
 0x50d   : > { %v10102_v17 = vsel %vm15322_vm1, %v10100_v40, %v10101_v10  ;;  %11550 = vst.msk [vmem:[%s14417_s20 + $0x18] sm:$0xff] %vm1326_vm10, %v11518_v37  ;;  %v7553_v63 = vunpack.c.h.b16 %v7466_v56  ;;  %v11228_v14 = vadd.f32 %v17954_v4, %v11139_v2  ;;  %v7554_v41 = vunpack.c.l.b16 %v7468_v22  ;;  %v13434_v33 = vld [vmem:[#allocation3 + $0x1cc] sm:$0xf0]  ;;  %v18597_v4 = vld [vmem:[#allocation59_spill] sm:$0xff]  ;;  %v13440_v28 = vld [vmem:[#allocation3 + $0x1c0] sm:$0xf] }
 0x50e   : > { %v8821_v26 = vrot.slane %v8819_v51, 4  ;;  %v8824_v9 = vrot.slane %v8822_v5, 5  ;;  %v8830_v59 = vrot.slane %v8828_v46, 5  ;;  %v8834_v20 = vrot.slane %v8832_v58, 4  ;;  %10186 = vst [vmem:[#allocation3 + $0x1dc] sm:$0xf] %v10102_v17  ;;  %v8308_v51 = vpop.permute.xlu0 %8307 }
 0x50f   : > { %v8383_v15 = vsel %vm1326_vm10, %v17534_v47, %v18007_v42  ;;  %v7600_v44 = vpack.c.b16 %v7552_v43, %v7552_v43  ;;  %v7601_v35 = vpack.c.b16 %v7553_v63, %v7553_v63  ;;  %v11315_v30 = vadd.f32 %v17957_v36, %v17997_v19  ;;  %v14036_v55 = vld [vmem:[#allocation3 + $0x1d0] sm:$0xf0]  ;;  %v18050_v40 = vpop.f32.mrf.mxu3  ;;  %v14347_v10 = vld [vmem:[#allocation2 + $0xa8] sm:$0xff] }
 0x510   : > { %v8825_v61 = vor.u32 %v8824_v9, %v8821_v26  ;;  %v8835_v21 = vor.u32 %v8834_v20, %v8830_v59  ;;  %v8469_v29 = vunpack.c.l.b16 %v8383_v15  ;;  %v7602_v7 = vpack.c.b16 %v7554_v41, %v7554_v41  ;;  %v9782_v26 = vpop.permute.xlu1 %9781  ;;  %v18067_v41 = vpop.f32.mrf.mxu0 }
 0x511   : > { %v11142_v2 = vadd.f32 %v17960_v25, %v18597_v4  ;;  %v12982_v12 = vrot.slane %v7600_v44, 9  ;;  %v7701_v24 = vrot.slane %v7601_v35, 5  ;;  %v11404_v42 = vadd.f32 %v17933_v48, %v11315_v30  ;;  %v18598_v35 = vld [vmem:[#allocation55_spill] sm:$0xff] }
 0x512   : > { %v8826_v34 = vrot.slane %v8825_v61, 4  ;;  %v8836_v52 = vrot.slane %v8835_v21, 4  ;;  %v8517_v47 = vpack.c.b16 %v8469_v29, %v8469_v29  ;;  %v7704_v19 = vrot.slane %v7602_v7, 5 }
 0x513   : > { %v9404_v16 = vsel %vm1326_vm10, %v14347_v10, %v9372_v1  ;;  %v13437_v25 = vor.u32 %v14033_v18, %v13434_v33  ;;  %v7702_v5 = vsel %vm15322_vm1, %v12982_v12, %v7701_v24  ;;  %v7703_v46 = vrot.slane %v7701_v24, 4  ;;  %v18059_v1 = vpop.f32.mrf.mxu1  ;;  %v8310_v18 = vpop.permute.xlu2 %8309  ;;  %v18600_v12 = vld [vmem:[#allocation44_spill] sm:$0xff] }
 0x514   : > { %v8831_v36 = vsel %vm15312_vm15, %v8826_v34, %v8830_v59  ;;  %v8838_v58 = vshll.u32 %v8517_v47, 16  ;;  %v11482_v48 = vmul.f32 %v17910_v57, %v11404_v42  ;;  %7783 = vst [vmem:[#allocation3 + $0x1e4] sm:$0xf] %v7702_v5  ;;  %v9451_v37 = vunpack.c.l.b16 %v9404_v16  ;;  %v14034_v47 = vld [vmem:[#allocation3 + $0x1c4] sm:$0xf] }
 0x515   : > { %8970 = vst [vmem:[#allocation3 + $0x1e8] sm:$0xf] %v8831_v36  ;;  %v9452_v17 = vunpack.c.h.b16 %v9404_v16  ;;  %11180 = vmatmul.bf16.gmra.mxu1 %v13437_v25  ;;  %v13441_v6 = vor.u32 %v14036_v55, %v13440_v28  ;;  %v8386_v56 = vsel %vm1326_vm10, %v14200_v0, %v8308_v51  ;;  %v7705_v9 = vsel %vm15322_vm1, %v7703_v46, %v7704_v19  ;;  %v13442_v28 = vld [vmem:[#allocation3 + $0x1d4] sm:$0xf0]  ;;  %v12896_v55 = vld [vmem:[#allocation2 + $0x9c] sm:$0xe]  ;;  %v18081_v19 = vpop.f32.mrf.mxu2 }
 0x516   : > { %v8840_v59 = vrot.slane %v8838_v58, 5  ;;  %v11519_v20 = vadd.f32 %v17917_v8, %v11482_v48  ;;  %v8470_v22 = vunpack.c.l.b16 %v8386_v56  ;;  %7784 = vst [vmem:[#allocation3 + $0x1f8] sm:$0xf] %v7705_v9  ;;  %v9483_v43 = vpack.c.b16 %v9451_v37, %v9451_v37  ;;  %v13927_v36 = vld [vmem:[#allocation2 + $0x9c] sm:$0xf0] }
 0x517   : > { %v9484_v63 = vpack.c.b16 %v9452_v17, %v9452_v17  ;;  %11269 = vmatmul.bf16.gmra.mxu2 %v13441_v6  ;;  %v8471_v61 = vunpack.c.h.b16 %v8386_v56  ;;  %v18065_v21 = vadd.f32 %v17985_v3, %v11142_v2  ;;  %v9869_v29 = vsel %vm1326_vm10, %v18598_v35, %v9780_v62  ;;  %v18599_v3 = vld [vmem:[#allocation64_spill] sm:$0xff]  ;;  %v14037_v51 = vld [vmem:[#allocation3 + $0x1d8] sm:$0xf0]  ;;  %v18084_v5 = vpop.f32.mrf.mxu3  ;;  %v7109_v17 = vld [vmem:[#allocation2 + $0xa4] sm:$0x1]  ;;  %v7399_v6 = vpop.permute.xlu0 %7398 }
 0x518   : > { %v8841_v15 = vsel %vm15312_vm15, %v8836_v52, %v8840_v59  ;;  %11551 = vst.msk [vmem:[%s14417_s20 + $0x20] sm:$0xff] %vm1326_vm10, %v11519_v20  ;;  %v8518_v44 = vpack.c.b16 %v8470_v22, %v8470_v22  ;;  %v11317_v30 = vadd.f32 %v17988_v11, %v11228_v14  ;;  %v9959_v34 = vunpack.c.l.b16 %v9869_v29 }
 0x519   : > { %8971 = vst [vmem:[#allocation3 + $0x1fc] sm:$0xf] %v8841_v15  ;;  %v8519_v33 = vpack.c.b16 %v8471_v61, %v8471_v61  ;;  %v9960_v7 = vunpack.c.h.b16 %v9869_v29  ;;  %v11144_v4 = vadd.f32 %v17991_v31, %v18599_v3  ;;  %v9872_v24 = vsel %vm1326_vm10, %v18600_v12, %v9782_v26  ;;  %v9374_v61 = vpop.permute.xlu1 %9373  ;;  %v18100_v12 = vpop.f32.mrf.mxu0 }
 0x51a   : > { %9547 = vst [vmem:[#allocation3 + $0x1ec] sm:$0xf] %v9483_v43  ;;  %v8843_v2 = vshrl.u32 %v8518_v44, 16  ;;  %v8846_v0 = vshll.u32 %v8518_v44, 16  ;;  %v11406_v52 = vadd.f32 %v17965_v13, %v11317_v30  ;;  %v10007_v14 = vpack.c.b16 %v9959_v34, %v9959_v34  ;;  %v13448_v13 = vld [vmem:[#allocation3 + $0x1c8] sm:$0xf] }
 0x51b   : > { %9548 = vst [vmem:[#allocation3 + $0x200] sm:$0xf] %v9484_v63  ;;  %v8852_v62 = vshll.u32 %v8519_v33, 16  ;;  %v8856_v11 = vshrl.u32 %v8519_v33, 16  ;;  %v10008_v42 = vpack.c.b16 %v9960_v7, %v9960_v7  ;;  %v9961_v25 = vunpack.c.l.b16 %v9872_v24  ;;  %v18089_v15 = vpop.f32.mrf.mxu1  ;;  %v18601_v7 = vld [vmem:[#allocation42_spill] sm:$0xff] }
 0x51c   : > { %v8845_v31 = vrot.slane %v8843_v2, 4  ;;  %v8848_v10 = vrot.slane %v8846_v0, 5  ;;  %v11483_v16 = vmul.f32 %v17910_v57, %v11406_v52  ;;  %v13126_v48 = vrot.slane %v10007_v14, 9  ;;  %v14038_v0 = vld [vmem:[#allocation3 + $0x1e4] sm:$0xf] }
 0x51d   : > { %v8854_v46 = vrot.slane %v8852_v62, 5  ;;  %v8858_v58 = vrot.slane %v8856_v11, 4  ;;  %v10105_v37 = vrot.slane %v10008_v42, 5  ;;  %v10009_v9 = vpack.c.b16 %v9961_v25, %v9961_v25  ;;  %v13454_v52 = vld [vmem:[#allocation3 + $0x1f4] sm:$0xf0] }
 0x51e   : > { %v8849_v56 = vor.u32 %v8848_v10, %v8845_v31  ;;  %v11520_v26 = vadd.f32 %v17917_v8, %v11483_v16  ;;  %v13445_v59 = vor.u32 %v14034_v47, %v13442_v28  ;;  %v13449_v63 = vor.u32 %v14037_v51, %v13448_v13  ;;  %v14348_v31 = vld [vmem:[#allocation2 + $0xb4] sm:$0xff] }
 0x51f   : > { %v8859_v20 = vor.u32 %v8858_v58, %v8854_v46  ;;  %v10106_v22 = vsel %vm15322_vm1, %v13126_v48, %v10105_v37  ;;  %v10107_v43 = vrot.slane %v10105_v37, 4  ;;  %v10108_v35 = vrot.slane %v10009_v9, 5  ;;  %v7833_v58 = vld [vmem:[#allocation2 + $0xb4] sm:$0xf] }
 0x520   : > { %v8850_v44 = vrot.slane %v8849_v56, 4  ;;  %10187 = vst [vmem:[#allocation3 + $0x1f0] sm:$0xf] %v10106_v22  ;;  %11358 = vmatmul.bf16.gmra.mxu3 %v13445_v59  ;;  %v7237_v29 = vunpack.c.l.b16 %v7109_v17  ;;  %v12897_v30 = vor.u32 %v13927_v36, %v12896_v55  ;;  %11447 = vmatmul.bf16.gmra.mxu0 %v13449_v63  ;;  %v11233_v33 = vadd.f32 %v18021_v45, %v11144_v4  ;;  %v9784_v4 = vpop.permute.xlu2 %9783  ;;  %v14041_v42 = vld [vmem:[#allocation3 + $0x1f8] sm:$0xf0]  ;;  %v18602_v55 = vld [vmem:[#allocation36_spill] sm:$0xff]  ;;  %v18115_v56 = vpop.f32.mrf.mxu3 }
 0x521   : > { %11552 = vst.msk [vmem:[%s14417_s20 + $0x28] sm:$0xff] %vm1326_vm10, %v11520_v26  ;;  %v18094_v34 = vrot.slane %v8859_v20, 4  ;;  %v8388_v3 = vsel %vm1326_vm10, %v18601_v7, %v8310_v18  ;;  %v11320_v2 = vadd.f32 %v18023_v32, %v18065_v21  ;;  %v10109_v47 = vsel %vm15322_vm1, %v10107_v43, %v10108_v35  ;;  %v13460_v21 = vld [vmem:[#allocation3 + $0x1e8] sm:$0xf]  ;;  %v18112_v48 = vpop.f32.mrf.mxu2  ;;  %v8312_v20 = vpop.permute.xlu0 %8311 }
 0x522   : > { %v8855_v24 = vsel %vm15312_vm15, %v8850_v44, %v8854_v46  ;;  %v7271_v62 = vpack.c.b16 %v7237_v29, %v7237_v29  ;;  %v7471_v45 = vsel %vm1326_vm10, %v12897_v30, %v7399_v6  ;;  %v8472_v14 = vunpack.c.l.b16 %v8388_v3  ;;  %10188 = vst [vmem:[#allocation3 + $0x204] sm:$0xf] %v10109_v47  ;;  %v9786_v7 = vpop.permute.xlu1 %9785  ;;  %v18605_v47 = vld [vmem:[#allocation63_spill] sm:$0xff] }
 0x523   : > { %8972 = vst [vmem:[#allocation3 + $0x210] sm:$0xf] %v8855_v24  ;;  %v7555_v11 = vunpack.c.l.b16 %v7471_v45  ;;  %v7556_v18 = vunpack.c.h.b16 %v7471_v45  ;;  %v11409_v32 = vadd.f32 %v18001_v54, %v11320_v2  ;;  %v11147_v36 = vadd.f32 %v18028_v23, %v18602_v55  ;;  %v18120_v3 = vpop.f32.mrf.mxu1  ;;  %v18603_v2 = vld [vmem:[#allocation48_spill] sm:$0xff] }
 0x524   : > { %v7473_v28 = vsel %vm1326_vm10, %v7271_v62, %v7399_v6  ;;  %v9406_v10 = vsel %vm1326_vm10, %v14348_v31, %v9374_v61  ;;  %v13457_v16 = vor.u32 %v14038_v0, %v13454_v52  ;;  %v8520_v46 = vpack.c.b16 %v8472_v14, %v8472_v14  ;;  %v18607_v31 = vld [vmem:[#allocation52_spill] sm:$0xff] }
 0x525   : > { %v7557_v25 = vunpack.c.l.b16 %v7473_v28  ;;  %v7603_v13 = vpack.c.b16 %v7555_v11, %v7555_v11  ;;  %v7604_v51 = vpack.c.b16 %v7556_v18, %v7556_v18  ;;  %v11484_v54 = vmul.f32 %v17910_v57, %v11409_v32  ;;  %v14039_v11 = vld [vmem:[#allocation3 + $0x1ec] sm:$0xf]  ;;  %v13462_v18 = vld [vmem:[#allocation3 + $0x1fc] sm:$0xf0] }
 0x526   : > { %v9453_v37 = vunpack.c.l.b16 %v9406_v10  ;;  %v9454_v17 = vunpack.c.h.b16 %v9406_v10  ;;  %11185 = vmatmul.bf16.gmra.mxu1 %v13457_v16  ;;  %v13461_v6 = vor.u32 %v14041_v42, %v13460_v21  ;;  %v8862_v59 = vshll.u32 %v8520_v46, 16 }
 0x527   : > { %v7605_v23 = vpack.c.b16 %v7557_v25, %v7557_v25  ;;  %v12983_v26 = vrot.slane %v7603_v13, 9  ;;  %v7708_v9 = vrot.slane %v7604_v51, 5  ;;  %v11521_v22 = vadd.f32 %v17917_v8, %v11484_v54  ;;  %v18137_v55 = vpop.f32.mrf.mxu0  ;;  %v7112_v54 = vld [vmem:[#allocation2 + $0xb0] sm:$0x1] }
 0x528   : > { %v9485_v43 = vpack.c.b16 %v9453_v37, %v9453_v37  ;;  %v9486_v63 = vpack.c.b16 %v9454_v17, %v9454_v17  ;;  %11274 = vmatmul.bf16.gmra.mxu2 %v13461_v6  ;;  %v7945_v61 = vunpack.c.l.b16 %v7833_v58  ;;  %v8864_v30 = vrot.slane %v8862_v59, 5  ;;  %v8314_v16 = vpop.permute.xlu2 %8313  ;;  %v13928_v58 = vld [vmem:[#allocation2 + $0xa8] sm:$0xf0] }
 0x529   : > { %v7709_v44 = vsel %vm15322_vm1, %v12983_v26, %v7708_v9  ;;  %v7710_v35 = vrot.slane %v7708_v9, 4  ;;  %v7711_v29 = vrot.slane %v7605_v23, 5  ;;  %v18604_v0 = vunpack.c.l.b16 %v18603_v2  ;;  %11553 = vst.msk [vmem:[%s14417_s20 + $0x30] sm:$0xff] %vm1326_vm10, %v11521_v22  ;;  %v14042_v28 = vld [vmem:[#allocation3 + $0x200] sm:$0xf0]  ;;  %v18146_v59 = vpop.f32.mrf.mxu2 }
 0x52a   : > { %7785 = vst [vmem:[#allocation3 + $0x20c] sm:$0xf] %v7709_v44  ;;  %v18125_v24 = vadd.f32 %v18047_v38, %v11147_v36  ;;  %v9875_v62 = vsel %vm1326_vm10, %v18605_v47, %v9784_v4  ;;  %v11322_v45 = vadd.f32 %v18050_v40, %v11233_v33  ;;  %v8865_v32 = vsel %vm15312_vm15, %v18094_v34, %v8864_v30  ;;  %v13468_v38 = vld [vmem:[#allocation3 + $0x1f0] sm:$0xf]  ;;  %v12900_v34 = vld [vmem:[#allocation2 + $0xa8] sm:$0xe] }
 0x52b   : > { %v7979_v52 = vpack.c.b16 %v18604_v0, %v7945_v61  ;;  %v7712_v14 = vsel %vm15322_vm1, %v7710_v35, %v7711_v29  ;;  %v9962_v21 = vunpack.c.l.b16 %v9875_v62  ;;  %v9963_v42 = vunpack.c.h.b16 %v9875_v62  ;;  %v18606_v4 = vld [vmem:[#allocation38_spill] sm:$0xff]  ;;  %8973 = vst [vmem:[#allocation3 + $0x224] sm:$0xf] %v8865_v32 }
 0x52c   : > { %7786 = vst [vmem:[#allocation3 + $0x220] sm:$0xf] %v7712_v14  ;;  %v11411_v33 = vadd.f32 %v18034_v39, %v11322_v45  ;;  %v11149_v36 = vadd.f32 %v18059_v1, %v18606_v4  ;;  %v9878_v10 = vsel %vm1326_vm10, %v18607_v31, %v9786_v7  ;;  %v13465_v39 = vor.u32 %v14039_v11, %v13462_v18  ;;  %v9376_v14 = vpop.permute.xlu1 %9375  ;;  %v18155_v32 = vpop.f32.mrf.mxu1 }
 0x52d   : > { %v8391_v40 = vsel %vm1326_vm10, %v7979_v52, %v8312_v20  ;;  %v10010_v51 = vpack.c.b16 %v9962_v21, %v9962_v21  ;;  %v10011_v46 = vpack.c.b16 %v9963_v42, %v9963_v42  ;;  %9549 = vst [vmem:[#allocation3 + $0x214] sm:$0xf] %v9485_v43  ;;  %v9964_v17 = vunpack.c.l.b16 %v9878_v10  ;;  %v18149_v43 = vpop.f32.mrf.mxu3 }
 0x52e   : > { %v8473_v25 = vunpack.c.l.b16 %v8391_v40  ;;  %v8474_v13 = vunpack.c.h.b16 %v8391_v40  ;;  %v11485_v37 = vmul.f32 %v17910_v57, %v11411_v33  ;;  %v13469_v6 = vor.u32 %v14042_v28, %v13468_v38  ;;  %9550 = vst [vmem:[#allocation3 + $0x228] sm:$0xf] %v9486_v63  ;;  %v7401_v63 = vpop.permute.xlu0 %7400 }
 0x52f   : > { %v13127_v26 = vrot.slane %v10010_v51, 9  ;;  %v10112_v9 = vrot.slane %v10011_v46, 5  ;;  %v10012_v22 = vpack.c.b16 %v9964_v17, %v9964_v17  ;;  %v7240_v61 = vunpack.c.l.b16 %v7112_v54  ;;  %v18164_v10 = vpop.f32.mrf.mxu0  ;;  %v18609_v46 = vld [vmem:[#allocation41_spill] sm:$0xff] }
 0x530   : > { %v8521_v1 = vpack.c.b16 %v8473_v25, %v8473_v25  ;;  %v8522_v23 = vpack.c.b16 %v8474_v13, %v8474_v13  ;;  %v11522_v20 = vadd.f32 %v17917_v8, %v11485_v37  ;;  %11363 = vmatmul.bf16.gmra.mxu3 %v13465_v39  ;;  %v12901_v44 = vor.u32 %v13928_v58, %v12900_v34  ;;  %v18608_v25 = vld [vmem:[#allocation51_spill] sm:$0xff]  ;;  %v9788_v54 = vpop.permute.xlu2 %9787 }
 0x531   : > { %11452 = vmatmul.bf16.gmra.mxu0 %v13469_v6  ;;  %v10113_v2 = vsel %vm15322_vm1, %v13127_v26, %v10112_v9  ;;  %v10114_v0 = vrot.slane %v10112_v9, 4  ;;  %v10115_v52 = vrot.slane %v10012_v22, 5  ;;  %v7273_v47 = vpack.c.b16 %v7240_v61, %v7240_v61  ;;  %v14043_v9 = vld [vmem:[#allocation3 + $0x20c] sm:$0xf]  ;;  %v13480_v22 = vld [vmem:[#allocation3 + $0x210] sm:$0xf] }
 0x532   : > { %v8867_v35 = vshrl.u32 %v8521_v1, 16  ;;  %v8870_v29 = vshll.u32 %v8521_v1, 16  ;;  %v8876_v30 = vshll.u32 %v8522_v23, 16  ;;  %v8880_v7 = vshrl.u32 %v8522_v23, 16  ;;  %11554 = vst.msk [vmem:[%s14417_s20 + $0x38] sm:$0xff] %vm1326_vm10, %v11522_v20  ;;  %v14349_v23 = vld [vmem:[#allocation2 + $0xc0] sm:$0xff] }
 0x533   : > { %10189 = vst [vmem:[#allocation3 + $0x218] sm:$0xf] %v10113_v2  ;;  %v10116_v21 = vsel %vm15322_vm1, %v10114_v0, %v10115_v52  ;;  %v7476_v42 = vsel %vm1326_vm10, %v12901_v44, %v7401_v63  ;;  %v7478_v38 = vsel %vm1326_vm10, %v7273_v47, %v7401_v63  ;;  %v18162_v28 = vadd.f32 %v18081_v19, %v11149_v36  ;;  %v14046_v61 = vld [vmem:[#allocation3 + $0x220] sm:$0xf0]  ;;  %v18179_v63 = vld [vmem:[#allocation2 + $0xbc] sm:$0x1] }
 0x534   : > { %v8869_v62 = vrot.slane %v8867_v35, 4  ;;  %v8872_v45 = vrot.slane %v8870_v29, 5  ;;  %v8878_v11 = vrot.slane %v8876_v30, 5  ;;  %v8882_v18 = vrot.slane %v8880_v7, 4  ;;  %10190 = vst [vmem:[#allocation3 + $0x22c] sm:$0xf] %v10116_v21 }
 0x535   : > { %v7558_v4 = vunpack.c.l.b16 %v7476_v42  ;;  %v7559_v31 = vunpack.c.h.b16 %v7476_v42  ;;  %v7560_v34 = vunpack.c.l.b16 %v7478_v38  ;;  %v8393_v13 = vsel %vm1326_vm10, %v18608_v25, %v8314_v16  ;;  %v13474_v16 = vld [vmem:[#allocation3 + $0x21c] sm:$0xf0]  ;;  %v14201_v7 = vld [vmem:[#allocation2 + $0xc0] sm:$0xff]   ;;  %v18181_v2 = vpop.f32.mrf.mxu3 }
 0x536   : > { %v8873_v40 = vor.u32 %v8872_v45, %v8869_v62  ;;  %v8883_v33 = vor.u32 %v8882_v18, %v8878_v11  ;;  %v11325_v51 = vadd.f32 %v18084_v5, %v18125_v24  ;;  %v11152_v58 = vadd.f32 %v18089_v15, %v18609_v46  ;;  %v8316_v45 = vpop.permute.xlu0 %8315  ;;  %v18610_v46 = vld [vmem:[#allocation45_spill] sm:$0xff] }
 0x537   : > { %v7606_v36 = vpack.c.b16 %v7558_v4, %v7558_v4  ;;  %v7607_v37 = vpack.c.b16 %v7559_v31, %v7559_v31  ;;  %v7608_v39 = vpack.c.b16 %v7560_v34, %v7560_v34  ;;  %v8475_v6 = vunpack.c.l.b16 %v8393_v13  ;;  %v18176_v44 = vpop.f32.mrf.mxu2  ;;  %v18193_v4 = vpop.f32.mrf.mxu1 }
 0x538   : > { %v8874_v19 = vrot.slane %v8873_v40, 4  ;;  %v8884_v17 = vrot.slane %v8883_v33, 4  ;;  %v11414_v1 = vadd.f32 %v18067_v41, %v11325_v51  ;;  %v9408_v26 = vsel %vm1326_vm10, %v14349_v23, %v9376_v14  ;;  %v9790_v40 = vpop.permute.xlu1 %9789 }
 0x539   : > { %v12984_v24 = vrot.slane %v7606_v36, 9  ;;  %v7715_v20 = vrot.slane %v7607_v37, 5  ;;  %v9455_v15 = vunpack.c.l.b16 %v9408_v26  ;;  %v7718_v35 = vrot.slane %v7608_v39, 5 }
 0x53a   : > { %v8879_v5 = vsel %vm15312_vm15, %v8874_v19, %v8878_v11  ;;  %v8523_v29 = vpack.c.b16 %v8475_v6, %v8475_v6  ;;  %v11486_v41 = vmul.f32 %v17910_v57, %v11414_v1  ;;  %v9456_v30 = vunpack.c.h.b16 %v9408_v26  ;;  %v18203_v19 = vpop.f32.mrf.mxu0  ;;  %v18611_v6 = vld [vmem:[#allocation35_spill] sm:$0xff]  ;;  %v14044_v26 = vld [vmem:[#allocation3 + $0x214] sm:$0xf] }
 0x53b   : > { %8974 = vst [vmem:[#allocation3 + $0x238] sm:$0xf] %v8879_v5  ;;  %v7716_v0 = vsel %vm15322_vm1, %v12984_v24, %v7715_v20  ;;  %v7717_v52 = vrot.slane %v7715_v20, 4  ;;  %v9487_v47 = vpack.c.b16 %v9455_v15, %v9455_v15  ;;  %v13477_v62 = vor.u32 %v14043_v9, %v13474_v16  ;;  %v13482_v24 = vld [vmem:[#allocation3 + $0x224] sm:$0xf0] }
 0x53c   : > { %7787 = vst [vmem:[#allocation3 + $0x234] sm:$0xf] %v7716_v0  ;;  %v8886_v11 = vshll.u32 %v8523_v29, 16  ;;  %v11523_v18 = vadd.f32 %v17917_v8, %v11486_v41  ;;  %v9488_v14 = vpack.c.b16 %v9456_v30, %v9456_v30  ;;  %v13481_v57 = vor.u32 %v14046_v61, %v13480_v22  ;;  %v18213_v22 = vld [vmem:[%s18387_s2 + $0x10] ss:$0 sm:$0xff] }
 0x53d   : > { %v7719_v21 = vsel %vm15322_vm1, %v7717_v52, %v7718_v35  ;;  %9551 = vst [vmem:[#allocation3 + $0x23c] sm:$0xf] %v9487_v47  ;;  %11190 = vmatmul.bf16.gmra.mxu1 %v13477_v62  ;;  %v8396_v42 = vsel %vm1326_vm10, %v14201_v7, %v8316_v45  ;;  %v18190_v38 = vadd.f32 %v18112_v48, %v11152_v58  ;;  %v7243_v33 = vunpack.c.l.b16 %v18179_v63  ;;  %v13488_v29 = vld [vmem:[#allocation3 + $0x218] sm:$0xf]  ;;  %v13929_v52 = vld [vmem:[#allocation2 + $0xb4] sm:$0xf0]  ;;  %v18218_v47 = vpop.f32.mrf.mxu3 }
 0x53e   : > { %7788 = vst [vmem:[#allocation3 + $0x248] sm:$0xf] %v7719_v21  ;;  %v8888_v8 = vrot.slane %v8886_v11, 5  ;;  %11279 = vmatmul.bf16.gmra.mxu2 %v13481_v57  ;;  %v8476_v31 = vunpack.c.l.b16 %v8396_v42  ;;  %v8477_v34 = vunpack.c.h.b16 %v8396_v42  ;;  %v9881_v25 = vsel %vm1326_vm10, %v17830_v60, %v9788_v54  ;;  %v8318_v54 = vpop.permute.xlu2 %8317  ;;  %v18225_v11 = vld [vmem:[%s18388_s3 + $0x10] ss:$0 sm:$0xff]  ;;  %v7403_v57 = vpop.permute.xlu0 %7402 }
 0x53f   : > { %11555 = vst.msk [vmem:[%s14417_s20 + $0x40] sm:$0xff] %vm1326_vm10, %v11523_v18  ;;  %v9965_v13 = vunpack.c.l.b16 %v9881_v25  ;;  %v9966_v51 = vunpack.c.h.b16 %v9881_v25  ;;  %v11327_v48 = vadd.f32 %v18115_v56, %v18162_v28  ;;  %v11154_v58 = vadd.f32 %v18120_v3, %v18610_v46  ;;  %v18216_v41 = vpop.f32.mrf.mxu2 }
 0x540   : > { %v8889_v36 = vsel %vm15312_vm15, %v8884_v17, %v8888_v8  ;;  %9552 = vst [vmem:[#allocation3 + $0x250] sm:$0xf] %v9488_v14  ;;  %v8524_v37 = vpack.c.b16 %v8476_v31, %v8476_v31  ;;  %v8525_v39 = vpack.c.b16 %v8477_v34, %v8477_v34  ;;  %v9884_v60 = vsel %vm1326_vm10, %v18611_v6, %v9790_v40  ;;  %v12904_v17 = vld [vmem:[#allocation2 + $0xb4] sm:$0xe] }
 0x541   : > { %8975 = vst [vmem:[#allocation3 + $0x24c] sm:$0xf] %v8889_v36  ;;  %v10013_v1 = vpack.c.b16 %v9965_v13, %v9965_v13  ;;  %v10014_v23 = vpack.c.b16 %v9966_v51, %v9966_v51  ;;  %v11416_v56 = vadd.f32 %v18100_v12, %v11327_v48  ;;  %v9967_v28 = vunpack.c.l.b16 %v9884_v60  ;;  %v14047_v12 = vld [vmem:[#allocation3 + $0x228] sm:$0xf0] }
 0x542   : > { %v8891_v3 = vshrl.u32 %v8524_v37, 16  ;;  %v8894_v9 = vshll.u32 %v8524_v37, 16  ;;  %v8900_v16 = vshll.u32 %v8525_v39, 16  ;;  %v8904_v5 = vshrl.u32 %v8525_v39, 16  ;;  %v13500_v31 = vld [vmem:[#allocation3 + $0x238] sm:$0xf] }
 0x543   : > { %v13128_v20 = vrot.slane %v10013_v1, 9  ;;  %v10119_v15 = vrot.slane %v10014_v23, 5  ;;  %v11487_v61 = vmul.f32 %v18213_v22, %v11416_v56  ;;  %v10015_v35 = vpack.c.b16 %v9967_v28, %v9967_v28  ;;  %v14048_v48 = vld [vmem:[#allocation3 + $0x234] sm:$0xf]  ;;  %v18241_v23 = vpop.f32.mrf.mxu0 }
 0x544   : > { %v8893_v30 = vrot.slane %v8891_v3, 4  ;;  %v8896_v7 = vrot.slane %v8894_v9, 5  ;;  %v8902_v63 = vrot.slane %v8900_v16, 5  ;;  %v8906_v0 = vrot.slane %v8904_v5, 4 }
 0x545   : > { %v10120_v62 = vsel %vm15322_vm1, %v13128_v20, %v10119_v15  ;;  %v10121_v45 = vrot.slane %v10119_v15, 4  ;;  %v11524_v18 = vadd.f32 %v18225_v11, %v11487_v61  ;;  %v10122_v14 = vrot.slane %v10015_v35, 5  ;;  %v13494_v46 = vld [vmem:[#allocation3 + $0x244] sm:$0xf0] }
 0x546   : > { %v8897_v21 = vor.u32 %v8896_v7, %v8893_v30  ;;  %v8907_v42 = vor.u32 %v8906_v0, %v8902_v63  ;;  %10191 = vst [vmem:[#allocation3 + $0x240] sm:$0xf] %v10120_v62  ;;  %v13485_v40 = vor.u32 %v14044_v26, %v13482_v24  ;;  %v13489_v8 = vor.u32 %v14047_v12, %v13488_v29  ;;  %v18233_v36 = vpop.f32.mrf.mxu1  ;;  %v9792_v9 = vpop.permute.xlu2 %9791 }
 0x547   : > { %11556 = vst.msk [vmem:[%s14417_s20 + $0x48] sm:$0xff] %vm1326_vm10, %v11524_v18  ;;  %v10123_v34 = vsel %vm15322_vm1, %v10121_v45, %v10122_v14  ;;  %v12905_v25 = vor.u32 %v13929_v52, %v12904_v17  ;;  %v7275_v13 = vpack.c.b16 %v7243_v33, %v7243_v33  ;;  %v11243_v51 = vadd.f32 %v18146_v59, %v11154_v58  ;;  %v18612_v17 = vld [vmem:[#allocation47_spill] sm:$0xff]  ;;  %v9794_v12 = vpop.permute.xlu0 %9793  ;;  %v11336_v52 = vpop.f32.mrf.mxu3 }
 0x548   : > { %v8898_v37 = vrot.slane %v8897_v21, 4  ;;  %10192 = vst [vmem:[#allocation3 + $0x254] sm:$0xf] %v10123_v34  ;;  %11368 = vmatmul.bf16.gmra.mxu3 %v13485_v40  ;;  %11457 = vmatmul.bf16.gmra.mxu0 %v13489_v8  ;;  %v8398_v39 = vsel %vm1326_vm10, %v17740_v50, %v8318_v54  ;;  %v11330_v6 = vadd.f32 %v18149_v43, %v18190_v38  ;;  %v14051_v60 = vld [vmem:[#allocation3 + $0x248] sm:$0xf0]  ;;  %v8908_v59 = vrot.slane %v8907_v42, 4 }
 0x549   : > { %v7481_v1 = vsel %vm1326_vm10, %v12905_v25, %v7403_v57  ;;  %v7483_v33 = vsel %vm1326_vm10, %v7275_v13, %v7403_v57  ;;  %v8478_v58 = vunpack.c.l.b16 %v8398_v39  ;;  %v13497_v38 = vor.u32 %v14048_v48, %v13494_v46  ;;  %v18613_v21 = vld [vmem:[#allocation66_spill] sm:$0xff]  ;;  %v9378_v13 = vpop.permute.xlu1 %9377 }
 0x54a   : > { %v8903_v56 = vsel %vm15312_vm15, %v8898_v37, %v8902_v63  ;;  %v7561_v28 = vunpack.c.l.b16 %v7481_v1  ;;  %v7562_v26 = vunpack.c.h.b16 %v7481_v1  ;;  %v7563_v3 = vunpack.c.l.b16 %v7483_v33  ;;  %v18614_v37 = vld [vmem:[#allocation6_spill] sm:$0xff] }
 0x54b   : > { %8976 = vst [vmem:[#allocation3 + $0x260] sm:$0xf] %v8903_v56  ;;  %v8526_v50 = vpack.c.b16 %v8478_v58, %v8478_v58  ;;  %v11419_v43 = vadd.f32 %v18137_v55, %v11330_v6  ;;  %v13501_v54 = vor.u32 %v14051_v60, %v13500_v31  ;;  %v11157_v20 = vadd.f32 %v18155_v32, %v18612_v17  ;;  %v14049_v6 = vld [vmem:[#allocation3 + $0x23c] sm:$0xf]  ;;  %v13502_v33 = vld [vmem:[#allocation3 + $0x24c] sm:$0xf0] }
 0x54c   : > { %v7609_v16 = vpack.c.b16 %v7561_v28, %v7561_v28  ;;  %v7610_v5 = vpack.c.b16 %v7562_v26, %v7562_v26  ;;  %v7611_v24 = vpack.c.b16 %v7563_v3, %v7563_v3  ;;  %v9887_v35 = vsel %vm1326_vm10, %v17884_v49, %v9792_v9  ;;  %v11250_v30 = vpop.f32.mrf.mxu2  ;;  %v14352_v56 = vld [vmem:[#allocation2 + $0xcc] sm:$0xff] }
 0x54d   : > { %v8910_v15 = vshll.u32 %v8526_v50, 16  ;;  %v11488_v61 = vmul.f32 %v18213_v22, %v11419_v43  ;;  %11195 = vmatmul.bf16.gmra.mxu1 %v13497_v38  ;;  %v11332_v29 = vadd.f32 %v18181_v2, %v11243_v51  ;;  %v9968_v0 = vunpack.c.l.b16 %v9887_v35  ;;  %v13508_v40 = vld [vmem:[#allocation3 + $0x240] sm:$0xf] }
 0x54e   : > { %v12985_v55 = vrot.slane %v7609_v16, 9  ;;  %v7722_v7 = vrot.slane %v7610_v5, 5  ;;  %v7725_v63 = vrot.slane %v7611_v24, 5  ;;  %11284 = vmatmul.bf16.gmra.mxu2 %v13501_v54  ;;  %v9969_v45 = vunpack.c.h.b16 %v9887_v35  ;;  %v18254_v14 = vpop.f32.mrf.mxu1 }
 0x54f   : > { %v8912_v62 = vrot.slane %v8910_v15, 5  ;;  %v11525_v32 = vadd.f32 %v18225_v11, %v11488_v61  ;;  %v11421_v18 = vadd.f32 %v18164_v10, %v11332_v29  ;;  %v10016_v57 = vpack.c.b16 %v9968_v0, %v9968_v0  ;;  %v14052_v8 = vld [vmem:[#allocation3 + $0x250] sm:$0xf0] }
 0x550   : > { %v7723_v49 = vsel %vm15322_vm1, %v12985_v55, %v7722_v7  ;;  %v7724_v2 = vrot.slane %v7722_v7, 4  ;;  %v9890_v42 = vsel %vm1326_vm10, %v18613_v21, %v9794_v12  ;;  %v10017_v34 = vpack.c.b16 %v9969_v45, %v9969_v45  ;;  %v18616_v45 = vld [vmem:[#allocation60_spill] sm:$0xff] }
 0x551   : > { %7789 = vst [vmem:[#allocation3 + $0x25c] sm:$0xf] %v7723_v49  ;;  %v8913_v31 = vsel %vm15312_vm15, %v8908_v59, %v8912_v62  ;;  %v11489_v25 = vmul.f32 %v18213_v22, %v11421_v18  ;;  %v9970_v10 = vunpack.c.l.b16 %v9890_v42  ;;  %v11246_v48 = vadd.f32 %v18176_v44, %v11157_v20 }
 0x552   : > { %v7726_v51 = vsel %vm15322_vm1, %v7724_v2, %v7725_v63  ;;  %8977 = vst [vmem:[#allocation3 + $0x274] sm:$0xf] %v8913_v31  ;;  %v13129_v46 = vrot.slane %v10016_v57, 9  ;;  %v11159_v39 = vadd.f32 %v18193_v4, %v18614_v37  ;;  %v10126_v53 = vrot.slane %v10017_v34, 5  ;;  %v11428_v58 = vpop.f32.mrf.mxu0  ;;  %v18615_v4 = vld [vmem:[#allocation56_spill] sm:$0xff] }
 0x553   : > { %7790 = vst [vmem:[#allocation3 + $0x270] sm:$0xf] %v7726_v51  ;;  %v11526_v60 = vadd.f32 %v18225_v11, %v11489_v25  ;;  %v10018_v1 = vpack.c.b16 %v9970_v10, %v9970_v10  ;;  %v13509_v59 = vor.u32 %v14052_v8, %v13508_v40  ;;  %v9410_v28 = vsel %vm1326_vm10, %v14352_v56, %v9378_v13 }
 0x554   : > { %11557 = vst.msk [vmem:[%s14417_s20 + $0x50] sm:$0xff] %vm1326_vm10, %v11525_v32  ;;  %v11248_v44 = vadd.f32 %v18216_v41, %v11159_v39  ;;  %v11335_v26 = vadd.f32 %v18218_v47, %v11246_v48  ;;  %v11162_v3 = vadd.f32 %v18233_v36, %v18615_v4  ;;  %v10127_v9 = vsel %vm15322_vm1, %v13129_v46, %v10126_v53  ;;  %v11252_v41 = vpop.f32.mrf.mxu2  ;;  %v13520_v36 = vld [vmem:[#allocation3 + $0x260] sm:$0xf]  ;;  %v18617_v46 = vld [vmem:[#allocation37_spill] sm:$0xff] }
 0x555   : > { %v10128_v50 = vrot.slane %v10126_v53, 4  ;;  %11558 = vst.msk [vmem:[%s14417_s20 + $0x58] sm:$0xff] %vm1326_vm10, %v11526_v60  ;;  %v10129_v43 = vrot.slane %v10018_v1, 5  ;;  %v9457_v38 = vunpack.c.l.b16 %v9410_v28  ;;  %v13505_v54 = vor.u32 %v14049_v6, %v13502_v33 }
 0x556   : > { %10193 = vst [vmem:[#allocation3 + $0x268] sm:$0xf] %v10127_v9  ;;  %v9458_v16 = vunpack.c.h.b16 %v9410_v28  ;;  %v11424_v5 = vadd.f32 %v18203_v19, %v11335_v26  ;;  %v11337_v24 = vadd.f32 %v11336_v52, %v11248_v44  ;;  %v11251_v20 = vadd.f32 %v11250_v30, %v11162_v3 }
 0x557   : > { %v10130_v47 = vsel %vm15322_vm1, %v10128_v50, %v10129_v43  ;;  %v9489_v17 = vpack.c.b16 %v9457_v38, %v9457_v38  ;;  %v11339_v12 = vpop.f32.mrf.mxu3  ;;  %v11164_v18 = vadd.f32 %v18254_v14, %v18616_v45 }
 0x558   : > { %10194 = vst [vmem:[#allocation3 + $0x27c] sm:$0xf] %v10130_v47  ;;  %11373 = vmatmul.bf16.gmra.mxu3 %v13505_v54  ;;  %11462 = vmatmul.bf16.gmra.mxu0 %v13509_v59  ;;  %v9490_v15 = vpack.c.b16 %v9458_v16, %v9458_v16  ;;  %v11490_v61 = vmul.f32 %v18213_v22, %v11424_v5  ;;  %v14053_v35 = vld [vmem:[#allocation3 + $0x25c] sm:$0xf]  ;;  %v11166_v27 = vpop.f32.mrf.mxu1 }
 0x559   : > { %v11426_v29 = vadd.f32 %v18241_v23, %v11337_v24  ;;  %9553 = vst [vmem:[#allocation3 + $0x264] sm:$0xf] %v9489_v17  ;;  %v14056_v19 = vld [vmem:[#allocation3 + $0x270] sm:$0xf0]  ;;  %v11340_v55 = vadd.f32 %v11339_v12, %v11251_v20  ;;  %v11253_v2 = vadd.f32 %v11252_v41, %v11164_v18  ;;  %v11167_v37 = vadd.f32 %v11166_v27, %v18617_v46  ;;  %v18619_v54 = vld [vmem:[#allocation43_spill] sm:$0xff] }
 0x55a   : > { %9554 = vst [vmem:[#allocation3 + $0x278] sm:$0xf] %v9490_v15  ;;  %v11527_v7 = vadd.f32 %v18225_v11, %v11490_v61  ;;  %v13514_v30 = vld [vmem:[#allocation3 + $0x26c] sm:$0xf0]  ;;  %v13521_v63 = vor.u32 %v14056_v19, %v13520_v36  ;;  %v11430_v32 = vpop.f32.mrf.mxu0 }
 0x55b   : > { %v11491_v0 = vmul.f32 %v18213_v22, %v11426_v29  ;;  %v13517_v52 = vor.u32 %v14053_v35, %v13514_v30  ;;  %v11429_v62 = vadd.f32 %v11428_v58, %v11340_v55  ;;  %v18618_v58 = vld [vmem:[#allocation39_spill] sm:$0xff]  ;;  %v18620_v35 = vld [vmem:[#allocation4_spill] sm:$0xff] }
 0x55c   : > { %11559 = vst.msk [vmem:[%s14417_s20 + $0x60] sm:$0xff] %vm1326_vm10, %v11527_v7 }
 0x55d   : > { %v11528_v23 = vadd.f32 %v18225_v11, %v11491_v0  ;;  %11200 = vmatmul.bf16.gmra.mxu1 %v13517_v52  ;;  %v11492_v49 = vmul.f32 %v18213_v22, %v11429_v62  ;;  %v13528_v21 = vld [vmem:[#allocation3 + $0x268] sm:$0xf] }
 0x55e   : > { %11289 = vmatmul.bf16.gmra.mxu2 %v13521_v63  ;;  %v11255_v40 = vpop.f32.mrf.mxu2 }
 0x55f   : > { %11560 = vst.msk [vmem:[%s14417_s20 + $0x68] sm:$0xff] %vm1326_vm10, %v11528_v23  ;;  %v11529_v57 = vadd.f32 %v18225_v11, %v11492_v49  ;;  %v14057_v42 = vld [vmem:[#allocation3 + $0x278] sm:$0xf0]  ;;  %v11341_v8 = vpop.f32.mrf.mxu3  ;;  %v11256_v6 = vadd.f32 %v11255_v40, %v11167_v37  ;;  %v18621_v23 = vld [vmem:[#allocation49_spill] sm:$0xff] }
 0x560   : > { %v14054_v31 = vld [vmem:[#allocation3 + $0x264] sm:$0xf]  ;;  %v11342_v25 = vadd.f32 %v11341_v8, %v11253_v2  ;;  %v11168_v14 = vpop.f32.mrf.mxu1  ;;  %v13529_v51 = vor.u32 %v14057_v42, %v13528_v21  ;;  %v18622_v8 = vld [vmem:[#allocation53_spill] sm:$0xff] }
 0x561   : > { %v13522_v34 = vld [vmem:[#allocation3 + $0x274] sm:$0xf0]  ;;  %11561 = vst.msk [vmem:[%s14417_s20 + $0x70] sm:$0xff] %vm1326_vm10, %v11529_v57  ;;  %v11169_v56 = vadd.f32 %v11168_v14, %v18618_v58 }
 0x562   : > { %v11431_v10 = vadd.f32 %v11430_v32, %v11342_v25  ;;  %v13525_v13 = vor.u32 %v14054_v31, %v13522_v34  ;;  %v11433_v48 = vpop.f32.mrf.mxu0 }
 0x564   : > { %v11493_v39 = vmul.f32 %v18213_v22, %v11431_v10 }
 0x566   : > { %v11530_v53 = vadd.f32 %v18225_v11, %v11493_v39  ;;  %v11257_v33 = vpop.f32.mrf.mxu2 }
 0x567   : > { %v11344_v60 = vpop.f32.mrf.mxu3  ;;  %v11258_v4 = vadd.f32 %v11257_v33, %v11169_v56 }
 0x568   : > { %11378 = vmatmul.bf16.gmra.mxu3 %v13525_v13  ;;  %11467 = vmatmul.bf16.gmra.mxu0 %v13529_v51  ;;  %11562 = vst.msk [vmem:[%s14417_s20 + $0x78] sm:$0xff] %vm1326_vm10, %v11530_v53  ;;  %v11345_v1 = vadd.f32 %v11344_v60, %v11256_v6 }
 0x56a   : > { %v11434_v59 = vadd.f32 %v11433_v48, %v11345_v1  ;;  %v11435_v26 = vpop.f32.mrf.mxu0  ;;  %v18623_v1 = vld [vmem:[#allocation57_spill] sm:$0xff] }
 0x56c   : > { %v11494_v28 = vmul.f32 %v18213_v22, %v11434_v59  ;;  %v11171_v44 = vpop.f32.mrf.mxu1 }
 0x56d   : > { %v11172_v16 = vadd.f32 %v11171_v44, %v18619_v54 }
 0x56e   : > { %v11531_v3 = vadd.f32 %v18225_v11, %v11494_v28 }
 0x56f   : > { %v11346_v9 = vpop.f32.mrf.mxu3 }
 0x570   : > { %11563 = vst.msk [vmem:[%s14417_s20 + $0x80] sm:$0xff] %vm1326_vm10, %v11531_v3  ;;  %v11347_v50 = vadd.f32 %v11346_v9, %v11258_v4  ;;  %v18624_v3 = vld [vmem:[#allocation61_spill] sm:$0xff] }
 0x572   : > { %v11436_v43 = vadd.f32 %v11435_v26, %v11347_v50 }
 0x573   : > { %v11438_v17 = vpop.f32.mrf.mxu0 }
 0x574   : > { %v11260_v38 = vpop.f32.mrf.mxu2  ;;  %v11495_v5 = vmul.f32 %v18213_v22, %v11436_v43  ;;  %v11173_v24 = vpop.f32.mrf.mxu1 }
 0x575   : > { %v11261_v41 = vadd.f32 %v11260_v38, %v11172_v16  ;;  %v11174_v29 = vadd.f32 %v11173_v24, %v18620_v35 }
 0x576   : > { %v11532_v47 = vadd.f32 %v18225_v11, %v11495_v5 }
 0x577   : > { %v11349_v36 = vpop.f32.mrf.mxu3 }
 0x578   : > { %11564 = vst.msk [vmem:[%s14417_s20 + $0x88] sm:$0xff] %vm1326_vm10, %v11532_v47  ;;  %v11350_v20 = vadd.f32 %v11349_v36, %v11261_v41  ;;  %v18625_v41 = vld [vmem:[#allocation40_spill] sm:$0xff] }
 0x57a   : > { %v11439_v15 = vadd.f32 %v11438_v17, %v11350_v20 }
 0x57b   : > { %v11440_v7 = vpop.f32.mrf.mxu0 }
 0x57c   : > { %v11262_v61 = vpop.f32.mrf.mxu2  ;;  %v11496_v12 = vmul.f32 %v18213_v22, %v11439_v15 }
 0x57d   : > { %v11263_v19 = vadd.f32 %v11262_v61, %v11174_v29 }
 0x57e   : > { %v11533_v55 = vadd.f32 %v18225_v11, %v11496_v12  ;;  %v11176_v27 = vpop.f32.mrf.mxu1 }
 0x57f   : > { %v11351_v30 = vpop.f32.mrf.mxu3  ;;  %v11177_v45 = vadd.f32 %v11176_v27, %v18621_v23 }
 0x580   : > { %11565 = vst.msk [vmem:[%s14417_s20 + $0x90] sm:$0xff] %vm1326_vm10, %v11533_v55  ;;  %v11352_v63 = vadd.f32 %v11351_v30, %v11263_v19  ;;  %v18626_v55 = vld [vmem:[#allocation5_spill] sm:$0xff] }
 0x582   : > { %v11441_v0 = vadd.f32 %v11440_v7, %v11352_v63 }
 0x584   : > { %v11497_v52 = vmul.f32 %v18213_v22, %v11441_v0 }
 0x586   : > { %v11265_v62 = vpop.f32.mrf.mxu2  ;;  %v11534_v32 = vadd.f32 %v18225_v11, %v11497_v52  ;;  %v11178_v18 = vpop.f32.mrf.mxu1 }
 0x587   : > { %v11443_v49 = vpop.f32.mrf.mxu0  ;;  %v11266_v2 = vadd.f32 %v11265_v62, %v11177_v45  ;;  %v11179_v31 = vadd.f32 %v11178_v18, %v18622_v8 }
 0x588   : > { %11566 = vst.msk [vmem:[%s14417_s20 + $0x98] sm:$0xff] %vm1326_vm10, %v11534_v32 }
 0x58a   : > { %v11354_v57 = vpop.f32.mrf.mxu3 }
 0x58b   : > { %v11355_v21 = vadd.f32 %v11354_v57, %v11266_v2 }
 0x58d   : > { %v11444_v42 = vadd.f32 %v11443_v49, %v11355_v21  ;;  %v18627_v21 = vld [vmem:[#allocation46_spill] sm:$0xff] }
 0x58e   : > { %v11267_v40 = vpop.f32.mrf.mxu2 }
 0x58f   : > { %v11498_v34 = vmul.f32 %v18213_v22, %v11444_v42  ;;  %v11268_v25 = vadd.f32 %v11267_v40, %v11179_v31  ;;  %v11445_v13 = vpop.f32.mrf.mxu0 }
 0x591   : > { %v11535_v10 = vadd.f32 %v18225_v11, %v11498_v34 }
 0x592   : > { %v11181_v14 = vpop.f32.mrf.mxu1  ;;  %v11356_v51 = vpop.f32.mrf.mxu3 }
 0x593   : > { %11567 = vst.msk [vmem:[%s14417_s20 + $0xa0] sm:$0xff] %vm1326_vm10, %v11535_v10  ;;  %v11357_v48 = vadd.f32 %v11356_v51, %v11268_v25  ;;  %v11182_v33 = vadd.f32 %v11181_v14, %v18623_v1 }
 0x595   : > { %v11446_v46 = vadd.f32 %v11445_v13, %v11357_v48  ;;  %v18628_v13 = vld [vmem:[#allocation50_spill] sm:$0xff] }
 0x597   : > { %v11499_v37 = vmul.f32 %v18213_v22, %v11446_v46 }
 0x599   : > { %v11536_v6 = vadd.f32 %v18225_v11, %v11499_v37 }
 0x59a   : > { %v11270_v39 = vpop.f32.mrf.mxu2  ;;  %v11183_v53 = vpop.f32.mrf.mxu1 }
 0x59b   : > { %11568 = vst.msk [vmem:[%s14417_s20 + $0xa8] sm:$0xff] %vm1326_vm10, %v11536_v6  ;;  %v11271_v59 = vadd.f32 %v11270_v39, %v11182_v33  ;;  %v11184_v9 = vadd.f32 %v11183_v53, %v18624_v3  ;;  %v18629_v33 = vld [vmem:[#allocation54_spill] sm:$0xff] }
 0x59d   : > { %v11448_v60 = vpop.f32.mrf.mxu0 }
 0x5a2   : > { %v11272_v58 = vpop.f32.mrf.mxu2 }
 0x5a3   : > { %v11359_v56 = vpop.f32.mrf.mxu3  ;;  %v11186_v4 = vpop.f32.mrf.mxu1  ;;  %v11273_v43 = vadd.f32 %v11272_v58, %v11184_v9 }
 0x5a4   : > { %v11360_v28 = vadd.f32 %v11359_v56, %v11271_v59  ;;  %v11187_v47 = vadd.f32 %v11186_v4, %v18625_v41 }
 0x5a5   : > { %v11450_v26 = vpop.f32.mrf.mxu0 }
 0x5a6   : > { %v11449_v44 = vadd.f32 %v11448_v60, %v11360_v28 }
 0x5a8   : > { %v11500_v50 = vmul.f32 %v18213_v22, %v11449_v44 }
 0x5aa   : > { %v11537_v38 = vadd.f32 %v18225_v11, %v11500_v50  ;;  %v18630_v50 = vld [vmem:[#allocation58_spill] sm:$0xff] }
 0x5ab   : > { %v11361_v54 = vpop.f32.mrf.mxu3  ;;  %v11275_v5 = vpop.f32.mrf.mxu2 }
 0x5ac   : > { %11569 = vst.msk [vmem:[%s14417_s20 + $0xb0] sm:$0xff] %vm1326_vm10, %v11537_v38  ;;  %v11362_v16 = vadd.f32 %v11361_v54, %v11273_v43  ;;  %v11188_v20 = vpop.f32.mrf.mxu1  ;;  %v11276_v15 = vadd.f32 %v11275_v5, %v11187_v47 }
 0x5ad   : > { %v11189_v27 = vadd.f32 %v11188_v20, %v18626_v55  ;;  %v18631_v20 = vld [vmem:[#allocation62_spill] sm:$0xff] }
 0x5ae   : > { %v11451_v24 = vadd.f32 %v11450_v26, %v11362_v16  ;;  %v11453_v36 = vpop.f32.mrf.mxu0 }
 0x5b0   : > { %v11501_v17 = vmul.f32 %v18213_v22, %v11451_v24 }
 0x5b2   : > { %v11538_v61 = vadd.f32 %v18225_v11, %v11501_v17 }
 0x5b3   : > { %v11364_v35 = vpop.f32.mrf.mxu3  ;;  %v11277_v19 = vpop.f32.mrf.mxu2 }
 0x5b4   : > { %11570 = vst.msk [vmem:[%s14417_s20 + $0xb8] sm:$0xff] %vm1326_vm10, %v11538_v61  ;;  %v11365_v29 = vadd.f32 %v11364_v35, %v11276_v15  ;;  %v11278_v30 = vadd.f32 %v11277_v19, %v11189_v27 }
 0x5b6   : > { %v11454_v12 = vadd.f32 %v11453_v36, %v11365_v29  ;;  %v11455_v0 = vpop.f32.mrf.mxu0 }
 0x5b8   : > { %v11502_v7 = vmul.f32 %v18213_v22, %v11454_v12 }
 0x5ba   : > { %v11539_v63 = vadd.f32 %v18225_v11, %v11502_v7  ;;  %v11191_v52 = vpop.f32.mrf.mxu1 }
 0x5bb   : > { %v11366_v62 = vpop.f32.mrf.mxu3  ;;  %v11192_v42 = vadd.f32 %v11191_v52, %v18627_v21 }
 0x5bc   : > { %11571 = vst.msk [vmem:[%s14417_s20 + $0xc0] sm:$0xff] %vm1326_vm10, %v11539_v63  ;;  %v11367_v32 = vadd.f32 %v11366_v62, %v11278_v30  ;;  %v18632_v63 = vld [vmem:[#allocation65_spill] sm:$0xff] }
 0x5be   : > { %v11456_v23 = vadd.f32 %v11455_v0, %v11367_v32 }
 0x5c0   : > { %v11503_v45 = vmul.f32 %v18213_v22, %v11456_v23 }
 0x5c1   : > { %v11280_v18 = vpop.f32.mrf.mxu2 }
 0x5c2   : > { %v11540_v49 = vadd.f32 %v18225_v11, %v11503_v45  ;;  %v11193_v2 = vpop.f32.mrf.mxu1  ;;  %v11281_v8 = vadd.f32 %v11280_v18, %v11192_v42 }
 0x5c3   : > { %v11194_v51 = vadd.f32 %v11193_v2, %v18628_v13 }
 0x5c4   : > { %11572 = vst.msk [vmem:[%s14417_s20 + $0xc8] sm:$0xff] %vm1326_vm10, %v11540_v49 }
 0x5c5   : > { %v11458_v57 = vpop.f32.mrf.mxu0 }
 0x5c9   : > { %v11282_v40 = vpop.f32.mrf.mxu2 }
 0x5ca   : > { %v11196_v14 = vpop.f32.mrf.mxu1  ;;  %v11283_v37 = vadd.f32 %v11282_v40, %v11194_v51 }
 0x5cb   : > { %v11369_v31 = vpop.f32.mrf.mxu3  ;;  %v11197_v59 = vadd.f32 %v11196_v14, %v18629_v33 }
 0x5cc   : > { %v11370_v34 = vadd.f32 %v11369_v31, %v11281_v8 }
 0x5cd   : > { %v11460_v25 = vpop.f32.mrf.mxu0 }
 0x5ce   : > { %v11459_v10 = vadd.f32 %v11458_v57, %v11370_v34 }
 0x5d0   : > { %v11504_v48 = vmul.f32 %v18213_v22, %v11459_v10 }
 0x5d1   : > { %v11285_v46 = vpop.f32.mrf.mxu2 }
 0x5d2   : > { %v11541_v39 = vadd.f32 %v18225_v11, %v11504_v48  ;;  %v11198_v56 = vpop.f32.mrf.mxu1  ;;  %v11286_v28 = vadd.f32 %v11285_v46, %v11197_v59 }
 0x5d3   : > { %v11371_v6 = vpop.f32.mrf.mxu3  ;;  %v11199_v43 = vadd.f32 %v11198_v56, %v18630_v50 }
 0x5d4   : > { %11573 = vst.msk [vmem:[%s14417_s20 + $0xd0] sm:$0xff] %vm1326_vm10, %v11541_v39  ;;  %v11372_v53 = vadd.f32 %v11371_v6, %v11283_v37 }
 0x5d5   : > { %v11463_v1 = vpop.f32.mrf.mxu0 }
 0x5d6   : > { %v11461_v60 = vadd.f32 %v11460_v25, %v11372_v53 }
 0x5d8   : > { %v11505_v58 = vmul.f32 %v18213_v22, %v11461_v60 }
 0x5d9   : > { %v11287_v26 = vpop.f32.mrf.mxu2 }
 0x5da   : > { %v11542_v44 = vadd.f32 %v18225_v11, %v11505_v58  ;;  %v11288_v16 = vadd.f32 %v11287_v26, %v11199_v43  ;;  %v11201_v24 = vpop.f32.mrf.mxu1 }
 0x5db   : > { %v11374_v4 = vpop.f32.mrf.mxu3  ;;  %v11202_v15 = vadd.f32 %v11201_v24, %v18631_v20 }
 0x5dc   : > { %11574 = vst.msk [vmem:[%s14417_s20 + $0xd8] sm:$0xff] %vm1326_vm10, %v11542_v44  ;;  %v11375_v3 = vadd.f32 %v11374_v4, %v11286_v28 }
 0x5dd   : > { %v11465_v54 = vpop.f32.mrf.mxu0 }
 0x5de   : > { %v11464_v9 = vadd.f32 %v11463_v1, %v11375_v3 }
 0x5e0   : > { %v11506_v38 = vmul.f32 %v18213_v22, %v11464_v9 }
 0x5e1   : > { %v11290_v17 = vpop.f32.mrf.mxu2 }
 0x5e2   : > { %v11543_v5 = vadd.f32 %v18225_v11, %v11506_v38  ;;  %v11291_v35 = vadd.f32 %v11290_v17, %v11202_v15  ;;  %v11203_v27 = vpop.f32.mrf.mxu1 }
 0x5e3   : > { %v11376_v41 = vpop.f32.mrf.mxu3  ;;  %v11204_v0 = vadd.f32 %v11203_v27, %v18632_v63 }
 0x5e4   : > { %11575 = vst.msk [vmem:[%s14417_s20 + $0xe0] sm:$0xff] %vm1326_vm10, %v11543_v5  ;;  %v11377_v47 = vadd.f32 %v11376_v41, %v11288_v16 }
 0x5e5   : > { %v11468_v12 = vpop.f32.mrf.mxu0 }
 0x5e6   : > { %v11466_v36 = vadd.f32 %v11465_v54, %v11377_v47 }
 0x5e8   : > { %v11507_v61 = vmul.f32 %v18213_v22, %v11466_v36 }
 0x5e9   : > { %v11292_v30 = vpop.f32.mrf.mxu2 }
 0x5ea   : > { %v11544_v29 = vadd.f32 %v18225_v11, %v11507_v61  ;;  %v11293_v62 = vadd.f32 %v11292_v30, %v11204_v0 }
 0x5eb   : > { %v11379_v19 = vpop.f32.mrf.mxu3 }
 0x5ec   : > { %11576 = vst.msk [vmem:[%s14417_s20 + $0xe8] sm:$0xff] %vm1326_vm10, %v11544_v29  ;;  %v11380_v55 = vadd.f32 %v11379_v19, %v11291_v35 }
 0x5ed   : > { %v11470_v18 = vpop.f32.mrf.mxu0 }
 0x5ee   : > { %v11469_v7 = vadd.f32 %v11468_v12, %v11380_v55 }
 0x5f0   : > { %v11508_v52 = vmul.f32 %v18213_v22, %v11469_v7 }
 0x5f2   : > { %v11545_v32 = vadd.f32 %v18225_v11, %v11508_v52 }
 0x5f3   : > { %v11381_v23 = vpop.f32.mrf.mxu3 }
 0x5f4   : > { %11577 = vst.msk [vmem:[%s14417_s20 + $0xf0] sm:$0xff] %vm1326_vm10, %v11545_v32  ;;  %v11382_v45 = vadd.f32 %v11381_v23, %v11293_v62 }
 0x5f6   : > { %v11471_v49 = vadd.f32 %v11470_v18, %v11382_v45 }
 0x5f8   : > { %v11509_v2 = vmul.f32 %v18213_v22, %v11471_v49 }
 0x5fa   : > { %v11546_v57 = vadd.f32 %v18225_v11, %v11509_v2 }
 0x5fc   : > { %11578 = vst.msk [vmem:[%s14417_s20 + $0xf8] sm:$0xff] %vm1326_vm10, %v11546_v57 }
 0x5fd PF: > { %s14_s15 = sadd.s32 1, %s14363_s15  }
 0x5fe   : > { %p11_p7 = scmp.ge.s32.totalorder %s14_s15, 4  }
 0x600   :  { %13 = sbr.rel (!%p11_p7) target bundleno = 1 (0x1), region = 97 }

</bundles_post_ra>
